<compile_context>
chip_gen: v5e
topology: v5e:2x2
jax: 0.10.0
libtpu: 0.0.40
codegen_flags: <defaults>
</compile_context>

<pallas_src>
import jax
import jax.numpy as jnp
from jax import lax
from jax.experimental import pallas as pl
from jax.experimental.pallas import tpu as pltpu


def _round_up(x, m):
    return (x + m - 1) // m * m


def lstm_fusion_kernel(x_ref, e_ref, h0_ref, c0_ref,
                       wih_ref, whh_ref, b_ref,
                       wfh_ref, wfe_ref, bf_ref,
                       out_ref, xg_scr):
    """One batch-tile of the LSTM recurrence + fusion linear head.

    x_ref   : (T*TB, F)  bf16  time-major rows for this batch tile
    e_ref   : (TB, E)    f32   env factors
    h0/c0   : (TB, H)    f32   initial states
    wih_ref : (F, 4H)    bf16  input->gates, gate cols reordered to [i, f, o, g]
    whh_ref : (H, 4H)    bf16  hidden->gates, same order
    b_ref   : (1, 4H)    f32   b_ih + b_hh, same order
    wfh_ref : (OUT, H)   f32   fusion weight, hidden part
    wfe_ref : (OUT, E)   f32   fusion weight, env part
    bf_ref  : (1, OUT)   f32   fusion bias
    out_ref : (TB, OUT)  f32
    xg_scr  : (T*TB, 4H) f32   scratch: x @ W_ih + b (flat; row t*TB + i)
    """
    TB, H = h0_ref.shape
    H4 = 4 * H
    H3 = 3 * H
    T = x_ref.shape[0] // TB

    # ---- Prologue: input projection hoisted off the serial chain -----------
    # One (T*TB, F) @ (F, 4H) bf16 matmul (f32 accumulate), bias folded in,
    # stored to flat VMEM scratch (no in-kernel reshape).
    xg_scr[...] = (jnp.dot(x_ref[...], wih_ref[...],
                           preferred_element_type=jnp.float32) + b_ref[...])

    # Loop-invariant operands hoisted out of the recurrence.
    whh = whh_ref[...]                                   # bf16 (H, 4H), vreg-resident
    lane = lax.broadcasted_iota(jnp.int32, (TB, H4), 1)  # hoisted (no per-step bcast)
    is_sig = lane < H3                                   # [i|f|o] -> sigmoid, [g] -> tanh

    # ---- Recurrence: h, c carried as register values -----------------------
    def step(t, carry):
        h, c = carry                                     # f32 (TB, H)
        row0 = pl.multiple_of(t * TB, TB)
        gates = xg_scr[pl.ds(row0, TB), :] + jnp.dot(
            h.astype(whh.dtype), whh, preferred_element_type=jnp.float32)
        # Full-vreg activations: one sigmoid + one tanh EUP push over all 4H
        # lanes, lane-mask select; no sub-vreg slicing before the EUP.
        act = jnp.where(is_sig, jax.nn.sigmoid(gates), jnp.tanh(gates))
        i_g = act[:, 0 * H:1 * H]
        f_g = act[:, 1 * H:2 * H]
        o_g = act[:, 2 * H:H3]
        g_g = act[:, H3:H4]
        c_new = f_g * c + i_g * g_g
        h_new = o_g * jnp.tanh(c_new)
        return h_new, c_new

    # Full unroll only while unrolled live ranges fit the 64-vreg file.
    unroll = True if T <= 16 else 8
    h_fin, _ = lax.fori_loop(0, T, step, (h0_ref[...], c0_ref[...]),
                             unroll=unroll)

    # ---- Fusion head: Linear(concat(h_T, e)) == h@W_h^T + e@W_e^T + b ------
    OUT = wfh_ref.shape[0]
    if OUT == 1:
        # N=1 MXU pass replaced by VPU broadcast-mul + lane reduction.
        out = (jnp.sum(h_fin * wfh_ref[...], axis=-1, keepdims=True)
               + jnp.sum(e_ref[...] * wfe_ref[...], axis=-1, keepdims=True)
               + bf_ref[...])
    else:
        out = (lax.dot_general(h_fin, wfh_ref[...], (((1,), (1,)), ((), ())),
                               preferred_element_type=jnp.float32)
               + lax.dot_general(e_ref[...], wfe_ref[...], (((1,), (1,)), ((), ())),
                                 preferred_element_type=jnp.float32)
               + bf_ref[...])
    out_ref[...] = out


def lstm_fusion_forward(input_x, params, *, time_series_len, hidden_size,
                        h0, c0, batch_tile=128):
    """Trace-time layout plumbing in JAX; the hot path runs in the Pallas kernel."""
    B, F, L = input_x.shape
    T = time_series_len
    H = hidden_size
    E = L - T

    w_ih, w_hh, b_ih, b_hh, w_fc, b_fc = params
    OUT = w_fc.shape[0]

    # Batch tile: fill the MXU M dimension (up to 128 rows), multiple of 8
    # sublanes; grid over the tiles ("parallel" -> both v7x TensorCores).
    TB = min(batch_tile, _round_up(B, 8))
    B_pad = _round_up(B, TB)
    nb = B_pad // TB
    pad = B_pad - B

    # x: (B, F, T) -> (T, B, F)  (== input_x[:, :, :T].permute(2, 0, 1))
    x = jnp.transpose(input_x[:, :, :T], (2, 0, 1)).astype(jnp.float32)
    # e: env slots, channel 0 only (matches env_factor_vec[:, :1, :].view(B, -1))
    e = input_x[:, 0, T:].astype(jnp.float32)
    h0 = h0.astype(jnp.float32)
    c0 = c0.astype(jnp.float32)
    if pad:
        x = jnp.pad(x, ((0, 0), (0, pad), (0, 0)))
        e = jnp.pad(e, ((0, pad), (0, 0)))
        h0 = jnp.pad(h0, ((0, pad), (0, 0)))
        c0 = jnp.pad(c0, ((0, pad), (0, 0)))

    # Re-layout so each batch tile owns a contiguous (T*TB, F) slab:
    # (T, B_pad, F) -> (nb, T*TB, F).  Wrapper-side plumbing; kernel never reshapes.
    x_tiles = (x.reshape(T, nb, TB, F)
                 .transpose(1, 0, 2, 3)
                 .reshape(nb, T * TB, F)
                 .astype(jnp.bfloat16))

    def reorder_gates(w):
        # PyTorch gate order along 4H is (i, f, g, o); reorder to (i, f, o, g) so
        # lanes [0, 3H) take sigmoid and [3H, 4H) take tanh in one pass each.
        i, f, g, o = jnp.split(w, 4, axis=-1)
        return jnp.concatenate([i, f, o, g], axis=-1)

    wih = reorder_gates(w_ih.T).astype(jnp.bfloat16)             # (F, 4H)
    whh = reorder_gates(w_hh.T).astype(jnp.bfloat16)             # (H, 4H)
    bias = reorder_gates((b_ih + b_hh).reshape(1, 4 * H)).astype(jnp.float32)
    wfh = w_fc[:, :H].astype(jnp.float32)                        # (OUT, H)
    wfe = w_fc[:, H:].astype(jnp.float32)                        # (OUT, E)
    bf = b_fc.reshape(1, OUT).astype(jnp.float32)

    def _replicated(shape):
        nd = len(shape)
        return pl.BlockSpec(shape, lambda b: (0,) * nd)

    in_specs = [
        pl.BlockSpec((None, T * TB, F), lambda b: (b, 0, 0)),    # x batch tile
        pl.BlockSpec((TB, E), lambda b: (b, 0)),                 # e
        pl.BlockSpec((TB, H), lambda b: (b, 0)),                 # h0
        pl.BlockSpec((TB, H), lambda b: (b, 0)),                 # c0
        _replicated((F, 4 * H)),                                 # W_ih
        _replicated((H, 4 * H)),                                 # W_hh
        _replicated((1, 4 * H)),                                 # bias
        _replicated((OUT, H)),                                   # fusion W (hidden)
        _replicated((OUT, E)),                                   # fusion W (env)
        _replicated((1, OUT)),                                   # fusion bias
    ]
    out_specs = pl.BlockSpec((TB, OUT), lambda b: (b, 0))

    # Rough per-step VMEM budget; raise the scoped limit only when the
    # conservative default (16 MiB on v5e) would be exceeded at scale.
    scratch_bytes = T * TB * 4 * H * 4
    stream_bytes = 2 * (T * TB * F * 2 + TB * (E + 2 * H + OUT) * 4)
    weight_bytes = (F + H) * 4 * H * 2 + (4 * H + OUT * (H + E + 1)) * 4
    est_vmem = scratch_bytes + stream_bytes + weight_bytes
    compiler_kwargs = dict(dimension_semantics=("parallel",))
    if est_vmem > 12 * (1 << 20):
        compiler_kwargs["vmem_limit_bytes"] = min(2 * est_vmem, 64 * (1 << 20))

    out = pl.pallas_call(
        lstm_fusion_kernel,
        out_shape=jax.ShapeDtypeStruct((B_pad, OUT), jnp.float32),
        grid_spec=pltpu.PrefetchScalarGridSpec(
            num_scalar_prefetch=0,
            grid=(nb,),
            in_specs=in_specs,
            out_specs=out_specs,
            scratch_shapes=[pltpu.VMEM((T * TB, 4 * H), jnp.float32)],
        ),
        compiler_params=pltpu.CompilerParams(**compiler_kwargs),
    )(x_tiles, e, h0, c0, wih, whh, bias, wfh, wfe, bf)

    out = out[:B]
    if OUT == 1:
        out = out.reshape(-1)                                    # res.view(-1)
    return out


def reference_forward(input_x, params, *, time_series_len, hidden_size, h0, c0,
                      matmul_dtype=jnp.float32):
    """Pure-JAX reference mirroring the torch semantics.

    matmul_dtype=float32  -> exact torch-style f32 math.
    matmul_dtype=bfloat16 -> mirrors the kernel's bf16 MXU operands
                             (f32 accumulation, f32 elementwise).
    """
    B, F, L = input_x.shape
    T, H = time_series_len, hidden_size
    x = jnp.transpose(input_x[:, :, :T], (2, 0, 1)).astype(jnp.float32)
    e = input_x[:, 0, T:].astype(jnp.float32)
    w_ih, w_hh, b_ih, b_hh, w_fc, b_fc = params
    wih = w_ih.T.astype(matmul_dtype)
    whh = w_hh.T.astype(matmul_dtype)
    bias = (b_ih + b_hh).reshape(1, 4 * H)

    def step(carry, x_t):
        h, c = carry
        gates = (jnp.dot(x_t.astype(matmul_dtype), wih,
                         preferred_element_type=jnp.float32)
                 + jnp.dot(h.astype(matmul_dtype), whh,
                           preferred_element_type=jnp.float32)
                 + bias)
        i = jax.nn.sigmoid(gates[:, 0 * H:1 * H])
        f = jax.nn.sigmoid(gates[:, 1 * H:2 * H])
        g = jnp.tanh(gates[:, 2 * H:3 * H])
        o = jax.nn.sigmoid(gates[:, 3 * H:4 * H])
        c = f * c + i * g
        h = o * jnp.tanh(c)
        return (h, c), None

    (h, _), _ = lax.scan(step, (h0, c0), x)
    res = jnp.concatenate([h, e], axis=1) @ w_fc.T + b_fc
    return res.reshape(-1)


if __name__ == "__main__":
    # Deterministic config: input_feature=8, time_series_len=8, env_factor_num=3,
    # lstm_hidden_size=32, output_size=1.  Batch=256 so the per-step matmul
    # carries 128 MXU rows per tile and the grid has 2 parallel tiles (v7x 2-TC).
    B, F, T, E, H, OUT = 256, 8, 8, 3, 32, 1
    L = T + E

    key = jax.random.PRNGKey(0)
    k_x, k_h, k_c, k1, k2, k3, k4, k5, k6 = jax.random.split(key, 9)

    input_x = jax.random.normal(k_x, (B, F, L), dtype=jnp.float32)

    # Deterministic "random" initial LSTM state (stands in for torch.randn h_0/c_0).
    # TODO(synk): the PyTorch module draws fresh randn(1,B,H) every forward; here
    # the initial state is an explicit deterministic input for reproducibility.
    h0 = jax.random.normal(k_h, (B, H), dtype=jnp.float32)
    c0 = jax.random.normal(k_c, (B, H), dtype=jnp.float32)

    # Parameters (PyTorch shapes), deterministic uniform init.
    s_lstm = 1.0 / jnp.sqrt(H)
    s_fc = 1.0 / jnp.sqrt(H + E)
    w_ih = jax.random.uniform(k1, (4 * H, F), minval=-s_lstm, maxval=s_lstm)
    w_hh = jax.random.uniform(k2, (4 * H, H), minval=-s_lstm, maxval=s_lstm)
    b_ih = jax.random.uniform(k3, (4 * H,), minval=-s_lstm, maxval=s_lstm)
    b_hh = jax.random.uniform(k4, (4 * H,), minval=-s_lstm, maxval=s_lstm)
    w_fc = jax.random.uniform(k5, (OUT, H + E), minval=-s_fc, maxval=s_fc)
    b_fc = jax.random.uniform(k6, (OUT,), minval=-s_fc, maxval=s_fc)
    params = (w_ih, w_hh, b_ih, b_hh, w_fc, b_fc)

    out = lstm_fusion_forward(input_x, params, time_series_len=T,
                              hidden_size=H, h0=h0, c0=c0)
    out = jax.block_until_ready(out)
    assert out.shape == (B,), out.shape

    # Structural check: reference mirroring the kernel's bf16 MXU operands.
    ref_q = reference_forward(input_x, params, time_series_len=T, hidden_size=H,
                              h0=h0, c0=c0, matmul_dtype=jnp.bfloat16)
    assert jnp.allclose(out, ref_q, atol=5e-3, rtol=5e-3), (out, ref_q)

    # Semantic check vs full-f32 torch math (looser tolerance accounts for the
    # intentional bf16 quantization of the MXU operands through the recurrence).
    ref = reference_forward(input_x, params, time_series_len=T, hidden_size=H,
                            h0=h0, c0=c0, matmul_dtype=jnp.float32)
    assert jnp.allclose(out, ref, atol=5e-2, rtol=5e-2), (out, ref)

    print("KERNEL_OK")
</pallas_src>

<mosaic_0001>
module attributes {stable_mosaic.version = 11 : i64} {
  func.func @lstm_fusion_kernel(%arg0: i32, %arg1: memref<1x1024x8xbf16, #tpu.memory_space<vmem>>, %arg2: memref<128x3xf32, #tpu.memory_space<vmem>>, %arg3: memref<128x32xf32, #tpu.memory_space<vmem>>, %arg4: memref<128x32xf32, #tpu.memory_space<vmem>>, %arg5: memref<8x128xbf16, #tpu.memory_space<vmem>>, %arg6: memref<32x128xbf16, #tpu.memory_space<vmem>>, %arg7: memref<1x128xf32, #tpu.memory_space<vmem>>, %arg8: memref<1x32xf32, #tpu.memory_space<vmem>>, %arg9: memref<1x3xf32, #tpu.memory_space<vmem>>, %arg10: memref<1x1xf32, #tpu.memory_space<vmem>>, %arg11: memref<128x1xf32, #tpu.memory_space<vmem>>, %arg12: memref<1024x128xf32, #tpu.memory_space<vmem>>) attributes {dimension_semantics = [#tpu.dimension_semantics<parallel>], iteration_bounds = array<i64: 2>, scalar_prefetch = 0 : i64, scratch_operands = 1 : i64, tpu.core_type = #tpu.core_type<tc>, window_params = [{transform_indices = @transform_0, window_bounds = array<i64: 1, 1024, 8>}, {transform_indices = @transform_1, window_bounds = array<i64: 128, 3>}, {transform_indices = @transform_2, window_bounds = array<i64: 128, 32>}, {transform_indices = @transform_3, window_bounds = array<i64: 128, 32>}, {pipeline_mode = #tpu.pipeline_mode<synchronous>, transform_indices = @transform_4, window_bounds = array<i64: 8, 128>}, {pipeline_mode = #tpu.pipeline_mode<synchronous>, transform_indices = @transform_5, window_bounds = array<i64: 32, 128>}, {pipeline_mode = #tpu.pipeline_mode<synchronous>, transform_indices = @transform_6, window_bounds = array<i64: 1, 128>}, {pipeline_mode = #tpu.pipeline_mode<synchronous>, transform_indices = @transform_7, window_bounds = array<i64: 1, 32>}, {pipeline_mode = #tpu.pipeline_mode<synchronous>, transform_indices = @transform_8, window_bounds = array<i64: 1, 3>}, {pipeline_mode = #tpu.pipeline_mode<synchronous>, transform_indices = @transform_9, window_bounds = array<i64: 1, 1>}, {transform_indices = @transform_10, window_bounds = array<i64: 128, 1>}]} {
    %c0 = arith.constant 0 : index
    %c0_0 = arith.constant 0 : index
    %c0_1 = arith.constant 0 : index
    %0 = vector.load %arg1[%c0, %c0_0, %c0_1] : memref<1x1024x8xbf16, #tpu.memory_space<vmem>>, vector<1x1024x8xbf16>
    %1 = vector.shape_cast %0 : vector<1x1024x8xbf16> to vector<1024x8xbf16>
    %c0_2 = arith.constant 0 : index
    %c0_3 = arith.constant 0 : index
    %2 = vector.load %arg5[%c0_2, %c0_3] : memref<8x128xbf16, #tpu.memory_space<vmem>>, vector<8x128xbf16>
    %cst = arith.constant dense<0.000000e+00> : vector<1024x128xf32>
    %3 = tpu.matmul %1, %2, %cst {dimension_numbers = #tpu.dot_dimension_numbers<[1], [0], [0], [1], [0, 0, 1, 1], [], []>} : vector<1024x8xbf16>, vector<8x128xbf16>, vector<1024x128xf32> -> vector<1024x128xf32>
    %c0_4 = arith.constant 0 : index
    %c0_5 = arith.constant 0 : index
    %4 = vector.load %arg7[%c0_4, %c0_5] : memref<1x128xf32, #tpu.memory_space<vmem>>, vector<1x128xf32>
    %5 = vector.broadcast %4 : vector<1x128xf32> to vector<1024x128xf32>
    %6 = arith.addf %3, %5 : vector<1024x128xf32>
    %c0_6 = arith.constant 0 : index
    %c0_7 = arith.constant 0 : index
    %7 = vector.load %arg12[%c0_6, %c0_7] : memref<1024x128xf32, #tpu.memory_space<vmem>>, vector<1024x128xf32>
    tpu.vector_store %arg12[%c0_6, %c0_7], %6 {strides = array<i32>} : memref<1024x128xf32, #tpu.memory_space<vmem>>, vector<1024x128xf32>,
    %c0_8 = arith.constant 0 : index
    %c0_9 = arith.constant 0 : index
    %8 = vector.load %arg6[%c0_8, %c0_9] : memref<32x128xbf16, #tpu.memory_space<vmem>>, vector<32x128xbf16>
    %9 = tpu.iota {dimensions = array<i32: 1>} : vector<128x128xi32>
    %c96_i32 = arith.constant 96 : i32
    %10 = vector.broadcast %c96_i32 : i32 to vector<128x128xi32>
    %11 = arith.cmpi slt, %9, %10 : vector<128x128xi32>
    %c0_10 = arith.constant 0 : index
    %c0_11 = arith.constant 0 : index
    %12 = vector.load %arg3[%c0_10, %c0_11] : memref<128x32xf32, #tpu.memory_space<vmem>>, vector<128x32xf32>
    %c0_12 = arith.constant 0 : index
    %c0_13 = arith.constant 0 : index
    %13 = vector.load %arg4[%c0_12, %c0_13] : memref<128x32xf32, #tpu.memory_space<vmem>>, vector<128x32xf32>
    %c0_i32 = arith.constant 0 : i32
    %c128_i32 = arith.constant 128 : i32
    %14 = arith.muli %c0_i32, %c128_i32 : i32
    %15 = tpu.assume_multiple %14, 128 : i32
    %16 = arith.index_cast %15 : i32 to index
    %c0_14 = arith.constant 0 : index
    %17 = vector.load %arg12[%16, %c0_14] : memref<1024x128xf32, #tpu.memory_space<vmem>>, vector<128x128xf32>
    %18 = arith.truncf %12 : vector<128x32xf32> to vector<128x32xbf16>
    %cst_15 = arith.constant dense<0.000000e+00> : vector<128x128xf32>
    %19 = tpu.matmul %18, %8, %cst_15 {dimension_numbers = #tpu.dot_dimension_numbers<[1], [0], [0], [1], [0, 0, 1, 1], [], []>} : vector<128x32xbf16>, vector<32x128xbf16>, vector<128x128xf32> -> vector<128x128xf32>
    %20 = arith.addf %17, %19 : vector<128x128xf32>
    %21 = arith.negf %20 : vector<128x128xf32>
    %22 = math.exp %21 : vector<128x128xf32>
    %cst_16 = arith.constant 1.000000e+00 : f32
    %23 = vector.broadcast %cst_16 : f32 to vector<128x128xf32>
    %24 = arith.addf %23, %22 : vector<128x128xf32>
    %25 = arith.divf %23, %24 : vector<128x128xf32>
    %26 = math.tanh %20 : vector<128x128xf32>
    %27 = arith.select %11, %25, %26 : vector<128x128xi1>, vector<128x128xf32>
    %28 = vector.extract_strided_slice %27 {offsets = [0, 0], sizes = [128, 32], strides = [1, 1]} : vector<128x128xf32> to vector<128x32xf32>
    %29 = vector.extract_strided_slice %27 {offsets = [0, 32], sizes = [128, 32], strides = [1, 1]} : vector<128x128xf32> to vector<128x32xf32>
    %30 = vector.extract_strided_slice %27 {offsets = [0, 64], sizes = [128, 32], strides = [1, 1]} : vector<128x128xf32> to vector<128x32xf32>
    %31 = vector.extract_strided_slice %27 {offsets = [0, 96], sizes = [128, 32], strides = [1, 1]} : vector<128x128xf32> to vector<128x32xf32>
    %32 = arith.mulf %29, %13 : vector<128x32xf32>
    %33 = arith.mulf %28, %31 : vector<128x32xf32>
    %34 = arith.addf %32, %33 : vector<128x32xf32>
    %35 = math.tanh %34 : vector<128x32xf32>
    %36 = arith.mulf %30, %35 : vector<128x32xf32>
    %c1_i32 = arith.constant 1 : i32
    %c128_i32_17 = arith.constant 128 : i32
    %37 = arith.muli %c1_i32, %c128_i32_17 : i32
    %38 = tpu.assume_multiple %37, 128 : i32
    %39 = arith.index_cast %38 : i32 to index
    %c0_18 = arith.constant 0 : index
    %40 = vector.load %arg12[%39, %c0_18] : memref<1024x128xf32, #tpu.memory_space<vmem>>, vector<128x128xf32>
    %41 = arith.truncf %36 : vector<128x32xf32> to vector<128x32xbf16>
    %cst_19 = arith.constant dense<0.000000e+00> : vector<128x128xf32>
    %42 = tpu.matmul %41, %8, %cst_19 {dimension_numbers = #tpu.dot_dimension_numbers<[1], [0], [0], [1], [0, 0, 1, 1], [], []>} : vector<128x32xbf16>, vector<32x128xbf16>, vector<128x128xf32> -> vector<128x128xf32>
    %43 = arith.addf %40, %42 : vector<128x128xf32>
    %44 = arith.negf %43 : vector<128x128xf32>
    %45 = math.exp %44 : vector<128x128xf32>
    %cst_20 = arith.constant 1.000000e+00 : f32
    %46 = vector.broadcast %cst_20 : f32 to vector<128x128xf32>
    %47 = arith.addf %46, %45 : vector<128x128xf32>
    %48 = arith.divf %46, %47 : vector<128x128xf32>
    %49 = math.tanh %43 : vector<128x128xf32>
    %50 = arith.select %11, %48, %49 : vector<128x128xi1>, vector<128x128xf32>
    %51 = vector.extract_strided_slice %50 {offsets = [0, 0], sizes = [128, 32], strides = [1, 1]} : vector<128x128xf32> to vector<128x32xf32>
    %52 = vector.extract_strided_slice %50 {offsets = [0, 32], sizes = [128, 32], strides = [1, 1]} : vector<128x128xf32> to vector<128x32xf32>
    %53 = vector.extract_strided_slice %50 {offsets = [0, 64], sizes = [128, 32], strides = [1, 1]} : vector<128x128xf32> to vector<128x32xf32>
    %54 = vector.extract_strided_slice %50 {offsets = [0, 96], sizes = [128, 32], strides = [1, 1]} : vector<128x128xf32> to vector<128x32xf32>
    %55 = arith.mulf %52, %34 : vector<128x32xf32>
    %56 = arith.mulf %51, %54 : vector<128x32xf32>
    %57 = arith.addf %55, %56 : vector<128x32xf32>
    %58 = math.tanh %57 : vector<128x32xf32>
    %59 = arith.mulf %53, %58 : vector<128x32xf32>
    %c2_i32 = arith.constant 2 : i32
    %c128_i32_21 = arith.constant 128 : i32
    %60 = arith.muli %c2_i32, %c128_i32_21 : i32
    %61 = tpu.assume_multiple %60, 128 : i32
    %62 = arith.index_cast %61 : i32 to index
    %c0_22 = arith.constant 0 : index
    %63 = vector.load %arg12[%62, %c0_22] : memref<1024x128xf32, #tpu.memory_space<vmem>>, vector<128x128xf32>
    %64 = arith.truncf %59 : vector<128x32xf32> to vector<128x32xbf16>
    %cst_23 = arith.constant dense<0.000000e+00> : vector<128x128xf32>
    %65 = tpu.matmul %64, %8, %cst_23 {dimension_numbers = #tpu.dot_dimension_numbers<[1], [0], [0], [1], [0, 0, 1, 1], [], []>} : vector<128x32xbf16>, vector<32x128xbf16>, vector<128x128xf32> -> vector<128x128xf32>
    %66 = arith.addf %63, %65 : vector<128x128xf32>
    %67 = arith.negf %66 : vector<128x128xf32>
    %68 = math.exp %67 : vector<128x128xf32>
    %cst_24 = arith.constant 1.000000e+00 : f32
    %69 = vector.broadcast %cst_24 : f32 to vector<128x128xf32>
    %70 = arith.addf %69, %68 : vector<128x128xf32>
    %71 = arith.divf %69, %70 : vector<128x128xf32>
    %72 = math.tanh %66 : vector<128x128xf32>
    %73 = arith.select %11, %71, %72 : vector<128x128xi1>, vector<128x128xf32>
    %74 = vector.extract_strided_slice %73 {offsets = [0, 0], sizes = [128, 32], strides = [1, 1]} : vector<128x128xf32> to vector<128x32xf32>
    %75 = vector.extract_strided_slice %73 {offsets = [0, 32], sizes = [128, 32], strides = [1, 1]} : vector<128x128xf32> to vector<128x32xf32>
    %76 = vector.extract_strided_slice %73 {offsets = [0, 64], sizes = [128, 32], strides = [1, 1]} : vector<128x128xf32> to vector<128x32xf32>
    %77 = vector.extract_strided_slice %73 {offsets = [0, 96], sizes = [128, 32], strides = [1, 1]} : vector<128x128xf32> to vector<128x32xf32>
    %78 = arith.mulf %75, %57 : vector<128x32xf32>
    %79 = arith.mulf %74, %77 : vector<128x32xf32>
    %80 = arith.addf %78, %79 : vector<128x32xf32>
    %81 = math.tanh %80 : vector<128x32xf32>
    %82 = arith.mulf %76, %81 : vector<128x32xf32>
    %c3_i32 = arith.constant 3 : i32
    %c128_i32_25 = arith.constant 128 : i32
    %83 = arith.muli %c3_i32, %c128_i32_25 : i32
    %84 = tpu.assume_multiple %83, 128 : i32
    %85 = arith.index_cast %84 : i32 to index
    %c0_26 = arith.constant 0 : index
    %86 = vector.load %arg12[%85, %c0_26] : memref<1024x128xf32, #tpu.memory_space<vmem>>, vector<128x128xf32>
    %87 = arith.truncf %82 : vector<128x32xf32> to vector<128x32xbf16>
    %cst_27 = arith.constant dense<0.000000e+00> : vector<128x128xf32>
    %88 = tpu.matmul %87, %8, %cst_27 {dimension_numbers = #tpu.dot_dimension_numbers<[1], [0], [0], [1], [0, 0, 1, 1], [], []>} : vector<128x32xbf16>, vector<32x128xbf16>, vector<128x128xf32> -> vector<128x128xf32>
    %89 = arith.addf %86, %88 : vector<128x128xf32>
    %90 = arith.negf %89 : vector<128x128xf32>
    %91 = math.exp %90 : vector<128x128xf32>
    %cst_28 = arith.constant 1.000000e+00 : f32
    %92 = vector.broadcast %cst_28 : f32 to vector<128x128xf32>
    %93 = arith.addf %92, %91 : vector<128x128xf32>
    %94 = arith.divf %92, %93 : vector<128x128xf32>
    %95 = math.tanh %89 : vector<128x128xf32>
    %96 = arith.select %11, %94, %95 : vector<128x128xi1>, vector<128x128xf32>
    %97 = vector.extract_strided_slice %96 {offsets = [0, 0], sizes = [128, 32], strides = [1, 1]} : vector<128x128xf32> to vector<128x32xf32>
    %98 = vector.extract_strided_slice %96 {offsets = [0, 32], sizes = [128, 32], strides = [1, 1]} : vector<128x128xf32> to vector<128x32xf32>
    %99 = vector.extract_strided_slice %96 {offsets = [0, 64], sizes = [128, 32], strides = [1, 1]} : vector<128x128xf32> to vector<128x32xf32>
    %100 = vector.extract_strided_slice %96 {offsets = [0, 96], sizes = [128, 32], strides = [1, 1]} : vector<128x128xf32> to vector<128x32xf32>
    %101 = arith.mulf %98, %80 : vector<128x32xf32>
    %102 = arith.mulf %97, %100 : vector<128x32xf32>
    %103 = arith.addf %101, %102 : vector<128x32xf32>
    %104 = math.tanh %103 : vector<128x32xf32>
    %105 = arith.mulf %99, %104 : vector<128x32xf32>
    %c4_i32 = arith.constant 4 : i32
    %c128_i32_29 = arith.constant 128 : i32
    %106 = arith.muli %c4_i32, %c128_i32_29 : i32
    %107 = tpu.assume_multiple %106, 128 : i32
    %108 = arith.index_cast %107 : i32 to index
    %c0_30 = arith.constant 0 : index
    %109 = vector.load %arg12[%108, %c0_30] : memref<1024x128xf32, #tpu.memory_space<vmem>>, vector<128x128xf32>
    %110 = arith.truncf %105 : vector<128x32xf32> to vector<128x32xbf16>
    %cst_31 = arith.constant dense<0.000000e+00> : vector<128x128xf32>
    %111 = tpu.matmul %110, %8, %cst_31 {dimension_numbers = #tpu.dot_dimension_numbers<[1], [0], [0], [1], [0, 0, 1, 1], [], []>} : vector<128x32xbf16>, vector<32x128xbf16>, vector<128x128xf32> -> vector<128x128xf32>
    %112 = arith.addf %109, %111 : vector<128x128xf32>
    %113 = arith.negf %112 : vector<128x128xf32>
    %114 = math.exp %113 : vector<128x128xf32>
    %cst_32 = arith.constant 1.000000e+00 : f32
    %115 = vector.broadcast %cst_32 : f32 to vector<128x128xf32>
    %116 = arith.addf %115, %114 : vector<128x128xf32>
    %117 = arith.divf %115, %116 : vector<128x128xf32>
    %118 = math.tanh %112 : vector<128x128xf32>
    %119 = arith.select %11, %117, %118 : vector<128x128xi1>, vector<128x128xf32>
    %120 = vector.extract_strided_slice %119 {offsets = [0, 0], sizes = [128, 32], strides = [1, 1]} : vector<128x128xf32> to vector<128x32xf32>
    %121 = vector.extract_strided_slice %119 {offsets = [0, 32], sizes = [128, 32], strides = [1, 1]} : vector<128x128xf32> to vector<128x32xf32>
    %122 = vector.extract_strided_slice %119 {offsets = [0, 64], sizes = [128, 32], strides = [1, 1]} : vector<128x128xf32> to vector<128x32xf32>
    %123 = vector.extract_strided_slice %119 {offsets = [0, 96], sizes = [128, 32], strides = [1, 1]} : vector<128x128xf32> to vector<128x32xf32>
    %124 = arith.mulf %121, %103 : vector<128x32xf32>
    %125 = arith.mulf %120, %123 : vector<128x32xf32>
    %126 = arith.addf %124, %125 : vector<128x32xf32>
    %127 = math.tanh %126 : vector<128x32xf32>
    %128 = arith.mulf %122, %127 : vector<128x32xf32>
    %c5_i32 = arith.constant 5 : i32
    %c128_i32_33 = arith.constant 128 : i32
    %129 = arith.muli %c5_i32, %c128_i32_33 : i32
    %130 = tpu.assume_multiple %129, 128 : i32
    %131 = arith.index_cast %130 : i32 to index
    %c0_34 = arith.constant 0 : index
    %132 = vector.load %arg12[%131, %c0_34] : memref<1024x128xf32, #tpu.memory_space<vmem>>, vector<128x128xf32>
    %133 = arith.truncf %128 : vector<128x32xf32> to vector<128x32xbf16>
    %cst_35 = arith.constant dense<0.000000e+00> : vector<128x128xf32>
    %134 = tpu.matmul %133, %8, %cst_35 {dimension_numbers = #tpu.dot_dimension_numbers<[1], [0], [0], [1], [0, 0, 1, 1], [], []>} : vector<128x32xbf16>, vector<32x128xbf16>, vector<128x128xf32> -> vector<128x128xf32>
    %135 = arith.addf %132, %134 : vector<128x128xf32>
    %136 = arith.negf %135 : vector<128x128xf32>
    %137 = math.exp %136 : vector<128x128xf32>
    %cst_36 = arith.constant 1.000000e+00 : f32
    %138 = vector.broadcast %cst_36 : f32 to vector<128x128xf32>
    %139 = arith.addf %138, %137 : vector<128x128xf32>
    %140 = arith.divf %138, %139 : vector<128x128xf32>
    %141 = math.tanh %135 : vector<128x128xf32>
    %142 = arith.select %11, %140, %141 : vector<128x128xi1>, vector<128x128xf32>
    %143 = vector.extract_strided_slice %142 {offsets = [0, 0], sizes = [128, 32], strides = [1, 1]} : vector<128x128xf32> to vector<128x32xf32>
    %144 = vector.extract_strided_slice %142 {offsets = [0, 32], sizes = [128, 32], strides = [1, 1]} : vector<128x128xf32> to vector<128x32xf32>
    %145 = vector.extract_strided_slice %142 {offsets = [0, 64], sizes = [128, 32], strides = [1, 1]} : vector<128x128xf32> to vector<128x32xf32>
    %146 = vector.extract_strided_slice %142 {offsets = [0, 96], sizes = [128, 32], strides = [1, 1]} : vector<128x128xf32> to vector<128x32xf32>
    %147 = arith.mulf %144, %126 : vector<128x32xf32>
    %148 = arith.mulf %143, %146 : vector<128x32xf32>
    %149 = arith.addf %147, %148 : vector<128x32xf32>
    %150 = math.tanh %149 : vector<128x32xf32>
    %151 = arith.mulf %145, %150 : vector<128x32xf32>
    %c6_i32 = arith.constant 6 : i32
    %c128_i32_37 = arith.constant 128 : i32
    %152 = arith.muli %c6_i32, %c128_i32_37 : i32
    %153 = tpu.assume_multiple %152, 128 : i32
    %154 = arith.index_cast %153 : i32 to index
    %c0_38 = arith.constant 0 : index
    %155 = vector.load %arg12[%154, %c0_38] : memref<1024x128xf32, #tpu.memory_space<vmem>>, vector<128x128xf32>
    %156 = arith.truncf %151 : vector<128x32xf32> to vector<128x32xbf16>
    %cst_39 = arith.constant dense<0.000000e+00> : vector<128x128xf32>
    %157 = tpu.matmul %156, %8, %cst_39 {dimension_numbers = #tpu.dot_dimension_numbers<[1], [0], [0], [1], [0, 0, 1, 1], [], []>} : vector<128x32xbf16>, vector<32x128xbf16>, vector<128x128xf32> -> vector<128x128xf32>
    %158 = arith.addf %155, %157 : vector<128x128xf32>
    %159 = arith.negf %158 : vector<128x128xf32>
    %160 = math.exp %159 : vector<128x128xf32>
    %cst_40 = arith.constant 1.000000e+00 : f32
    %161 = vector.broadcast %cst_40 : f32 to vector<128x128xf32>
    %162 = arith.addf %161, %160 : vector<128x128xf32>
    %163 = arith.divf %161, %162 : vector<128x128xf32>
    %164 = math.tanh %158 : vector<128x128xf32>
    %165 = arith.select %11, %163, %164 : vector<128x128xi1>, vector<128x128xf32>
    %166 = vector.extract_strided_slice %165 {offsets = [0, 0], sizes = [128, 32], strides = [1, 1]} : vector<128x128xf32> to vector<128x32xf32>
    %167 = vector.extract_strided_slice %165 {offsets = [0, 32], sizes = [128, 32], strides = [1, 1]} : vector<128x128xf32> to vector<128x32xf32>
    %168 = vector.extract_strided_slice %165 {offsets = [0, 64], sizes = [128, 32], strides = [1, 1]} : vector<128x128xf32> to vector<128x32xf32>
    %169 = vector.extract_strided_slice %165 {offsets = [0, 96], sizes = [128, 32], strides = [1, 1]} : vector<128x128xf32> to vector<128x32xf32>
    %170 = arith.mulf %167, %149 : vector<128x32xf32>
    %171 = arith.mulf %166, %169 : vector<128x32xf32>
    %172 = arith.addf %170, %171 : vector<128x32xf32>
    %173 = math.tanh %172 : vector<128x32xf32>
    %174 = arith.mulf %168, %173 : vector<128x32xf32>
    %c7_i32 = arith.constant 7 : i32
    %c128_i32_41 = arith.constant 128 : i32
    %175 = arith.muli %c7_i32, %c128_i32_41 : i32
    %176 = tpu.assume_multiple %175, 128 : i32
    %177 = arith.index_cast %176 : i32 to index
    %c0_42 = arith.constant 0 : index
    %178 = vector.load %arg12[%177, %c0_42] : memref<1024x128xf32, #tpu.memory_space<vmem>>, vector<128x128xf32>
    %179 = arith.truncf %174 : vector<128x32xf32> to vector<128x32xbf16>
    %cst_43 = arith.constant dense<0.000000e+00> : vector<128x128xf32>
    %180 = tpu.matmul %179, %8, %cst_43 {dimension_numbers = #tpu.dot_dimension_numbers<[1], [0], [0], [1], [0, 0, 1, 1], [], []>} : vector<128x32xbf16>, vector<32x128xbf16>, vector<128x128xf32> -> vector<128x128xf32>
    %181 = arith.addf %178, %180 : vector<128x128xf32>
    %182 = arith.negf %181 : vector<128x128xf32>
    %183 = math.exp %182 : vector<128x128xf32>
    %cst_44 = arith.constant 1.000000e+00 : f32
    %184 = vector.broadcast %cst_44 : f32 to vector<128x128xf32>
    %185 = arith.addf %184, %183 : vector<128x128xf32>
    %186 = arith.divf %184, %185 : vector<128x128xf32>
    %187 = math.tanh %181 : vector<128x128xf32>
    %188 = arith.select %11, %186, %187 : vector<128x128xi1>, vector<128x128xf32>
    %189 = vector.extract_strided_slice %188 {offsets = [0, 0], sizes = [128, 32], strides = [1, 1]} : vector<128x128xf32> to vector<128x32xf32>
    %190 = vector.extract_strided_slice %188 {offsets = [0, 32], sizes = [128, 32], strides = [1, 1]} : vector<128x128xf32> to vector<128x32xf32>
    %191 = vector.extract_strided_slice %188 {offsets = [0, 64], sizes = [128, 32], strides = [1, 1]} : vector<128x128xf32> to vector<128x32xf32>
    %192 = vector.extract_strided_slice %188 {offsets = [0, 96], sizes = [128, 32], strides = [1, 1]} : vector<128x128xf32> to vector<128x32xf32>
    %193 = arith.mulf %190, %172 : vector<128x32xf32>
    %194 = arith.mulf %189, %192 : vector<128x32xf32>
    %195 = arith.addf %193, %194 : vector<128x32xf32>
    %196 = math.tanh %195 : vector<128x32xf32>
    %197 = arith.mulf %191, %196 : vector<128x32xf32>
    %c8_i32 = arith.constant 8 : i32
    %c0_45 = arith.constant 0 : index
    %c0_46 = arith.constant 0 : index
    %198 = vector.load %arg8[%c0_45, %c0_46] : memref<1x32xf32, #tpu.memory_space<vmem>>, vector<1x32xf32>
    %199 = vector.broadcast %198 : vector<1x32xf32> to vector<128x32xf32>
    %200 = arith.mulf %197, %199 : vector<128x32xf32>
    %cst_47 = arith.constant dense<0.000000e+00> : vector<128xf32>
    %201 = vector.multi_reduction <add>, %200, %cst_47 [1] : vector<128x32xf32> to vector<128xf32>
    %202 = vector.shape_cast %201 : vector<128xf32> to vector<128x1xf32>
    %c0_48 = arith.constant 0 : index
    %c0_49 = arith.constant 0 : index
    %203 = vector.load %arg2[%c0_48, %c0_49] : memref<128x3xf32, #tpu.memory_space<vmem>>, vector<128x3xf32>
    %c0_50 = arith.constant 0 : index
    %c0_51 = arith.constant 0 : index
    %204 = vector.load %arg9[%c0_50, %c0_51] : memref<1x3xf32, #tpu.memory_space<vmem>>, vector<1x3xf32>
    %205 = vector.broadcast %204 : vector<1x3xf32> to vector<128x3xf32>
    %206 = arith.mulf %203, %205 : vector<128x3xf32>
    %cst_52 = arith.constant dense<0.000000e+00> : vector<128xf32>
    %207 = vector.multi_reduction <add>, %206, %cst_52 [1] : vector<128x3xf32> to vector<128xf32>
    %208 = vector.shape_cast %207 : vector<128xf32> to vector<128x1xf32>
    %209 = arith.addf %202, %208 : vector<128x1xf32>
    %c0_53 = arith.constant 0 : index
    %c0_54 = arith.constant 0 : index
    %210 = vector.load %arg10[%c0_53, %c0_54] : memref<1x1xf32, #tpu.memory_space<vmem>>, vector<1x1xf32>
    %211 = vector.broadcast %210 : vector<1x1xf32> to vector<128x1xf32>
    %212 = arith.addf %209, %211 : vector<128x1xf32>
    %c0_55 = arith.constant 0 : index
    %c0_56 = arith.constant 0 : index
    %213 = vector.load %arg11[%c0_55, %c0_56] : memref<128x1xf32, #tpu.memory_space<vmem>>, vector<128x1xf32>
    tpu.vector_store %arg11[%c0_55, %c0_56], %212 {strides = array<i32>} : memref<128x1xf32, #tpu.memory_space<vmem>>, vector<128x1xf32>,
    return
  }
  func.func @transform_0(%arg0: i32) -> (i32, i32, i32) {
    %c0_i32 = arith.constant 0 : i32
    %c0_i32_0 = arith.constant 0 : i32
    %c0_i32_1 = arith.constant 0 : i32
    return %arg0, %c0_i32, %c0_i32_0 : i32, i32, i32
  }
  func.func @transform_1(%arg0: i32) -> (i32, i32) {
    %c0_i32 = arith.constant 0 : i32
    %c0_i32_0 = arith.constant 0 : i32
    return %arg0, %c0_i32 : i32, i32
  }
  func.func @transform_2(%arg0: i32) -> (i32, i32) {
    %c0_i32 = arith.constant 0 : i32
    %c0_i32_0 = arith.constant 0 : i32
    return %arg0, %c0_i32 : i32, i32
  }
  func.func @transform_3(%arg0: i32) -> (i32, i32) {
    %c0_i32 = arith.constant 0 : i32
    %c0_i32_0 = arith.constant 0 : i32
    return %arg0, %c0_i32 : i32, i32
  }
  func.func @transform_4(%arg0: i32) -> (i32, i32) {
    %c0_i32 = arith.constant 0 : i32
    %c0_i32_0 = arith.constant 0 : i32
    %c0_i32_1 = arith.constant 0 : i32
    return %c0_i32, %c0_i32_0 : i32, i32
  }
  func.func @transform_5(%arg0: i32) -> (i32, i32) {
    %c0_i32 = arith.constant 0 : i32
    %c0_i32_0 = arith.constant 0 : i32
    %c0_i32_1 = arith.constant 0 : i32
    return %c0_i32, %c0_i32_0 : i32, i32
  }
  func.func @transform_6(%arg0: i32) -> (i32, i32) {
    %c0_i32 = arith.constant 0 : i32
    %c0_i32_0 = arith.constant 0 : i32
    %c0_i32_1 = arith.constant 0 : i32
    return %c0_i32, %c0_i32_0 : i32, i32
  }
  func.func @transform_7(%arg0: i32) -> (i32, i32) {
    %c0_i32 = arith.constant 0 : i32
    %c0_i32_0 = arith.constant 0 : i32
    %c0_i32_1 = arith.constant 0 : i32
    return %c0_i32, %c0_i32_0 : i32, i32
  }
  func.func @transform_8(%arg0: i32) -> (i32, i32) {
    %c0_i32 = arith.constant 0 : i32
    %c0_i32_0 = arith.constant 0 : i32
    %c0_i32_1 = arith.constant 0 : i32
    return %c0_i32, %c0_i32_0 : i32, i32
  }
  func.func @transform_9(%arg0: i32) -> (i32, i32) {
    %c0_i32 = arith.constant 0 : i32
    %c0_i32_0 = arith.constant 0 : i32
    %c0_i32_1 = arith.constant 0 : i32
    return %c0_i32, %c0_i32_0 : i32, i32
  }
  func.func @transform_10(%arg0: i32) -> (i32, i32) {
    %c0_i32 = arith.constant 0 : i32
    %c0_i32_0 = arith.constant 0 : i32
    return %arg0, %c0_i32 : i32, i32
  }
}

</mosaic_0001>

<bundles_post_ra>
// kernel: tpu_custom_call.1
= control target key start
LH: loop header
LB: loop body
LE: loop exit
PB: predicated region body
PF: predicated region fallthrough
CT: control target
= control target key end

     0   :  { %s9684_s15 = smov 0   ;;  %s12770_s0 = inlined_call_operand.vmem [shape: bf16[2,1024,8], index: 0, kind: input, shape index: {}]   ;;  %s12771_s1 = inlined_call_operand.vmem [shape: f32[256,3], index: 1, kind: input, shape index: {}]   ;;  %s12772_s2 = inlined_call_operand.vmem [shape: f32[256,32], index: 2, kind: input, shape index: {}]   ;;  %s12773_s3 = inlined_call_operand.vmem [shape: f32[256,32], index: 3, kind: input, shape index: {}]   ;;  %s12774_s4 = inlined_call_operand.vmem [shape: bf16[8,128], index: 4, kind: input, shape index: {}]   ;;  %s12775_s5 = inlined_call_operand.vmem [shape: bf16[32,128], index: 5, kind: input, shape index: {}]   ;;  %s12776_s6 = inlined_call_operand.vmem [shape: f32[1,128], index: 6, kind: input, shape index: {}]   ;;  %s12777_s7 = inlined_call_operand.vmem [shape: f32[1,32], index: 7, kind: input, shape index: {}]   ;;  %s12778_s8 = inlined_call_operand.vmem [shape: f32[1,3], index: 8, kind: input, shape index: {}]   ;;  %s12779_s9 = inlined_call_operand.<no memory space> [shape: f32[1,1], index: 9, kind: input, shape index: {}]   ;;  %s12780_s10 = inlined_call_operand.vmem [shape: f32[256,1], index: 10, kind: output, shape index: {}]  }
   0x1   :  { %v15_v0 = vstv %s12779_s9 }
   0x2   :  { %16 = vst [vmem:[#allocation3] sm:$0x1] %v15_v0 }
   0x3 LB: > { %s7960_s16 = sadd.s32 4294967295, %s9622_s15   ;;  %p7964_p0 = scmp.ge.s32.totalorder %s9622_s15, 1  ;;  %s9622_s15 = sphi %s9684_s15, %s22_s15  }
   0x4   : > { %p347_p1 = scmp.lt.s32.totalorder %s9622_s15, 3 }
   0x6   : > { %p348_p2 = pnand %p7964_p0, %p347_p1 }
   0x8   : > { %351 = sbr.rel (%p348_p2) target bundleno = 5701 (0x1645), region = 60 }
   0xd   : > { %v558_v1 = vld [vmem:[%s12774_s4] sm:$0xf]  ;;  %vm1076_vm0 = vcmask 1043456   ;;  %p400_p3 = scmp.lt.s32.totalorder %s7960_s16, 1  ;;  %v9698_v2 = vld [vmem:[%s12775_s5 + $0x8] sm:$0xff]  ;;  %s7967_s20 = sshll.u32 %s7960_s16, 4 }
   0xe   : > { %v1078_v3 = vsel %vm1076_vm0, %v558_v1, 0  ;;  %8566 = vmatpush.bf16.msra.mxu2 %v9698_v2  ;;  %v9705_v4 = vld [vmem:[%s12775_s5] sm:$0xff]  ;;  %p406_p4 = scmp.lt.s32.totalorder %s7967_s20, 31  ;;  %vm883_vm1 = vcmask 64512   ;;  %vm1612_vm2 = vcmask 261120   ;;  %s9624_s13 = smov 32  }
   0xf   : > { %8564 = vmatpush.bf16.msra.mxu1 %v1078_v3  ;;  %s12886_s16 = smov (!%p400_p3, %s7960_s16), 1  ;;  %1087 = vmatpush.bf16.msra.mxu0 %v1078_v3  ;;  %v9786_v40 = vld [vmem:[%s12776_s6] ss:$0 sm:$0xff]  ;;  %s9625_s18 = smov 64  }
  0x10   : > { %s8497_s23 = sshll.u32 %s12886_s16, 9  ;;  %8565 = vmatpush.bf16.msra.mxu3 %v1078_v3  ;;  %s12888_s20 = smov (!%p406_p4, %s7967_s20), 31 }
  0x11   : > { %s9710_s26 = scalar_lea.vmem %s12770_s0, %s8497_s23  ;;  %s9719_s27 = sshll.u32 %s12888_s20, 3 }
  0x12   : > { %v8531_v5 = vld [vmem:[%s9710_s26 + $0x108] sm:$0xff]  ;;  %v8498_v6 = vld [vmem:[%s9710_s26] sm:$0xff]  ;;  %8567 = vmatpush.bf16.msra.mxu2 %v9705_v4  ;;  %s9725_s30 = scalar_lea.vmem %s12772_s2, %s9719_s27  ;;  %v8532_v10 = vld [vmem:[%s9710_s26 + $0x110] sm:$0xff]  ;;  %s9841_s17 = scalar_lea.vmem %s12773_s3, %s9719_s27 }
  0x13   : > { %1643 = vmatpush.bf16.msrb.mxu1 %v9698_v2  ;;  %8231 = vmatmul.msk.bf16.vlgmr.msra.gmra.mxu0 %vm883_vm1, %v8498_v6  ;;  %v1546_v7 = vld [vmem:[%s9725_s30 + $0x10] sm:$0xff]  ;;  %v1547_v8 = vld [vmem:[%s9725_s30 + $0x18] sm:$0xff]  ;;  %v8499_v11 = vld [vmem:[%s9710_s26 + $0x8] sm:$0xff]  ;;  %s12271_s21 = scalar_lea.vmem %s12771_s1, %s9719_s27 }
  0x14   : > { %3199 = vmatpush.bf16.msrb.mxu3 %v9698_v2  ;;  %8264 = vmatmul.msk.bf16.vlgmr.msra.gmra.mxu1 %vm883_vm1, %v8531_v5  ;;  %v1593_v9 = vpack.c.bf16 %v1547_v8, %v1546_v7  ;;  %v1548_v12 = vld [vmem:[%s9725_s30 + $0x20] sm:$0xff]  ;;  %v1549_v13 = vld [vmem:[%s9725_s30 + $0x28] sm:$0xff]  ;;  %v8533_v15 = vld [vmem:[%s9710_s26 + $0x118] sm:$0xff]  ;;  %v1541_v7 = vlaneseq }
  0x15   : > { %v1594_v14 = vpack.c.bf16 %v1549_v13, %v1548_v12  ;;  %v8500_v16 = vld [vmem:[%s9710_s26 + $0x10] sm:$0xff]  ;;  %v1551_v18 = vld [vmem:[%s9725_s30 + $0x38] sm:$0xff]  ;;  %v8534_v20 = vld [vmem:[%s9710_s26 + $0x120] sm:$0xff] }
  0x16   : > { %2453 = vmatpush.bf16.msrb.mxu2 %v9698_v2  ;;  %v1550_v17 = vld [vmem:[%s9725_s30 + $0x30] sm:$0xff]  ;;  %v8501_v21 = vld [vmem:[%s9710_s26 + $0x18] sm:$0xff]  ;;  %v8535_v22 = vld [vmem:[%s9710_s26 + $0x128] sm:$0xff] }
  0x17   : > { %1644 = vmatpush.bf16.msrb.mxu1 %v9705_v4  ;;  %8304 = vmatmul.msk.bf16.vlgmr.msra.gmra.mxu2 %vm1612_vm2, %v1593_v9  ;;  %v1595_v19 = vpack.c.bf16 %v1551_v18, %v1550_v17  ;;  %v8536_v23 = vld [vmem:[%s9710_s26 + $0x130] sm:$0xff]  ;;  %v8537_v24 = vld [vmem:[%s9710_s26 + $0x138] sm:$0xff]  ;;  %v1552_v25 = vld [vmem:[%s9725_s30 + $0x40] sm:$0xff] }
  0x18   : > { %3200 = vmatpush.bf16.msrb.mxu3 %v9705_v4  ;;  %v1553_v26 = vld [vmem:[%s9725_s30 + $0x48] sm:$0xff]  ;;  %v8538_v27 = vld [vmem:[%s9710_s26 + $0x140] sm:$0xff]  ;;  %v1554_v30 = vld [vmem:[%s9725_s30 + $0x50] sm:$0xff] }
  0x19   : > { %v1596_v28 = vpack.c.bf16 %v1553_v26, %v1552_v25  ;;  %v8502_v29 = vld [vmem:[%s9710_s26 + $0x20] sm:$0xff]  ;;  %v1555_v31 = vld [vmem:[%s9725_s30 + $0x58] sm:$0xff]  ;;  %v8539_v32 = vld [vmem:[%s9710_s26 + $0x148] sm:$0xff] }
  0x1a   : > { %2454 = vmatpush.bf16.msrb.mxu2 %v9705_v4  ;;  %v1597_v33 = vpack.c.bf16 %v1555_v31, %v1554_v30  ;;  %v8503_v36 = vld [vmem:[%s9710_s26 + $0x28] sm:$0xff]  ;;  %v8540_v41 = vld [vmem:[%s9710_s26 + $0x150] sm:$0xff]  ;;  %v8541_v56 = vld [vmem:[%s9710_s26 + $0x158] sm:$0xff] }
  0x1b   : > { %3945 = vmatpush.bf16.msra.mxu1 %v9698_v2  ;;  %v8542_v17 = vld [vmem:[%s9710_s26 + $0x160] sm:$0xff] }
  0x1e   : > { %4691 = vmatpush.bf16.msra.mxu2 %v9698_v2 }
  0x1f   : > { %3946 = vmatpush.bf16.msra.mxu1 %v9705_v4 }
  0x22   : > { %4692 = vmatpush.bf16.msra.mxu2 %v9705_v4 }
  0x23   : > { %8232 = vmatmul.msk.bf16.gmra.mxu0 %vm883_vm1, %v8499_v11 }
  0x24   : > { %8265 = vmatmul.msk.bf16.gmra.mxu1 %vm883_vm1, %v8532_v10  ;;  %v9809_v10 = vand.u32 127, %v1541_v7 }
  0x26   : > { %vm1543_vm6 = vcmp.lt.s32.totalorder %v9809_v10, 96 }
  0x27   : > { %8305 = vmatmul.msk.bf16.gmra.mxu2 %vm1612_vm2, %v1594_v14 }
  0x33   : > { %8233 = vmatmul.msk.bf16.gmra.mxu0 %vm883_vm1, %v8500_v16 }
  0x34   : > { %8266 = vmatmul.msk.bf16.gmra.mxu1 %vm883_vm1, %v8533_v15 }
  0x37   : > { %8306 = vmatmul.msk.bf16.gmra.mxu2 %vm1612_vm2, %v1595_v19 }
  0x43   : > { %8234 = vmatmul.msk.bf16.gmra.mxu0 %vm883_vm1, %v8501_v21 }
  0x44   : > { %8267 = vmatmul.msk.bf16.gmra.mxu1 %vm883_vm1, %v8534_v20 }
  0x47   : > { %8307 = vmatmul.msk.bf16.gmra.mxu2 %vm1612_vm2, %v1596_v28 }
  0x53   : > { %8235 = vmatmul.msk.bf16.gmra.mxu0 %vm883_vm1, %v8502_v29 }
  0x54   : > { %8268 = vmatmul.msk.bf16.gmra.mxu1 %vm883_vm1, %v8535_v22 }
  0x57   : > { %8308 = vmatmul.msk.bf16.gmra.mxu2 %vm1612_vm2, %v1597_v33 }
  0x63   : > { %8236 = vmatmul.msk.bf16.gmra.mxu0 %vm883_vm1, %v8503_v36 }
  0x64   : > { %8269 = vmatmul.msk.bf16.gmra.mxu1 %vm883_vm1, %v8536_v23 }
  0x74   : > { %8270 = vmatmul.msk.bf16.gmra.mxu1 %vm883_vm1, %v8537_v24 }
  0x84   : > { %8271 = vmatmul.msk.bf16.gmra.mxu1 %vm883_vm1, %v8538_v27 }
  0x90   : > { %v9773_v35 = vpop.f32.mrf.mxu0 }
  0x91   : > { %v9771_v34 = vpop.f32.mrf.mxu1 }
  0x94   : > { %8272 = vmatmul.msk.bf16.gmra.mxu1 %vm883_vm1, %v8539_v32 }
  0x98   : > { %v9781_v38 = vpop.f32.mrf.mxu0 }
  0x99   : > { %v9779_v37 = vpop.f32.mrf.mxu1 }
  0x9a   : > { %v1651_v39 = vpop.f32.mrf.mxu2 }
  0xa0   : > { %v1094_v43 = vpop.f32.mrf.mxu0 }
  0xa1   : > { %v9789_v42 = vpop.f32.mrf.mxu1  ;;  %v1095_v44 = vadd.f32 %v9786_v40, %v1094_v43 }
  0xa2   : > { %v1653_v46 = vpop.f32.mrf.mxu2 }
  0xa3   : > { %v1688_v45 = vadd.f32 %v1651_v39, %v1095_v44 }
  0xa4   : > { %8273 = vmatmul.msk.bf16.gmra.mxu1 %vm883_vm1, %v8540_v41 }
  0xa5   : > { %v8313_v47 = vmul.f32 -1.442695, %v1688_v45 }
  0xa7   : > { %8582 = vpow2.f32 %v8313_v47  ;;  %v8543_v47 = vld [vmem:[%s9710_s26 + $0x168] sm:$0xff] }
  0xa8   : > { %v1096_v49 = vpop.f32.mrf.mxu0 }
  0xa9   : > { %v9793_v48 = vpop.f32.mrf.mxu1  ;;  %v1097_v50 = vadd.f32 %v9786_v40, %v1096_v49  ;;  %v1561_v49 = vld [vmem:[%s9841_s17 + $0x8] sm:$0xff] }
  0xaa   : > { %v1656_v52 = vpop.f32.mrf.mxu2 }
  0xab   : > { %v1689_v51 = vadd.f32 %v1653_v46, %v1097_v50 }
  0xad   : > { %v8583_v53 = vpop.eup %8582  ;;  %v8314_v54 = vmul.f32 -1.442695, %v1689_v51 }
  0xae   : > { %v1752_v55 = vadd.f32 1.0, %v8583_v53 }
  0xaf   : > { %8584 = vpow2.f32 %v8314_v54 }
  0xb0   : > { %8586 = vrcp.f32 %v1752_v55  ;;  %v1099_v58 = vpop.f32.mrf.mxu0  ;;  %v1807_v8 = vand.u32 2147483648, %v1752_v55  ;;  %vm1801_vm3 = vweird.f32 %v1752_v55  ;;  %v1805_v12 = vand.u32 2147483647, %v1752_v55 }
  0xb1   : > { %v9797_v57 = vpop.f32.mrf.mxu1  ;;  %v1100_v59 = vadd.f32 %v9786_v40, %v1099_v58  ;;  %8588 = vtanh.f32 %v1688_v45 }
  0xb2   : > { %v9803_v62 = vpop.f32.mrf.mxu2  ;;  %v1808_v13 = vor.u32 1.1754944e-38, %v1807_v8  ;;  %vm1806_vm7 = vcmp.eq.f32.partialorder %v1805_v12, 8.507059e+37  ;;  %v1544_v12 = vld [vmem:[%s9725_s30] sm:$0xff] }
  0xb3   : > { %v9801_v60 = vadd.f32 %v1656_v52, %v1100_v59 }
  0xb4   : > { %8274 = vmatmul.msk.bf16.gmra.mxu1 %vm883_vm1, %v8541_v56 }
  0xb5   : > { %v8585_v61 = vpop.eup %8584 }
  0xb6   : > { %v8587_v63 = vpop.eup %8586  ;;  %v1753_v0 = vadd.f32 1.0, %v8585_v61 }
  0xb7   : > { %v1797_v1 = vmul.f32 %v8587_v63, %v1752_v55  ;;  %vm1802_vm4 = vweird.f32 %v8587_v63  ;;  %v8589_v14 = vpop.eup %8588 }
  0xb8   : > { %8590 = vrcp.f32 %v1753_v0  ;;  %v9807_v5 = vpop.f32.mrf.mxu0  ;;  %vm9811_vm5 = vmor %vm1801_vm3, %vm1802_vm4  ;;  %v1822_v27 = vand.u32 2147483648, %v1753_v0  ;;  %vm1816_vm8 = vweird.f32 %v1753_v0  ;;  %v1820_v30 = vand.u32 2147483647, %v1753_v0 }
  0xb9   : > { %v9805_v3 = vpop.f32.mrf.mxu1  ;;  %v1798_v6 = vsub.f32 1.0, %v1797_v1  ;;  %8592 = vtanh.f32 %v1689_v51 }
  0xba   : > { %v1661_v18 = vpop.f32.mrf.mxu2  ;;  %v1823_v31 = vor.u32 1.1754944e-38, %v1822_v27  ;;  %vm1821_vm11 = vcmp.eq.f32.partialorder %v1820_v30, 8.507059e+37  ;;  %v8504_v30 = vld [vmem:[%s9710_s26 + $0x30] sm:$0xff] }
  0xbb   : > { %v1799_v9 = vmul.f32 %v8587_v63, %v1798_v6  ;;  %8237 = vmatmul.msk.bf16.gmra.mxu0 %vm883_vm1, %v8504_v30 }
  0xbd   : > { %v1800_v15 = vadd.f32 %v8587_v63, %v1799_v9  ;;  %v1563_v9 = vld [vmem:[%s9841_s17 + $0x18] sm:$0xff] }
  0xbe   : > { %v8591_v16 = vpop.eup %8590 }
  0xbf   : > { %v1804_v19 = vsel %vm9811_vm5, %v8587_v63, %v1800_v15  ;;  %v1812_v20 = vmul.f32 %v8591_v16, %v1753_v0  ;;  %vm1817_vm9 = vweird.f32 %v8591_v16  ;;  %v8593_v36 = vpop.eup %8592  ;;  %v8544_v0 = vld [vmem:[%s9710_s26 + $0x170] sm:$0xff] }
  0xc0   : > { %v1104_v22 = vpop.f32.mrf.mxu0  ;;  %v1809_v23 = vsel %vm1806_vm7, %v1808_v13, %v1804_v19  ;;  %vm1818_vm10 = vmor %vm1816_vm8, %vm1817_vm9  ;;  %v1545_v13 = vld [vmem:[%s9725_s30 + $0x8] sm:$0xff] }
  0xc1   : > { %v9819_v21 = vpop.f32.mrf.mxu1  ;;  %v1105_v24 = vadd.f32 %v9786_v40, %v1104_v22  ;;  %v9824_v25 = vsel %vm1543_vm6, %v1809_v23, %v8589_v14  ;;  %v1813_v26 = vsub.f32 1.0, %v1812_v20  ;;  %v1592_v14 = vpack.c.bf16 %v1545_v13, %v1544_v12  ;;  %v1556_v20 = vld [vmem:[%s9725_s30 + $0x60] sm:$0xff]  ;;  %v1557_v22 = vld [vmem:[%s9725_s30 + $0x68] sm:$0xff] }
  0xc2   : > { %2138 = vrot.lane.b32.xlu1 %v9824_v25, %s9624_s13 }
  0xc3   : > { %v1692_v28 = vadd.f32 %v1661_v18, %v1105_v24  ;;  %v1814_v29 = vmul.f32 %v8591_v16, %v1813_v26  ;;  %v1663_v18 = vpop.f32.mrf.mxu2  ;;  %v1598_v24 = vpack.c.bf16 %v1557_v22, %v1556_v20 }
  0xc4   : > { %8275 = vmatmul.msk.bf16.gmra.mxu1 %vm883_vm1, %v8542_v17 }
  0xc5   : > { %v8317_v32 = vmul.f32 -1.442695, %v1692_v28  ;;  %v1815_v33 = vadd.f32 %v8591_v16, %v1814_v29  ;;  %8309 = vmatmul.msk.bf16.gmra.mxu2 %vm1612_vm2, %v1598_v24 }
  0xc7   : > { %8594 = vpow2.f32 %v8317_v32  ;;  %v1819_v39 = vsel %vm1818_vm10, %v8591_v16, %v1815_v33 }
  0xc8   : > { %v1824_v43 = vsel %vm1821_vm11, %v1823_v31, %v1819_v39  ;;  %v1106_v17 = vpop.f32.mrf.mxu0 }
  0xc9   : > { %v9829_v41 = vpop.f32.mrf.mxu1  ;;  %v9833_v44 = vsel %vm1543_vm6, %v1824_v43, %v8593_v36 }
  0xca   : > { %2140 = vrot.lane.b32.xlu1 %v9833_v44, %s9624_s13 }
  0xcb   : > { %v1666_v27 = vpop.f32.mrf.mxu2 }
  0xcd   : > { %v8595_v45 = vpop.eup %8594 }
  0xce   : > { %v1756_v46 = vadd.f32 1.0, %v8595_v45 }
  0xd0   : > { %8596 = vrcp.f32 %v1756_v46  ;;  %v1867_v54 = vand.u32 2147483648, %v1756_v46  ;;  %vm1861_vm12 = vweird.f32 %v1756_v46  ;;  %v1865_v56 = vand.u32 2147483647, %v1756_v46  ;;  %v1109_v23 = vpop.f32.mrf.mxu0 }
  0xd1   : > { %v9845_v50 = vpop.f32.mrf.mxu1  ;;  %8598 = vtanh.f32 %v1692_v28  ;;  %v1110_v26 = vadd.f32 %v9786_v40, %v1109_v23 }
  0xd2   : > { %2056 = vrot.lane.b32.xlu1 %v1561_v49, %s9624_s13  ;;  %v1868_v59 = vor.u32 1.1754944e-38, %v1867_v54  ;;  %vm1866_vm15 = vcmp.eq.f32.partialorder %v1865_v56, 8.507059e+37  ;;  %v1102_v49 = vadd.f32 %v9786_v40, %v9807_v5 }
  0xd3   : > { %v1694_v28 = vadd.f32 %v1666_v27, %v1110_v26  ;;  %v9886_v31 = vpop.f32.mrf.mxu2 }
  0xd4   : > { %8276 = vmatmul.msk.bf16.gmra.mxu1 %vm883_vm1, %v8543_v47  ;;  %v8315_v47 = vmul.f32 -1.442695, %v9801_v60  ;;  %v9897_v56 = vadd.f32 %v9803_v62, %v1102_v49 }
  0xd6   : > { %v8597_v51 = vpop.eup %8596 }
  0xd7   : > { %v1857_v52 = vmul.f32 %v8597_v51, %v1756_v46  ;;  %vm1862_vm13 = vweird.f32 %v8597_v51  ;;  %v8599_v63 = vpop.eup %8598 }
  0xd8   : > { %vm1863_vm14 = vmor %vm1861_vm12, %vm1862_vm13 }
  0xd9   : > { %v9849_v53 = vpop.f32.mrf.mxu1  ;;  %v1858_v55 = vsub.f32 1.0, %v1857_v52 }
  0xdb   : > { %v1859_v58 = vmul.f32 %v8597_v51, %v1858_v55  ;;  %v1671_v45 = vpop.f32.mrf.mxu2 }
  0xdd   : > { %v1860_v61 = vadd.f32 %v8597_v51, %v1859_v58 }
  0xdf   : > { %v1864_v1 = vsel %vm1863_vm14, %v8597_v51, %v1860_v61 }
  0xe0   : > { %v1869_v7 = vsel %vm1866_vm15, %v1868_v59, %v1864_v1 }
  0xe1   : > { %v9852_v6 = vpop.f32.mrf.mxu1  ;;  %v9856_v8 = vsel %vm1543_vm6, %v1869_v7, %v8599_v63  ;;  %v1107_v7 = vadd.f32 %v9786_v40, %v1106_v17 }
  0xe2   : > { %2146 = vrot.lane.b32.xlu1 %v9856_v8, %s9624_s13 }
  0xe3   : > { %v9903_v24 = vadd.f32 %v1663_v18, %v1107_v7 }
  0xe4   : > { %8277 = vmatmul.msk.bf16.gmra.mxu1 %vm883_vm1, %v8544_v0  ;;  %v8316_v0 = vmul.f32 -1.442695, %v9897_v56 }
  0xe5   : > { %v8318_v27 = vmul.f32 -1.442695, %v9903_v24 }
  0xe9   : > { %v9862_v11 = vpop.f32.mrf.mxu1 }
  0xea   : > { %12783 = vst [vmem:[#allocation4_spill] sm:$0xff] %v9862_v11  ;;  %2060 = vrot.lane.b32.xlu1 %v1563_v9, %s9624_s13 }
  0xf1   : > { %v9867_v15 = vpop.f32.mrf.mxu1 }
  0xf2   : > { %12784 = vst [vmem:[#allocation5_spill] sm:$0xff] %v9867_v15 }
  0xf4   : > { %8303 = vmatmul.msk.bf16.vlgmr.msrb.gmra.mxu1 %vm1612_vm2, %v1592_v14 }
  0xf5   : > { %6183 = vmatpush.bf16.msrb.mxu1 %v9698_v2  ;;  %v8319_v2 = vmul.f32 -1.442695, %v1694_v28 }
  0xf7   : > { %8600 = vpow2.f32 %v8319_v2 }
  0xf9   : > { %v9871_v16 = vpop.f32.mrf.mxu1  ;;  %6184 = vmatpush.bf16.msrb.mxu1 %v9705_v4  ;;  %v9883_v4 = vpop.f32.mrf.mxu0 }
  0xfa   : > { %12785 = vst [vmem:[#allocation6_spill] sm:$0xff] %v9871_v16 }
  0xfd   : > { %v8601_v32 = vpop.eup %8600 }
  0xfe   : > { %v1758_v36 = vadd.f32 1.0, %v8601_v32  ;;  %v1565_v32 = vld [vmem:[%s9841_s17 + $0x28] sm:$0xff] }
 0x100   : > { %8602 = vrcp.f32 %v1758_v36  ;;  %v1897_v61 = vand.u32 2147483648, %v1758_v36  ;;  %vm1891_vm0 = vweird.f32 %v1758_v36  ;;  %v1895_v5 = vand.u32 2147483647, %v1758_v36 }
 0x101   : > { %v9874_v19 = vpop.f32.mrf.mxu1  ;;  %v1114_v39 = vpop.f32.mrf.mxu0 }
 0x102   : > { %12786 = vst [vmem:[#allocation7_spill] sm:$0xff] %v9874_v19  ;;  %v1115_v43 = vadd.f32 %v9786_v40, %v1114_v39  ;;  %v1898_v62 = vor.u32 1.1754944e-38, %v1897_v61  ;;  %vm1896_vm5 = vcmp.eq.f32.partialorder %v1895_v5, 8.507059e+37 }
 0x104   : > { %v1696_v46 = vadd.f32 %v1671_v45, %v1115_v43 }
 0x106   : > { %v8321_v51 = vmul.f32 -1.442695, %v1696_v46  ;;  %v8603_v54 = vpop.eup %8602 }
 0x107   : > { %v1887_v55 = vmul.f32 %v8603_v54, %v1758_v36  ;;  %vm1892_vm3 = vweird.f32 %v8603_v54 }
 0x108   : > { %8604 = vpow2.f32 %v8321_v51  ;;  %vm1893_vm4 = vmor %vm1891_vm0, %vm1892_vm3 }
 0x109   : > { %v9880_v29 = vpop.f32.mrf.mxu1  ;;  %8606 = vpow2.f32 %v8315_v47  ;;  %v1888_v58 = vsub.f32 1.0, %v1887_v55 }
 0x10a   : > { %12787 = vst [vmem:[#allocation8_spill] sm:$0xff] %v9880_v29  ;;  %8608 = vtanh.f32 %v1694_v28 }
 0x10b   : > { %v1889_v59 = vmul.f32 %v8603_v54, %v1888_v58 }
 0x10d   : > { %v1890_v13 = vadd.f32 %v8603_v54, %v1889_v59 }
 0x10e   : > { %v8605_v63 = vpop.eup %8604 }
 0x10f   : > { %v8607_v1 = vpop.eup %8606  ;;  %v1760_v12 = vadd.f32 1.0, %v8605_v63  ;;  %v1894_v20 = vsel %vm1893_vm4, %v8603_v54, %v1890_v13 }
 0x110   : > { %v8609_v14 = vpop.eup %8608  ;;  %v1899_v22 = vsel %vm1896_vm5, %v1898_v62, %v1894_v20  ;;  %v1754_v23 = vadd.f32 1.0, %v8607_v1 }
 0x111   : > { %v9888_v33 = vpop.f32.mrf.mxu1  ;;  %8610 = vrcp.f32 %v1760_v12  ;;  %v9907_v26 = vsel %vm1543_vm6, %v1899_v22, %v8609_v14  ;;  %v1927_v45 = vand.u32 2147483648, %v1760_v12  ;;  %vm1921_vm7 = vweird.f32 %v1760_v12 }
 0x112   : > { %12788 = vst [vmem:[#allocation9_spill] sm:$0xff] %v9888_v33  ;;  %8612 = vpow2.f32 %v8316_v0  ;;  %2150 = vrot.lane.b32.xlu1 %v9907_v26, %s9624_s13  ;;  %v1925_v49 = vand.u32 2147483647, %v1760_v12  ;;  %v1837_v13 = vand.u32 2147483648, %v1754_v23  ;;  %vm1831_vm11 = vweird.f32 %v1754_v23 }
 0x113   : > { %8614 = vrcp.f32 %v1754_v23 }
 0x114   : > { %8616 = vtanh.f32 %v1696_v46  ;;  %v1928_v46 = vor.u32 1.1754944e-38, %v1927_v45  ;;  %vm1926_vm10 = vcmp.eq.f32.partialorder %v1925_v49, 8.507059e+37  ;;  %v1838_v22 = vor.u32 1.1754944e-38, %v1837_v13 }
 0x115   : > { %8618 = vpow2.f32 %v8318_v27 }
 0x117   : > { %v8611_v17 = vpop.eup %8610 }
 0x118   : > { %v8613_v2 = vpop.eup %8612  ;;  %v1917_v30 = vmul.f32 %v8611_v17, %v1760_v12  ;;  %vm1922_vm8 = vweird.f32 %v8611_v17  ;;  %v1112_v12 = vadd.f32 %v9786_v40, %v9883_v4 }
 0x119   : > { %v9894_v52 = vpop.f32.mrf.mxu1  ;;  %v9915_v18 = vadd.f32 1.0, %v8613_v2  ;;  %v8615_v43 = vpop.eup %8614  ;;  %vm1923_vm9 = vmor %vm1921_vm7, %vm1922_vm8 }
 0x11a   : > { %12789 = vst [vmem:[#allocation10_spill] sm:$0xff] %v9894_v52  ;;  %v1918_v36 = vsub.f32 1.0, %v1917_v30  ;;  %2064 = vrot.lane.b32.xlu1 %v1565_v32, %s9624_s13  ;;  %v8617_v51 = vpop.eup %8616  ;;  %v1827_v58 = vmul.f32 %v8615_v43, %v1754_v23  ;;  %vm1832_vm12 = vweird.f32 %v8615_v43  ;;  %v1695_v4 = vadd.f32 %v9886_v31, %v1112_v12  ;;  %v1567_v30 = vld [vmem:[%s9841_s17 + $0x38] sm:$0xff] }
 0x11b   : > { %8620 = vrcp.f32 %v9915_v18  ;;  %v8619_v59 = vpop.eup %8618  ;;  %vm1833_vm13 = vmor %vm1831_vm11, %vm1832_vm12  ;;  %vm1846_vm15 = vweird.f32 %v9915_v18  ;;  %v1850_v31 = vand.u32 2147483647, %v9915_v18 }
 0x11c   : > { %v1919_v39 = vmul.f32 %v8611_v17, %v1918_v36  ;;  %8622 = vtanh.f32 %v9801_v60  ;;  %v1828_v0 = vsub.f32 1.0, %v1827_v58  ;;  %v1757_v5 = vadd.f32 1.0, %v8619_v59 }
 0x11d   : > { %v1835_v60 = vand.u32 2147483647, %v1754_v23  ;;  %vm1851_vm4 = vcmp.eq.f32.partialorder %v1850_v31, 8.507059e+37 }
 0x11e   : > { %v1920_v47 = vadd.f32 %v8611_v17, %v1919_v39  ;;  %v1829_v1 = vmul.f32 %v8615_v43, %v1828_v0  ;;  %8624 = vrcp.f32 %v1757_v5  ;;  %v8320_v39 = vmul.f32 -1.442695, %v1695_v4 }
 0x11f   : > { %vm1836_vm14 = vcmp.eq.f32.partialorder %v1835_v60, 8.507059e+37  ;;  %8626 = vtanh.f32 %v9897_v56  ;;  %v1882_v0 = vand.u32 2147483648, %v1757_v5  ;;  %vm1876_vm5 = vweird.f32 %v1757_v5 }
 0x120   : > { %v1924_v55 = vsel %vm1923_vm9, %v8611_v17, %v1920_v47  ;;  %v1830_v62 = vadd.f32 %v8615_v43, %v1829_v1  ;;  %8628 = vtanh.f32 %v9903_v24  ;;  %v1880_v24 = vand.u32 2147483647, %v1757_v5 }
 0x121   : > { %v9901_v9 = vpop.f32.mrf.mxu1  ;;  %v1929_v61 = vsel %vm1926_vm10, %v1928_v46, %v1924_v55  ;;  %v8621_v7 = vpop.eup %8620  ;;  %8630 = vpow2.f32 %v8320_v39 }
 0x122   : > { %12790 = vst [vmem:[#allocation11_spill] sm:$0xff] %v9901_v9  ;;  %v9924_v63 = vsel %vm1543_vm6, %v1929_v61, %v8617_v51  ;;  %v8623_v14 = vpop.eup %8622  ;;  %v1834_v17 = vsel %vm1833_vm13, %v8615_v43, %v1830_v62  ;;  %v1842_v27 = vmul.f32 %v8621_v7, %v9915_v18  ;;  %v1852_v43 = vand.u32 2147483648, %v9915_v18 }
 0x123   : > { %2154 = vrot.lane.b32.xlu1 %v9924_v63, %s9624_s13  ;;  %v1839_v2 = vsel %vm1836_vm14, %v1838_v22, %v1834_v17  ;;  %vm1847_vm0 = vweird.f32 %v8621_v7  ;;  %v1883_v62 = vor.u32 1.1754944e-38, %v1882_v0  ;;  %vm1881_vm9 = vcmp.eq.f32.partialorder %v1880_v24, 8.507059e+37 }
 0x124   : > { %v9938_v32 = vsel %vm1543_vm6, %v1839_v2, %v8623_v14  ;;  %v1843_v23 = vsub.f32 1.0, %v1842_v27  ;;  %v8625_v45 = vpop.eup %8624  ;;  %vm1848_vm3 = vmor %vm1846_vm15, %vm1847_vm0  ;;  %v1853_v51 = vor.u32 1.1754944e-38, %v1852_v43  ;;  %v1092_v24 = vadd.f32 %v9786_v40, %v9781_v38 }
 0x125   : > { %2142 = vrot.lane.b32.xlu2 %v9938_v32, %s9624_s13  ;;  %v8627_v47 = vpop.eup %8626  ;;  %v1872_v58 = vmul.f32 %v8625_v45, %v1757_v5  ;;  %vm1877_vm7 = vweird.f32 %v8625_v45 }
 0x126   : > { %v1844_v36 = vmul.f32 %v8621_v7, %v1843_v23  ;;  %v8629_v1 = vpop.eup %8628  ;;  %vm1878_vm8 = vmor %vm1876_vm5, %vm1877_vm7 }
 0x127   : > { %v1873_v18 = vsub.f32 1.0, %v1872_v58  ;;  %v8631_v13 = vpop.eup %8630 }
 0x128   : > { %v1845_v56 = vadd.f32 %v8621_v7, %v1844_v36  ;;  %v1759_v22 = vadd.f32 1.0, %v8631_v13 }
 0x129   : > { %v9912_v28 = vpop.f32.mrf.mxu1  ;;  %v1874_v61 = vmul.f32 %v8625_v45, %v1873_v18 }
 0x12a   : > { %12791 = vst [vmem:[#allocation12_spill] sm:$0xff] %v9912_v28  ;;  %v1849_v46 = vsel %vm1848_vm3, %v8621_v7, %v1845_v56  ;;  %8632 = vrcp.f32 %v1759_v22  ;;  %vm1906_vm10 = vweird.f32 %v1759_v22  ;;  %v1910_v31 = vand.u32 2147483647, %v1759_v22 }
 0x12b   : > { %2068 = vrot.lane.b32.xlu1 %v1567_v30, %s9624_s13  ;;  %v1854_v55 = vsel %vm1851_vm4, %v1853_v51, %v1849_v46  ;;  %v1875_v7 = vadd.f32 %v8625_v45, %v1874_v61  ;;  %8634 = vtanh.f32 %v1695_v4  ;;  %v1090_v61 = vadd.f32 %v9786_v40, %v9773_v35  ;;  %v9987_v35 = vpop.f32.mrf.mxu2 }
 0x12c   : > { %v9951_v59 = vsel %vm1543_vm6, %v1854_v55, %v8627_v47  ;;  %vm1911_vm13 = vcmp.eq.f32.partialorder %v1910_v31, 8.507059e+37 }
 0x12d   : > { %2144 = vrot.lane.b32.xlu2 %v9951_v59, %s9624_s13  ;;  %v1879_v60 = vsel %vm1878_vm8, %v8625_v45, %v1875_v7  ;;  %v1912_v45 = vand.u32 2147483648, %v1759_v22 }
 0x12e   : > { %v1884_v14 = vsel %vm1881_vm9, %v1883_v62, %v1879_v60 }
 0x12f   : > { %v9959_v17 = vsel %vm1543_vm6, %v1884_v14, %v8629_v1  ;;  %v1913_v46 = vor.u32 1.1754944e-38, %v1912_v45 }
 0x130   : > { %v8633_v30 = vpop.eup %8632 }
 0x131   : > { %v9919_v54 = vpop.f32.mrf.mxu1  ;;  %v1902_v36 = vmul.f32 %v8633_v30, %v1759_v22  ;;  %vm1907_vm11 = vweird.f32 %v8633_v30  ;;  %v8635_v47 = vpop.eup %8634 }
 0x132   : > { %12792 = vst [vmem:[#allocation13_spill] sm:$0xff] %v9919_v54  ;;  %vm1908_vm12 = vmor %vm1906_vm10, %vm1907_vm11 }
 0x133   : > { %v1903_v39 = vsub.f32 1.0, %v1902_v36 }
 0x134   : > { %v2139_v2 = vpop.permute.xlu1 %2138 }
 0x135   : > { %2148 = vrot.lane.b32.xlu2 %v9959_v17, %s9624_s13  ;;  %v2184_v5 = vmul.f32 %v2139_v2, %v9824_v25  ;;  %v1904_v43 = vmul.f32 %v8633_v30, %v1903_v39  ;;  %v9983_v2 = vpop.f32.mrf.mxu0  ;;  %v8505_v39 = vld [vmem:[%s9710_s26 + $0x38] sm:$0xff] }
 0x136   : > { %8238 = vmatmul.msk.bf16.gmra.mxu0 %vm883_vm1, %v8505_v39 }
 0x137   : > { %v1905_v56 = vadd.f32 %v8633_v30, %v1904_v43 }
 0x139   : > { %v9930_v20 = vpop.f32.mrf.mxu1  ;;  %v1909_v55 = vsel %vm1908_vm12, %v8633_v30, %v1905_v56  ;;  %v1559_v30 = vld [vmem:[%s9725_s30 + $0x78] sm:$0xff] }
 0x13a   : > { %12793 = vst [vmem:[#allocation14_spill] sm:$0xff] %v9930_v20  ;;  %v1914_v58 = vsel %vm1911_vm13, %v1913_v46, %v1909_v55 }
 0x13b   : > { %v9973_v18 = vsel %vm1543_vm6, %v1914_v58, %v8635_v47 }
 0x13d   : > { %2218 = vrot.lane.b32.xlu2 %v2184_v5, %s9624_s13  ;;  %v1558_v5 = vld [vmem:[%s9725_s30 + $0x70] sm:$0xff]  ;;  %v1119_v47 = vpop.f32.mrf.mxu0 }
 0x13e   : > { %v1599_v36 = vpack.c.bf16 %v1559_v30, %v1558_v5  ;;  %v1120_v55 = vadd.f32 %v9786_v40, %v1119_v47 }
 0x140   : > { %8310 = vmatmul.msk.bf16.gmra.mxu2 %vm1612_vm2, %v1599_v36  ;;  %v2141_v36 = vpop.permute.xlu1 %2140 }
 0x141   : > { %v9946_v49 = vpop.f32.mrf.mxu1 }
 0x142   : > { %12794 = vst [vmem:[#allocation15_spill] sm:$0xff] %v9946_v49 }
 0x145   : > { %2152 = vrot.lane.b32.xlu2 %v9973_v18, %s9624_s13 }
 0x148   : > { %v1676_v58 = vpop.f32.mrf.mxu2 }
 0x149   : > { %v9955_v12 = vpop.f32.mrf.mxu1 }
 0x14a   : > { %12795 = vst [vmem:[#allocation16_spill] sm:$0xff] %v9955_v12 }
 0x150   : > { %v1678_v47 = vpop.f32.mrf.mxu2 }
 0x151   : > { %v9963_v27 = vpop.f32.mrf.mxu1 }
 0x152   : > { %12796 = vst [vmem:[#allocation17_spill] sm:$0xff] %v9963_v27 }
 0x159   : > { %v9967_v23 = vpop.f32.mrf.mxu1 }
 0x15a   : > { %12797 = vst [vmem:[#allocation18_spill] sm:$0xff] %v9967_v23 }
 0x161   : > { %v9969_v51 = vpop.f32.mrf.mxu1 }
 0x162   : > { %12798 = vst [vmem:[#allocation19_spill] sm:$0xff] %v9969_v51 }
 0x169   : > { %v9977_v4 = vpop.f32.mrf.mxu1 }
 0x16a   : > { %12799 = vst [vmem:[#allocation20_spill] sm:$0xff] %v9977_v4 }
 0x171   : > { %v1646_v0 = vpop.f32.mrf.mxu1 }
 0x172   : > { %v1686_v1 = vadd.f32 %v1646_v0, %v1090_v61 }
 0x174   : > { %v8311_v7 = vmul.f32 -1.442695, %v1686_v1 }
 0x176   : > { %8636 = vpow2.f32 %v8311_v7  ;;  %v9993_v7 = vadd.f32 %v1676_v58, %v1120_v55 }
 0x179   : > { %v1648_v13 = vpop.f32.mrf.mxu1 }
 0x17a   : > { %v1687_v62 = vadd.f32 %v1648_v13, %v1092_v24 }
 0x17c   : > { %v8637_v60 = vpop.eup %8636  ;;  %v8312_v14 = vmul.f32 -1.442695, %v1687_v62 }
 0x17d   : > { %v1750_v22 = vadd.f32 1.0, %v8637_v60 }
 0x17e   : > { %8638 = vpow2.f32 %v8312_v14 }
 0x17f   : > { %8640 = vrcp.f32 %v1750_v22  ;;  %v1777_v46 = vand.u32 2147483648, %v1750_v22  ;;  %v1775_v0 = vand.u32 2147483647, %v1750_v22  ;;  %vm1771_vm15 = vweird.f32 %v1750_v22 }
 0x181   : > { %v1778_v60 = vor.u32 1.1754944e-38, %v1777_v46  ;;  %vm1776_vm3 = vcmp.eq.f32.partialorder %v1775_v0, 8.507059e+37 }
 0x184   : > { %v8639_v38 = vpop.eup %8638 }
 0x185   : > { %v8641_v43 = vpop.eup %8640  ;;  %v1751_v45 = vadd.f32 1.0, %v8639_v38 }
 0x186   : > { %v1767_v56 = vmul.f32 %v8641_v43, %v1750_v22  ;;  %vm1772_vm14 = vweird.f32 %v8641_v43 }
 0x187   : > { %8642 = vrcp.f32 %v1751_v45  ;;  %vm1773_vm0 = vmor %vm1771_vm15, %vm1772_vm14  ;;  %v1792_v22 = vand.u32 2147483648, %v1751_v45  ;;  %v1790_v46 = vand.u32 2147483647, %v1751_v45  ;;  %vm1786_vm5 = vweird.f32 %v1751_v45 }
 0x188   : > { %v1768_v31 = vsub.f32 1.0, %v1767_v56  ;;  %8644 = vtanh.f32 %v1686_v1  ;;  %v1121_v56 = vpop.f32.mrf.mxu0 }
 0x189   : > { %8646 = vtanh.f32 %v1687_v62  ;;  %vm1791_vm8 = vcmp.eq.f32.partialorder %v1790_v46, 8.507059e+37 }
 0x18a   : > { %v1769_v61 = vmul.f32 %v8641_v43, %v1768_v31  ;;  %v1122_v31 = vadd.f32 %v9786_v40, %v1121_v56  ;;  %v1562_v56 = vld [vmem:[%s9841_s17 + $0x10] sm:$0xff] }
 0x18c   : > { %v1770_v24 = vadd.f32 %v8641_v43, %v1769_v61  ;;  %v1699_v55 = vadd.f32 %v1678_v47, %v1122_v31  ;;  %v1793_v61 = vor.u32 1.1754944e-38, %v1792_v22 }
 0x18d   : > { %v8643_v13 = vpop.eup %8642 }
 0x18e   : > { %v1774_v14 = vsel %vm1773_vm0, %v8641_v43, %v1770_v24  ;;  %v1782_v5 = vmul.f32 %v8643_v13, %v1751_v45  ;;  %v8645_v30 = vpop.eup %8644  ;;  %vm1787_vm4 = vweird.f32 %v8643_v13  ;;  %v8324_v0 = vmul.f32 -1.442695, %v1699_v55  ;;  %v1560_v45 = vld [vmem:[%s9841_s17] sm:$0xff] }
 0x18f   : > { %v1779_v1 = vsel %vm1776_vm3, %v1778_v60, %v1774_v14  ;;  %vm1788_vm7 = vmor %vm1786_vm5, %vm1787_vm4  ;;  %v8647_v62 = vpop.eup %8646 }
 0x190   : > { %v9997_v39 = vsel %vm1543_vm6, %v1779_v1, %v8645_v30  ;;  %v1783_v38 = vsub.f32 1.0, %v1782_v5  ;;  %8648 = vpow2.f32 %v8324_v0  ;;  %v10006_v5 = vpop.permute.xlu1 %2056 }
 0x191   : > { %2134 = vrot.lane.b32.xlu0 %v9997_v39, %s9624_s13 }
 0x192   : > { %v1784_v43 = vmul.f32 %v8643_v13, %v1783_v38 }
 0x194   : > { %v1785_v58 = vadd.f32 %v8643_v13, %v1784_v43 }
 0x196   : > { %v1789_v24 = vsel %vm1788_vm7, %v8643_v13, %v1785_v58  ;;  %v8649_v30 = vpop.eup %8648 }
 0x197   : > { %v1794_v60 = vsel %vm1791_vm8, %v1793_v61, %v1789_v24  ;;  %v1763_v1 = vadd.f32 1.0, %v8649_v30 }
 0x198   : > { %v10004_v14 = vsel %vm1543_vm6, %v1794_v60, %v8647_v62  ;;  %v10012_v13 = vpop.permute.xlu1 %2146  ;;  %v2185_v62 = vmul.f32 %v2141_v36, %v9833_v44 }
 0x199   : > { %2136 = vrot.lane.b32.xlu0 %v10004_v14, %s9624_s13  ;;  %8650 = vrcp.f32 %v1763_v1  ;;  %v1972_v31 = vand.u32 2147483648, %v1763_v1  ;;  %vm1966_vm9 = vweird.f32 %v1763_v1  ;;  %v1970_v43 = vand.u32 2147483647, %v1763_v1 }
 0x19a   : > { %8652 = vtanh.f32 %v1699_v55 }
 0x19b   : > { %v1973_v58 = vor.u32 1.1754944e-38, %v1972_v31  ;;  %vm1971_vm12 = vcmp.eq.f32.partialorder %v1970_v43, 8.507059e+37 }
 0x19f   : > { %v8651_v38 = vpop.eup %8650 }
 0x1a0   : > { %v1962_v22 = vmul.f32 %v8651_v38, %v1763_v1  ;;  %vm1967_vm10 = vweird.f32 %v8651_v38  ;;  %v10016_v61 = vpop.permute.xlu1 %2060  ;;  %v8653_v24 = vpop.eup %8652 }
 0x1a1   : > { %2054 = vrot.lane.b32.xlu0 %v1560_v45, %s9624_s13  ;;  %vm1968_vm11 = vmor %vm1966_vm9, %vm1967_vm10 }
 0x1a2   : > { %v1963_v47 = vsub.f32 1.0, %v1962_v22 }
 0x1a4   : > { %v1964_v46 = vmul.f32 %v8651_v38, %v1963_v47 }
 0x1a6   : > { %v1965_v0 = vadd.f32 %v8651_v38, %v1964_v46 }
 0x1a8   : > { %v1969_v60 = vsel %vm1968_vm11, %v8651_v38, %v1965_v0  ;;  %v2151_v45 = vpop.permute.xlu1 %2150  ;;  %v2143_v0 = vpop.permute.xlu2 %2142 }
 0x1a9   : > { %2058 = vrot.lane.b32.xlu0 %v1562_v56, %s9624_s13  ;;  %v1974_v30 = vsel %vm1971_vm12, %v1973_v58, %v1969_v60  ;;  %v2190_v1 = vmul.f32 %v2151_v45, %v9907_v26  ;;  %v1117_v56 = vadd.f32 %v9786_v40, %v9983_v2  ;;  %v8323_v58 = vmul.f32 -1.442695, %v9993_v7 }
 0x1aa   : > { %v10022_v55 = vsel %vm1543_vm6, %v1974_v30, %v8653_v24 }
 0x1ab   : > { %2160 = vrot.lane.b32.xlu1 %v10022_v55, %s9624_s13  ;;  %v1697_v36 = vadd.f32 %v9987_v35, %v1117_v56 }
 0x1ad   : > { %v8322_v38 = vmul.f32 -1.442695, %v1697_v36 }
 0x1af   : > { %8654 = vpow2.f32 %v8322_v38 }
 0x1b1   : > { %2220 = vrot.lane.b32.xlu0 %v2185_v62, %s9624_s13 }
 0x1b3   : > { %2230 = vrot.lane.b32.xlu1 %v2190_v1, %s9624_s13  ;;  %v1124_v30 = vpop.f32.mrf.mxu0 }
 0x1b4   : > { %v1125_v2 = vadd.f32 %v9786_v40, %v1124_v30  ;;  %v2145_v30 = vpop.permute.xlu2 %2144 }
 0x1b5   : > { %v8655_v22 = vpop.eup %8654 }
 0x1b6   : > { %v1761_v31 = vadd.f32 1.0, %v8655_v22 }
 0x1b8   : > { %8656 = vrcp.f32 %v1761_v31  ;;  %vm1936_vm13 = vweird.f32 %v1761_v31  ;;  %v1942_v45 = vand.u32 2147483648, %v1761_v31  ;;  %v1940_v38 = vand.u32 2147483647, %v1761_v31 }
 0x1b9   : > { %8658 = vpow2.f32 %v8323_v58 }
 0x1ba   : > { %8660 = vtanh.f32 %v1697_v36  ;;  %vm1941_vm0 = vcmp.eq.f32.partialorder %v1940_v38, 8.507059e+37 }
 0x1bb   : > { %v1126_v36 = vpop.f32.mrf.mxu0 }
 0x1be   : > { %v8657_v47 = vpop.eup %8656 }
 0x1bf   : > { %v1932_v43 = vmul.f32 %v8657_v47, %v1761_v31  ;;  %vm1937_vm14 = vweird.f32 %v8657_v47 }
 0x1c0   : > { %vm1938_vm15 = vmor %vm1936_vm13, %vm1937_vm14 }
 0x1c1   : > { %v1933_v46 = vsub.f32 1.0, %v1932_v43  ;;  %v2186_v43 = vmul.f32 %v2143_v0, %v9938_v32  ;;  %v1564_v0 = vld [vmem:[%s9841_s17 + $0x20] sm:$0xff] }
 0x1c3   : > { %v1934_v60 = vmul.f32 %v8657_v47, %v1933_v46  ;;  %v1681_v35 = vpop.f32.mrf.mxu2 }
 0x1c4   : > { %v10035_v1 = vadd.f32 %v1681_v35, %v1125_v2 }
 0x1c5   : > { %v1935_v56 = vadd.f32 %v8657_v47, %v1934_v60 }
 0x1c7   : > { %v1939_v58 = vsel %vm1938_vm15, %v8657_v47, %v1935_v56  ;;  %v2149_v47 = vpop.permute.xlu2 %2148 }
 0x203   : > { %v2135_v24 = vpop.permute.xlu0 %2134 }
 0x204   : > { %v2182_v62 = vmul.f32 %v2135_v24, %v9997_v39  ;;  %v1943_v24 = vor.u32 1.1754944e-38, %v1942_v45  ;;  %v1683_v45 = vpop.f32.mrf.mxu2 }
 0x206   : > { %2214 = vrot.lane.b32.xlu2 %v2182_v62, %s9624_s13  ;;  %v8659_v62 = vpop.eup %8658  ;;  %v1944_v31 = vsel %vm1941_vm0, %v1943_v24, %v1939_v58  ;;  %v2187_v24 = vmul.f32 %v2145_v30, %v9951_v59 }
 0x207   : > { %v8661_v2 = vpop.eup %8660  ;;  %v1762_v60 = vadd.f32 1.0, %v8659_v62 }
 0x208   : > { %v10043_v35 = vsel %vm1543_vm6, %v1944_v31, %v8661_v2  ;;  %v1568_v2 = vld [vmem:[%s9841_s17 + $0x40] sm:$0xff]  ;;  %v1566_v31 = vld [vmem:[%s9841_s17 + $0x30] sm:$0xff] }
 0x209   : > { %8662 = vrcp.f32 %v1762_v60  ;;  %vm1951_vm3 = vweird.f32 %v1762_v60  ;;  %v1957_v30 = vand.u32 2147483648, %v1762_v60 }
 0x20b   : > { %v2137_v22 = vpop.permute.xlu0 %2136 }
 0x20c   : > { %v2183_v46 = vmul.f32 %v2137_v22, %v10004_v14  ;;  %v1127_v22 = vadd.f32 %v9786_v40, %v1126_v36  ;;  %v2219_v40 = vpop.permute.xlu2 %2218 }
 0x20e   : > { %2222 = vrot.lane.b32.xlu2 %v2186_v43, %s9624_s13  ;;  %2216 = vrot.lane.b32.xlu0 %v2183_v46, %s9624_s13  ;;  %v1701_v56 = vadd.f32 %v1683_v45, %v1127_v22  ;;  %v2188_v46 = vmul.f32 %v10012_v13, %v9856_v8 }
 0x20f   : > { %v8663_v38 = vpop.eup %8662 }
 0x210   : > { %v8326_v43 = vmul.f32 -1.442695, %v1701_v56  ;;  %v1947_v62 = vmul.f32 %v8663_v38, %v1762_v60  ;;  %vm1952_vm4 = vweird.f32 %v8663_v38 }
 0x211   : > { %vm1953_vm5 = vmor %vm1951_vm3, %vm1952_vm4 }
 0x212   : > { %8664 = vpow2.f32 %v8326_v43  ;;  %v1948_v58 = vsub.f32 1.0, %v1947_v62 }
 0x213   : > { %8666 = vtanh.f32 %v9993_v7  ;;  %v2055_v43 = vpop.permute.xlu0 %2054 }
 0x214   : > { %v2153_v22 = vpop.permute.xlu2 %2152 }
 0x215   : > { %v2191_v62 = vmul.f32 %v2153_v22, %v9973_v18 }
 0x216   : > { %2156 = vrot.lane.b32.xlu2 %v10043_v35, %s9624_s13  ;;  %2062 = vrot.lane.b32.xlu0 %v1564_v0, %s9624_s13  ;;  %v1949_v0 = vmul.f32 %v8663_v38, %v1948_v58  ;;  %v1958_v58 = vor.u32 1.1754944e-38, %v1957_v30 }
 0x218   : > { %v8665_v36 = vpop.eup %8664  ;;  %v1950_v45 = vadd.f32 %v8663_v38, %v1949_v0 }
 0x219   : > { %v1765_v13 = vadd.f32 1.0, %v8665_v36 }
 0x21b   : > { %8668 = vrcp.f32 %v1765_v13  ;;  %v2059_v0 = vpop.permute.xlu0 %2058  ;;  %vm1996_vm8 = vweird.f32 %v1765_v13 }
 0x21c   : > { %v2104_v30 = vmul.f32 %v2059_v0, %v9824_v25 }
 0x21e   : > { %2226 = vrot.lane.b32.xlu2 %v2188_v46, %s9624_s13  ;;  %2224 = vrot.lane.b32.xlu0 %v2187_v24, %s9624_s13  ;;  %v1955_v46 = vand.u32 2147483647, %v1762_v60  ;;  %v2189_v24 = vmul.f32 %v2149_v47, %v9959_v17  ;;  %v10071_v22 = vadd.f32 %v2219_v40, %v2104_v30 }
 0x220   : > { %vm1956_vm7 = vcmp.eq.f32.partialorder %v1955_v46, 8.507059e+37  ;;  %8670 = vtanh.f32 %v10071_v22 }
 0x221   : > { %8672 = vtanh.f32 %v1701_v56 }
 0x226   : > { %2070 = vrot.lane.b32.xlu2 %v1568_v2, %s9624_s13  ;;  %2066 = vrot.lane.b32.xlu0 %v1566_v31, %s9624_s13  ;;  %v1954_v2 = vsel %vm1953_vm5, %v8663_v38, %v1950_v45  ;;  %v8667_v31 = vpop.eup %8666  ;;  %v1569_v45 = vld [vmem:[%s9841_s17 + $0x48] sm:$0xff] }
 0x227   : > { %v1959_v36 = vsel %vm1956_vm7, %v1958_v58, %v1954_v2  ;;  %v8669_v60 = vpop.eup %8668  ;;  %v2000_v58 = vand.u32 2147483647, %v1765_v13 }
 0x228   : > { %v10066_v7 = vsel %vm1543_vm6, %v1959_v36, %v8667_v31  ;;  %v1992_v47 = vmul.f32 %v8669_v60, %v1765_v13  ;;  %vm1997_vm9 = vweird.f32 %v8669_v60  ;;  %v8671_v31 = vpop.eup %8670 }
 0x229   : > { %vm1998_vm10 = vmor %vm1996_vm8, %vm1997_vm9  ;;  %vm2001_vm11 = vcmp.eq.f32.partialorder %v2000_v58, 8.507059e+37  ;;  %v8673_v40 = vpop.eup %8672 }
 0x22a   : > { %v1993_v38 = vsub.f32 1.0, %v1992_v47  ;;  %v2065_v47 = vpop.permute.xlu1 %2064 }
 0x22c   : > { %v1994_v46 = vmul.f32 %v8669_v60, %v1993_v38 }
 0x22e   : > { %2232 = vrot.lane.b32.xlu2 %v2191_v62, %s9624_s13  ;;  %2228 = vrot.lane.b32.xlu0 %v2189_v24, %s9624_s13  ;;  %v2002_v24 = vand.u32 2147483648, %v1765_v13  ;;  %v1995_v62 = vadd.f32 %v8669_v60, %v1994_v46  ;;  %v8325_v13 = vmul.f32 -1.442695, %v10035_v1 }
 0x230   : > { %v2003_v2 = vor.u32 1.1754944e-38, %v2002_v24  ;;  %v1999_v36 = vsel %vm1998_vm10, %v8669_v60, %v1995_v62  ;;  %v2102_v60 = vmul.f32 %v2055_v43, %v9997_v39  ;;  %8674 = vpow2.f32 %v8325_v13  ;;  %v2221_v24 = vpop.permute.xlu0 %2220 }
 0x231   : > { %v2105_v62 = vmul.f32 %v10016_v61, %v9833_v44 }
 0x232   : > { %v2004_v0 = vsel %vm2001_vm11, %v2003_v2, %v1999_v36  ;;  %v2155_v38 = vpop.permute.xlu1 %2154 }
 0x233   : > { %v10079_v30 = vsel %vm1543_vm6, %v2004_v0, %v8673_v40  ;;  %v2192_v56 = vmul.f32 %v2155_v38, %v9924_v63  ;;  %v10092_v58 = vadd.f32 %v2221_v24, %v2105_v62  ;;  %v1570_v38 = vld [vmem:[%s9841_s17 + $0x50] sm:$0xff] }
 0x236   : > { %2158 = vrot.lane.b32.xlu0 %v10066_v7, %s9624_s13  ;;  %v8675_v2 = vpop.eup %8674 }
 0x237   : > { %v1764_v43 = vadd.f32 1.0, %v8675_v2 }
 0x239   : > { %vm1981_vm12 = vweird.f32 %v1764_v43 }
 0x23e   : > { %2072 = vrot.lane.b32.xlu0 %v1569_v45, %s9624_s13 }
 0x246   : > { %2314 = vrot.lane.b32.xlu0 %v8671_v31, %s9624_s13 }
 0x24e   : > { %2164 = vrot.lane.b32.xlu0 %v10079_v30, %s9624_s13 }
 0x256   : > { %2234 = vrot.lane.b32.xlu0 %v2192_v56, %s9624_s13 }
 0x260   : > { %v2215_v45 = vpop.permute.xlu2 %2214 }
 0x261   : > { %v10087_v46 = vadd.f32 %v2215_v45, %v2102_v60  ;;  %v2103_v60 = vmul.f32 %v10006_v5, %v10004_v14 }
 0x263   : > { %8676 = vtanh.f32 %v10087_v46 }
 0x264   : > { %8678 = vtanh.f32 %v10092_v58 }
 0x265   : > { %8680 = vrcp.f32 %v1764_v43 }
 0x268   : > { %v2223_v40 = vpop.permute.xlu2 %2222 }
 0x269   : > { %v8677_v31 = vpop.eup %8676 }
 0x26a   : > { %2310 = vrot.lane.b32.xlu1 %v8677_v31, %s9624_s13  ;;  %v8679_v36 = vpop.eup %8678  ;;  %v1987_v31 = vand.u32 2147483648, %v1764_v43 }
 0x26b   : > { %v8681_v0 = vpop.eup %8680 }
 0x26c   : > { %v1977_v56 = vmul.f32 %v8681_v0, %v1764_v43  ;;  %vm1982_vm13 = vweird.f32 %v8681_v0  ;;  %v1988_v5 = vor.u32 1.1754944e-38, %v1987_v31 }
 0x26d   : > { %vm1983_vm14 = vmor %vm1981_vm12, %vm1982_vm13 }
 0x26e   : > { %v1978_v13 = vsub.f32 1.0, %v1977_v56 }
 0x270   : > { %v2157_v61 = vpop.permute.xlu2 %2156  ;;  %v1979_v2 = vmul.f32 %v8681_v0, %v1978_v13 }
 0x271   : > { %v2193_v45 = vmul.f32 %v2157_v61, %v10043_v35 }
 0x272   : > { %2316 = vrot.lane.b32.xlu1 %v8679_v36, %s9624_s13  ;;  %v1980_v36 = vadd.f32 %v8681_v0, %v1979_v2 }
 0x274   : > { %v1984_v4 = vsel %vm1983_vm14, %v8681_v0, %v1980_v36 }
 0x27a   : > { %2074 = vrot.lane.b32.xlu1 %v1570_v38, %s9624_s13  ;;  %v1985_v38 = vand.u32 2147483647, %v1764_v43 }
 0x27c   : > { %vm1986_vm15 = vcmp.eq.f32.partialorder %v1985_v38, 8.507059e+37  ;;  %v2227_v38 = vpop.permute.xlu2 %2226 }
 0x280   : > { %v2217_v24 = vpop.permute.xlu0 %2216 }
 0x281   : > { %v10102_v62 = vadd.f32 %v2217_v24, %v2103_v60  ;;  %v1989_v60 = vsel %vm1986_vm15, %v1988_v5, %v1984_v4  ;;  %v1571_v4 = vld [vmem:[%s9841_s17 + $0x58] sm:$0xff] }
 0x282   : > { %2236 = vrot.lane.b32.xlu1 %v2193_v45, %s9624_s13  ;;  %v2107_v45 = vmul.f32 %v2065_v47, %v9951_v59 }
 0x283   : > { %8682 = vtanh.f32 %v10102_v62 }
 0x284   : > { %8684 = vtanh.f32 %v10035_v1 }
 0x288   : > { %v2063_v56 = vpop.permute.xlu0 %2062 }
 0x289   : > { %v8683_v61 = vpop.eup %8682  ;;  %v2106_v0 = vmul.f32 %v2063_v56, %v9938_v32  ;;  %v1573_v56 = vld [vmem:[%s9841_s17 + $0x68] sm:$0xff] }
 0x28a   : > { %2312 = vrot.lane.b32.xlu2 %v8683_v61, %s9624_s13  ;;  %v8685_v13 = vpop.eup %8684 }
 0x28b   : > { %v10111_v24 = vsel %vm1543_vm6, %v1989_v60, %v8685_v13  ;;  %v10119_v2 = vadd.f32 %v2223_v40, %v2106_v0  ;;  %v2069_v13 = vpop.permute.xlu1 %2068  ;;  %v1572_v60 = vld [vmem:[%s9841_s17 + $0x60] sm:$0xff] }
 0x290   : > { %v2225_v43 = vpop.permute.xlu0 %2224 }
 0x291   : > { %v10113_v1 = vadd.f32 %v2225_v43, %v2107_v45 }
 0x292   : > { %2162 = vrot.lane.b32.xlu2 %v10111_v24, %s9624_s13 }
 0x293   : > { %8686 = vtanh.f32 %v10113_v1 }
 0x294   : > { %8688 = vtanh.f32 %v10119_v2 }
 0x298   : > { %v2067_v47 = vpop.permute.xlu0 %2066 }
 0x299   : > { %v8687_v31 = vpop.eup %8686  ;;  %v2108_v36 = vmul.f32 %v2067_v47, %v9856_v8  ;;  %v1574_v47 = vld [vmem:[%s9841_s17 + $0x70] sm:$0xff] }
 0x29a   : > { %2076 = vrot.lane.b32.xlu2 %v1571_v4, %s9624_s13  ;;  %2320 = vrot.lane.b32.xlu0 %v8687_v31, %s9624_s13  ;;  %v8689_v40 = vpop.eup %8688  ;;  %v2161_v4 = vpop.permute.xlu1 %2160 }
 0x29b   : > { %v10126_v5 = vadd.f32 %v2227_v38, %v2108_v36  ;;  %v2195_v31 = vmul.f32 %v2161_v4, %v10022_v55 }
 0x29d   : > { %8690 = vtanh.f32 %v10126_v5 }
 0x2a0   : > { %v2229_v61 = vpop.permute.xlu0 %2228 }
 0x2a2   : > { %2318 = vrot.lane.b32.xlu2 %v8689_v40, %s9624_s13  ;;  %2080 = vrot.lane.b32.xlu0 %v1573_v56, %s9624_s13 }
 0x2a3   : > { %v8691_v43 = vpop.eup %8690 }
 0x2a8   : > { %v2159_v45 = vpop.permute.xlu0 %2158 }
 0x2a9   : > { %v2194_v0 = vmul.f32 %v2159_v45, %v10066_v7  ;;  %v2231_v45 = vpop.permute.xlu1 %2230 }
 0x2aa   : > { %2078 = vrot.lane.b32.xlu2 %v1572_v60, %s9624_s13  ;;  %2322 = vrot.lane.b32.xlu0 %v8691_v43, %s9624_s13  ;;  %v2071_v60 = vpop.permute.xlu2 %2070 }
 0x2ab   : > { %2238 = vrot.lane.b32.xlu1 %v2194_v0, %s9624_s13  ;;  %v2109_v0 = vmul.f32 %v2069_v13, %v9959_v17 }
 0x2ad   : > { %v10148_v49 = vadd.f32 %v2229_v61, %v2109_v0 }
 0x2af   : > { %8692 = vtanh.f32 %v10148_v49 }
 0x2b0   : > { %v2073_v36 = vpop.permute.xlu0 %2072 }
 0x2b2   : > { %2240 = vrot.lane.b32.xlu2 %v2195_v31, %s9624_s13  ;;  %2082 = vrot.lane.b32.xlu0 %v1574_v47, %s9624_s13  ;;  %v2233_v43 = vpop.permute.xlu2 %2232 }
 0x2b8   : > { %v2315_v38 = vpop.permute.xlu0 %2314 }
 0x2b9   : > { %v2360_v4 = vmul.f32 %v2315_v38, %v9824_v25  ;;  %v2111_v25 = vmul.f32 %v2073_v36, %v9973_v18  ;;  %v1575_v38 = vld [vmem:[%s9841_s17 + $0x78] sm:$0xff] }
 0x2c0   : > { %v2165_v56 = vpop.permute.xlu0 %2164 }
 0x2c1   : > { %v2197_v40 = vmul.f32 %v2165_v56, %v10079_v30 }
 0x2c3   : > { %2244 = vrot.lane.b32.xlu0 %v2197_v40, %s9624_s13 }
 0x2dc   : > { %v2311_v51 = vpop.permute.xlu1 %2310 }
 0x2dd   : > { %v2358_v31 = vmul.f32 %v2311_v51, %v9997_v39  ;;  %v10154_v39 = vadd.f32 %v2233_v43, %v2111_v25 }
 0x2df   : > { %8694 = vtanh.f32 %v10154_v39 }
 0x2e4   : > { %v2317_v23 = vpop.permute.xlu1 %2316  ;;  %v2313_v27 = vpop.permute.xlu2 %2312 }
 0x2e5   : > { %v2361_v47 = vmul.f32 %v2317_v23, %v9833_v44  ;;  %v2359_v12 = vmul.f32 %v2313_v27, %v10004_v14  ;;  %v8693_v27 = vpop.eup %8692 }
 0x2e6   : > { %v8695_v0 = vpop.eup %8694 }
 0x2e7   : > { %v2392_v56 = vpack.c.bf16 %v2361_v47, %v2360_v4  ;;  %v2391_v40 = vpack.c.bf16 %v2359_v12, %v2358_v31  ;;  %v2110_v12 = vmul.f32 %v2071_v60, %v9907_v26  ;;  %v2235_v4 = vpop.permute.xlu0 %2234 }
 0x2e9   : > { %2407 = vrot.lane.b32.xlu1 %v2391_v40, %s9625_s18  ;;  %2409 = vrot.lane.b32.xlu2 %v2392_v56, %s9625_s18  ;;  %v10162_v61 = vadd.f32 %v2231_v45, %v2110_v12 }
 0x2ec   : > { %v2075_v13 = vpop.permute.xlu1 %2074  ;;  %v2163_v51 = vpop.permute.xlu2 %2162 }
 0x2ed   : > { %v2196_v44 = vmul.f32 %v2163_v51, %v10111_v24  ;;  %v2112_v60 = vmul.f32 %v2075_v13, %v9924_v63 }
 0x2ef   : > { %v10172_v31 = vadd.f32 %v2235_v4, %v2112_v60  ;;  %v8506_v4 = vld [vmem:[%s9710_s26 + $0x40] sm:$0xff] }
 0x2f0   : > { %8239 = vmatmul.msk.bf16.gmra.mxu0 %vm883_vm1, %v8506_v4 }
 0x2f1   : > { %2324 = vrot.lane.b32.xlu1 %v8693_v27, %s9624_s13  ;;  %2242 = vrot.lane.b32.xlu2 %v2196_v44, %s9624_s13 }
 0x2f4   : > { %v2077_v23 = vpop.permute.xlu2 %2076  ;;  %v2237_v36 = vpop.permute.xlu1 %2236 }
 0x2f5   : > { %v2113_v14 = vmul.f32 %v2077_v23, %v10043_v35 }
 0x2f7   : > { %v10165_v43 = vadd.f32 %v2237_v36, %v2113_v14 }
 0x2f9   : > { %8696 = vtanh.f32 %v10165_v43  ;;  %2084 = vrot.lane.b32.xlu1 %v1575_v38, %s9624_s13  ;;  %2328 = vrot.lane.b32.xlu2 %v8695_v0, %s9624_s13 }
 0x2fa   : > { %8698 = vtanh.f32 %v10162_v61 }
 0x2fb   : > { %8700 = vtanh.f32 %v10172_v31 }
 0x2fc   : > { %v2319_v56 = vpop.permute.xlu2 %2318 }
 0x2fd   : > { %v2362_v44 = vmul.f32 %v2319_v56, %v9938_v32 }
 0x2ff   : > { %v8697_v45 = vpop.eup %8696 }
 0x300   : > { %v8699_v47 = vpop.eup %8698 }
 0x301   : > { %2326 = vrot.lane.b32.xlu1 %v8699_v47, %s9624_s13  ;;  %2332 = vrot.lane.b32.xlu2 %v8697_v45, %s9624_s13  ;;  %v8701_v40 = vpop.eup %8700 }
 0x304   : > { %v2079_v25 = vpop.permute.xlu2 %2078 }
 0x305   : > { %v2114_v38 = vmul.f32 %v2079_v25, %v10066_v7 }
 0x309   : > { %2330 = vrot.lane.b32.xlu1 %v8701_v40, %s9624_s13 }
 0x30c   : > { %v2321_v51 = vpop.permute.xlu0 %2320  ;;  %v2241_v14 = vpop.permute.xlu2 %2240 }
 0x30d   : > { %v2363_v13 = vmul.f32 %v2321_v51, %v9951_v59 }
 0x30f   : > { %v2393_v27 = vpack.c.bf16 %v2363_v13, %v2362_v44  ;;  %v8507_v44 = vld [vmem:[%s9710_s26 + $0x48] sm:$0xff] }
 0x310   : > { %8240 = vmatmul.msk.bf16.gmra.mxu0 %vm883_vm1, %v8507_v44 }
 0x311   : > { %2411 = vrot.lane.b32.xlu0 %v2393_v27, %s9625_s18 }
 0x314   : > { %v2081_v12 = vpop.permute.xlu0 %2080 }
 0x315   : > { %v2115_v23 = vmul.f32 %v2081_v12, %v10022_v55  ;;  %v10204_v12 = vld [vmem:[%s12775_s5 + $0x8] sm:$0xff] }
 0x317   : > { %v10182_v36 = vadd.f32 %v2241_v14, %v2115_v23  ;;  %v10210_v23 = vld [vmem:[%s12775_s5] sm:$0xff] }
 0x319   : > { %8702 = vtanh.f32 %v10182_v36 }
 0x31c   : > { %v2323_v45 = vpop.permute.xlu0 %2322 }
 0x31d   : > { %v2239_v0 = vpop.permute.xlu1 %2238 }
 0x31e   : > { %v10186_v60 = vadd.f32 %v2239_v0, %v2114_v38  ;;  %v2364_v38 = vmul.f32 %v2323_v45, %v9856_v8 }
 0x31f   : > { %v8703_v32 = vpop.eup %8702 }
 0x320   : > { %8704 = vtanh.f32 %v10186_v60  ;;  %2336 = vrot.lane.b32.xlu2 %v8703_v32, %s9624_s13  ;;  %v8508_v32 = vld [vmem:[%s9710_s26 + $0x50] sm:$0xff] }
 0x321   : > { %8241 = vmatmul.msk.bf16.gmra.mxu0 %vm883_vm1, %v8508_v32 }
 0x324   : > { %v2083_v56 = vpop.permute.xlu0 %2082 }
 0x325   : > { %v2116_v40 = vmul.f32 %v2083_v56, %v10111_v24 }
 0x326   : > { %v8705_v59 = vpop.eup %8704 }
 0x327   : > { %2334 = vrot.lane.b32.xlu1 %v8705_v59, %s9624_s13 }
 0x343   : > { %v2410_v47 = vpop.permute.xlu2 %2409 }
 0x34b   : > { %v2243_v25 = vpop.permute.xlu2 %2242 }
 0x34c   : > { %v10194_v51 = vadd.f32 %v2243_v25, %v2116_v40  ;;  %v2245_v40 = vpop.permute.xlu0 %2244 }
 0x34e   : > { %8706 = vtanh.f32 %v10194_v51 }
 0x353   : > { %v2329_v44 = vpop.permute.xlu2 %2328 }
 0x354   : > { %v8707_v13 = vpop.eup %8706 }
 0x355   : > { %2338 = vrot.lane.b32.xlu1 %v8707_v13, %s9624_s13 }
 0x35b   : > { %v2408_v27 = vpop.permute.xlu1 %2407 }
 0x35c   : > { %8327 = vmatmul.msk.bf16.vlgmr.msrb.gmra.mxu2 %vm1612_vm2, %v2408_v27 }
 0x35d   : > { %6929 = vmatpush.bf16.msrb.mxu2 %v10204_v12 }
 0x361   : > { %6930 = vmatpush.bf16.msrb.mxu2 %v10210_v23 }
 0x363   : > { %v2325_v14 = vpop.permute.xlu1 %2324 }
 0x364   : > { %v2365_v0 = vmul.f32 %v2325_v14, %v9959_v17  ;;  %v2367_v17 = vmul.f32 %v2329_v44, %v9973_v18  ;;  %v2333_v14 = vpop.permute.xlu2 %2332  ;;  %v8509_v44 = vld [vmem:[%s9710_s26 + $0x58] sm:$0xff] }
 0x365   : > { %8242 = vmatmul.msk.bf16.gmra.mxu0 %vm883_vm1, %v8509_v44 }
 0x366   : > { %v2394_v59 = vpack.c.bf16 %v2365_v0, %v2364_v38  ;;  %v2369_v38 = vmul.f32 %v2333_v14, %v10043_v35 }
 0x368   : > { %2413 = vrot.lane.b32.xlu0 %v2394_v59, %s9625_s18 }
 0x36b   : > { %v2085_v4 = vpop.permute.xlu1 %2084 }
 0x36c   : > { %v2117_v56 = vmul.f32 %v2085_v4, %v10079_v30  ;;  %8328 = vmatmul.msk.bf16.gmra.mxu2 %vm1612_vm2, %v2410_v47 }
 0x36e   : > { %v10220_v25 = vadd.f32 %v2245_v40, %v2117_v56 }
 0x370   : > { %8708 = vtanh.f32 %v10220_v25 }
 0x373   : > { %v2327_v8 = vpop.permute.xlu1 %2326 }
 0x374   : > { %v2366_v45 = vmul.f32 %v2327_v8, %v9907_v26 }
 0x376   : > { %v8709_v13 = vpop.eup %8708  ;;  %v2395_v27 = vpack.c.bf16 %v2367_v17, %v2366_v45 }
 0x377   : > { %2340 = vrot.lane.b32.xlu2 %v8709_v13, %s9624_s13 }
 0x378   : > { %2415 = vrot.lane.b32.xlu0 %v2395_v27, %s9625_s18  ;;  %v10245_v27 = vld [vmem:[%s12776_s6] ss:$0 sm:$0xff] }
 0x37a   : > { %v2337_v26 = vpop.permute.xlu2 %2336 }
 0x37b   : > { %v2331_v47 = vpop.permute.xlu1 %2330  ;;  %v2371_v4 = vmul.f32 %v2337_v26, %v10022_v55  ;;  %v1129_v55 = vpop.f32.mrf.mxu0 }
 0x37c   : > { %v2368_v0 = vmul.f32 %v2331_v47, %v9924_v63  ;;  %v8510_v63 = vld [vmem:[%s9710_s26 + $0x60] sm:$0xff]  ;;  %v1130_v14 = vadd.f32 %v10245_v27, %v1129_v55  ;;  %v8511_v47 = vld [vmem:[%s9710_s26 + $0x68] sm:$0xff] }
 0x37d   : > { %8243 = vmatmul.msk.bf16.gmra.mxu0 %vm883_vm1, %v8510_v63 }
 0x37e   : > { %v2396_v32 = vpack.c.bf16 %v2369_v38, %v2368_v0 }
 0x380   : > { %2417 = vrot.lane.b32.xlu0 %v2396_v32, %s9625_s18 }
 0x383   : > { %v2412_v18 = vpop.permute.xlu0 %2411  ;;  %v1131_v0 = vpop.f32.mrf.mxu0 }
 0x384   : > { %8329 = vmatmul.msk.bf16.gmra.mxu2 %vm1612_vm2, %v2412_v18  ;;  %v1132_v32 = vadd.f32 %v10245_v27, %v1131_v0 }
 0x38d   : > { %8244 = vmatmul.msk.bf16.gmra.mxu0 %vm883_vm1, %v8511_v47  ;;  %v1134_v26 = vpop.f32.mrf.mxu0 }
 0x38e   : > { %v1135_v63 = vadd.f32 %v10245_v27, %v1134_v26 }
 0x399   : > { %v2335_v59 = vpop.permute.xlu1 %2334 }
 0x39a   : > { %v2370_v56 = vmul.f32 %v2335_v59, %v10066_v7 }
 0x39c   : > { %v2397_v40 = vpack.c.bf16 %v2371_v4, %v2370_v56 }
 0x39e   : > { %2419 = vrot.lane.b32.xlu1 %v2397_v40, %s9625_s18 }
 0x3c7   : > { %v2339_v35 = vpop.permute.xlu1 %2338 }
 0x3c8   : > { %v2372_v17 = vmul.f32 %v2339_v35, %v10111_v24 }
 0x3d1   : > { %v2341_v8 = vpop.permute.xlu2 %2340 }
 0x3d2   : > { %v2373_v45 = vmul.f32 %v2341_v8, %v10079_v30 }
 0x3d4   : > { %v2398_v13 = vpack.c.bf16 %v2373_v45, %v2372_v17  ;;  %v1136_v17 = vpop.f32.mrf.mxu0 }
 0x3d6   : > { %2421 = vrot.lane.b32.xlu2 %v2398_v13, %s9625_s18 }
 0x3da   : > { %v2414_v7 = vpop.permute.xlu0 %2413 }
 0x3db   : > { %8330 = vmatmul.msk.bf16.gmra.mxu2 %vm1612_vm2, %v2414_v7 }
 0x3df   : > { %v2456_v38 = vpop.f32.mrf.mxu2 }
 0x3e0   : > { %v2496_v30 = vadd.f32 %v2456_v38, %v1130_v14  ;;  %v1137_v14 = vadd.f32 %v10245_v27, %v1136_v17  ;;  %v8512_v38 = vld [vmem:[%s9710_s26 + $0x70] sm:$0xff] }
 0x3e1   : > { %8245 = vmatmul.msk.bf16.gmra.mxu0 %vm883_vm1, %v8512_v38 }
 0x3e2   : > { %v8335_v24 = vmul.f32 -1.442695, %v2496_v30 }
 0x3e4   : > { %8710 = vpow2.f32 %v8335_v24 }
 0x3e7   : > { %v2458_v18 = vpop.f32.mrf.mxu2 }
 0x3e8   : > { %v2497_v59 = vadd.f32 %v2458_v18, %v1132_v32 }
 0x3ea   : > { %v8711_v4 = vpop.eup %8710  ;;  %v8336_v56 = vmul.f32 -1.442695, %v2497_v59  ;;  %v2416_v40 = vpop.permute.xlu0 %2415 }
 0x3eb   : > { %v2560_v44 = vadd.f32 1.0, %v8711_v4  ;;  %8331 = vmatmul.msk.bf16.gmra.mxu2 %vm1612_vm2, %v2416_v40 }
 0x3ec   : > { %8712 = vpow2.f32 %v8336_v56 }
 0x3ed   : > { %8714 = vrcp.f32 %v2560_v44  ;;  %v2587_v32 = vand.u32 2147483648, %v2560_v44  ;;  %v2585_v4 = vand.u32 2147483647, %v2560_v44  ;;  %vm2581_vm3 = vweird.f32 %v2560_v44 }
 0x3ef   : > { %v2461_v35 = vpop.f32.mrf.mxu2  ;;  %vm2586_vm5 = vcmp.eq.f32.partialorder %v2585_v4, 8.507059e+37 }
 0x3f0   : > { %v2498_v8 = vadd.f32 %v2461_v35, %v1135_v63 }
 0x3f2   : > { %v8713_v45 = vpop.eup %8712  ;;  %v8337_v13 = vmul.f32 -1.442695, %v2498_v8  ;;  %v2418_v40 = vpop.permute.xlu0 %2417 }
 0x3f3   : > { %v8715_v55 = vpop.eup %8714  ;;  %v2561_v7 = vadd.f32 1.0, %v8713_v45 }
 0x3f4   : > { %8716 = vpow2.f32 %v8337_v13  ;;  %v2577_v47 = vmul.f32 %v8715_v55, %v2560_v44  ;;  %vm2582_vm0 = vweird.f32 %v8715_v55  ;;  %v2588_v13 = vor.u32 1.1754944e-38, %v2587_v32 }
 0x3f5   : > { %8718 = vrcp.f32 %v2561_v7  ;;  %vm2583_vm4 = vmor %vm2581_vm3, %vm2582_vm0  ;;  %v2602_v44 = vand.u32 2147483648, %v2561_v7  ;;  %v2600_v32 = vand.u32 2147483647, %v2561_v7  ;;  %vm2596_vm8 = vweird.f32 %v2561_v7 }
 0x3f6   : > { %v2578_v0 = vsub.f32 1.0, %v2577_v47  ;;  %8720 = vtanh.f32 %v2496_v30 }
 0x3f7   : > { %v2463_v24 = vpop.f32.mrf.mxu2  ;;  %vm2601_vm10 = vcmp.eq.f32.partialorder %v2600_v32, 8.507059e+37 }
 0x3f8   : > { %v10256_v18 = vadd.f32 %v2463_v24, %v1137_v14  ;;  %v2579_v26 = vmul.f32 %v8715_v55, %v2578_v0  ;;  %v1139_v24 = vpop.f32.mrf.mxu0 }
 0x3fa   : > { %v8717_v56 = vpop.eup %8716  ;;  %v8338_v63 = vmul.f32 -1.442695, %v10256_v18  ;;  %v2580_v35 = vadd.f32 %v8715_v55, %v2579_v26 }
 0x3fb   : > { %v8719_v17 = vpop.eup %8718  ;;  %v2562_v45 = vadd.f32 1.0, %v8717_v56  ;;  %8332 = vmatmul.msk.bf16.gmra.mxu2 %vm1612_vm2, %v2418_v40 }
 0x3fc   : > { %8722 = vpow2.f32 %v8338_v63  ;;  %v2584_v30 = vsel %vm2583_vm4, %v8715_v55, %v2580_v35  ;;  %v2592_v14 = vmul.f32 %v8719_v17, %v2561_v7  ;;  %v8721_v47 = vpop.eup %8720  ;;  %vm2597_vm7 = vweird.f32 %v8719_v17 }
 0x3fd   : > { %8724 = vrcp.f32 %v2562_v45  ;;  %v2589_v38 = vsel %vm2586_vm5, %v2588_v13, %v2584_v30  ;;  %vm2598_vm9 = vmor %vm2596_vm8, %vm2597_vm7  ;;  %v2603_v35 = vor.u32 1.1754944e-38, %v2602_v44  ;;  %v1140_v13 = vadd.f32 %v10245_v27, %v1139_v24 }
 0x3fe   : > { %v10262_v0 = vsel %vm1543_vm6, %v2589_v38, %v8721_v47  ;;  %v2593_v26 = vsub.f32 1.0, %v2592_v14  ;;  %8726 = vtanh.f32 %v2497_v59  ;;  %vm2611_vm12 = vweird.f32 %v2562_v45 }
 0x3ff   : > { %2880 = vrot.lane.b32.xlu0 %v10262_v0, %s9624_s13 }
 0x400   : > { %v2594_v56 = vmul.f32 %v8719_v17, %v2593_v26 }
 0x402   : > { %v8723_v55 = vpop.eup %8722  ;;  %v2595_v4 = vadd.f32 %v8719_v17, %v2594_v56  ;;  %v2617_v56 = vand.u32 2147483648, %v2562_v45 }
 0x403   : > { %v8725_v40 = vpop.eup %8724  ;;  %v2563_v63 = vadd.f32 1.0, %v8723_v55  ;;  %v1141_v55 = vpop.f32.mrf.mxu0 }
 0x404   : > { %v2599_v30 = vsel %vm2598_vm9, %v8719_v17, %v2595_v4  ;;  %v2607_v14 = vmul.f32 %v8725_v40, %v2562_v45  ;;  %v8727_v59 = vpop.eup %8726  ;;  %vm2612_vm11 = vweird.f32 %v8725_v40  ;;  %v2615_v17 = vand.u32 2147483647, %v2562_v45 }
 0x405   : > { %8728 = vrcp.f32 %v2563_v63  ;;  %v2604_v47 = vsel %vm2601_vm10, %v2603_v35, %v2599_v30  ;;  %v1142_v30 = vadd.f32 %v10245_v27, %v1141_v55  ;;  %vm2613_vm13 = vmor %vm2611_vm12, %vm2612_vm11  ;;  %vm2626_vm0 = vweird.f32 %v2563_v63 }
 0x406   : > { %v10269_v38 = vsel %vm1543_vm6, %v2604_v47, %v8727_v59  ;;  %v2608_v26 = vsub.f32 1.0, %v2607_v14  ;;  %8730 = vtanh.f32 %v2498_v8  ;;  %v2618_v59 = vor.u32 1.1754944e-38, %v2617_v56 }
 0x407   : > { %2882 = vrot.lane.b32.xlu1 %v10269_v38, %s9624_s13  ;;  %v2466_v7 = vpop.f32.mrf.mxu2  ;;  %vm2616_vm14 = vcmp.eq.f32.partialorder %v2615_v17, 8.507059e+37  ;;  %v8513_v17 = vld [vmem:[%s9710_s26 + $0x78] sm:$0xff] }
 0x408   : > { %v2500_v44 = vadd.f32 %v2466_v7, %v1140_v13  ;;  %v2609_v24 = vmul.f32 %v8725_v40, %v2608_v26  ;;  %v2632_v7 = vand.u32 2147483648, %v2563_v63  ;;  %8246 = vmatmul.msk.bf16.gmra.mxu0 %vm883_vm1, %v8513_v17 }
 0x40a   : > { %v8339_v32 = vmul.f32 -1.442695, %v2500_v44  ;;  %v2610_v4 = vadd.f32 %v8725_v40, %v2609_v24  ;;  %v2630_v24 = vand.u32 2147483647, %v2563_v63 }
 0x40b   : > { %v8729_v35 = vpop.eup %8728 }
 0x40c   : > { %8732 = vpow2.f32 %v8339_v32  ;;  %v2614_v8 = vsel %vm2613_vm13, %v8725_v40, %v2610_v4  ;;  %v2622_v14 = vmul.f32 %v8729_v35, %v2563_v63  ;;  %v8731_v47 = vpop.eup %8730  ;;  %vm2627_vm15 = vweird.f32 %v8729_v35 }
 0x40d   : > { %v2619_v20 = vsel %vm2616_vm14, %v2618_v59, %v2614_v8  ;;  %8734 = vtanh.f32 %v10256_v18  ;;  %vm2628_vm3 = vmor %vm2626_vm0, %vm2627_vm15  ;;  %v2633_v18 = vor.u32 1.1754944e-38, %v2632_v7  ;;  %vm2631_vm4 = vcmp.eq.f32.partialorder %v2630_v24, 8.507059e+37 }
 0x40e   : > { %v10276_v13 = vsel %vm1543_vm6, %v2619_v20, %v8731_v47  ;;  %v2623_v26 = vsub.f32 1.0, %v2622_v14 }
 0x40f   : > { %2884 = vrot.lane.b32.xlu2 %v10276_v13, %s9624_s13  ;;  %v2468_v45 = vpop.f32.mrf.mxu2 }
 0x410   : > { %v2501_v56 = vadd.f32 %v2468_v45, %v1142_v30  ;;  %v2420_v55 = vpop.permute.xlu1 %2419  ;;  %v2624_v40 = vmul.f32 %v8729_v35, %v2623_v26 }
 0x411   : > { %8333 = vmatmul.msk.bf16.gmra.mxu2 %vm1612_vm2, %v2420_v55 }
 0x412   : > { %v8733_v32 = vpop.eup %8732  ;;  %v8340_v4 = vmul.f32 -1.442695, %v2501_v56  ;;  %v2625_v20 = vadd.f32 %v8729_v35, %v2624_v40 }
 0x413   : > { %v2564_v59 = vadd.f32 1.0, %v8733_v32  ;;  %v8735_v30 = vpop.eup %8734 }
 0x414   : > { %8736 = vpow2.f32 %v8340_v4  ;;  %v2629_v8 = vsel %vm2628_vm3, %v8729_v35, %v2625_v20 }
 0x415   : > { %8738 = vrcp.f32 %v2564_v59  ;;  %v2634_v14 = vsel %vm2631_vm4, %v2633_v18, %v2629_v8  ;;  %v2647_v40 = vand.u32 2147483648, %v2564_v59  ;;  %v2645_v24 = vand.u32 2147483647, %v2564_v59 }
 0x416   : > { %v10286_v47 = vsel %vm1543_vm6, %v2634_v14, %v8735_v30  ;;  %vm2641_vm7 = vweird.f32 %v2564_v59 }
 0x417   : > { %2886 = vrot.lane.b32.xlu0 %v10286_v47, %s9624_s13  ;;  %v2648_v4 = vor.u32 1.1754944e-38, %v2647_v40  ;;  %vm2646_vm9 = vcmp.eq.f32.partialorder %v2645_v24, 8.507059e+37 }
 0x41a   : > { %v8737_v26 = vpop.eup %8736 }
 0x41b   : > { %v8739_v63 = vpop.eup %8738  ;;  %v2565_v45 = vadd.f32 1.0, %v8737_v26 }
 0x41c   : > { %v2637_v55 = vmul.f32 %v8739_v63, %v2564_v59  ;;  %vm2642_vm5 = vweird.f32 %v8739_v63 }
 0x41d   : > { %8740 = vrcp.f32 %v2565_v45  ;;  %vm2643_vm8 = vmor %vm2641_vm7, %vm2642_vm5  ;;  %v2660_v59 = vand.u32 2147483647, %v2565_v45  ;;  %vm2656_vm11 = vweird.f32 %v2565_v45 }
 0x41e   : > { %v2638_v7 = vsub.f32 1.0, %v2637_v55  ;;  %8742 = vtanh.f32 %v2500_v44  ;;  %v2662_v44 = vand.u32 2147483648, %v2565_v45 }
 0x41f   : > { %8744 = vtanh.f32 %v2501_v56  ;;  %vm2661_vm13 = vcmp.eq.f32.partialorder %v2660_v59, 8.507059e+37 }
 0x420   : > { %v2639_v35 = vmul.f32 %v8739_v63, %v2638_v7 }
 0x422   : > { %v2640_v17 = vadd.f32 %v8739_v63, %v2639_v35 }
 0x423   : > { %v8741_v32 = vpop.eup %8740 }
 0x424   : > { %v2644_v20 = vsel %vm2643_vm8, %v8739_v63, %v2640_v17  ;;  %v2652_v18 = vmul.f32 %v8741_v32, %v2565_v45  ;;  %v8743_v8 = vpop.eup %8742  ;;  %vm2657_vm10 = vweird.f32 %v8741_v32  ;;  %v2663_v63 = vor.u32 1.1754944e-38, %v2662_v44 }
 0x425   : > { %v2649_v30 = vsel %vm2646_vm9, %v2648_v4, %v2644_v20  ;;  %vm2658_vm12 = vmor %vm2656_vm11, %vm2657_vm10  ;;  %v8745_v35 = vpop.eup %8744  ;;  %v1144_v4 = vpop.f32.mrf.mxu0 }
 0x426   : > { %v10292_v14 = vsel %vm1543_vm6, %v2649_v30, %v8743_v8  ;;  %v2653_v26 = vsub.f32 1.0, %v2652_v18  ;;  %v1145_v45 = vadd.f32 %v10245_v27, %v1144_v4 }
 0x427   : > { %2888 = vrot.lane.b32.xlu1 %v10292_v14, %s9624_s13 }
 0x428   : > { %v2654_v55 = vmul.f32 %v8741_v32, %v2653_v26 }
 0x42a   : > { %v2655_v7 = vadd.f32 %v8741_v32, %v2654_v55 }
 0x42c   : > { %v2659_v40 = vsel %vm2658_vm12, %v8741_v32, %v2655_v7 }
 0x42d   : > { %v2664_v24 = vsel %vm2661_vm13, %v2663_v63, %v2659_v40  ;;  %v1146_v20 = vpop.f32.mrf.mxu0 }
 0x42e   : > { %v10298_v17 = vsel %vm1543_vm6, %v2664_v24, %v8745_v35  ;;  %v1147_v26 = vadd.f32 %v10245_v27, %v1146_v20 }
 0x42f   : > { %2890 = vrot.lane.b32.xlu2 %v10298_v17, %s9624_s13 }
 0x430   : > { %v2422_v56 = vpop.permute.xlu2 %2421 }
 0x431   : > { %8334 = vmatmul.msk.bf16.gmra.mxu2 %vm1612_vm2, %v2422_v56 }
 0x435   : > { %v1149_v30 = vpop.f32.mrf.mxu0 }
 0x436   : > { %v1150_v40 = vadd.f32 %v10245_v27, %v1149_v30 }
 0x43d   : > { %v1151_v35 = vpop.f32.mrf.mxu0 }
 0x43e   : > { %v1152_v30 = vadd.f32 %v10245_v27, %v1151_v35 }
 0x45e   : > { %v2471_v18 = vpop.f32.mrf.mxu2 }
 0x45f   : > { %v2502_v8 = vadd.f32 %v2471_v18, %v1145_v45 }
 0x461   : > { %v8341_v32 = vmul.f32 -1.442695, %v2502_v8 }
 0x463   : > { %8746 = vpow2.f32 %v8341_v32 }
 0x466   : > { %v2473_v44 = vpop.f32.mrf.mxu2 }
 0x467   : > { %v2503_v55 = vadd.f32 %v2473_v44, %v1147_v26  ;;  %v1154_v44 = vpop.f32.mrf.mxu0 }
 0x469   : > { %v8747_v59 = vpop.eup %8746  ;;  %v8342_v7 = vmul.f32 -1.442695, %v2503_v55 }
 0x46a   : > { %v2566_v63 = vadd.f32 1.0, %v8747_v59 }
 0x46b   : > { %8748 = vpow2.f32 %v8342_v7 }
 0x46c   : > { %8750 = vrcp.f32 %v2566_v63  ;;  %v2675_v9 = vand.u32 2147483647, %v2566_v63  ;;  %vm2671_vm15 = vweird.f32 %v2566_v63 }
 0x46e   : > { %v2476_v24 = vpop.f32.mrf.mxu2  ;;  %vm2676_vm3 = vcmp.eq.f32.partialorder %v2675_v9, 8.507059e+37 }
 0x46f   : > { %v10306_v56 = vadd.f32 %v2476_v24, %v1150_v40  ;;  %v2677_v40 = vand.u32 2147483648, %v2566_v63 }
 0x471   : > { %v8749_v4 = vpop.eup %8748  ;;  %v8343_v45 = vmul.f32 -1.442695, %v10306_v56  ;;  %v2881_v18 = vpop.permute.xlu0 %2880 }
 0x472   : > { %v8751_v32 = vpop.eup %8750  ;;  %v2567_v54 = vadd.f32 1.0, %v8749_v4  ;;  %v2928_v20 = vmul.f32 %v2881_v18, %v10262_v0 }
 0x473   : > { %8752 = vpow2.f32 %v8343_v45  ;;  %v2667_v26 = vmul.f32 %v8751_v32, %v2566_v63  ;;  %vm2672_vm14 = vweird.f32 %v8751_v32 }
 0x474   : > { %8754 = vrcp.f32 %v2567_v54  ;;  %2960 = vrot.lane.b32.xlu0 %v2928_v20, %s9624_s13  ;;  %vm2673_vm0 = vmor %vm2671_vm15, %vm2672_vm14  ;;  %vm2686_vm5 = vweird.f32 %v2567_v54 }
 0x475   : > { %v2668_v59 = vsub.f32 1.0, %v2667_v26  ;;  %8756 = vtanh.f32 %v2502_v8  ;;  %v1155_v8 = vadd.f32 %v10245_v27, %v1154_v44  ;;  %v2678_v26 = vor.u32 1.1754944e-38, %v2677_v40 }
 0x476   : > { %v2478_v7 = vpop.f32.mrf.mxu2  ;;  %v2692_v40 = vand.u32 2147483648, %v2567_v54 }
 0x477   : > { %v10312_v24 = vadd.f32 %v2478_v7, %v1152_v30  ;;  %v2669_v28 = vmul.f32 %v8751_v32, %v2668_v59 }
 0x478   : > { %v2693_v29 = vor.u32 1.1754944e-38, %v2692_v40 }
 0x479   : > { %v8753_v4 = vpop.eup %8752  ;;  %v8344_v18 = vmul.f32 -1.442695, %v10312_v24  ;;  %v2883_v45 = vpop.permute.xlu1 %2882  ;;  %v2670_v52 = vadd.f32 %v8751_v32, %v2669_v28 }
 0x47a   : > { %v8755_v33 = vpop.eup %8754  ;;  %v10315_v20 = vadd.f32 1.0, %v8753_v4  ;;  %v2929_v35 = vmul.f32 %v2883_v45, %v10269_v38  ;;  %v2690_v45 = vand.u32 2147483647, %v2567_v54 }
 0x47b   : > { %8758 = vpow2.f32 %v8344_v18  ;;  %v2674_v30 = vsel %vm2673_vm0, %v8751_v32, %v2670_v52  ;;  %v2682_v59 = vmul.f32 %v8755_v33, %v2567_v54  ;;  %v8757_v7 = vpop.eup %8756  ;;  %v2885_v52 = vpop.permute.xlu2 %2884  ;;  %vm2687_vm4 = vweird.f32 %v8755_v33 }
 0x47c   : > { %8760 = vrcp.f32 %v10315_v20  ;;  %2962 = vrot.lane.b32.xlu1 %v2929_v35, %s9624_s13  ;;  %v2679_v28 = vsel %vm2676_vm3, %v2678_v26, %v2674_v30  ;;  %v1156_v32 = vpop.f32.mrf.mxu0  ;;  %vm2688_vm7 = vmor %vm2686_vm5, %vm2687_vm4  ;;  %vm2691_vm8 = vcmp.eq.f32.partialorder %v2690_v45, 8.507059e+37  ;;  %v2705_v45 = vand.u32 2147483647, %v10315_v20 }
 0x47d   : > { %v10323_v63 = vsel %vm1543_vm6, %v2679_v28, %v8757_v7  ;;  %v2683_v4 = vsub.f32 1.0, %v2682_v59  ;;  %8762 = vtanh.f32 %v2503_v55  ;;  %v2930_v55 = vmul.f32 %v2885_v52, %v10276_v13 }
 0x47e   : > { %2892 = vrot.lane.b32.xlu2 %v10323_v63, %s9624_s13  ;;  %v2481_v44 = vpop.f32.mrf.mxu2  ;;  %v1157_v28 = vadd.f32 %v10245_v27, %v1156_v32  ;;  %vm2701_vm10 = vweird.f32 %v10315_v20  ;;  %vm2706_vm12 = vcmp.eq.f32.partialorder %v2705_v45, 8.507059e+37 }
 0x47f   : > { %v10327_v9 = vadd.f32 %v2481_v44, %v1155_v8  ;;  %v2684_v18 = vmul.f32 %v8755_v33, %v2683_v4 }
 0x481   : > { %v8759_v35 = vpop.eup %8758  ;;  %v8345_v26 = vmul.f32 -1.442695, %v10327_v9  ;;  %v2685_v30 = vadd.f32 %v8755_v33, %v2684_v18 }
 0x482   : > { %v8761_v7 = vpop.eup %8760  ;;  %v2569_v59 = vadd.f32 1.0, %v8759_v35 }
 0x483   : > { %8764 = vpow2.f32 %v8345_v26  ;;  %v2689_v8 = vsel %vm2688_vm7, %v8755_v33, %v2685_v30  ;;  %v2697_v4 = vmul.f32 %v8761_v7, %v10315_v20  ;;  %v8763_v44 = vpop.eup %8762  ;;  %v2707_v33 = vand.u32 2147483648, %v10315_v20 }
 0x484   : > { %8766 = vrcp.f32 %v2569_v59  ;;  %2964 = vrot.lane.b32.xlu1 %v2930_v55, %s9624_s13  ;;  %v2694_v19 = vsel %vm2691_vm8, %v2693_v29, %v2689_v8  ;;  %vm2702_vm9 = vweird.f32 %v8761_v7  ;;  %vm2716_vm14 = vweird.f32 %v2569_v59 }
 0x485   : > { %v10336_v54 = vsel %vm1543_vm6, %v2694_v19, %v8763_v44  ;;  %v2698_v52 = vsub.f32 1.0, %v2697_v4  ;;  %8768 = vtanh.f32 %v10306_v56  ;;  %vm2703_vm11 = vmor %vm2701_vm10, %vm2702_vm9  ;;  %v2708_v8 = vor.u32 1.1754944e-38, %v2707_v33 }
 0x486   : > { %v2483_v32 = vpop.f32.mrf.mxu2  ;;  %2894 = vrot.lane.b32.xlu0 %v10336_v54, %s9624_s13  ;;  %v2722_v33 = vand.u32 2147483648, %v2569_v59 }
 0x487   : > { %v10342_v40 = vadd.f32 %v2483_v32, %v1157_v28  ;;  %v2699_v18 = vmul.f32 %v8761_v7, %v2698_v52 }
 0x489   : > { %v8765_v29 = vpop.eup %8764  ;;  %v8346_v35 = vmul.f32 -1.442695, %v10342_v40  ;;  %v2887_v19 = vpop.permute.xlu0 %2886  ;;  %v2700_v26 = vadd.f32 %v8761_v7, %v2699_v18 }
 0x48a   : > { %v8767_v56 = vpop.eup %8766  ;;  %v2570_v30 = vadd.f32 1.0, %v8765_v29  ;;  %v2931_v55 = vmul.f32 %v2887_v19, %v10286_v47  ;;  %v2891_v29 = vpop.permute.xlu2 %2890 }
 0x48b   : > { %8770 = vpow2.f32 %v8346_v35  ;;  %v2704_v28 = vsel %vm2703_vm11, %v8761_v7, %v2700_v26  ;;  %v2712_v4 = vmul.f32 %v8767_v56, %v2569_v59  ;;  %v8769_v44 = vpop.eup %8768  ;;  %vm2717_vm13 = vweird.f32 %v8767_v56 }
 0x48c   : > { %8772 = vrcp.f32 %v2570_v30  ;;  %2966 = vrot.lane.b32.xlu2 %v2931_v55, %s9624_s13  ;;  %v2709_v52 = vsel %vm2706_vm12, %v2708_v8, %v2704_v28  ;;  %v2720_v7 = vand.u32 2147483647, %v2569_v59  ;;  %vm2718_vm15 = vmor %vm2716_vm14, %vm2717_vm13  ;;  %v2723_v55 = vor.u32 1.1754944e-38, %v2722_v33 }
 0x48d   : > { %v10351_v32 = vsel %vm1543_vm6, %v2709_v52, %v8769_v44  ;;  %v2713_v20 = vsub.f32 1.0, %v2712_v4  ;;  %8774 = vtanh.f32 %v10312_v24  ;;  %v2933_v24 = vmul.f32 %v2891_v29, %v10298_v17 }
 0x48e   : > { %2896 = vrot.lane.b32.xlu0 %v10351_v32, %s9624_s13  ;;  %vm2721_vm0 = vcmp.eq.f32.partialorder %v2720_v7, 8.507059e+37  ;;  %v2737_v59 = vand.u32 2147483648, %v2570_v30  ;;  %v2735_v33 = vand.u32 2147483647, %v2570_v30  ;;  %vm2731_vm4 = vweird.f32 %v2570_v30 }
 0x48f   : > { %v2714_v18 = vmul.f32 %v8767_v56, %v2713_v20 }
 0x490   : > { %vm2736_vm7 = vcmp.eq.f32.partialorder %v2735_v33, 8.507059e+37 }
 0x491   : > { %v8771_v45 = vpop.eup %8770  ;;  %v2715_v35 = vadd.f32 %v8767_v56, %v2714_v18 }
 0x492   : > { %v8773_v19 = vpop.eup %8772  ;;  %v2571_v26 = vadd.f32 1.0, %v8771_v45 }
 0x493   : > { %v2719_v8 = vsel %vm2718_vm15, %v8767_v56, %v2715_v35  ;;  %v2727_v28 = vmul.f32 %v8773_v19, %v2570_v30  ;;  %v8775_v4 = vpop.eup %8774  ;;  %vm2732_vm3 = vweird.f32 %v8773_v19  ;;  %v2738_v35 = vor.u32 1.1754944e-38, %v2737_v59 }
 0x494   : > { %8776 = vrcp.f32 %v2571_v26  ;;  %v2724_v44 = vsel %vm2721_vm0, %v2723_v55, %v2719_v8  ;;  %vm2733_vm5 = vmor %vm2731_vm4, %vm2732_vm3  ;;  %v2752_v30 = vand.u32 2147483648, %v2571_v26  ;;  %vm2746_vm9 = vweird.f32 %v2571_v26 }
 0x495   : > { %v10359_v52 = vsel %vm1543_vm6, %v2724_v44, %v8775_v4  ;;  %v2728_v20 = vsub.f32 1.0, %v2727_v28  ;;  %8778 = vtanh.f32 %v10327_v9 }
 0x496   : > { %2898 = vrot.lane.b32.xlu1 %v10359_v52, %s9624_s13  ;;  %2970 = vrot.lane.b32.xlu0 %v2933_v24, %s9624_s13  ;;  %8780 = vtanh.f32 %v10342_v40  ;;  %v2753_v59 = vor.u32 1.1754944e-38, %v2752_v30 }
 0x497   : > { %v2729_v56 = vmul.f32 %v8773_v19, %v2728_v20 }
 0x499   : > { %v2889_v18 = vpop.permute.xlu1 %2888  ;;  %v2730_v7 = vadd.f32 %v8773_v19, %v2729_v56 }
 0x49a   : > { %v8777_v45 = vpop.eup %8776  ;;  %v2932_v29 = vmul.f32 %v2889_v18, %v10292_v14 }
 0x49b   : > { %v2734_v55 = vsel %vm2733_vm5, %v8773_v19, %v2730_v7  ;;  %v2742_v9 = vmul.f32 %v8777_v45, %v2571_v26  ;;  %v8779_v8 = vpop.eup %8778  ;;  %vm2747_vm8 = vweird.f32 %v8777_v45  ;;  %v2750_v19 = vand.u32 2147483647, %v2571_v26  ;;  %v8545_v7 = vld [vmem:[%s9710_s26 + $0x178] sm:$0xff]  ;;  %v1159_v26 = vpop.f32.mrf.mxu0 }
 0x49c   : > { %2968 = vrot.lane.b32.xlu2 %v2932_v29, %s9624_s13  ;;  %v2739_v28 = vsel %vm2736_vm7, %v2738_v35, %v2734_v55  ;;  %vm2748_vm10 = vmor %vm2746_vm9, %vm2747_vm8  ;;  %v8781_v33 = vpop.eup %8780  ;;  %8278 = vmatmul.msk.bf16.vlgmr.msra.gmra.mxu3 %vm883_vm1, %v8545_v7  ;;  %v8546_v35 = vld [vmem:[%s9710_s26 + $0x180] sm:$0xff] }
 0x49d   : > { %v10369_v4 = vsel %vm1543_vm6, %v2739_v28, %v8779_v8  ;;  %v2743_v24 = vsub.f32 1.0, %v2742_v9  ;;  %vm2751_vm11 = vcmp.eq.f32.partialorder %v2750_v19, 8.507059e+37  ;;  %5437 = vmatpush.bf16.msra.mxu3 %v10204_v12  ;;  %v8547_v19 = vld [vmem:[%s9710_s26 + $0x188] sm:$0xff] }
 0x49e   : > { %2900 = vrot.lane.b32.xlu1 %v10369_v4, %s9624_s13 }
 0x49f   : > { %v2744_v44 = vmul.f32 %v8777_v45, %v2743_v24 }
 0x4a1   : > { %v2745_v20 = vadd.f32 %v8777_v45, %v2744_v44  ;;  %5438 = vmatpush.bf16.msra.mxu3 %v10210_v23  ;;  %v1160_v44 = vadd.f32 %v10245_v27, %v1159_v26 }
 0x4a3   : > { %v2749_v56 = vsel %vm2748_vm10, %v8777_v45, %v2745_v20  ;;  %v2486_v45 = vpop.f32.mrf.mxu2  ;;  %v1161_v29 = vpop.f32.mrf.mxu0 }
 0x4a4   : > { %v2754_v18 = vsel %vm2751_vm11, %v2753_v59, %v2749_v56  ;;  %v1162_v9 = vadd.f32 %v10245_v27, %v1161_v29  ;;  %v10390_v23 = vadd.f32 %v2486_v45, %v1160_v44  ;;  %v8548_v45 = vld [vmem:[%s9710_s26 + $0x190] sm:$0xff] }
 0x4a5   : > { %v10376_v40 = vsel %vm1543_vm6, %v2754_v18, %v8781_v33 }
 0x4a6   : > { %2902 = vrot.lane.b32.xlu2 %v10376_v40, %s9624_s13  ;;  %v8347_v33 = vmul.f32 -1.442695, %v10390_v23 }
 0x4ab   : > { %v2488_v55 = vpop.f32.mrf.mxu2  ;;  %v1164_v8 = vpop.f32.mrf.mxu0 }
 0x4ac   : > { %8279 = vmatmul.msk.bf16.gmra.mxu3 %vm883_vm1, %v8546_v35  ;;  %v2509_v28 = vadd.f32 %v2488_v55, %v1162_v9  ;;  %v1165_v55 = vadd.f32 %v10245_v27, %v1164_v8  ;;  %v2848_v8 = vmul.f32 %v10262_v0, %v10087_v46  ;;  %v2849_v46 = vmul.f32 %v10269_v38, %v10102_v62 }
 0x4ae   : > { %v8348_v30 = vmul.f32 -1.442695, %v2509_v28 }
 0x4b0   : > { %8782 = vpow2.f32 %v8348_v30 }
 0x4b1   : > { %8784 = vpow2.f32 %v8347_v33 }
 0x4b3   : > { %v1166_v12 = vpop.f32.mrf.mxu0 }
 0x4b4   : > { %v2491_v24 = vpop.f32.mrf.mxu2  ;;  %v1167_v20 = vadd.f32 %v10245_v27, %v1166_v12 }
 0x4b5   : > { %v10402_v30 = vadd.f32 %v2491_v24, %v1165_v55 }
 0x4b6   : > { %v8783_v56 = vpop.eup %8782 }
 0x4b7   : > { %v2573_v7 = vadd.f32 1.0, %v8783_v56  ;;  %v8785_v9 = vpop.eup %8784 }
 0x4b9   : > { %8786 = vrcp.f32 %v2573_v7  ;;  %vm2776_vm13 = vweird.f32 %v2573_v7  ;;  %v2780_v15 = vand.u32 2147483647, %v2573_v7 }
 0x4bb   : > { %vm2781_vm15 = vcmp.eq.f32.partialorder %v2780_v15, 8.507059e+37 }
 0x4bc   : > { %8280 = vmatmul.msk.bf16.gmra.mxu3 %vm883_vm1, %v8547_v19  ;;  %v2493_v59 = vpop.f32.mrf.mxu2  ;;  %v10404_v19 = vadd.f32 1.0, %v8785_v9 }
 0x4bd   : > { %v10394_v18 = vadd.f32 %v2493_v59, %v1167_v20  ;;  %v8349_v20 = vmul.f32 -1.442695, %v10402_v30 }
 0x4be   : > { %vm2761_vm3 = vweird.f32 %v10404_v19 }
 0x4bf   : > { %v8350_v26 = vmul.f32 -1.442695, %v10394_v18  ;;  %v8787_v44 = vpop.eup %8786 }
 0x4c0   : > { %v2772_v59 = vmul.f32 %v8787_v44, %v2573_v7  ;;  %vm2777_vm12 = vweird.f32 %v8787_v44 }
 0x4c1   : > { %8788 = vpow2.f32 %v8350_v26  ;;  %vm2778_vm14 = vmor %vm2776_vm13, %vm2777_vm12 }
 0x4c2   : > { %8790 = vrcp.f32 %v10404_v19  ;;  %v2773_v33 = vsub.f32 1.0, %v2772_v59 }
 0x4c3   : > { %8792 = vpow2.f32 %v8349_v20 }
 0x4c7   : > { %v8789_v12 = vpop.eup %8788 }
 0x4c8   : > { %v10408_v27 = vadd.f32 1.0, %v8789_v12  ;;  %v10414_v26 = vpop.eup %8790 }
 0x4c9   : > { %v8793_v55 = vpop.eup %8792  ;;  %vm2762_vm0 = vweird.f32 %v10414_v26 }
 0x4ca   : > { %8794 = vrcp.f32 %v10408_v27  ;;  %v10426_v59 = vadd.f32 1.0, %v8793_v55  ;;  %vm2763_vm4 = vmor %vm2761_vm3, %vm2762_vm0  ;;  %vm2806_vm8 = vweird.f32 %v10408_v27 }
 0x4cc   : > { %8281 = vmatmul.msk.bf16.gmra.mxu3 %vm883_vm1, %v8548_v45  ;;  %v2757_v45 = vmul.f32 %v10414_v26, %v10404_v19  ;;  %vm2791_vm12 = vweird.f32 %v10426_v59 }
 0x4ce   : > { %v2758_v16 = vsub.f32 1.0, %v2757_v45 }
 0x4d0   : > { %v10424_v20 = vpop.eup %8794  ;;  %v2759_v55 = vmul.f32 %v10414_v26, %v2758_v16 }
 0x4d1   : > { %vm2807_vm7 = vweird.f32 %v10424_v20 }
 0x4d2   : > { %v2760_v16 = vadd.f32 %v10414_v26, %v2759_v55  ;;  %vm2808_vm9 = vmor %vm2806_vm8, %vm2807_vm7 }
 0x4d4   : > { %v2764_v55 = vsel %vm2763_vm4, %v10414_v26, %v2760_v16  ;;  %v2810_v16 = vand.u32 2147483647, %v10408_v27 }
 0x4d6   : > { %vm2811_vm10 = vcmp.eq.f32.partialorder %v2810_v16, 8.507059e+37 }
 0x4d8   : > { %v2893_v29 = vpop.permute.xlu2 %2892 }
 0x4d9   : > { %v2934_v35 = vmul.f32 %v2893_v29, %v10323_v63  ;;  %v2774_v29 = vmul.f32 %v8787_v44, %v2773_v33 }
 0x4db   : > { %2972 = vrot.lane.b32.xlu0 %v2934_v35, %s9624_s13  ;;  %v8549_v35 = vld [vmem:[%s9710_s26 + $0x198] sm:$0xff]  ;;  %v2775_v12 = vadd.f32 %v8787_v44, %v2774_v29  ;;  %v2802_v29 = vmul.f32 %v10424_v20, %v10408_v27 }
 0x4dc   : > { %8282 = vmatmul.msk.bf16.gmra.mxu3 %vm883_vm1, %v8549_v35 }
 0x4dd   : > { %v2779_v62 = vsel %vm2778_vm14, %v8787_v44, %v2775_v12 }
 0x4e6   : > { %v2961_v56 = vpop.permute.xlu0 %2960 }
 0x4e7   : > { %v10412_v24 = vadd.f32 %v2961_v56, %v2848_v8  ;;  %v2782_v56 = vand.u32 2147483648, %v2573_v7 }
 0x4e9   : > { %8796 = vtanh.f32 %v10412_v24  ;;  %v2783_v35 = vor.u32 1.1754944e-38, %v2782_v56  ;;  %v2765_v56 = vand.u32 2147483647, %v10404_v19 }
 0x4ea   : > { %8798 = vtanh.f32 %v2509_v28  ;;  %v2850_v28 = vmul.f32 %v10276_v13, %v10071_v22 }
 0x4eb   : > { %v2784_v7 = vsel %vm2781_vm15, %v2783_v35, %v2779_v62  ;;  %v8550_v35 = vld [vmem:[%s9710_s26 + $0x1a0] sm:$0xff]  ;;  %vm2766_vm5 = vcmp.eq.f32.partialorder %v2765_v56, 8.507059e+37 }
 0x4ec   : > { %8283 = vmatmul.msk.bf16.gmra.mxu3 %vm883_vm1, %v8550_v35 }
 0x4ee   : > { %v2963_v9 = vpop.permute.xlu1 %2962 }
 0x4ef   : > { %v10428_v8 = vadd.f32 %v2963_v9, %v2849_v46  ;;  %v8797_v33 = vpop.eup %8796  ;;  %v2803_v9 = vsub.f32 1.0, %v2802_v29  ;;  %v2967_v29 = vpop.permute.xlu2 %2966 }
 0x4f0   : > { %3056 = vrot.lane.b32.xlu2 %v8797_v33, %s9624_s13  ;;  %v8799_v45 = vpop.eup %8798 }
 0x4f1   : > { %8800 = vtanh.f32 %v10428_v8  ;;  %v10443_v44 = vsel %vm1543_vm6, %v2784_v7, %v8799_v45  ;;  %v2804_v62 = vmul.f32 %v10424_v20, %v2803_v9  ;;  %v2812_v9 = vand.u32 2147483648, %v10408_v27 }
 0x4f2   : > { %8802 = vrcp.f32 %v10426_v59 }
 0x4f3   : > { %v2805_v45 = vadd.f32 %v10424_v20, %v2804_v62  ;;  %v2813_v27 = vor.u32 1.1754944e-38, %v2812_v9 }
 0x4f5   : > { %v2809_v62 = vsel %vm2808_vm9, %v10424_v20, %v2805_v45 }
 0x4f6   : > { %v2965_v46 = vpop.permute.xlu1 %2964 }
 0x4f7   : > { %v8801_v11 = vpop.eup %8800  ;;  %v10438_v33 = vadd.f32 %v2965_v46, %v2850_v28 }
 0x4f8   : > { %3058 = vrot.lane.b32.xlu0 %v8801_v11, %s9624_s13  ;;  %v2895_v15 = vpop.permute.xlu0 %2894  ;;  %v10447_v22 = vpop.eup %8802  ;;  %2906 = vrot.lane.b32.xlu2 %v10443_v44, %s9624_s13  ;;  %v2767_v11 = vand.u32 2147483648, %v10404_v19  ;;  %v2851_v19 = vmul.f32 %v10286_v47, %v10092_v58 }
 0x4f9   : > { %8804 = vtanh.f32 %v10438_v33  ;;  %v2935_v12 = vmul.f32 %v2895_v15, %v10336_v54  ;;  %v2787_v28 = vmul.f32 %v10447_v22, %v10426_v59  ;;  %vm2792_vm11 = vweird.f32 %v10447_v22 }
 0x4fa   : > { %8806 = vtanh.f32 %v10390_v23  ;;  %v2768_v7 = vor.u32 1.1754944e-38, %v2767_v11  ;;  %v10469_v15 = vadd.f32 %v2967_v29, %v2851_v19  ;;  %v2969_v29 = vpop.permute.xlu2 %2968  ;;  %vm2793_vm13 = vmor %vm2791_vm12, %vm2792_vm11 }
 0x4fb   : > { %2974 = vrot.lane.b32.xlu1 %v2935_v12, %s9624_s13  ;;  %v2788_v12 = vsub.f32 1.0, %v2787_v28  ;;  %8808 = vtanh.f32 %v10394_v18  ;;  %v2852_v18 = vmul.f32 %v10292_v14, %v10119_v2  ;;  %v2797_v2 = vand.u32 2147483648, %v10426_v59 }
 0x4fc   : > { %v2769_v46 = vsel %vm2766_vm5, %v2768_v7, %v2764_v55  ;;  %8810 = vtanh.f32 %v10469_v15  ;;  %v2814_v55 = vsel %vm2811_vm10, %v2813_v27, %v2809_v62 }
 0x4fd   : > { %v2789_v35 = vmul.f32 %v10447_v22, %v2788_v12  ;;  %v10488_v28 = vadd.f32 %v2969_v29, %v2852_v18 }
 0x4ff   : > { %v8805_v23 = vpop.eup %8804  ;;  %v2790_v45 = vadd.f32 %v10447_v22, %v2789_v35  ;;  %8812 = vtanh.f32 %v10488_v28 }
 0x500   : > { %v2897_v26 = vpop.permute.xlu0 %2896  ;;  %v8807_v11 = vpop.eup %8806  ;;  %3060 = vrot.lane.b32.xlu2 %v8805_v23, %s9624_s13  ;;  %8814 = vtanh.f32 %v10402_v30 }
 0x501   : > { %v2936_v58 = vmul.f32 %v2897_v26, %v10351_v32  ;;  %v10478_v56 = vsel %vm1543_vm6, %v2769_v46, %v8807_v11  ;;  %v8809_v20 = vpop.eup %8808  ;;  %v8551_v46 = vld [vmem:[%s9710_s26 + $0x1a8] sm:$0xff]  ;;  %v2795_v26 = vand.u32 2147483647, %v10426_v59  ;;  %v2794_v16 = vsel %vm2793_vm13, %v10447_v22, %v2790_v45 }
 0x502   : > { %v10492_v19 = vsel %vm1543_vm6, %v2814_v55, %v8809_v20  ;;  %v8811_v9 = vpop.eup %8810  ;;  %v2798_v11 = vor.u32 1.1754944e-38, %v2797_v2  ;;  %8284 = vmatmul.msk.bf16.gmra.mxu3 %vm883_vm1, %v8551_v46  ;;  %v8552_v55 = vld [vmem:[%s9710_s26 + $0x1b0] sm:$0xff]  ;;  %v8554_v2 = vld [vmem:[%s9710_s26 + $0x1c0] sm:$0xff] }
 0x503   : > { %2904 = vrot.lane.b32.xlu1 %v10478_v56, %s9624_s13  ;;  %2976 = vrot.lane.b32.xlu0 %v2936_v58, %s9624_s13  ;;  %v2853_v58 = vmul.f32 %v10298_v17, %v10113_v1  ;;  %vm2796_vm14 = vcmp.eq.f32.partialorder %v2795_v26, 8.507059e+37  ;;  %v2903_v1 = vpop.permute.xlu2 %2902 }
 0x504   : > { %v2799_v62 = vsel %vm2796_vm14, %v2798_v11, %v2794_v16  ;;  %v2939_v35 = vmul.f32 %v2903_v1, %v10376_v40  ;;  %v8555_v16 = vld [vmem:[%s9710_s26 + $0x1c8] sm:$0xff]  ;;  %v2854_v1 = vmul.f32 %v10323_v63, %v10126_v5  ;;  %v2855_v5 = vmul.f32 %v10336_v54, %v10148_v49 }
 0x505   : > { %v8813_v59 = vpop.eup %8812  ;;  %v2856_v49 = vmul.f32 %v10351_v32, %v10162_v61  ;;  %v2857_v61 = vmul.f32 %v10359_v52, %v10154_v39 }
 0x506   : > { %v8815_v27 = vpop.eup %8814 }
 0x507   : > { %v10517_v22 = vsel %vm1543_vm6, %v2799_v62, %v8815_v27 }
 0x508   : > { %v2899_v7 = vpop.permute.xlu1 %2898  ;;  %2910 = vrot.lane.b32.xlu2 %v10492_v19, %s9624_s13  ;;  %v2971_v12 = vpop.permute.xlu0 %2970 }
 0x509   : > { %v2937_v23 = vmul.f32 %v2899_v7, %v10359_v52  ;;  %v10511_v29 = vadd.f32 %v2971_v12, %v2853_v58  ;;  %v8553_v7 = vld [vmem:[%s9710_s26 + $0x1b8] sm:$0xff] }
 0x50b   : > { %2978 = vrot.lane.b32.xlu1 %v2937_v23, %s9624_s13  ;;  %3062 = vrot.lane.b32.xlu0 %v8811_v9, %s9624_s13  ;;  %8816 = vtanh.f32 %v10511_v29 }
 0x510   : > { %v2901_v30 = vpop.permute.xlu1 %2900  ;;  %3064 = vrot.lane.b32.xlu2 %v8813_v59, %s9624_s13  ;;  %v8556_v59 = vld [vmem:[%s9710_s26 + $0x1d0] sm:$0xff] }
 0x511   : > { %v2938_v18 = vmul.f32 %v2901_v30, %v10369_v4  ;;  %v8817_v20 = vpop.eup %8816 }
 0x512   : > { %8285 = vmatmul.msk.bf16.gmra.mxu3 %vm883_vm1, %v8552_v55  ;;  %v8557_v55 = vld [vmem:[%s9710_s26 + $0x1d8] sm:$0xff] }
 0x513   : > { %2908 = vrot.lane.b32.xlu1 %v10517_v22, %s9624_s13  ;;  %2980 = vrot.lane.b32.xlu0 %v2938_v18, %s9624_s13 }
 0x51b   : > { %2982 = vrot.lane.b32.xlu1 %v2939_v35, %s9624_s13  ;;  %3066 = vrot.lane.b32.xlu0 %v8817_v20, %s9624_s13 }
 0x51f   : > { %v10530_v45 = vpop.f32.mrf.mxu3 }
 0x522   : > { %8286 = vmatmul.msk.bf16.gmra.mxu3 %vm883_vm1, %v8553_v7 }
 0x527   : > { %v10532_v23 = vpop.f32.mrf.mxu3 }
 0x52f   : > { %v10536_v46 = vpop.f32.mrf.mxu3 }
 0x530   : > { %12800 = vst [vmem:[#allocation21_spill] sm:$0xff] %v10536_v46 }
 0x532   : > { %8287 = vmatmul.msk.bf16.gmra.mxu3 %vm883_vm1, %v8554_v2 }
 0x537   : > { %v10538_v9 = vpop.f32.mrf.mxu3 }
 0x538   : > { %12801 = vst [vmem:[#allocation22_spill] sm:$0xff] %v10538_v9 }
 0x53f   : > { %v10542_v12 = vpop.f32.mrf.mxu3 }
 0x540   : > { %12802 = vst [vmem:[#allocation23_spill] sm:$0xff] %v10542_v12 }
 0x542   : > { %8288 = vmatmul.msk.bf16.gmra.mxu3 %vm883_vm1, %v8555_v16 }
 0x547   : > { %v10546_v62 = vpop.f32.mrf.mxu3 }
 0x548   : > { %12803 = vst [vmem:[#allocation24_spill] sm:$0xff] %v10546_v62 }
 0x54a   : > { %v3057_v26 = vpop.permute.xlu2 %3056 }
 0x54b   : > { %v3104_v20 = vmul.f32 %v3057_v26, %v10262_v0 }
 0x54d   : > { %v2973_v27 = vpop.permute.xlu0 %2972 }
 0x54e   : > { %v10559_v2 = vadd.f32 %v2973_v27, %v2854_v1 }
 0x54f   : > { %v10550_v30 = vpop.f32.mrf.mxu3 }
 0x550   : > { %12804 = vst [vmem:[#allocation25_spill] sm:$0xff] %v10550_v30  ;;  %8818 = vtanh.f32 %v10559_v2 }
 0x552   : > { %v2907_v11 = vpop.permute.xlu2 %2906  ;;  %8289 = vmatmul.msk.bf16.gmra.mxu3 %vm883_vm1, %v8556_v59 }
 0x553   : > { %v2941_v58 = vmul.f32 %v2907_v11, %v10443_v44 }
 0x555   : > { %2986 = vrot.lane.b32.xlu0 %v2941_v58, %s9624_s13 }
 0x556   : > { %v8819_v26 = vpop.eup %8818 }
 0x557   : > { %v10552_v18 = vpop.f32.mrf.mxu3 }
 0x558   : > { %12805 = vst [vmem:[#allocation26_spill] sm:$0xff] %v10552_v18 }
 0x55a   : > { %v3061_v1 = vpop.permute.xlu2 %3060 }
 0x55f   : > { %v10564_v58 = vpop.f32.mrf.mxu3 }
 0x560   : > { %12806 = vst [vmem:[#allocation27_spill] sm:$0xff] %v10564_v58 }
 0x562   : > { %8290 = vmatmul.msk.bf16.gmra.mxu3 %vm883_vm1, %v8557_v55  ;;  %v8558_v55 = vld [vmem:[%s9710_s26 + $0x1e0] sm:$0xff] }
 0x56a   : > { %v3059_v35 = vpop.permute.xlu0 %3058 }
 0x56b   : > { %v3105_v7 = vmul.f32 %v3059_v35, %v10269_v38  ;;  %v10573_v35 = vpop.f32.mrf.mxu3 }
 0x56c   : > { %12807 = vst [vmem:[#allocation28_spill] sm:$0xff] %v10573_v35  ;;  %v2911_v35 = vpop.permute.xlu2 %2910 }
 0x56d   : > { %v3137_v16 = vpack.c.bf16 %v3105_v7, %v3104_v20  ;;  %v2975_v11 = vpop.permute.xlu1 %2974 }
 0x56e   : > { %v10568_v59 = vadd.f32 %v2975_v11, %v2855_v5 }
 0x56f   : > { %3153 = vrot.lane.b32.xlu1 %v3137_v16, %s9625_s18  ;;  %v3106_v16 = vmul.f32 %v3061_v1, %v10276_v13 }
 0x570   : > { %8820 = vtanh.f32 %v10568_v59 }
 0x572   : > { %8291 = vmatmul.msk.bf16.gmra.mxu3 %vm883_vm1, %v8558_v55  ;;  %v2943_v55 = vmul.f32 %v2911_v35, %v10492_v19  ;;  %v2859_v35 = vmul.f32 %v10376_v40, %v10165_v43 }
 0x575   : > { %v2905_v0 = vpop.permute.xlu1 %2904  ;;  %v2977_v38 = vpop.permute.xlu0 %2976 }
 0x576   : > { %v2940_v27 = vmul.f32 %v2905_v0, %v10478_v56  ;;  %v8821_v5 = vpop.eup %8820  ;;  %v10582_v0 = vadd.f32 %v2977_v38, %v2856_v49  ;;  %v2858_v38 = vmul.f32 %v10369_v4, %v10172_v31  ;;  %v3065_v31 = vpop.permute.xlu2 %3064 }
 0x577   : > { %3068 = vrot.lane.b32.xlu1 %v8819_v26, %s9624_s13 }
 0x578   : > { %2984 = vrot.lane.b32.xlu2 %v2940_v27, %s9624_s13  ;;  %v10585_v27 = vpop.f32.mrf.mxu3  ;;  %8822 = vtanh.f32 %v10582_v0 }
 0x579   : > { %12808 = vst [vmem:[#allocation29_spill] sm:$0xff] %v10585_v27 }
 0x57d   : > { %v2979_v20 = vpop.permute.xlu1 %2978  ;;  %v3063_v7 = vpop.permute.xlu0 %3062 }
 0x57e   : > { %v3107_v11 = vmul.f32 %v3063_v7, %v10286_v47  ;;  %v10591_v13 = vadd.f32 %v2979_v20, %v2857_v61  ;;  %v8823_v39 = vpop.eup %8822  ;;  %v8559_v20 = vld [vmem:[%s9710_s26 + $0x1e8] sm:$0xff] }
 0x580   : > { %v3138_v26 = vpack.c.bf16 %v3107_v11, %v3106_v16  ;;  %3070 = vrot.lane.b32.xlu2 %v8821_v5, %s9624_s13  ;;  %v10601_v16 = vpop.f32.mrf.mxu3  ;;  %8824 = vtanh.f32 %v10591_v13 }
 0x581   : > { %12809 = vst [vmem:[#allocation30_spill] sm:$0xff] %v10601_v16 }
 0x582   : > { %3155 = vrot.lane.b32.xlu0 %v3138_v26, %s9625_s18  ;;  %v3108_v26 = vmul.f32 %v3065_v31, %v10292_v14  ;;  %8292 = vmatmul.msk.bf16.gmra.mxu3 %vm883_vm1, %v8559_v20  ;;  %v8561_v31 = vld [vmem:[%s9710_s26 + $0x1f8] sm:$0xff] }
 0x585   : > { %v2909_v47 = vpop.permute.xlu1 %2908  ;;  %v2981_v1 = vpop.permute.xlu0 %2980 }
 0x586   : > { %v2942_v49 = vmul.f32 %v2909_v47, %v10517_v22  ;;  %v10597_v7 = vadd.f32 %v2981_v1, %v2858_v38  ;;  %v8825_v38 = vpop.eup %8824 }
 0x588   : > { %2990 = vrot.lane.b32.xlu2 %v2943_v55, %s9624_s13  ;;  %2988 = vrot.lane.b32.xlu1 %v2942_v49, %s9624_s13  ;;  %8826 = vtanh.f32 %v10597_v7  ;;  %v10616_v43 = vpop.f32.mrf.mxu3  ;;  %v8560_v49 = vld [vmem:[%s9710_s26 + $0x1f0] sm:$0xff] }
 0x589   : > { %12810 = vst [vmem:[#allocation31_spill] sm:$0xff] %v10616_v43 }
 0x58a   : > { %3072 = vrot.lane.b32.xlu0 %v8823_v39, %s9624_s13 }
 0x58d   : > { %v2983_v11 = vpop.permute.xlu1 %2982  ;;  %v3067_v5 = vpop.permute.xlu0 %3066 }
 0x58e   : > { %v10610_v61 = vadd.f32 %v2983_v11, %v2859_v35  ;;  %v3109_v47 = vmul.f32 %v3067_v5, %v10298_v17  ;;  %v8827_v55 = vpop.eup %8826  ;;  %v8514_v11 = vld [vmem:[%s9710_s26 + $0x80] sm:$0xff] }
 0x58f   : > { %8247 = vmatmul.msk.bf16.gmra.mxu0 %vm883_vm1, %v8514_v11 }
 0x590   : > { %8828 = vtanh.f32 %v10610_v61  ;;  %v3139_v1 = vpack.c.bf16 %v3109_v47, %v3108_v26  ;;  %3074 = vrot.lane.b32.xlu1 %v8825_v38, %s9624_s13  ;;  %v10621_v17 = vpop.f32.mrf.mxu3  ;;  %v2861_v26 = vmul.f32 %v10443_v44, %v10182_v36 }
 0x591   : > { %12811 = vst [vmem:[#allocation32_spill] sm:$0xff] %v10621_v17 }
 0x592   : > { %3076 = vrot.lane.b32.xlu0 %v8827_v55, %s9624_s13  ;;  %3157 = vrot.lane.b32.xlu2 %v3139_v1, %s9625_s18  ;;  %v8515_v55 = vld [vmem:[%s9710_s26 + $0x88] sm:$0xff] }
 0x593   : > { %8293 = vmatmul.msk.bf16.gmra.mxu3 %vm883_vm1, %v8560_v49  ;;  %v2860_v49 = vmul.f32 %v10478_v56, %v10186_v60  ;;  %v2863_v60 = vmul.f32 %v10492_v19, %v10220_v25 }
 0x596   : > { %v8829_v14 = vpop.eup %8828 }
 0x598   : > { %3078 = vrot.lane.b32.xlu1 %v8829_v14, %s9624_s13  ;;  %v10625_v39 = vpop.f32.mrf.mxu3 }
 0x599   : > { %12812 = vst [vmem:[#allocation33_spill] sm:$0xff] %v10625_v39 }
 0x59f   : > { %8248 = vmatmul.msk.bf16.gmra.mxu0 %vm883_vm1, %v8515_v55 }
 0x5a0   : > { %v10627_v20 = vpop.f32.mrf.mxu3 }
 0x5a1   : > { %12813 = vst [vmem:[#allocation34_spill] sm:$0xff] %v10627_v20 }
 0x5a3   : > { %8294 = vmatmul.msk.bf16.gmra.mxu3 %vm883_vm1, %v8561_v31 }
 0x5a8   : > { %v10631_v35 = vpop.f32.mrf.mxu3 }
 0x5a9   : > { %12814 = vst [vmem:[#allocation35_spill] sm:$0xff] %v10631_v35 }
 0x5b0   : > { %v10634_v5 = vpop.f32.mrf.mxu3 }
 0x5b1   : > { %12815 = vst [vmem:[#allocation36_spill] sm:$0xff] %v10634_v5 }
 0x5b8   : > { %v10639_v47 = vpop.f32.mrf.mxu3 }
 0x5b9   : > { %12816 = vst [vmem:[#allocation37_spill] sm:$0xff] %v10639_v47 }
 0x5c0   : > { %v10648_v31 = vpop.f32.mrf.mxu3 }
 0x5c1   : > { %12817 = vst [vmem:[#allocation38_spill] sm:$0xff] %v10648_v31 }
 0x5c7   : > { %v2987_v38 = vpop.permute.xlu0 %2986 }
 0x5c8   : > { %v10641_v1 = vadd.f32 %v2987_v38, %v2861_v26  ;;  %v10654_v47 = vpop.f32.mrf.mxu3 }
 0x5c9   : > { %12818 = vst [vmem:[#allocation39_spill] sm:$0xff] %v10654_v47 }
 0x5ca   : > { %8830 = vtanh.f32 %v10641_v1 }
 0x5d0   : > { %v8831_v14 = vpop.eup %8830 }
 0x5d1   : > { %3082 = vrot.lane.b32.xlu1 %v8831_v14, %s9624_s13  ;;  %v10663_v14 = vpop.f32.mrf.mxu3 }
 0x5d2   : > { %v2985_v36 = vpop.permute.xlu2 %2984  ;;  %12819 = vst [vmem:[#allocation40_spill] sm:$0xff] %v10663_v14 }
 0x5d3   : > { %v10651_v11 = vadd.f32 %v2985_v36, %v2860_v49  ;;  %v8516_v49 = vld [vmem:[%s9710_s26 + $0x90] sm:$0xff] }
 0x5d4   : > { %8249 = vmatmul.msk.bf16.gmra.mxu0 %vm883_vm1, %v8516_v49 }
 0x5d5   : > { %8832 = vtanh.f32 %v10651_v11 }
 0x5d9   : > { %v10671_v25 = vpop.f32.mrf.mxu3 }
 0x5da   : > { %v3071_v26 = vpop.permute.xlu2 %3070  ;;  %12820 = vst [vmem:[#allocation41_spill] sm:$0xff] %v10671_v25 }
 0x5db   : > { %v8833_v38 = vpop.eup %8832  ;;  %v3111_v47 = vmul.f32 %v3071_v26, %v10336_v54 }
 0x5dc   : > { %3080 = vrot.lane.b32.xlu0 %v8833_v38, %s9624_s13 }
 0x5e1   : > { %v3154_v55 = vpop.permute.xlu1 %3153 }
 0x5e2   : > { %v2991_v5 = vpop.permute.xlu2 %2990  ;;  %8351 = vmatmul.msk.bf16.vlgmr.msrb.gmra.mxu3 %vm1612_vm2, %v3154_v55  ;;  %v2862_v55 = vmul.f32 %v10517_v22, %v10194_v51 }
 0x5e3   : > { %v10660_v31 = vadd.f32 %v2991_v5, %v2863_v60  ;;  %v10676_v60 = vpop.f32.mrf.mxu3 }
 0x5e4   : > { %12821 = vst [vmem:[#allocation42_spill] sm:$0xff] %v10676_v60 }
 0x5e5   : > { %8834 = vtanh.f32 %v10660_v31 }
 0x5e9   : > { %v3069_v36 = vpop.permute.xlu1 %3068 }
 0x5ea   : > { %v3110_v38 = vmul.f32 %v3069_v36, %v10323_v63 }
 0x5eb   : > { %v8835_v35 = vpop.eup %8834  ;;  %v10683_v36 = vpop.f32.mrf.mxu3 }
 0x5ec   : > { %v3140_v20 = vpack.c.bf16 %v3111_v47, %v3110_v38  ;;  %3086 = vrot.lane.b32.xlu1 %v8835_v35, %s9624_s13  ;;  %12822 = vst [vmem:[#allocation43_spill] sm:$0xff] %v10683_v36  ;;  %v3158_v38 = vpop.permute.xlu2 %3157 }
 0x5ee   : > { %3159 = vrot.lane.b32.xlu2 %v3140_v20, %s9625_s18 }
 0x5f4   : > { %v3156_v5 = vpop.permute.xlu0 %3155 }
 0x5f5   : > { %8352 = vmatmul.msk.bf16.gmra.mxu3 %vm1612_vm2, %v3156_v5 }
 0x5fa   : > { %v2989_v49 = vpop.permute.xlu1 %2988 }
 0x5fb   : > { %v10678_v54 = vadd.f32 %v2989_v49, %v2862_v55 }
 0x5fc   : > { %v3073_v63 = vpop.permute.xlu0 %3072 }
 0x5fd   : > { %8836 = vtanh.f32 %v10678_v54  ;;  %v3112_v20 = vmul.f32 %v3073_v63, %v10351_v32 }
 0x602   : > { %v3075_v47 = vpop.permute.xlu1 %3074 }
 0x603   : > { %v8837_v35 = vpop.eup %8836  ;;  %v3113_v26 = vmul.f32 %v3075_v47, %v10359_v52  ;;  %v10690_v52 = vpop.f32.mrf.mxu3 }
 0x604   : > { %3084 = vrot.lane.b32.xlu0 %v8837_v35, %s9624_s13  ;;  %v3077_v5 = vpop.permute.xlu0 %3076  ;;  %12823 = vst [vmem:[#allocation44_spill] sm:$0xff] %v10690_v52 }
 0x605   : > { %v3141_v51 = vpack.c.bf16 %v3113_v26, %v3112_v20  ;;  %8353 = vmatmul.msk.bf16.gmra.mxu3 %vm1612_vm2, %v3158_v38  ;;  %v3114_v49 = vmul.f32 %v3077_v5, %v10369_v4  ;;  %v8517_v20 = vld [vmem:[%s9710_s26 + $0x98] sm:$0xff] }
 0x606   : > { %8250 = vmatmul.msk.bf16.gmra.mxu0 %vm883_vm1, %v8517_v20 }
 0x607   : > { %3161 = vrot.lane.b32.xlu2 %v3141_v51, %s9625_s18 }
 0x60a   : > { %v3079_v55 = vpop.permute.xlu1 %3078 }
 0x60b   : > { %v3115_v32 = vmul.f32 %v3079_v55, %v10376_v40  ;;  %v10693_v47 = vpop.f32.mrf.mxu3  ;;  %v8518_v40 = vld [vmem:[%s9710_s26 + $0xa0] sm:$0xff] }
 0x60c   : > { %12824 = vst [vmem:[#allocation45_spill] sm:$0xff] %v10693_v47 }
 0x60d   : > { %v3142_v63 = vpack.c.bf16 %v3115_v32, %v3114_v49 }
 0x60f   : > { %3163 = vrot.lane.b32.xlu2 %v3142_v63, %s9625_s18 }
 0x613   : > { %v10695_v35 = vpop.f32.mrf.mxu3 }
 0x614   : > { %12825 = vst [vmem:[#allocation46_spill] sm:$0xff] %v10695_v35 }
 0x616   : > { %8251 = vmatmul.msk.bf16.gmra.mxu0 %vm883_vm1, %v8518_v40  ;;  %v1169_v40 = vpop.f32.mrf.mxu0 }
 0x61b   : > { %v10698_v26 = vpop.f32.mrf.mxu3 }
 0x61c   : > { %12826 = vst [vmem:[#allocation47_spill] sm:$0xff] %v10698_v26 }
 0x623   : > { %v10701_v38 = vpop.f32.mrf.mxu3 }
 0x624   : > { %12827 = vst [vmem:[#allocation48_spill] sm:$0xff] %v10701_v38 }
 0x62b   : > { %v10703_v4 = vpop.f32.mrf.mxu3 }
 0x62c   : > { %12828 = vst [vmem:[#allocation49_spill] sm:$0xff] %v10703_v4  ;;  %v8519_v4 = vld [vmem:[%s9710_s26 + $0xa8] sm:$0xff] }
 0x62d   : > { %8252 = vmatmul.msk.bf16.gmra.mxu0 %vm883_vm1, %v8519_v4 }
 0x633   : > { %v10707_v5 = vpop.f32.mrf.mxu3 }
 0x634   : > { %12829 = vst [vmem:[#allocation50_spill] sm:$0xff] %v10707_v5 }
 0x63b   : > { %v10712_v20 = vpop.f32.mrf.mxu3 }
 0x63c   : > { %12830 = vst [vmem:[#allocation51_spill] sm:$0xff] %v10712_v20 }
 0x643   : > { %v3083_v55 = vpop.permute.xlu1 %3082  ;;  %v10717_v38 = vpop.f32.mrf.mxu3 }
 0x644   : > { %v3117_v32 = vmul.f32 %v3083_v55, %v10443_v44  ;;  %12831 = vst [vmem:[#allocation52_spill] sm:$0xff] %v10717_v38 }
 0x648   : > { %v3160_v51 = vpop.permute.xlu2 %3159 }
 0x649   : > { %8354 = vmatmul.msk.bf16.gmra.mxu3 %vm1612_vm2, %v3160_v51  ;;  %v10722_v51 = vld [vmem:[%s12776_s6] ss:$0 sm:$0xff] }
 0x64a   : > { %v1170_v44 = vadd.f32 %v10722_v51, %v1169_v40 }
 0x64e   : > { %v3081_v49 = vpop.permute.xlu0 %3080 }
 0x64f   : > { %v3116_v63 = vmul.f32 %v3081_v49, %v10478_v56  ;;  %v1171_v56 = vpop.f32.mrf.mxu0 }
 0x650   : > { %v1172_v4 = vadd.f32 %v10722_v51, %v1171_v56 }
 0x651   : > { %v3143_v26 = vpack.c.bf16 %v3117_v32, %v3116_v63 }
 0x653   : > { %3165 = vrot.lane.b32.xlu0 %v3143_v26, %s9625_s18 }
 0x657   : > { %v1174_v38 = vpop.f32.mrf.mxu0 }
 0x65e   : > { %v3087_v40 = vpop.permute.xlu1 %3086 }
 0x661   : > { %v3162_v5 = vpop.permute.xlu2 %3161 }
 0x662   : > { %8355 = vmatmul.msk.bf16.gmra.mxu3 %vm1612_vm2, %v3162_v5  ;;  %v1175_v5 = vadd.f32 %v10722_v51, %v1174_v38 }
 0x665   : > { %v3202_v55 = vpop.f32.mrf.mxu3 }
 0x666   : > { %v3242_v49 = vadd.f32 %v3202_v55, %v1170_v44  ;;  %v3119_v44 = vmul.f32 %v3087_v40, %v10492_v19 }
 0x668   : > { %v8359_v26 = vmul.f32 -1.442695, %v3242_v49 }
 0x669   : > { %v3164_v52 = vpop.permute.xlu2 %3163 }
 0x66a   : > { %8838 = vpow2.f32 %v8359_v26  ;;  %v1176_v26 = vpop.f32.mrf.mxu0 }
 0x66d   : > { %v3204_v32 = vpop.f32.mrf.mxu3 }
 0x66e   : > { %v3243_v63 = vadd.f32 %v3204_v32, %v1172_v4 }
 0x670   : > { %v8839_v20 = vpop.eup %8838  ;;  %v8360_v35 = vmul.f32 -1.442695, %v3243_v63 }
 0x671   : > { %v3306_v47 = vadd.f32 1.0, %v8839_v20 }
 0x672   : > { %8840 = vpow2.f32 %v8360_v35  ;;  %8356 = vmatmul.msk.bf16.gmra.mxu3 %vm1612_vm2, %v3164_v52 }
 0x673   : > { %8842 = vrcp.f32 %v3306_v47  ;;  %v3333_v38 = vand.u32 2147483648, %v3306_v47  ;;  %v3331_v19 = vand.u32 2147483647, %v3306_v47  ;;  %vm3327_vm0 = vweird.f32 %v3306_v47 }
 0x675   : > { %vm3332_vm4 = vcmp.eq.f32.partialorder %v3331_v19, 8.507059e+37 }
 0x676   : > { %v3085_v36 = vpop.permute.xlu0 %3084 }
 0x677   : > { %v3118_v55 = vmul.f32 %v3085_v36, %v10517_v22  ;;  %v1177_v22 = vadd.f32 %v10722_v51, %v1176_v26 }
 0x678   : > { %v8841_v56 = vpop.eup %8840  ;;  %v3207_v4 = vpop.f32.mrf.mxu3 }
 0x679   : > { %v8843_v32 = vpop.eup %8842  ;;  %v3307_v60 = vadd.f32 1.0, %v8841_v56  ;;  %v3144_v25 = vpack.c.bf16 %v3119_v44, %v3118_v55  ;;  %v3244_v20 = vadd.f32 %v3207_v4, %v1175_v5  ;;  %v1179_v56 = vpop.f32.mrf.mxu0  ;;  %v3334_v55 = vor.u32 1.1754944e-38, %v3333_v38 }
 0x67a   : > { %v3323_v14 = vmul.f32 %v8843_v32, %v3306_v47  ;;  %vm3328_vm15 = vweird.f32 %v8843_v32  ;;  %v1180_v26 = vadd.f32 %v10722_v51, %v1179_v56 }
 0x67b   : > { %8844 = vrcp.f32 %v3307_v60  ;;  %v8361_v35 = vmul.f32 -1.442695, %v3244_v20  ;;  %3167 = vrot.lane.b32.xlu1 %v3144_v25, %s9625_s18  ;;  %vm3329_vm3 = vmor %vm3327_vm0, %vm3328_vm15  ;;  %v3346_v19 = vand.u32 2147483647, %v3307_v60  ;;  %vm3342_vm7 = vweird.f32 %v3307_v60 }
 0x67c   : > { %8846 = vtanh.f32 %v3242_v49  ;;  %v3324_v52 = vsub.f32 1.0, %v3323_v14 }
 0x67d   : > { %8848 = vpow2.f32 %v8361_v35  ;;  %vm3347_vm9 = vcmp.eq.f32.partialorder %v3346_v19, 8.507059e+37 }
 0x67e   : > { %v3325_v39 = vmul.f32 %v8843_v32, %v3324_v52  ;;  %8850 = vtanh.f32 %v3243_v63 }
 0x680   : > { %v3209_v36 = vpop.f32.mrf.mxu3  ;;  %v3326_v40 = vadd.f32 %v8843_v32, %v3325_v39 }
 0x681   : > { %v8845_v44 = vpop.eup %8844  ;;  %v10733_v5 = vadd.f32 %v3209_v36, %v1177_v22 }
 0x682   : > { %v8847_v4 = vpop.eup %8846  ;;  %v3330_v25 = vsel %vm3329_vm3, %v8843_v32, %v3326_v40  ;;  %v3338_v14 = vmul.f32 %v8845_v44, %v3307_v60  ;;  %v3348_v32 = vand.u32 2147483648, %v3307_v60  ;;  %vm3343_vm5 = vweird.f32 %v8845_v44 }
 0x683   : > { %v8849_v49 = vpop.eup %8848  ;;  %v8362_v35 = vmul.f32 -1.442695, %v10733_v5  ;;  %v3335_v52 = vsel %vm3332_vm4, %v3334_v55, %v3330_v25  ;;  %vm3344_vm8 = vmor %vm3342_vm7, %vm3343_vm5  ;;  %v1181_v25 = vpop.f32.mrf.mxu0 }
 0x684   : > { %v3308_v17 = vadd.f32 1.0, %v8849_v49  ;;  %v10738_v39 = vsel %vm1543_vm6, %v3335_v52, %v8847_v4  ;;  %v3339_v47 = vsub.f32 1.0, %v3338_v14  ;;  %v3349_v40 = vor.u32 1.1754944e-38, %v3348_v32  ;;  %v8851_v55 = vpop.eup %8850 }
 0x685   : > { %8852 = vpow2.f32 %v8362_v35  ;;  %3626 = vrot.lane.b32.xlu2 %v10738_v39, %s9624_s13  ;;  %v1182_v60 = vadd.f32 %v10722_v51, %v1181_v25 }
 0x686   : > { %8854 = vrcp.f32 %v3308_v17  ;;  %v3340_v38 = vmul.f32 %v8845_v44, %v3339_v47  ;;  %vm3357_vm11 = vweird.f32 %v3308_v17 }
 0x688   : > { %v3212_v22 = vpop.f32.mrf.mxu3  ;;  %v3341_v36 = vadd.f32 %v8845_v44, %v3340_v38  ;;  %v3363_v38 = vand.u32 2147483648, %v3308_v17 }
 0x689   : > { %v10743_v63 = vadd.f32 %v3212_v22, %v1180_v26 }
 0x68a   : > { %v3345_v4 = vsel %vm3344_vm8, %v8845_v44, %v3341_v36  ;;  %v3361_v36 = vand.u32 2147483647, %v3308_v17 }
 0x68b   : > { %v8853_v14 = vpop.eup %8852  ;;  %v8363_v49 = vmul.f32 -1.442695, %v10743_v63  ;;  %v3350_v56 = vsel %vm3347_vm9, %v3349_v40, %v3345_v4 }
 0x68c   : > { %v8855_v35 = vpop.eup %8854  ;;  %v3309_v52 = vadd.f32 1.0, %v8853_v14  ;;  %v10748_v47 = vsel %vm1543_vm6, %v3350_v56, %v8851_v55  ;;  %v3364_v56 = vor.u32 1.1754944e-38, %v3363_v38  ;;  %vm3362_vm13 = vcmp.eq.f32.partialorder %v3361_v36, 8.507059e+37 }
 0x68d   : > { %8856 = vpow2.f32 %v8363_v49  ;;  %3628 = vrot.lane.b32.xlu0 %v10748_v47, %s9624_s13  ;;  %v3353_v26 = vmul.f32 %v8855_v35, %v3308_v17  ;;  %vm3358_vm10 = vweird.f32 %v8855_v35 }
 0x68e   : > { %8858 = vrcp.f32 %v3309_v52  ;;  %vm3359_vm12 = vmor %vm3357_vm11, %vm3358_vm10  ;;  %v3378_v17 = vand.u32 2147483648, %v3309_v52  ;;  %v3376_v38 = vand.u32 2147483647, %v3309_v52  ;;  %vm3372_vm15 = vweird.f32 %v3309_v52 }
 0x68f   : > { %v3354_v44 = vsub.f32 1.0, %v3353_v26  ;;  %8860 = vtanh.f32 %v3244_v20 }
 0x690   : > { %v3214_v32 = vpop.f32.mrf.mxu3  ;;  %vm3377_vm3 = vcmp.eq.f32.partialorder %v3376_v38, 8.507059e+37 }
 0x691   : > { %v3247_v19 = vadd.f32 %v3214_v32, %v1182_v60  ;;  %v3355_v22 = vmul.f32 %v8855_v35, %v3354_v44 }
 0x693   : > { %v8857_v40 = vpop.eup %8856  ;;  %v8364_v4 = vmul.f32 -1.442695, %v3247_v19  ;;  %v3356_v55 = vadd.f32 %v8855_v35, %v3355_v22 }
 0x694   : > { %v8859_v14 = vpop.eup %8858  ;;  %v3310_v49 = vadd.f32 1.0, %v8857_v40 }
 0x695   : > { %8862 = vpow2.f32 %v8364_v4  ;;  %v3360_v25 = vsel %vm3359_vm12, %v8855_v35, %v3356_v55  ;;  %v3368_v43 = vmul.f32 %v8859_v14, %v3309_v52  ;;  %v8861_v26 = vpop.eup %8860  ;;  %vm3373_vm14 = vweird.f32 %v8859_v14 }
 0x696   : > { %8864 = vrcp.f32 %v3310_v49  ;;  %v3365_v20 = vsel %vm3362_vm13, %v3364_v56, %v3360_v25  ;;  %vm3374_vm0 = vmor %vm3372_vm15, %vm3373_vm14  ;;  %v3379_v4 = vor.u32 1.1754944e-38, %v3378_v17  ;;  %v3393_v52 = vand.u32 2147483648, %v3310_v49 }
 0x697   : > { %v10755_v60 = vsel %vm1543_vm6, %v3365_v20, %v8861_v26  ;;  %v3369_v44 = vsub.f32 1.0, %v3368_v43  ;;  %8866 = vtanh.f32 %v10733_v5  ;;  %vm3387_vm5 = vweird.f32 %v3310_v49 }
 0x698   : > { %3630 = vrot.lane.b32.xlu1 %v10755_v60, %s9624_s13 }
 0x699   : > { %v3370_v32 = vmul.f32 %v8859_v14, %v3369_v44 }
 0x69b   : > { %v8863_v35 = vpop.eup %8862  ;;  %v3371_v22 = vadd.f32 %v8859_v14, %v3370_v32  ;;  %v3394_v32 = vor.u32 1.1754944e-38, %v3393_v52 }
 0x69c   : > { %v8865_v36 = vpop.eup %8864  ;;  %v3311_v40 = vadd.f32 1.0, %v8863_v35 }
 0x69d   : > { %v3375_v55 = vsel %vm3374_vm0, %v8859_v14, %v3371_v22  ;;  %v3383_v56 = vmul.f32 %v8865_v36, %v3310_v49  ;;  %v8867_v43 = vpop.eup %8866  ;;  %vm3388_vm4 = vweird.f32 %v8865_v36  ;;  %v3391_v14 = vand.u32 2147483647, %v3310_v49 }
 0x69e   : > { %8868 = vrcp.f32 %v3311_v40  ;;  %v3380_v5 = vsel %vm3377_vm3, %v3379_v4, %v3375_v55  ;;  %vm3389_vm7 = vmor %vm3387_vm5, %vm3388_vm4  ;;  %v8520_v55 = vld [vmem:[%s9710_s26 + $0xb0] sm:$0xff]  ;;  %vm3402_vm10 = vweird.f32 %v3311_v40 }
 0x69f   : > { %v10762_v25 = vsel %vm1543_vm6, %v3380_v5, %v8867_v43  ;;  %v3384_v26 = vsub.f32 1.0, %v3383_v56  ;;  %8870 = vtanh.f32 %v10743_v63  ;;  %vm3392_vm8 = vcmp.eq.f32.partialorder %v3391_v14, 8.507059e+37  ;;  %8253 = vmatmul.msk.bf16.gmra.mxu0 %vm883_vm1, %v8520_v55 }
 0x6a0   : > { %3632 = vrot.lane.b32.xlu2 %v10762_v25, %s9624_s13  ;;  %8872 = vtanh.f32 %v3247_v19  ;;  %v3408_v43 = vand.u32 2147483648, %v3311_v40 }
 0x6a1   : > { %v3385_v20 = vmul.f32 %v8865_v36, %v3384_v26 }
 0x6a2   : > { %v3409_v26 = vor.u32 1.1754944e-38, %v3408_v43 }
 0x6a3   : > { %v3386_v44 = vadd.f32 %v8865_v36, %v3385_v20 }
 0x6a4   : > { %v8869_v17 = vpop.eup %8868 }
 0x6a5   : > { %v3390_v38 = vsel %vm3389_vm7, %v8865_v36, %v3386_v44  ;;  %v3398_v35 = vmul.f32 %v8869_v17, %v3311_v40  ;;  %v8871_v22 = vpop.eup %8870  ;;  %vm3403_vm9 = vweird.f32 %v8869_v17  ;;  %v3406_v36 = vand.u32 2147483647, %v3311_v40  ;;  %v1184_v44 = vpop.f32.mrf.mxu0  ;;  %v8521_v40 = vld [vmem:[%s9710_s26 + $0xb8] sm:$0xff] }
 0x6a6   : > { %v3395_v4 = vsel %vm3392_vm8, %v3394_v32, %v3390_v38  ;;  %vm3404_vm11 = vmor %vm3402_vm10, %vm3403_vm9  ;;  %v8873_v20 = vpop.eup %8872  ;;  %v1185_v38 = vadd.f32 %v10722_v51, %v1184_v44 }
 0x6a7   : > { %v10770_v63 = vsel %vm1543_vm6, %v3395_v4, %v8871_v22  ;;  %v3399_v56 = vsub.f32 1.0, %v3398_v35  ;;  %vm3407_vm12 = vcmp.eq.f32.partialorder %v3406_v36, 8.507059e+37 }
 0x6a8   : > { %3634 = vrot.lane.b32.xlu0 %v10770_v63, %s9624_s13 }
 0x6a9   : > { %v3400_v49 = vmul.f32 %v8869_v17, %v3399_v56 }
 0x6ab   : > { %v3401_v5 = vadd.f32 %v8869_v17, %v3400_v49 }
 0x6ad   : > { %v3405_v52 = vsel %vm3404_vm11, %v8869_v17, %v3401_v5  ;;  %v1186_v22 = vpop.f32.mrf.mxu0 }
 0x6ae   : > { %v3410_v14 = vsel %vm3407_vm12, %v3409_v26, %v3405_v52  ;;  %v1187_v55 = vadd.f32 %v10722_v51, %v1186_v22 }
 0x6af   : > { %v10777_v19 = vsel %vm1543_vm6, %v3410_v14, %v8873_v20  ;;  %8254 = vmatmul.msk.bf16.gmra.mxu0 %vm883_vm1, %v8521_v40 }
 0x6b0   : > { %3636 = vrot.lane.b32.xlu1 %v10777_v19, %s9624_s13 }
 0x6b5   : > { %v1189_v26 = vpop.f32.mrf.mxu0 }
 0x6b6   : > { %v1190_v40 = vadd.f32 %v10722_v51, %v1189_v26 }
 0x6c5   : > { %v3166_v32 = vpop.permute.xlu0 %3165 }
 0x6c6   : > { %8357 = vmatmul.msk.bf16.gmra.mxu3 %vm1612_vm2, %v3166_v32 }
 0x6cc   : > { %v3217_v35 = vpop.f32.mrf.mxu3 }
 0x6cd   : > { %v3248_v17 = vadd.f32 %v3217_v35, %v1185_v38  ;;  %v1191_v35 = vpop.f32.mrf.mxu0 }
 0x6ce   : > { %v1192_v26 = vadd.f32 %v10722_v51, %v1191_v35 }
 0x6cf   : > { %v8365_v4 = vmul.f32 -1.442695, %v3248_v17 }
 0x6d1   : > { %8874 = vpow2.f32 %v8365_v4 }
 0x6d4   : > { %v3219_v56 = vpop.f32.mrf.mxu3 }
 0x6d5   : > { %v3249_v43 = vadd.f32 %v3219_v56, %v1187_v55 }
 0x6d7   : > { %v8875_v49 = vpop.eup %8874  ;;  %v8366_v36 = vmul.f32 -1.442695, %v3249_v43 }
 0x6d8   : > { %v3312_v5 = vadd.f32 1.0, %v8875_v49 }
 0x6d9   : > { %8876 = vpow2.f32 %v8366_v36 }
 0x6da   : > { %8878 = vrcp.f32 %v3312_v5  ;;  %v3423_v4 = vand.u32 2147483648, %v3312_v5  ;;  %v3421_v49 = vand.u32 2147483647, %v3312_v5  ;;  %vm3417_vm14 = vweird.f32 %v3312_v5 }
 0x6dc   : > { %vm3422_vm0 = vcmp.eq.f32.partialorder %v3421_v49, 8.507059e+37 }
 0x6df   : > { %v8877_v52 = vpop.eup %8876  ;;  %v3627_v20 = vpop.permute.xlu2 %3626 }
 0x6e0   : > { %v8879_v14 = vpop.eup %8878  ;;  %v3313_v44 = vadd.f32 1.0, %v8877_v52  ;;  %v3674_v32 = vmul.f32 %v3627_v20, %v10738_v39  ;;  %v3424_v20 = vor.u32 1.1754944e-38, %v3423_v4 }
 0x6e1   : > { %v3413_v38 = vmul.f32 %v8879_v14, %v3312_v5  ;;  %vm3418_vm13 = vweird.f32 %v8879_v14  ;;  %v1194_v5 = vpop.f32.mrf.mxu0 }
 0x6e2   : > { %8880 = vrcp.f32 %v3313_v44  ;;  %3706 = vrot.lane.b32.xlu2 %v3674_v32, %s9624_s13  ;;  %vm3419_vm15 = vmor %vm3417_vm14, %vm3418_vm13  ;;  %vm3432_vm4 = vweird.f32 %v3313_v44 }
 0x6e3   : > { %v3414_v22 = vsub.f32 1.0, %v3413_v38  ;;  %8882 = vtanh.f32 %v3248_v17 }
 0x6e5   : > { %v3222_v55 = vpop.f32.mrf.mxu3  ;;  %v3415_v56 = vmul.f32 %v8879_v14, %v3414_v22 }
 0x6e6   : > { %v3250_v36 = vadd.f32 %v3222_v55, %v1190_v40  ;;  %v3438_v40 = vand.u32 2147483648, %v3313_v44  ;;  %v3436_v55 = vand.u32 2147483647, %v3313_v44 }
 0x6e7   : > { %v3416_v16 = vadd.f32 %v8879_v14, %v3415_v56 }
 0x6e8   : > { %v8881_v52 = vpop.eup %8880  ;;  %v8367_v27 = vmul.f32 -1.442695, %v3250_v36  ;;  %vm3437_vm7 = vcmp.eq.f32.partialorder %v3436_v55, 8.507059e+37 }
 0x6e9   : > { %v3420_v58 = vsel %vm3419_vm15, %v8879_v14, %v3416_v16  ;;  %v3428_v32 = vmul.f32 %v8881_v52, %v3313_v44  ;;  %v8883_v18 = vpop.eup %8882  ;;  %vm3433_vm3 = vweird.f32 %v8881_v52 }
 0x6ea   : > { %8884 = vpow2.f32 %v8367_v27  ;;  %v3425_v17 = vsel %vm3422_vm0, %v3424_v20, %v3420_v58  ;;  %vm3434_vm5 = vmor %vm3432_vm4, %vm3433_vm3 }
 0x6eb   : > { %v10792_v38 = vsel %vm1543_vm6, %v3425_v17, %v8883_v18  ;;  %v3429_v22 = vsub.f32 1.0, %v3428_v32  ;;  %8886 = vtanh.f32 %v3249_v43  ;;  %v3439_v43 = vor.u32 1.1754944e-38, %v3438_v40  ;;  %v1196_v40 = vpop.f32.mrf.mxu0 }
 0x6ec   : > { %3638 = vrot.lane.b32.xlu1 %v10792_v38, %s9624_s13  ;;  %v1195_v32 = vadd.f32 %v10722_v51, %v1194_v5  ;;  %v1197_v55 = vadd.f32 %v10722_v51, %v1196_v40 }
 0x6ed   : > { %v3224_v4 = vpop.f32.mrf.mxu3  ;;  %v3168_v16 = vpop.permute.xlu1 %3167  ;;  %v3430_v14 = vmul.f32 %v8881_v52, %v3429_v22 }
 0x6ee   : > { %v10796_v27 = vadd.f32 %v3224_v4, %v1192_v26  ;;  %8358 = vmatmul.msk.bf16.gmra.mxu3 %vm1612_vm2, %v3168_v16 }
 0x6ef   : > { %v3431_v58 = vadd.f32 %v8881_v52, %v3430_v14 }
 0x6f0   : > { %v8885_v18 = vpop.eup %8884  ;;  %v8368_v35 = vmul.f32 -1.442695, %v10796_v27 }
 0x6f1   : > { %v3314_v56 = vadd.f32 1.0, %v8885_v18  ;;  %v3435_v49 = vsel %vm3434_vm5, %v8881_v52, %v3431_v58  ;;  %v8887_v20 = vpop.eup %8886 }
 0x6f2   : > { %8888 = vpow2.f32 %v8368_v35  ;;  %v3440_v17 = vsel %vm3437_vm7, %v3439_v43, %v3435_v49 }
 0x6f3   : > { %8890 = vrcp.f32 %v3314_v56  ;;  %v10803_v26 = vsel %vm1543_vm6, %v3440_v17, %v8887_v20  ;;  %v3453_v49 = vand.u32 2147483648, %v3314_v56  ;;  %v3451_v17 = vand.u32 2147483647, %v3314_v56 }
 0x6f4   : > { %3640 = vrot.lane.b32.xlu2 %v10803_v26, %s9624_s13  ;;  %vm3447_vm9 = vweird.f32 %v3314_v56 }
 0x6f5   : > { %v3227_v44 = vpop.f32.mrf.mxu3  ;;  %vm3452_vm11 = vcmp.eq.f32.partialorder %v3451_v17, 8.507059e+37 }
 0x6f6   : > { %v10807_v22 = vadd.f32 %v3227_v44, %v1195_v32 }
 0x6f8   : > { %v8889_v4 = vpop.eup %8888  ;;  %v8369_v52 = vmul.f32 -1.442695, %v10807_v22 }
 0x6f9   : > { %v8891_v16 = vpop.eup %8890  ;;  %v3315_v14 = vadd.f32 1.0, %v8889_v4 }
 0x6fa   : > { %8892 = vpow2.f32 %v8369_v52  ;;  %v3633_v5 = vpop.permute.xlu2 %3632  ;;  %v3443_v58 = vmul.f32 %v8891_v16, %v3314_v56  ;;  %vm3448_vm8 = vweird.f32 %v8891_v16 }
 0x6fb   : > { %8894 = vrcp.f32 %v3315_v14  ;;  %v3677_v18 = vmul.f32 %v3633_v5, %v10762_v25  ;;  %vm3449_vm10 = vmor %vm3447_vm9, %vm3448_vm8  ;;  %v3468_v17 = vand.u32 2147483648, %v3315_v14  ;;  %vm3462_vm13 = vweird.f32 %v3315_v14 }
 0x6fc   : > { %v3444_v35 = vsub.f32 1.0, %v3443_v58  ;;  %8896 = vtanh.f32 %v3250_v36  ;;  %v3454_v36 = vor.u32 1.1754944e-38, %v3453_v49 }
 0x6fd   : > { %v3229_v43 = vpop.f32.mrf.mxu3  ;;  %3712 = vrot.lane.b32.xlu1 %v3677_v18, %s9624_s13 }
 0x6fe   : > { %v10813_v20 = vadd.f32 %v3229_v43, %v1197_v55  ;;  %v3445_v32 = vmul.f32 %v8891_v16, %v3444_v35 }
 0x6ff   : > { %v3629_v44 = vpop.permute.xlu0 %3628 }
 0x700   : > { %v8893_v4 = vpop.eup %8892  ;;  %v8370_v52 = vmul.f32 -1.442695, %v10813_v20  ;;  %v3675_v40 = vmul.f32 %v3629_v44, %v10748_v47  ;;  %v3446_v30 = vadd.f32 %v8891_v16, %v3445_v32 }
 0x701   : > { %v8895_v5 = vpop.eup %8894  ;;  %v3316_v58 = vadd.f32 1.0, %v8893_v4 }
 0x702   : > { %8898 = vpow2.f32 %v8370_v52  ;;  %3708 = vrot.lane.b32.xlu0 %v3675_v40, %s9624_s13  ;;  %v3450_v55 = vsel %vm3449_vm10, %v8891_v16, %v3446_v30  ;;  %v3458_v18 = vmul.f32 %v8895_v5, %v3315_v14  ;;  %v8897_v35 = vpop.eup %8896  ;;  %vm3463_vm12 = vweird.f32 %v8895_v5 }
 0x703   : > { %8900 = vrcp.f32 %v3316_v58  ;;  %v3455_v43 = vsel %vm3452_vm11, %v3454_v36, %v3450_v55  ;;  %v3466_v36 = vand.u32 2147483647, %v3315_v14  ;;  %vm3464_vm14 = vmor %vm3462_vm13, %vm3463_vm12  ;;  %vm3477_vm3 = vweird.f32 %v3316_v58 }
 0x704   : > { %v10820_v62 = vsel %vm1543_vm6, %v3455_v43, %v8897_v35  ;;  %v3459_v44 = vsub.f32 1.0, %v3458_v18  ;;  %v3469_v43 = vor.u32 1.1754944e-38, %v3468_v17 }
 0x705   : > { %3642 = vrot.lane.b32.xlu2 %v10820_v62, %s9624_s13  ;;  %vm3467_vm15 = vcmp.eq.f32.partialorder %v3466_v36, 8.507059e+37 }
 0x706   : > { %v3460_v56 = vmul.f32 %v8895_v5, %v3459_v44 }
 0x708   : > { %v8899_v32 = vpop.eup %8898  ;;  %v3461_v40 = vadd.f32 %v8895_v5, %v3460_v56 }
 0x709   : > { %v8901_v49 = vpop.eup %8900  ;;  %v3317_v4 = vadd.f32 1.0, %v8899_v32 }
 0x70a   : > { %v3631_v52 = vpop.permute.xlu1 %3630  ;;  %v3473_v30 = vmul.f32 %v8901_v49, %v3316_v58  ;;  %v3465_v18 = vsel %vm3464_vm14, %v8895_v5, %v3461_v40  ;;  %vm3478_vm0 = vweird.f32 %v8901_v49 }
 0x70b   : > { %8902 = vrcp.f32 %v3317_v4  ;;  %v3676_v16 = vmul.f32 %v3631_v52, %v10755_v60  ;;  %v3470_v56 = vsel %vm3467_vm15, %v3469_v43, %v3465_v18  ;;  %v3483_v52 = vand.u32 2147483648, %v3316_v58  ;;  %vm3479_vm4 = vmor %vm3477_vm3, %vm3478_vm0 }
 0x70c   : > { %v3474_v55 = vsub.f32 1.0, %v3473_v30  ;;  %8904 = vtanh.f32 %v10796_v27  ;;  %v3481_v27 = vand.u32 2147483647, %v3316_v58  ;;  %vm3492_vm8 = vweird.f32 %v3317_v4 }
 0x70d   : > { %3710 = vrot.lane.b32.xlu0 %v3676_v16, %s9624_s13  ;;  %8906 = vtanh.f32 %v10807_v22  ;;  %v3484_v16 = vor.u32 1.1754944e-38, %v3483_v52  ;;  %v3496_v22 = vand.u32 2147483647, %v3317_v4 }
 0x70e   : > { %v3475_v35 = vmul.f32 %v8901_v49, %v3474_v55  ;;  %vm3482_vm5 = vcmp.eq.f32.partialorder %v3481_v27, 8.507059e+37  ;;  %8908 = vtanh.f32 %v10813_v20  ;;  %v3594_v20 = vmul.f32 %v10738_v39, %v10412_v24 }
 0x70f   : > { %vm3497_vm10 = vcmp.eq.f32.partialorder %v3496_v22, 8.507059e+37 }
 0x710   : > { %v3476_v32 = vadd.f32 %v8901_v49, %v3475_v35  ;;  %v3498_v35 = vand.u32 2147483648, %v3317_v4 }
 0x711   : > { %v8903_v44 = vpop.eup %8902 }
 0x712   : > { %v3488_v12 = vmul.f32 %v8903_v44, %v3317_v4  ;;  %v8905_v9 = vpop.eup %8904  ;;  %v3480_v5 = vsel %vm3479_vm4, %v8901_v49, %v3476_v32  ;;  %vm3493_vm7 = vweird.f32 %v8903_v44  ;;  %v3499_v49 = vor.u32 1.1754944e-38, %v3498_v35 }
 0x713   : > { %v10829_v14 = vsel %vm1543_vm6, %v3470_v56, %v8905_v9  ;;  %v3485_v17 = vsel %vm3482_vm5, %v3484_v16, %v3480_v5  ;;  %v8907_v18 = vpop.eup %8906  ;;  %vm3494_vm9 = vmor %vm3492_vm8, %vm3493_vm7 }
 0x714   : > { %v3489_v30 = vsub.f32 1.0, %v3488_v12  ;;  %v10837_v12 = vsel %vm1543_vm6, %v3485_v17, %v8907_v18  ;;  %v8909_v32 = vpop.eup %8908 }
 0x715   : > { %3644 = vrot.lane.b32.xlu0 %v10829_v14, %s9624_s13 }
 0x716   : > { %v3490_v40 = vmul.f32 %v8903_v44, %v3489_v30 }
 0x718   : > { %v3491_v55 = vadd.f32 %v8903_v44, %v3490_v40 }
 0x71a   : > { %v3635_v36 = vpop.permute.xlu0 %3634  ;;  %v3495_v58 = vsel %vm3494_vm9, %v8903_v44, %v3491_v55 }
 0x71b   : > { %v3678_v9 = vmul.f32 %v3635_v36, %v10770_v63  ;;  %v3500_v43 = vsel %vm3497_vm10, %v3499_v49, %v3495_v58 }
 0x71c   : > { %v10846_v27 = vsel %vm1543_vm6, %v3500_v43, %v8909_v32  ;;  %v1199_v30 = vpop.f32.mrf.mxu0 }
 0x71d   : > { %3646 = vrot.lane.b32.xlu0 %v10837_v12, %s9624_s13  ;;  %3714 = vrot.lane.b32.xlu1 %v3678_v9, %s9624_s13  ;;  %v1200_v40 = vadd.f32 %v10722_v51, %v1199_v30 }
 0x722   : > { %v3637_v56 = vpop.permute.xlu1 %3636 }
 0x723   : > { %v3679_v52 = vmul.f32 %v3637_v56, %v10777_v19 }
 0x724   : > { %v1201_v36 = vpop.f32.mrf.mxu0 }
 0x725   : > { %3716 = vrot.lane.b32.xlu2 %v3679_v52, %s9624_s13  ;;  %3648 = vrot.lane.b32.xlu1 %v10846_v27, %s9624_s13  ;;  %v1202_v9 = vadd.f32 %v10722_v51, %v1201_v36 }
 0x73c   : > { %v3707_v4 = vpop.permute.xlu2 %3706 }
 0x73d   : > { %v10853_v44 = vadd.f32 %v3707_v4, %v3594_v20 }
 0x73f   : > { %8910 = vtanh.f32 %v10853_v44 }
 0x745   : > { %v8911_v5 = vpop.eup %8910 }
 0x746   : > { %3802 = vrot.lane.b32.xlu1 %v8911_v5, %s9624_s13 }
 0x749   : > { %v3232_v16 = vpop.f32.mrf.mxu3 }
 0x74a   : > { %v3254_v17 = vadd.f32 %v3232_v16, %v1200_v40 }
 0x74c   : > { %v8371_v55 = vmul.f32 -1.442695, %v3254_v17 }
 0x74e   : > { %8912 = vpow2.f32 %v8371_v55  ;;  %v3641_v18 = vpop.permute.xlu2 %3640 }
 0x74f   : > { %v3681_v24 = vmul.f32 %v3641_v18, %v10803_v26 }
 0x751   : > { %v3234_v35 = vpop.f32.mrf.mxu3  ;;  %3720 = vrot.lane.b32.xlu0 %v3681_v24, %s9624_s13 }
 0x752   : > { %v3255_v22 = vadd.f32 %v3234_v35, %v1202_v9 }
 0x754   : > { %v8913_v58 = vpop.eup %8912  ;;  %v8372_v49 = vmul.f32 -1.442695, %v3255_v22 }
 0x755   : > { %v3318_v43 = vadd.f32 1.0, %v8913_v58 }
 0x756   : > { %8914 = vpow2.f32 %v8372_v49 }
 0x757   : > { %8916 = vrcp.f32 %v3318_v43  ;;  %v3513_v40 = vand.u32 2147483648, %v3318_v43  ;;  %v3511_v36 = vand.u32 2147483647, %v3318_v43  ;;  %vm3507_vm12 = vweird.f32 %v3318_v43 }
 0x759   : > { %v3514_v9 = vor.u32 1.1754944e-38, %v3513_v40  ;;  %vm3512_vm14 = vcmp.eq.f32.partialorder %v3511_v36, 8.507059e+37 }
 0x75c   : > { %v8915_v56 = vpop.eup %8914 }
 0x75d   : > { %v8917_v32 = vpop.eup %8916  ;;  %v3319_v52 = vadd.f32 1.0, %v8915_v56 }
 0x75e   : > { %v3639_v20 = vpop.permute.xlu1 %3638  ;;  %v3503_v4 = vmul.f32 %v8917_v32, %v3318_v43  ;;  %vm3508_vm11 = vweird.f32 %v8917_v32 }
 0x75f   : > { %8918 = vrcp.f32 %v3319_v52  ;;  %v3680_v30 = vmul.f32 %v3639_v20, %v10792_v38  ;;  %vm3509_vm13 = vmor %vm3507_vm12, %vm3508_vm11  ;;  %v3528_v20 = vand.u32 2147483648, %v3319_v52  ;;  %v3526_v43 = vand.u32 2147483647, %v3319_v52 }
 0x760   : > { %v3504_v5 = vsub.f32 1.0, %v3503_v4  ;;  %8920 = vtanh.f32 %v3254_v17  ;;  %vm3522_vm0 = vweird.f32 %v3319_v52 }
 0x761   : > { %3718 = vrot.lane.b32.xlu2 %v3680_v30, %s9624_s13  ;;  %8922 = vtanh.f32 %v3255_v22  ;;  %v1204_v30 = vpop.f32.mrf.mxu0  ;;  %vm3527_vm4 = vcmp.eq.f32.partialorder %v3526_v43, 8.507059e+37 }
 0x762   : > { %v3505_v16 = vmul.f32 %v8917_v32, %v3504_v5  ;;  %v1205_v40 = vadd.f32 %v10722_v51, %v1204_v30 }
 0x764   : > { %v3506_v55 = vadd.f32 %v8917_v32, %v3505_v16 }
 0x765   : > { %v8919_v18 = vpop.eup %8918 }
 0x766   : > { %v3510_v24 = vsel %vm3509_vm13, %v8917_v32, %v3506_v55  ;;  %v3518_v35 = vmul.f32 %v8919_v18, %v3319_v52  ;;  %v8921_v58 = vpop.eup %8920  ;;  %vm3523_vm15 = vweird.f32 %v8919_v18  ;;  %v3529_v32 = vor.u32 1.1754944e-38, %v3528_v20 }
 0x767   : > { %v3515_v49 = vsel %vm3512_vm14, %v3514_v9, %v3510_v24  ;;  %vm3524_vm3 = vmor %vm3522_vm0, %vm3523_vm15  ;;  %v8923_v36 = vpop.eup %8922  ;;  %v3595_v52 = vmul.f32 %v10748_v47, %v10428_v8  ;;  %v3596_v8 = vmul.f32 %v10755_v60, %v10438_v33 }
 0x768   : > { %v10865_v56 = vsel %vm1543_vm6, %v3515_v49, %v8921_v58  ;;  %v3519_v17 = vsub.f32 1.0, %v3518_v35 }
 0x769   : > { %3650 = vrot.lane.b32.xlu0 %v10865_v56, %s9624_s13  ;;  %v1206_v49 = vpop.f32.mrf.mxu0 }
 0x76a   : > { %v3520_v4 = vmul.f32 %v8919_v18, %v3519_v17 }
 0x76c   : > { %v3521_v5 = vadd.f32 %v8919_v18, %v3520_v4 }
 0x76e   : > { %v3525_v16 = vsel %vm3524_vm3, %v8919_v18, %v3521_v5  ;;  %v1207_v18 = vadd.f32 %v10722_v51, %v1206_v49  ;;  %v3643_v51 = vpop.permute.xlu2 %3642 }
 0x76f   : > { %v3530_v55 = vsel %vm3527_vm4, %v3529_v32, %v3525_v16 }
 0x770   : > { %v10872_v22 = vsel %vm1543_vm6, %v3530_v55, %v8923_v36  ;;  %v3597_v36 = vmul.f32 %v10762_v25, %v10469_v15 }
 0x771   : > { %v3237_v9 = vpop.f32.mrf.mxu3  ;;  %3652 = vrot.lane.b32.xlu1 %v10872_v22, %s9624_s13 }
 0x772   : > { %v3256_v24 = vadd.f32 %v3237_v9, %v1205_v40  ;;  %v3713_v40 = vpop.permute.xlu1 %3712 }
 0x773   : > { %v10889_v9 = vadd.f32 %v3713_v40, %v3597_v36 }
 0x774   : > { %v8373_v35 = vmul.f32 -1.442695, %v3256_v24  ;;  %v3709_v58 = vpop.permute.xlu0 %3708 }
 0x775   : > { %v10878_v17 = vadd.f32 %v3709_v58, %v3595_v52 }
 0x776   : > { %8924 = vpow2.f32 %v8373_v35  ;;  %v3682_v35 = vmul.f32 %v3643_v51, %v10820_v62 }
 0x777   : > { %8926 = vtanh.f32 %v10878_v17 }
 0x779   : > { %v3239_v20 = vpop.f32.mrf.mxu3 }
 0x77a   : > { %v3257_v4 = vadd.f32 %v3239_v20, %v1207_v18 }
 0x77c   : > { %v8925_v43 = vpop.eup %8924  ;;  %v8374_v30 = vmul.f32 -1.442695, %v3257_v4 }
 0x77d   : > { %v8927_v5 = vpop.eup %8926  ;;  %v3320_v32 = vadd.f32 1.0, %v8925_v43 }
 0x77e   : > { %8928 = vpow2.f32 %v8374_v30  ;;  %3804 = vrot.lane.b32.xlu2 %v8927_v5, %s9624_s13 }
 0x77f   : > { %8930 = vrcp.f32 %v3320_v32  ;;  %v3711_v16 = vpop.permute.xlu0 %3710  ;;  %v3543_v30 = vand.u32 2147483648, %v3320_v32  ;;  %vm3537_vm7 = vweird.f32 %v3320_v32 }
 0x780   : > { %v10887_v55 = vadd.f32 %v3711_v16, %v3596_v8  ;;  %v3541_v8 = vand.u32 2147483647, %v3320_v32 }
 0x781   : > { %v3544_v51 = vor.u32 1.1754944e-38, %v3543_v30 }
 0x782   : > { %8932 = vtanh.f32 %v10887_v55  ;;  %vm3542_vm9 = vcmp.eq.f32.partialorder %v3541_v8, 8.507059e+37 }
 0x783   : > { %8934 = vtanh.f32 %v10889_v9 }
 0x784   : > { %v8929_v52 = vpop.eup %8928 }
 0x785   : > { %v8931_v58 = vpop.eup %8930  ;;  %v3321_v49 = vadd.f32 1.0, %v8929_v52 }
 0x786   : > { %3722 = vrot.lane.b32.xlu2 %v3682_v35, %s9624_s13  ;;  %v3533_v33 = vmul.f32 %v8931_v58, %v3320_v32  ;;  %vm3538_vm5 = vweird.f32 %v8931_v58  ;;  %v3599_v32 = vmul.f32 %v10777_v19, %v10511_v29 }
 0x787   : > { %8936 = vrcp.f32 %v3321_v49  ;;  %v3645_v18 = vpop.permute.xlu0 %3644  ;;  %vm3539_vm8 = vmor %vm3537_vm7, %vm3538_vm5  ;;  %v3558_v30 = vand.u32 2147483648, %v3321_v49  ;;  %v3556_v8 = vand.u32 2147483647, %v3321_v49  ;;  %vm3552_vm11 = vweird.f32 %v3321_v49 }
 0x788   : > { %v3683_v15 = vmul.f32 %v3645_v18, %v10829_v14  ;;  %v3534_v20 = vsub.f32 1.0, %v3533_v33  ;;  %v8933_v43 = vpop.eup %8932  ;;  %8938 = vtanh.f32 %v3256_v24 }
 0x789   : > { %3806 = vrot.lane.b32.xlu1 %v8933_v43, %s9624_s13  ;;  %v8935_v40 = vpop.eup %8934  ;;  %v3717_v43 = vpop.permute.xlu2 %3716  ;;  %8940 = vtanh.f32 %v3257_v4  ;;  %v3559_v4 = vor.u32 1.1754944e-38, %v3558_v30  ;;  %vm3557_vm13 = vcmp.eq.f32.partialorder %v3556_v8, 8.507059e+37  ;;  %v3600_v30 = vmul.f32 %v10792_v38, %v10559_v2 }
 0x78a   : > { %3724 = vrot.lane.b32.xlu0 %v3683_v15, %s9624_s13  ;;  %v3535_v5 = vmul.f32 %v8931_v58, %v3534_v20 }
 0x78c   : > { %v3536_v16 = vadd.f32 %v8931_v58, %v3535_v5 }
 0x78d   : > { %v8937_v36 = vpop.eup %8936 }
 0x78e   : > { %3808 = vrot.lane.b32.xlu2 %v8935_v40, %s9624_s13  ;;  %v3540_v52 = vsel %vm3539_vm8, %v8931_v58, %v3536_v16  ;;  %v3548_v35 = vmul.f32 %v8937_v36, %v3321_v49  ;;  %v8939_v24 = vpop.eup %8938  ;;  %vm3553_vm10 = vweird.f32 %v8937_v36  ;;  %v10907_v40 = vadd.f32 %v3717_v43, %v3599_v32 }
 0x78f   : > { %v3715_v33 = vpop.permute.xlu1 %3714  ;;  %v3545_v18 = vsel %vm3542_vm9, %v3544_v51, %v3540_v52  ;;  %v3647_v5 = vpop.permute.xlu0 %3646  ;;  %v3598_v16 = vmul.f32 %v10770_v63, %v10488_v28  ;;  %vm3554_vm12 = vmor %vm3552_vm11, %vm3553_vm10 }
 0x790   : > { %v10901_v15 = vsel %vm1543_vm6, %v3545_v18, %v8939_v24  ;;  %v3549_v20 = vsub.f32 1.0, %v3548_v35  ;;  %v3684_v51 = vmul.f32 %v3647_v5, %v10837_v12  ;;  %v8941_v24 = vpop.eup %8940  ;;  %8942 = vtanh.f32 %v10907_v40 }
 0x791   : > { %v10912_v29 = vadd.f32 %v3715_v33, %v3598_v16  ;;  %v3601_v16 = vmul.f32 %v10803_v26, %v10568_v59 }
 0x792   : > { %3654 = vrot.lane.b32.xlu0 %v10901_v15, %s9624_s13  ;;  %v3550_v58 = vmul.f32 %v8937_v36, %v3549_v20 }
 0x793   : > { %8944 = vtanh.f32 %v10912_v29 }
 0x794   : > { %v3551_v52 = vadd.f32 %v8937_v36, %v3550_v58 }
 0x796   : > { %3726 = vrot.lane.b32.xlu2 %v3684_v51, %s9624_s13  ;;  %v3555_v35 = vsel %vm3554_vm12, %v8937_v36, %v3551_v52  ;;  %v8943_v49 = vpop.eup %8942 }
 0x797   : > { %v3649_v18 = vpop.permute.xlu1 %3648  ;;  %v3560_v43 = vsel %vm3557_vm13, %v3559_v4, %v3555_v35 }
 0x798   : > { %v3685_v20 = vmul.f32 %v3649_v18, %v10846_v27  ;;  %v10919_v28 = vsel %vm1543_vm6, %v3560_v43, %v8941_v24 }
 0x799   : > { %3656 = vrot.lane.b32.xlu1 %v10919_v28, %s9624_s13  ;;  %v8945_v36 = vpop.eup %8944 }
 0x79a   : > { %3728 = vrot.lane.b32.xlu0 %v3685_v20, %s9624_s13 }
 0x79e   : > { %3812 = vrot.lane.b32.xlu2 %v8943_v49, %s9624_s13  ;;  %v3602_v49 = vmul.f32 %v10820_v62, %v10582_v0  ;;  %v3604_v0 = vmul.f32 %v10837_v12, %v10597_v7  ;;  %v3605_v7 = vmul.f32 %v10846_v27, %v10610_v61 }
 0x7a1   : > { %3810 = vrot.lane.b32.xlu1 %v8945_v36, %s9624_s13 }
 0x7b8   : > { %v3803_v5 = vpop.permute.xlu1 %3802 }
 0x7b9   : > { %v3850_v8 = vmul.f32 %v3803_v5, %v10738_v39 }
 0x7bb   : > { %v3719_v33 = vpop.permute.xlu2 %3718 }
 0x7bc   : > { %v10933_v52 = vadd.f32 %v3719_v33, %v3600_v30 }
 0x7be   : > { %8946 = vtanh.f32 %v10933_v52 }
 0x7c3   : > { %v3721_v32 = vpop.permute.xlu0 %3720 }
 0x7c4   : > { %v10935_v4 = vadd.f32 %v3721_v32, %v3601_v16  ;;  %v8947_v59 = vpop.eup %8946 }
 0x7c6   : > { %8948 = vtanh.f32 %v10935_v4 }
 0x7d8   : > { %v3805_v58 = vpop.permute.xlu2 %3804 }
 0x7d9   : > { %v3851_v51 = vmul.f32 %v3805_v58, %v10748_v47  ;;  %v8949_v47 = vpop.eup %8948 }
 0x7db   : > { %v3883_v35 = vpack.c.bf16 %v3851_v51, %v3850_v8  ;;  %v3651_v24 = vpop.permute.xlu0 %3650  ;;  %v3603_v8 = vmul.f32 %v10829_v14, %v10591_v13 }
 0x7dc   : > { %v3686_v18 = vmul.f32 %v3651_v24, %v10865_v56 }
 0x7dd   : > { %3899 = vrot.lane.b32.xlu0 %v3883_v35, %s9625_s18 }
 0x7de   : > { %3730 = vrot.lane.b32.xlu1 %v3686_v18, %s9624_s13 }
 0x7e0   : > { %v3723_v43 = vpop.permute.xlu2 %3722 }
 0x7e1   : > { %v10950_v30 = vadd.f32 %v3723_v43, %v3602_v49 }
 0x7e3   : > { %v3653_v2 = vpop.permute.xlu1 %3652  ;;  %8950 = vtanh.f32 %v10950_v30 }
 0x7e4   : > { %v3687_v39 = vmul.f32 %v3653_v2, %v10872_v22 }
 0x7e5   : > { %3814 = vrot.lane.b32.xlu0 %v8947_v59, %s9624_s13 }
 0x7e6   : > { %3732 = vrot.lane.b32.xlu2 %v3687_v39, %s9624_s13  ;;  %3816 = vrot.lane.b32.xlu1 %v8949_v47, %s9624_s13 }
 0x7e8   : > { %v3809_v20 = vpop.permute.xlu2 %3808 }
 0x7e9   : > { %v3853_v32 = vmul.f32 %v3809_v20, %v10762_v25  ;;  %v8951_v24 = vpop.eup %8950 }
 0x7f0   : > { %v3727_v16 = vpop.permute.xlu2 %3726 }
 0x7f8   : > { %v3813_v43 = vpop.permute.xlu2 %3812 }
 0x7f9   : > { %v3855_v61 = vmul.f32 %v3813_v43, %v10777_v19 }
 0x7fb   : > { %v3807_v36 = vpop.permute.xlu1 %3806 }
 0x7fc   : > { %v3725_v33 = vpop.permute.xlu0 %3724  ;;  %v3852_v5 = vmul.f32 %v3807_v36, %v10755_v60  ;;  %v10961_v60 = vadd.f32 %v3727_v16, %v3604_v0  ;;  %v3606_v0 = vmul.f32 %v10865_v56, %v10651_v11 }
 0x7fd   : > { %v10958_v51 = vadd.f32 %v3725_v33, %v3603_v8 }
 0x7fe   : > { %v3884_v58 = vpack.c.bf16 %v3853_v32, %v3852_v5  ;;  %v8522_v32 = vld [vmem:[%s9710_s26 + $0xc0] sm:$0xff]  ;;  %v8523_v5 = vld [vmem:[%s9710_s26 + $0xc8] sm:$0xff] }
 0x7ff   : > { %8952 = vtanh.f32 %v10958_v51  ;;  %8255 = vmatmul.msk.bf16.gmra.mxu0 %vm883_vm1, %v8522_v32 }
 0x800   : > { %3901 = vrot.lane.b32.xlu2 %v3884_v58, %s9625_s18  ;;  %8954 = vtanh.f32 %v10961_v60  ;;  %v3607_v58 = vmul.f32 %v10872_v22, %v10641_v1 }
 0x804   : > { %v3655_v35 = vpop.permute.xlu0 %3654 }
 0x805   : > { %v3688_v25 = vmul.f32 %v3655_v35, %v10901_v15  ;;  %v8953_v39 = vpop.eup %8952 }
 0x806   : > { %v8955_v47 = vpop.eup %8954 }
 0x807   : > { %3734 = vrot.lane.b32.xlu0 %v3688_v25, %s9624_s13 }
 0x808   : > { %3818 = vrot.lane.b32.xlu2 %v8951_v24, %s9624_s13 }
 0x80b   : > { %v3657_v13 = vpop.permute.xlu1 %3656 }
 0x80c   : > { %v3689_v18 = vmul.f32 %v3657_v13, %v10919_v28  ;;  %v3729_v2 = vpop.permute.xlu0 %3728 }
 0x80d   : > { %v10970_v59 = vadd.f32 %v3729_v2, %v3605_v7 }
 0x80e   : > { %3736 = vrot.lane.b32.xlu1 %v3689_v18, %s9624_s13 }
 0x80f   : > { %8956 = vtanh.f32 %v10970_v59  ;;  %3820 = vrot.lane.b32.xlu0 %v8953_v39, %s9624_s13  ;;  %8256 = vmatmul.msk.bf16.gmra.mxu0 %vm883_vm1, %v8523_v5  ;;  %v8524_v39 = vld [vmem:[%s9710_s26 + $0xd0] sm:$0xff] }
 0x810   : > { %3822 = vrot.lane.b32.xlu2 %v8955_v47, %s9624_s13  ;;  %v3608_v47 = vmul.f32 %v10901_v15, %v10678_v54 }
 0x813   : > { %v3811_v20 = vpop.permute.xlu1 %3810 }
 0x814   : > { %v3854_v49 = vmul.f32 %v3811_v20, %v10770_v63  ;;  %v3609_v20 = vmul.f32 %v10919_v28, %v10660_v31 }
 0x815   : > { %v8957_v36 = vpop.eup %8956 }
 0x816   : > { %v3885_v33 = vpack.c.bf16 %v3855_v61, %v3854_v49 }
 0x817   : > { %3824 = vrot.lane.b32.xlu0 %v8957_v36, %s9624_s13 }
 0x818   : > { %3903 = vrot.lane.b32.xlu1 %v3885_v33, %s9625_s18 }
 0x81f   : > { %8257 = vmatmul.msk.bf16.gmra.mxu0 %vm883_vm1, %v8524_v39 }
 0x840   : > { %v3733_v8 = vpop.permute.xlu2 %3732 }
 0x841   : > { %v10986_v16 = vadd.f32 %v3733_v8, %v3607_v58 }
 0x843   : > { %8958 = vtanh.f32 %v10986_v16 }
 0x849   : > { %v8959_v63 = vpop.eup %8958 }
 0x84a   : > { %3828 = vrot.lane.b32.xlu0 %v8959_v63, %s9624_s13 }
 0x84f   : > { %v3900_v19 = vpop.permute.xlu0 %3899 }
 0x850   : > { %v3731_v35 = vpop.permute.xlu1 %3730  ;;  %8375 = vmatmul.msk.bf16.vlgmr.msra.gmra.mxu1 %vm1612_vm2, %v3900_v19 }
 0x851   : > { %v10993_v25 = vadd.f32 %v3731_v35, %v3606_v0 }
 0x853   : > { %8960 = vtanh.f32 %v10993_v25 }
 0x857   : > { %v3815_v1 = vpop.permute.xlu0 %3814 }
 0x858   : > { %v3856_v24 = vmul.f32 %v3815_v1, %v10792_v38  ;;  %v3817_v13 = vpop.permute.xlu1 %3816 }
 0x859   : > { %v8961_v7 = vpop.eup %8960  ;;  %v3857_v18 = vmul.f32 %v3817_v13, %v10803_v26 }
 0x85a   : > { %3826 = vrot.lane.b32.xlu2 %v8961_v7, %s9624_s13  ;;  %v3902_v11 = vpop.permute.xlu2 %3901  ;;  %v11030_v7 = vld [vmem:[%s12776_s6] ss:$0 sm:$0xff] }
 0x85b   : > { %v3886_v2 = vpack.c.bf16 %v3857_v18, %v3856_v24 }
 0x85d   : > { %3905 = vrot.lane.b32.xlu1 %v3886_v2, %s9625_s18 }
 0x860   : > { %8376 = vmatmul.msk.bf16.gmra.mxu1 %vm1612_vm2, %v3902_v11 }
 0x862   : > { %v3819_v26 = vpop.permute.xlu2 %3818 }
 0x863   : > { %v3858_v32 = vmul.f32 %v3819_v26, %v10820_v62 }
 0x86a   : > { %v3823_v58 = vpop.permute.xlu2 %3822 }
 0x86b   : > { %v3860_v63 = vmul.f32 %v3823_v58, %v10837_v12 }
 0x879   : > { %v3735_v43 = vpop.permute.xlu0 %3734 }
 0x87a   : > { %v11005_v38 = vadd.f32 %v3735_v43, %v3608_v47  ;;  %v8526_v47 = vld [vmem:[%s9710_s26 + $0xe0] sm:$0xff] }
 0x87c   : > { %8962 = vtanh.f32 %v11005_v38 }
 0x880   : > { %v3737_v61 = vpop.permute.xlu1 %3736 }
 0x881   : > { %v11010_v49 = vadd.f32 %v3737_v61, %v3609_v20  ;;  %v3821_v36 = vpop.permute.xlu0 %3820 }
 0x882   : > { %v8963_v33 = vpop.eup %8962  ;;  %v3859_v5 = vmul.f32 %v3821_v36, %v10829_v14  ;;  %v8525_v14 = vld [vmem:[%s9710_s26 + $0xd8] sm:$0xff] }
 0x883   : > { %8964 = vtanh.f32 %v11010_v49  ;;  %3830 = vrot.lane.b32.xlu2 %v8963_v33, %s9624_s13  ;;  %8258 = vmatmul.msk.bf16.gmra.mxu0 %vm883_vm1, %v8525_v14 }
 0x884   : > { %v3887_v54 = vpack.c.bf16 %v3859_v5, %v3858_v32 }
 0x886   : > { %3907 = vrot.lane.b32.xlu1 %v3887_v54, %s9625_s18 }
 0x889   : > { %v8965_v8 = vpop.eup %8964  ;;  %v3825_v31 = vpop.permute.xlu0 %3824 }
 0x88a   : > { %v3861_v19 = vmul.f32 %v3825_v31, %v10846_v27  ;;  %v3904_v0 = vpop.permute.xlu1 %3903  ;;  %3832 = vrot.lane.b32.xlu0 %v8965_v8, %s9624_s13  ;;  %v1209_v27 = vpop.f32.mrf.mxu0 }
 0x88b   : > { %8377 = vmatmul.msk.bf16.gmra.mxu1 %vm1612_vm2, %v3904_v0  ;;  %v1210_v18 = vadd.f32 %v11030_v7, %v1209_v27 }
 0x88c   : > { %v3888_v62 = vpack.c.bf16 %v3861_v19, %v3860_v63 }
 0x88e   : > { %3909 = vrot.lane.b32.xlu1 %v3888_v62, %s9625_s18 }
 0x892   : > { %v1211_v2 = vpop.f32.mrf.mxu0 }
 0x893   : > { %8259 = vmatmul.msk.bf16.gmra.mxu0 %vm883_vm1, %v8526_v47 }
 0x89a   : > { %v1214_v20 = vpop.f32.mrf.mxu0 }
 0x89b   : > { %v1215_v5 = vadd.f32 %v11030_v7, %v1214_v20 }
 0x8a2   : > { %v1216_v8 = vpop.f32.mrf.mxu0 }
 0x8a3   : > { %v1217_v62 = vadd.f32 %v11030_v7, %v1216_v8 }
 0x8b4   : > { %v3827_v35 = vpop.permute.xlu2 %3826 }
 0x8b5   : > { %v3862_v24 = vmul.f32 %v3827_v35, %v10865_v56  ;;  %v1212_v56 = vadd.f32 %v11030_v7, %v1211_v2 }
 0x8bc   : > { %v3829_v1 = vpop.permute.xlu0 %3828 }
 0x8bd   : > { %v3863_v12 = vmul.f32 %v3829_v1, %v10872_v22 }
 0x8bf   : > { %v3889_v13 = vpack.c.bf16 %v3863_v12, %v3862_v24  ;;  %v8527_v12 = vld [vmem:[%s9710_s26 + $0xe8] sm:$0xff] }
 0x8c0   : > { %8260 = vmatmul.msk.bf16.gmra.mxu0 %vm883_vm1, %v8527_v12 }
 0x8c1   : > { %3911 = vrot.lane.b32.xlu2 %v3889_v13, %s9625_s18 }
 0x8cd   : > { %v3948_v11 = vpop.f32.mrf.mxu1 }
 0x8ce   : > { %v3988_v39 = vadd.f32 %v3948_v11, %v1210_v18 }
 0x8cf   : > { %v3906_v43 = vpop.permute.xlu1 %3905 }
 0x8d0   : > { %v8383_v26 = vmul.f32 -1.442695, %v3988_v39  ;;  %8378 = vmatmul.msk.bf16.gmra.mxu1 %vm1612_vm2, %v3906_v43 }
 0x8d2   : > { %8966 = vpow2.f32 %v8383_v26 }
 0x8d5   : > { %v3950_v22 = vpop.f32.mrf.mxu1 }
 0x8d6   : > { %v3989_v61 = vadd.f32 %v3950_v22, %v1212_v56 }
 0x8d8   : > { %v8967_v36 = vpop.eup %8966  ;;  %v8384_v33 = vmul.f32 -1.442695, %v3989_v61 }
 0x8d9   : > { %v4052_v32 = vadd.f32 1.0, %v8967_v36 }
 0x8da   : > { %8968 = vpow2.f32 %v8384_v33 }
 0x8db   : > { %8970 = vrcp.f32 %v4052_v32  ;;  %v4079_v24 = vand.u32 2147483648, %v4052_v32  ;;  %v4077_v18 = vand.u32 2147483647, %v4052_v32  ;;  %vm4073_vm15 = vweird.f32 %v4052_v32 }
 0x8dd   : > { %v3953_v54 = vpop.f32.mrf.mxu1  ;;  %v4080_v56 = vor.u32 1.1754944e-38, %v4079_v24  ;;  %vm4078_vm3 = vcmp.eq.f32.partialorder %v4077_v18, 8.507059e+37 }
 0x8de   : > { %v11038_v58 = vadd.f32 %v3953_v54, %v1215_v5 }
 0x8e0   : > { %v8969_v31 = vpop.eup %8968  ;;  %v8385_v63 = vmul.f32 -1.442695, %v11038_v58 }
 0x8e1   : > { %v8971_v19 = vpop.eup %8970  ;;  %v4053_v0 = vadd.f32 1.0, %v8969_v31 }
 0x8e2   : > { %8972 = vpow2.f32 %v8385_v63  ;;  %v4069_v14 = vmul.f32 %v8971_v19, %v4052_v32  ;;  %vm4074_vm14 = vweird.f32 %v8971_v19 }
 0x8e3   : > { %8974 = vrcp.f32 %v4053_v0  ;;  %vm4075_vm0 = vmor %vm4073_vm15, %vm4074_vm14  ;;  %v4094_v32 = vand.u32 2147483648, %v4053_v0  ;;  %v4092_v8 = vand.u32 2147483647, %v4053_v0  ;;  %vm4088_vm5 = vweird.f32 %v4053_v0 }
 0x8e4   : > { %v4070_v35 = vsub.f32 1.0, %v4069_v14  ;;  %8976 = vtanh.f32 %v3988_v39 }
 0x8e5   : > { %v3955_v1 = vpop.f32.mrf.mxu1  ;;  %v4095_v14 = vor.u32 1.1754944e-38, %v4094_v32  ;;  %vm4093_vm8 = vcmp.eq.f32.partialorder %v4092_v8, 8.507059e+37 }
 0x8e6   : > { %v3991_v13 = vadd.f32 %v3955_v1, %v1217_v62  ;;  %v4071_v27 = vmul.f32 %v8971_v19, %v4070_v35 }
 0x8e8   : > { %v8973_v2 = vpop.eup %8972  ;;  %v8386_v11 = vmul.f32 -1.442695, %v3991_v13  ;;  %v4072_v47 = vadd.f32 %v8971_v19, %v4071_v27 }
 0x8e9   : > { %v8975_v43 = vpop.eup %8974  ;;  %v11044_v26 = vadd.f32 1.0, %v8973_v2  ;;  %v3831_v2 = vpop.permute.xlu2 %3830 }
 0x8ea   : > { %8978 = vpow2.f32 %v8386_v11  ;;  %v4076_v39 = vsel %vm4075_vm0, %v8971_v19, %v4072_v47  ;;  %v4084_v22 = vmul.f32 %v8975_v43, %v4053_v0  ;;  %v8977_v20 = vpop.eup %8976  ;;  %vm4089_vm4 = vweird.f32 %v8975_v43  ;;  %v8528_v11 = vld [vmem:[%s9710_s26 + $0xf0] sm:$0xff] }
 0x8eb   : > { %8980 = vrcp.f32 %v11044_v26  ;;  %v4081_v36 = vsel %vm4078_vm3, %v4080_v56, %v4076_v39  ;;  %vm4090_vm7 = vmor %vm4088_vm5, %vm4089_vm4  ;;  %8261 = vmatmul.msk.bf16.gmra.mxu0 %vm883_vm1, %v8528_v11  ;;  %v3864_v56 = vmul.f32 %v3831_v2, %v10901_v15  ;;  %vm4103_vm11 = vweird.f32 %v11044_v26 }
 0x8ec   : > { %v11049_v33 = vsel %vm1543_vm6, %v4081_v36, %v8977_v20  ;;  %v4085_v5 = vsub.f32 1.0, %v4084_v22  ;;  %8982 = vtanh.f32 %v3989_v61 }
 0x8ed   : > { %4372 = vrot.lane.b32.xlu1 %v11049_v33, %s9624_s13 }
 0x8ee   : > { %v4086_v54 = vmul.f32 %v8975_v43, %v4085_v5 }
 0x8f0   : > { %v8979_v31 = vpop.eup %8978  ;;  %v4087_v63 = vadd.f32 %v8975_v43, %v4086_v54 }
 0x8f1   : > { %v8981_v19 = vpop.eup %8980  ;;  %v4055_v62 = vadd.f32 1.0, %v8979_v31  ;;  %v4109_v31 = vand.u32 2147483648, %v11044_v26 }
 0x8f2   : > { %v4091_v35 = vsel %vm4090_vm7, %v8975_v43, %v4087_v63  ;;  %v4099_v1 = vmul.f32 %v8981_v19, %v11044_v26  ;;  %v8983_v61 = vpop.eup %8982  ;;  %vm4104_vm9 = vweird.f32 %v8981_v19 }
 0x8f3   : > { %8984 = vrcp.f32 %v4055_v62  ;;  %v4096_v24 = vsel %vm4093_vm8, %v4095_v14, %v4091_v35  ;;  %v4124_v36 = vand.u32 2147483648, %v4055_v62  ;;  %v4122_v32 = vand.u32 2147483647, %v4055_v62  ;;  %v1219_v14 = vpop.f32.mrf.mxu0  ;;  %vm11067_vm13 = vmor %vm4103_vm11, %vm4104_vm9 }
 0x8f4   : > { %v11056_v12 = vsel %vm1543_vm6, %v4096_v24, %v8983_v61  ;;  %v4100_v0 = vsub.f32 1.0, %v4099_v1  ;;  %8986 = vtanh.f32 %v3991_v13  ;;  %vm4118_vm12 = vweird.f32 %v4055_v62 }
 0x8f5   : > { %4374 = vrot.lane.b32.xlu2 %v11056_v12, %s9624_s13  ;;  %8988 = vtanh.f32 %v11038_v58  ;;  %v4125_v13 = vor.u32 1.1754944e-38, %v4124_v36  ;;  %vm4123_vm15 = vcmp.eq.f32.partialorder %v4122_v32, 8.507059e+37  ;;  %v4110_v24 = vor.u32 1.1754944e-38, %v4109_v31 }
 0x8f6   : > { %v4101_v43 = vmul.f32 %v8981_v19, %v4100_v0  ;;  %v1220_v58 = vadd.f32 %v11030_v7, %v1219_v14 }
 0x8f8   : > { %v3908_v27 = vpop.permute.xlu1 %3907  ;;  %v4102_v54 = vadd.f32 %v8981_v19, %v4101_v43 }
 0x8f9   : > { %v8985_v18 = vpop.eup %8984  ;;  %8379 = vmatmul.msk.bf16.gmra.mxu1 %vm1612_vm2, %v3908_v27 }
 0x8fa   : > { %v4114_v47 = vmul.f32 %v8985_v18, %v4055_v62  ;;  %vm4119_vm10 = vweird.f32 %v8985_v18  ;;  %v4106_v1 = vsel %vm11067_vm13, %v8981_v19, %v4102_v54  ;;  %v8987_v61 = vpop.eup %8986 }
 0x8fb   : > { %vm4120_vm14 = vmor %vm4118_vm12, %vm4119_vm10  ;;  %v8989_v27 = vpop.eup %8988 }
 0x8fc   : > { %v3833_v39 = vpop.permute.xlu0 %3832  ;;  %v4115_v22 = vsub.f32 1.0, %v4114_v47  ;;  %v1221_v47 = vpop.f32.mrf.mxu0 }
 0x8fd   : > { %v3865_v20 = vmul.f32 %v3833_v39, %v10919_v28  ;;  %v4107_v28 = vand.u32 2147483647, %v11044_v26 }
 0x8fe   : > { %v4116_v5 = vmul.f32 %v8985_v18, %v4115_v22 }
 0x8ff   : > { %v3890_v8 = vpack.c.bf16 %v3865_v20, %v3864_v56  ;;  %vm4108_vm0 = vcmp.eq.f32.partialorder %v4107_v28, 8.507059e+37  ;;  %v1222_v56 = vadd.f32 %v11030_v7, %v1221_v47 }
 0x900   : > { %v4117_v63 = vadd.f32 %v8985_v18, %v4116_v5  ;;  %v4111_v26 = vsel %vm4108_vm0, %v4110_v24, %v4106_v1 }
 0x901   : > { %3913 = vrot.lane.b32.xlu0 %v3890_v8, %s9625_s18  ;;  %v11085_v19 = vsel %vm1543_vm6, %v4111_v26, %v8989_v27 }
 0x902   : > { %v4121_v35 = vsel %vm4120_vm14, %v8985_v18, %v4117_v63  ;;  %v3910_v18 = vpop.permute.xlu1 %3909  ;;  %v4342_v46 = vmul.f32 %v11085_v19, %v10887_v55 }
 0x903   : > { %v4126_v62 = vsel %vm4123_vm15, %v4125_v13, %v4121_v35 }
 0x904   : > { %v11078_v0 = vsel %vm1543_vm6, %v4126_v62, %v8987_v61 }
 0x905   : > { %4378 = vrot.lane.b32.xlu1 %v11078_v0, %s9624_s13 }
 0x908   : > { %v3958_v2 = vpop.f32.mrf.mxu1 }
 0x909   : > { %v3992_v11 = vadd.f32 %v3958_v2, %v1220_v58  ;;  %8380 = vmatmul.msk.bf16.gmra.mxu1 %vm1612_vm2, %v3910_v18  ;;  %4376 = vrot.lane.b32.xlu0 %v11085_v19, %s9624_s13 }
 0x90b   : > { %v8387_v43 = vmul.f32 -1.442695, %v3992_v11 }
 0x90d   : > { %8990 = vpow2.f32 %v8387_v43 }
 0x910   : > { %v3960_v39 = vpop.f32.mrf.mxu1 }
 0x911   : > { %v3993_v22 = vadd.f32 %v3960_v39, %v1222_v56 }
 0x913   : > { %v8991_v20 = vpop.eup %8990  ;;  %v8388_v36 = vmul.f32 -1.442695, %v3993_v22 }
 0x914   : > { %v4056_v5 = vadd.f32 1.0, %v8991_v20 }
 0x915   : > { %8992 = vpow2.f32 %v8388_v36 }
 0x916   : > { %8994 = vrcp.f32 %v4056_v5  ;;  %v4139_v15 = vand.u32 2147483648, %v4056_v5  ;;  %v4137_v13 = vand.u32 2147483647, %v4056_v5  ;;  %vm4133_vm4 = vweird.f32 %v4056_v5 }
 0x918   : > { %v4140_v61 = vor.u32 1.1754944e-38, %v4139_v15  ;;  %vm4138_vm7 = vcmp.eq.f32.partialorder %v4137_v13, 8.507059e+37 }
 0x91b   : > { %v8993_v32 = vpop.eup %8992  ;;  %v3912_v54 = vpop.permute.xlu2 %3911 }
 0x91c   : > { %v8995_v8 = vpop.eup %8994  ;;  %v4057_v31 = vadd.f32 1.0, %v8993_v32  ;;  %8381 = vmatmul.msk.bf16.gmra.mxu1 %vm1612_vm2, %v3912_v54 }
 0x91d   : > { %v4129_v63 = vmul.f32 %v8995_v8, %v4056_v5  ;;  %vm4134_vm3 = vweird.f32 %v8995_v8 }
 0x91e   : > { %8996 = vrcp.f32 %v4057_v31  ;;  %vm4135_vm5 = vmor %vm4133_vm4, %vm4134_vm3  ;;  %v4154_v2 = vand.u32 2147483648, %v4057_v31  ;;  %v4152_v47 = vand.u32 2147483647, %v4057_v31  ;;  %vm4148_vm9 = vweird.f32 %v4057_v31 }
 0x91f   : > { %v4130_v14 = vsub.f32 1.0, %v4129_v63  ;;  %8998 = vtanh.f32 %v3992_v11 }
 0x920   : > { %9000 = vtanh.f32 %v3993_v22  ;;  %v4155_v56 = vor.u32 1.1754944e-38, %v4154_v2  ;;  %vm4153_vm11 = vcmp.eq.f32.partialorder %v4152_v47, 8.507059e+37  ;;  %v1224_v22 = vpop.f32.mrf.mxu0 }
 0x921   : > { %v4131_v28 = vmul.f32 %v8995_v8, %v4130_v14  ;;  %v1225_v32 = vadd.f32 %v11030_v7, %v1224_v22 }
 0x923   : > { %v4132_v35 = vadd.f32 %v8995_v8, %v4131_v28 }
 0x924   : > { %v8997_v1 = vpop.eup %8996 }
 0x925   : > { %v4136_v62 = vsel %vm4135_vm5, %v8995_v8, %v4132_v35  ;;  %v4144_v24 = vmul.f32 %v8997_v1, %v4057_v31  ;;  %v8999_v58 = vpop.eup %8998  ;;  %vm4149_vm8 = vweird.f32 %v8997_v1  ;;  %v8529_v8 = vld [vmem:[%s9710_s26 + $0xf8] sm:$0xff] }
 0x926   : > { %v4141_v26 = vsel %vm4138_vm7, %v4140_v61, %v4136_v62  ;;  %vm4150_vm10 = vmor %vm4148_vm9, %vm4149_vm8  ;;  %v9001_v20 = vpop.eup %9000  ;;  %8262 = vmatmul.msk.bf16.gmra.mxu0 %vm883_vm1, %v8529_v8 }
 0x927   : > { %v11094_v27 = vsel %vm1543_vm6, %v4141_v26, %v8999_v58  ;;  %v4145_v18 = vsub.f32 1.0, %v4144_v24 }
 0x928   : > { %4380 = vrot.lane.b32.xlu2 %v11094_v27, %s9624_s13  ;;  %v1226_v14 = vpop.f32.mrf.mxu0 }
 0x929   : > { %v4146_v11 = vmul.f32 %v8997_v1, %v4145_v18  ;;  %v1227_v13 = vadd.f32 %v11030_v7, %v1226_v14 }
 0x92b   : > { %v4147_v43 = vadd.f32 %v8997_v1, %v4146_v11 }
 0x92d   : > { %v4151_v39 = vsel %vm4150_vm10, %v8997_v1, %v4147_v43 }
 0x92e   : > { %v4156_v36 = vsel %vm4153_vm11, %v4155_v56, %v4151_v39 }
 0x92f   : > { %v11100_v5 = vsel %vm1543_vm6, %v4156_v36, %v9001_v20 }
 0x930   : > { %4382 = vrot.lane.b32.xlu0 %v11100_v5, %s9624_s13 }
 0x94d   : > { %v3963_v54 = vpop.f32.mrf.mxu1 }
 0x94e   : > { %v3994_v63 = vadd.f32 %v3963_v54, %v1225_v32 }
 0x94f   : > { %v4375_v31 = vpop.permute.xlu2 %4374 }
 0x950   : > { %v8389_v15 = vmul.f32 -1.442695, %v3994_v63  ;;  %v4421_v28 = vmul.f32 %v4375_v31, %v11056_v12 }
 0x952   : > { %9002 = vpow2.f32 %v8389_v15  ;;  %4454 = vrot.lane.b32.xlu2 %v4421_v28, %s9624_s13  ;;  %v1229_v15 = vpop.f32.mrf.mxu0 }
 0x955   : > { %v3965_v35 = vpop.f32.mrf.mxu1 }
 0x956   : > { %v3995_v1 = vadd.f32 %v3965_v35, %v1227_v13 }
 0x958   : > { %v9003_v61 = vpop.eup %9002  ;;  %v8390_v62 = vmul.f32 -1.442695, %v3995_v1 }
 0x959   : > { %v4058_v24 = vadd.f32 1.0, %v9003_v61 }
 0x95a   : > { %9004 = vpow2.f32 %v8390_v62 }
 0x95b   : > { %9006 = vrcp.f32 %v4058_v24  ;;  %v4169_v56 = vand.u32 2147483648, %v4058_v24  ;;  %v4167_v20 = vand.u32 2147483647, %v4058_v24  ;;  %vm4163_vm13 = vweird.f32 %v4058_v24 }
 0x95d   : > { %v4170_v32 = vor.u32 1.1754944e-38, %v4169_v56  ;;  %vm4168_vm15 = vcmp.eq.f32.partialorder %v4167_v20, 8.507059e+37 }
 0x95f   : > { %v4373_v58 = vpop.permute.xlu1 %4372 }
 0x960   : > { %v9005_v26 = vpop.eup %9004  ;;  %v4420_v18 = vmul.f32 %v4373_v58, %v11049_v33 }
 0x961   : > { %v9007_v2 = vpop.eup %9006  ;;  %v4059_v11 = vadd.f32 1.0, %v9005_v26 }
 0x962   : > { %4452 = vrot.lane.b32.xlu1 %v4420_v18, %s9624_s13  ;;  %v4159_v47 = vmul.f32 %v9007_v2, %v4058_v24  ;;  %vm4164_vm12 = vweird.f32 %v9007_v2  ;;  %v1230_v18 = vadd.f32 %v11030_v7, %v1229_v15 }
 0x963   : > { %9008 = vrcp.f32 %v4059_v11  ;;  %vm4165_vm14 = vmor %vm4163_vm13, %vm4164_vm12  ;;  %v4184_v13 = vand.u32 2147483648, %v4059_v11  ;;  %v4182_v61 = vand.u32 2147483647, %v4059_v11  ;;  %vm4178_vm3 = vweird.f32 %v4059_v11 }
 0x964   : > { %v4160_v43 = vsub.f32 1.0, %v4159_v47  ;;  %9010 = vtanh.f32 %v3994_v63 }
 0x965   : > { %9012 = vtanh.f32 %v3995_v1  ;;  %v4185_v24 = vor.u32 1.1754944e-38, %v4184_v13  ;;  %vm4183_vm5 = vcmp.eq.f32.partialorder %v4182_v61, 8.507059e+37 }
 0x966   : > { %v4161_v39 = vmul.f32 %v9007_v2, %v4160_v43  ;;  %v1231_v43 = vpop.f32.mrf.mxu0 }
 0x968   : > { %v4162_v36 = vadd.f32 %v9007_v2, %v4161_v39 }
 0x969   : > { %v9009_v22 = vpop.eup %9008 }
 0x96a   : > { %v4166_v54 = vsel %vm4165_vm14, %v9007_v2, %v4162_v36  ;;  %v4174_v8 = vmul.f32 %v9009_v22, %v4059_v11  ;;  %v9011_v31 = vpop.eup %9010  ;;  %vm4179_vm0 = vweird.f32 %v9009_v22 }
 0x96b   : > { %v4171_v14 = vsel %vm4168_vm15, %v4170_v32, %v4166_v54  ;;  %vm4180_vm4 = vmor %vm4178_vm3, %vm4179_vm0  ;;  %v9013_v26 = vpop.eup %9012  ;;  %v1232_v54 = vadd.f32 %v11030_v7, %v1231_v43 }
 0x96c   : > { %v11114_v28 = vsel %vm1543_vm6, %v4171_v14, %v9011_v31  ;;  %v4175_v63 = vsub.f32 1.0, %v4174_v8 }
 0x96d   : > { %4384 = vrot.lane.b32.xlu0 %v11114_v28, %s9624_s13 }
 0x96e   : > { %v4176_v35 = vmul.f32 %v9009_v22, %v4175_v63  ;;  %v1234_v31 = vpop.f32.mrf.mxu0 }
 0x970   : > { %v4177_v62 = vadd.f32 %v9009_v22, %v4176_v35 }
 0x972   : > { %v4181_v58 = vsel %vm4180_vm4, %v9009_v22, %v4177_v62  ;;  %v1235_v62 = vadd.f32 %v11030_v7, %v1234_v31 }
 0x973   : > { %v3914_v2 = vpop.permute.xlu0 %3913  ;;  %v4186_v47 = vsel %vm4183_vm5, %v4185_v24, %v4181_v58 }
 0x974   : > { %8382 = vmatmul.msk.bf16.gmra.mxu1 %vm1612_vm2, %v3914_v2  ;;  %v11122_v1 = vsel %vm1543_vm6, %v4186_v47, %v9013_v26 }
 0x975   : > { %4386 = vrot.lane.b32.xlu1 %v11122_v1, %s9624_s13 }
 0x976   : > { %v3968_v11 = vpop.f32.mrf.mxu1  ;;  %v1236_v26 = vpop.f32.mrf.mxu0 }
 0x977   : > { %v3996_v56 = vadd.f32 %v3968_v11, %v1230_v18  ;;  %v4379_v39 = vpop.permute.xlu1 %4378  ;;  %v1237_v11 = vadd.f32 %v11030_v7, %v1236_v26 }
 0x978   : > { %v4423_v20 = vmul.f32 %v4379_v39, %v11078_v0 }
 0x979   : > { %v8391_v36 = vmul.f32 -1.442695, %v3996_v56 }
 0x97a   : > { %4458 = vrot.lane.b32.xlu0 %v4423_v20, %s9624_s13 }
 0x97b   : > { %9014 = vpow2.f32 %v8391_v36  ;;  %v4377_v22 = vpop.permute.xlu0 %4376 }
 0x97c   : > { %v4422_v32 = vmul.f32 %v4377_v22, %v11085_v19 }
 0x97e   : > { %v3970_v8 = vpop.f32.mrf.mxu1  ;;  %4456 = vrot.lane.b32.xlu2 %v4422_v32, %s9624_s13 }
 0x97f   : > { %v3997_v14 = vadd.f32 %v3970_v8, %v1232_v54 }
 0x981   : > { %v9015_v15 = vpop.eup %9014  ;;  %v8392_v63 = vmul.f32 -1.442695, %v3997_v14 }
 0x982   : > { %v4060_v13 = vadd.f32 1.0, %v9015_v15  ;;  %v4381_v35 = vpop.permute.xlu2 %4380 }
 0x983   : > { %9016 = vpow2.f32 %v8392_v63  ;;  %v4424_v61 = vmul.f32 %v4381_v35, %v11094_v27 }
 0x984   : > { %9018 = vrcp.f32 %v4060_v13  ;;  %v4199_v22 = vand.u32 2147483648, %v4060_v13  ;;  %v4197_v8 = vand.u32 2147483647, %v4060_v13  ;;  %vm4193_vm8 = vweird.f32 %v4060_v13 }
 0x985   : > { %4460 = vrot.lane.b32.xlu0 %v4424_v61, %s9624_s13 }
 0x986   : > { %v3973_v24 = vpop.f32.mrf.mxu1  ;;  %vm4198_vm10 = vcmp.eq.f32.partialorder %v4197_v8, 8.507059e+37 }
 0x987   : > { %v3998_v58 = vadd.f32 %v3973_v24, %v1235_v62  ;;  %v4200_v62 = vor.u32 1.1754944e-38, %v4199_v22 }
 0x989   : > { %v9017_v18 = vpop.eup %9016  ;;  %v8393_v2 = vmul.f32 -1.442695, %v3998_v58 }
 0x98a   : > { %v9019_v47 = vpop.eup %9018  ;;  %v4061_v43 = vadd.f32 1.0, %v9017_v18 }
 0x98b   : > { %9020 = vpow2.f32 %v8393_v2  ;;  %v4189_v39 = vmul.f32 %v9019_v47, %v4060_v13  ;;  %vm4194_vm7 = vweird.f32 %v9019_v47 }
 0x98c   : > { %9022 = vrcp.f32 %v4061_v43  ;;  %vm4195_vm9 = vmor %vm4193_vm8, %vm4194_vm7  ;;  %v4214_v13 = vand.u32 2147483648, %v4061_v43  ;;  %vm4208_vm12 = vweird.f32 %v4061_v43 }
 0x98d   : > { %v4190_v20 = vsub.f32 1.0, %v4189_v39  ;;  %9024 = vtanh.f32 %v3996_v56 }
 0x98e   : > { %v3975_v36 = vpop.f32.mrf.mxu1  ;;  %v4215_v8 = vor.u32 1.1754944e-38, %v4214_v13 }
 0x98f   : > { %v11135_v32 = vadd.f32 %v3975_v36, %v1237_v11  ;;  %v4191_v54 = vmul.f32 %v9019_v47, %v4190_v20  ;;  %v4212_v20 = vand.u32 2147483647, %v4061_v43 }
 0x991   : > { %v9021_v31 = vpop.eup %9020  ;;  %v8394_v15 = vmul.f32 -1.442695, %v11135_v32  ;;  %v4192_v63 = vadd.f32 %v9019_v47, %v4191_v54  ;;  %vm4213_vm14 = vcmp.eq.f32.partialorder %v4212_v20, 8.507059e+37 }
 0x992   : > { %v9023_v35 = vpop.eup %9022  ;;  %v4062_v61 = vadd.f32 1.0, %v9021_v31 }
 0x993   : > { %9026 = vpow2.f32 %v8394_v15  ;;  %v4196_v24 = vsel %vm4195_vm9, %v9019_v47, %v4192_v63  ;;  %v4204_v56 = vmul.f32 %v9023_v35, %v4061_v43  ;;  %v9025_v26 = vpop.eup %9024  ;;  %vm4209_vm11 = vweird.f32 %v9023_v35 }
 0x994   : > { %9028 = vrcp.f32 %v4062_v61  ;;  %v4201_v18 = vsel %vm4198_vm10, %v4200_v62, %v4196_v24  ;;  %vm4210_vm13 = vmor %vm4208_vm12, %vm4209_vm11  ;;  %v4229_v43 = vand.u32 2147483648, %v4062_v61  ;;  %vm4223_vm0 = vweird.f32 %v4062_v61 }
 0x995   : > { %v11140_v2 = vsel %vm1543_vm6, %v4201_v18, %v9025_v26  ;;  %v4205_v11 = vsub.f32 1.0, %v4204_v56  ;;  %9030 = vtanh.f32 %v3997_v14  ;;  %v4227_v26 = vand.u32 2147483647, %v4062_v61  ;;  %v1239_v18 = vpop.f32.mrf.mxu0 }
 0x996   : > { %4388 = vrot.lane.b32.xlu1 %v11140_v2, %s9624_s13 }
 0x997   : > { %v4206_v39 = vmul.f32 %v9023_v35, %v4205_v11  ;;  %vm4228_vm4 = vcmp.eq.f32.partialorder %v4227_v26, 8.507059e+37 }
 0x999   : > { %v9027_v36 = vpop.eup %9026  ;;  %v4207_v47 = vadd.f32 %v9023_v35, %v4206_v39  ;;  %v4230_v39 = vor.u32 1.1754944e-38, %v4229_v43 }
 0x99a   : > { %v9029_v22 = vpop.eup %9028  ;;  %v4063_v54 = vadd.f32 1.0, %v9027_v36 }
 0x99b   : > { %v4211_v31 = vsel %vm4210_vm13, %v9023_v35, %v4207_v47  ;;  %v4219_v15 = vmul.f32 %v9029_v22, %v4062_v61  ;;  %v9031_v63 = vpop.eup %9030  ;;  %vm4224_vm15 = vweird.f32 %v9029_v22 }
 0x99c   : > { %9032 = vrcp.f32 %v4063_v54  ;;  %v4216_v14 = vsel %vm4213_vm14, %v4215_v8, %v4211_v31  ;;  %vm4225_vm3 = vmor %vm4223_vm0, %vm4224_vm15  ;;  %v3978_v8 = vpop.f32.mrf.mxu1  ;;  %v4244_v61 = vand.u32 2147483648, %v4063_v54  ;;  %vm4238_vm7 = vweird.f32 %v4063_v54 }
 0x99d   : > { %v11146_v62 = vsel %vm1543_vm6, %v4216_v14, %v9031_v63  ;;  %v4220_v24 = vsub.f32 1.0, %v4219_v15  ;;  %9034 = vtanh.f32 %v3998_v58  ;;  %v1241_v43 = vpop.f32.mrf.mxu0 }
 0x99e   : > { %4390 = vrot.lane.b32.xlu2 %v11146_v62, %s9624_s13  ;;  %9036 = vtanh.f32 %v11135_v32 }
 0x99f   : > { %v4221_v56 = vmul.f32 %v9029_v22, %v4220_v24 }
 0x9a1   : > { %v4222_v35 = vadd.f32 %v9029_v22, %v4221_v56  ;;  %v4245_v56 = vor.u32 1.1754944e-38, %v4244_v61 }
 0x9a2   : > { %v9033_v11 = vpop.eup %9032  ;;  %v4383_v13 = vpop.permute.xlu0 %4382 }
 0x9a3   : > { %v4425_v20 = vmul.f32 %v4383_v13, %v11100_v5  ;;  %v4226_v36 = vsel %vm4225_vm3, %v9029_v22, %v4222_v35  ;;  %v4234_v47 = vmul.f32 %v9033_v11, %v4063_v54  ;;  %v9035_v58 = vpop.eup %9034  ;;  %vm4239_vm5 = vweird.f32 %v9033_v11 }
 0x9a4   : > { %v4231_v31 = vsel %vm4228_vm4, %v4230_v39, %v4226_v36  ;;  %v4242_v22 = vand.u32 2147483647, %v4063_v54  ;;  %vm4240_vm8 = vmor %vm4238_vm7, %vm4239_vm5  ;;  %v9037_v35 = vpop.eup %9036  ;;  %v1242_v39 = vadd.f32 %v11030_v7, %v1241_v43  ;;  %v1240_v54 = vadd.f32 %v11030_v7, %v1239_v18 }
 0x9a5   : > { %4462 = vrot.lane.b32.xlu1 %v4425_v20, %s9624_s13  ;;  %v11154_v15 = vsel %vm1543_vm6, %v4231_v31, %v9035_v58  ;;  %v4235_v63 = vsub.f32 1.0, %v4234_v47  ;;  %v3980_v20 = vpop.f32.mrf.mxu1  ;;  %v4340_v43 = vmul.f32 %v11049_v33, %v10853_v44 }
 0x9a6   : > { %4392 = vrot.lane.b32.xlu2 %v11154_v15, %s9624_s13  ;;  %vm4243_vm9 = vcmp.eq.f32.partialorder %v4242_v22, 8.507059e+37  ;;  %v4001_v36 = vadd.f32 %v3980_v20, %v1242_v39  ;;  %v4000_v58 = vadd.f32 %v3978_v8, %v1240_v54 }
 0x9a7   : > { %v4236_v14 = vmul.f32 %v9033_v11, %v4235_v63 }
 0x9a8   : > { %v8396_v47 = vmul.f32 -1.442695, %v4001_v36  ;;  %v8395_v31 = vmul.f32 -1.442695, %v4000_v58 }
 0x9a9   : > { %v4237_v24 = vadd.f32 %v9033_v11, %v4236_v14 }
 0x9aa   : > { %9038 = vpow2.f32 %v8396_v47 }
 0x9ab   : > { %v4241_v26 = vsel %vm4240_vm8, %v9033_v11, %v4237_v24  ;;  %9040 = vpow2.f32 %v8395_v31 }
 0x9ac   : > { %v4246_v13 = vsel %vm4243_vm9, %v4245_v56, %v4241_v26 }
 0x9ad   : > { %v11162_v32 = vsel %vm1543_vm6, %v4246_v13, %v9037_v35  ;;  %v4455_v13 = vpop.permute.xlu2 %4454 }
 0x9ae   : > { %4394 = vrot.lane.b32.xlu0 %v11162_v32, %s9624_s13 }
 0x9b0   : > { %v9039_v11 = vpop.eup %9038 }
 0x9b1   : > { %v4065_v63 = vadd.f32 1.0, %v9039_v11  ;;  %v9041_v61 = vpop.eup %9040  ;;  %v4341_v11 = vmul.f32 %v11056_v12, %v10878_v17 }
 0x9b2   : > { %v4064_v22 = vadd.f32 1.0, %v9041_v61 }
 0x9b3   : > { %9042 = vrcp.f32 %v4065_v63  ;;  %v4274_v47 = vand.u32 2147483648, %v4065_v63  ;;  %vm4268_vm11 = vweird.f32 %v4065_v63  ;;  %v4272_v31 = vand.u32 2147483647, %v4065_v63 }
 0x9b4   : > { %9044 = vrcp.f32 %v4064_v22  ;;  %v11175_v44 = vadd.f32 %v4455_v13, %v4341_v11  ;;  %vm4253_vm15 = vweird.f32 %v4064_v22  ;;  %v4257_v11 = vand.u32 2147483647, %v4064_v22 }
 0x9b5   : > { %vm4273_vm13 = vcmp.eq.f32.partialorder %v4272_v31, 8.507059e+37 }
 0x9b6   : > { %vm4258_vm3 = vcmp.eq.f32.partialorder %v4257_v11, 8.507059e+37 }
 0x9b9   : > { %v9043_v14 = vpop.eup %9042 }
 0x9ba   : > { %v4264_v24 = vmul.f32 %v9043_v14, %v4065_v63  ;;  %v9045_v8 = vpop.eup %9044  ;;  %vm4269_vm10 = vweird.f32 %v9043_v14 }
 0x9bb   : > { %v4249_v20 = vmul.f32 %v9045_v8, %v4064_v22  ;;  %vm4270_vm12 = vmor %vm4268_vm11, %vm4269_vm10  ;;  %vm4254_vm14 = vweird.f32 %v9045_v8 }
 0x9bc   : > { %v4265_v56 = vsub.f32 1.0, %v4264_v24  ;;  %vm4255_vm0 = vmor %vm4253_vm15, %vm4254_vm14 }
 0x9be   : > { %v4266_v18 = vmul.f32 %v9043_v14, %v4265_v56 }
 0x9c0   : > { %v4267_v39 = vadd.f32 %v9043_v14, %v4266_v18  ;;  %v4275_v18 = vor.u32 1.1754944e-38, %v4274_v47  ;;  %v4259_v47 = vand.u32 2147483648, %v4064_v22 }
 0x9c2   : > { %v4271_v24 = vsel %vm4270_vm12, %v9043_v14, %v4267_v39 }
 0x9c3   : > { %v4276_v17 = vsel %vm4273_vm13, %v4275_v18, %v4271_v24 }
 0x9d4   : > { %v4453_v26 = vpop.permute.xlu1 %4452 }
 0x9d5   : > { %v11169_v35 = vadd.f32 %v4453_v26, %v4340_v43  ;;  %v4250_v43 = vsub.f32 1.0, %v4249_v20 }
 0x9d7   : > { %9046 = vtanh.f32 %v11169_v35  ;;  %v4251_v63 = vmul.f32 %v9045_v8, %v4250_v43 }
 0x9d8   : > { %9048 = vtanh.f32 %v4001_v36  ;;  %v4457_v56 = vpop.permute.xlu2 %4456 }
 0x9d9   : > { %9050 = vtanh.f32 %v11175_v44  ;;  %v11182_v36 = vadd.f32 %v4457_v56, %v4342_v46  ;;  %v4252_v39 = vadd.f32 %v9045_v8, %v4251_v63  ;;  %v1244_v46 = vpop.f32.mrf.mxu0 }
 0x9da   : > { %v1245_v43 = vadd.f32 %v11030_v7, %v1244_v46 }
 0x9db   : > { %9052 = vtanh.f32 %v11182_v36  ;;  %v4256_v31 = vsel %vm4255_vm0, %v9045_v8, %v4252_v39 }
 0x9dc   : > { %9054 = vtanh.f32 %v4000_v58 }
 0x9dd   : > { %v9047_v54 = vpop.eup %9046 }
 0x9de   : > { %4548 = vrot.lane.b32.xlu0 %v9047_v54, %s9624_s13  ;;  %v9049_v13 = vpop.eup %9048 }
 0x9df   : > { %v4385_v61 = vpop.permute.xlu0 %4384  ;;  %v11186_v14 = vsel %vm1543_vm6, %v4276_v17, %v9049_v13  ;;  %v9051_v54 = vpop.eup %9050 }
 0x9e0   : > { %v4426_v26 = vmul.f32 %v4385_v61, %v11114_v28  ;;  %v4260_v61 = vor.u32 1.1754944e-38, %v4259_v47 }
 0x9e1   : > { %v9053_v24 = vpop.eup %9052  ;;  %v1246_v17 = vpop.f32.mrf.mxu0 }
 0x9e2   : > { %4464 = vrot.lane.b32.xlu1 %v4426_v26, %s9624_s13  ;;  %v4261_v56 = vsel %vm4258_vm3, %v4260_v61, %v4256_v31  ;;  %v9055_v26 = vpop.eup %9054  ;;  %v1247_v63 = vadd.f32 %v11030_v7, %v1246_v17 }
 0x9e3   : > { %v11198_v22 = vsel %vm1543_vm6, %v4261_v56, %v9055_v26 }
 0x9e6   : > { %4398 = vrot.lane.b32.xlu0 %v11186_v14, %s9624_s13 }
 0x9e7   : > { %v4387_v55 = vpop.permute.xlu1 %4386 }
 0x9e8   : > { %v4427_v20 = vmul.f32 %v4387_v55, %v11122_v1 }
 0x9ea   : > { %4466 = vrot.lane.b32.xlu2 %v4427_v20, %s9624_s13  ;;  %4550 = vrot.lane.b32.xlu1 %v9051_v54, %s9624_s13 }
 0x9ec   : > { %v4459_v61 = vpop.permute.xlu0 %4458 }
 0x9ee   : > { %4552 = vrot.lane.b32.xlu0 %v9053_v24, %s9624_s13 }
 0x9f1   : > { %v3983_v18 = vpop.f32.mrf.mxu1 }
 0x9f2   : > { %v4002_v58 = vadd.f32 %v3983_v18, %v1245_v43  ;;  %4396 = vrot.lane.b32.xlu2 %v11198_v22, %s9624_s13  ;;  %v4343_v43 = vmul.f32 %v11078_v0, %v10889_v9 }
 0x9f4   : > { %v8397_v8 = vmul.f32 -1.442695, %v4002_v58  ;;  %v11207_v56 = vadd.f32 %v4459_v61, %v4343_v43 }
 0x9f6   : > { %9056 = vpow2.f32 %v8397_v8 }
 0x9f8   : > { %v4391_v13 = vpop.permute.xlu2 %4390 }
 0x9f9   : > { %v4429_v55 = vmul.f32 %v4391_v13, %v11146_v62  ;;  %v3985_v39 = vpop.f32.mrf.mxu1 }
 0x9fa   : > { %v4003_v20 = vadd.f32 %v3985_v39, %v1247_v63 }
 0x9fb   : > { %4470 = vrot.lane.b32.xlu2 %v4429_v55, %s9624_s13 }
 0x9fc   : > { %v9057_v47 = vpop.eup %9056  ;;  %v8398_v54 = vmul.f32 -1.442695, %v4003_v20 }
 0x9fd   : > { %v4066_v46 = vadd.f32 1.0, %v9057_v47 }
 0x9fe   : > { %9058 = vpow2.f32 %v8398_v54 }
 0x9ff   : > { %9060 = vrcp.f32 %v4066_v46  ;;  %v4289_v8 = vand.u32 2147483648, %v4066_v46  ;;  %v4287_v13 = vand.u32 2147483647, %v4066_v46  ;;  %vm4283_vm5 = vweird.f32 %v4066_v46 }
 0xa01   : > { %v4290_v39 = vor.u32 1.1754944e-38, %v4289_v8  ;;  %vm4288_vm8 = vcmp.eq.f32.partialorder %v4287_v13, 8.507059e+37 }
 0xa04   : > { %v9059_v11 = vpop.eup %9058 }
 0xa05   : > { %v9061_v31 = vpop.eup %9060  ;;  %v4067_v24 = vadd.f32 1.0, %v9059_v11 }
 0xa06   : > { %v4279_v7 = vmul.f32 %v9061_v31, %v4066_v46  ;;  %vm4284_vm4 = vweird.f32 %v9061_v31 }
 0xa07   : > { %9062 = vrcp.f32 %v4067_v24  ;;  %vm4285_vm7 = vmor %vm4283_vm5, %vm4284_vm4  ;;  %vm4298_vm10 = vweird.f32 %v4067_v24 }
 0xa08   : > { %v4389_v26 = vpop.permute.xlu1 %4388  ;;  %v4280_v18 = vsub.f32 1.0, %v4279_v7  ;;  %9064 = vtanh.f32 %v4002_v58  ;;  %v4304_v7 = vand.u32 2147483648, %v4067_v24 }
 0xa09   : > { %v4428_v17 = vmul.f32 %v4389_v26, %v11140_v2  ;;  %9066 = vtanh.f32 %v11207_v56 }
 0xa0a   : > { %v4281_v63 = vmul.f32 %v9061_v31, %v4280_v18  ;;  %9068 = vtanh.f32 %v4003_v20  ;;  %v4302_v18 = vand.u32 2147483647, %v4067_v24  ;;  %v4393_v20 = vpop.permute.xlu2 %4392 }
 0xa0b   : > { %4468 = vrot.lane.b32.xlu1 %v4428_v17, %s9624_s13  ;;  %v4461_v17 = vpop.permute.xlu0 %4460 }
 0xa0c   : > { %v4282_v55 = vadd.f32 %v9061_v31, %v4281_v63  ;;  %v4305_v63 = vor.u32 1.1754944e-38, %v4304_v7  ;;  %vm4303_vm12 = vcmp.eq.f32.partialorder %v4302_v18, 8.507059e+37 }
 0xa0d   : > { %v9063_v9 = vpop.eup %9062 }
 0xa0e   : > { %v4286_v47 = vsel %vm4285_vm7, %v9061_v31, %v4282_v55  ;;  %v4294_v54 = vmul.f32 %v9063_v9, %v4067_v24  ;;  %v9065_v11 = vpop.eup %9064  ;;  %vm4299_vm9 = vweird.f32 %v9063_v9  ;;  %v4344_v31 = vmul.f32 %v11094_v27, %v10912_v29 }
 0xa0f   : > { %v4291_v58 = vsel %vm4288_vm8, %v4290_v39, %v4286_v47  ;;  %v9067_v26 = vpop.eup %9066  ;;  %vm4300_vm11 = vmor %vm4298_vm10, %vm4299_vm9  ;;  %v4345_v55 = vmul.f32 %v11100_v5, %v10907_v40  ;;  %v4430_v24 = vmul.f32 %v4393_v20, %v11154_v15 }
 0xa10   : > { %v11214_v61 = vsel %vm1543_vm6, %v4291_v58, %v9065_v11  ;;  %v4295_v43 = vsub.f32 1.0, %v4294_v54  ;;  %v11221_v13 = vadd.f32 %v4461_v17, %v4344_v31  ;;  %v9069_v47 = vpop.eup %9068 }
 0xa11   : > { %4400 = vrot.lane.b32.xlu2 %v11214_v61, %s9624_s13 }
 0xa12   : > { %v4296_v46 = vmul.f32 %v9063_v9, %v4295_v43  ;;  %9070 = vtanh.f32 %v11221_v13 }
 0xa13   : > { %4554 = vrot.lane.b32.xlu1 %v9067_v26, %s9624_s13 }
 0xa14   : > { %v4297_v8 = vadd.f32 %v9063_v9, %v4296_v46  ;;  %v4347_v46 = vmul.f32 %v11122_v1, %v10935_v4  ;;  %v4346_v4 = vmul.f32 %v11114_v28, %v10933_v52 }
 0xa16   : > { %v4301_v39 = vsel %vm4300_vm11, %v9063_v9, %v4297_v8 }
 0xa17   : > { %v4463_v54 = vpop.permute.xlu1 %4462  ;;  %v4306_v11 = vsel %vm4303_vm12, %v4305_v63, %v4301_v39 }
 0xa18   : > { %v11225_v58 = vadd.f32 %v4463_v54, %v4345_v55  ;;  %v11229_v29 = vsel %vm1543_vm6, %v4306_v11, %v9069_v47  ;;  %v9071_v40 = vpop.eup %9070 }
 0xa19   : > { %4402 = vrot.lane.b32.xlu0 %v11229_v29, %s9624_s13 }
 0xa1a   : > { %9072 = vtanh.f32 %v11225_v58 }
 0xa1b   : > { %4472 = vrot.lane.b32.xlu1 %v4430_v24, %s9624_s13 }
 0xa20   : > { %v4395_v9 = vpop.permute.xlu0 %4394  ;;  %v9073_v7 = vpop.eup %9072 }
 0xa21   : > { %v4431_v43 = vmul.f32 %v4395_v9, %v11162_v32  ;;  %4556 = vrot.lane.b32.xlu0 %v9071_v40, %s9624_s13 }
 0xa23   : > { %4558 = vrot.lane.b32.xlu1 %v9073_v7, %s9624_s13  ;;  %4474 = vrot.lane.b32.xlu2 %v4431_v43, %s9624_s13  ;;  %v4349_v7 = vmul.f32 %v11146_v62, %v10958_v51 }
 0xa44   : > { %v4467_v26 = vpop.permute.xlu2 %4466 }
 0xa45   : > { %v11243_v18 = vadd.f32 %v4467_v26, %v4347_v46  ;;  %v4351_v46 = vmul.f32 %v11162_v32, %v10970_v59 }
 0xa47   : > { %9074 = vtanh.f32 %v11243_v18 }
 0xa4c   : > { %v4397_v17 = vpop.permute.xlu2 %4396 }
 0xa4d   : > { %v4432_v31 = vmul.f32 %v4397_v17, %v11198_v22  ;;  %v9075_v20 = vpop.eup %9074 }
 0xa4f   : > { %4476 = vrot.lane.b32.xlu0 %v4432_v31, %s9624_s13 }
 0xa50   : > { %v4549_v8 = vpop.permute.xlu0 %4548 }
 0xa51   : > { %v4596_v54 = vmul.f32 %v4549_v8, %v11049_v33 }
 0xa54   : > { %v4465_v63 = vpop.permute.xlu1 %4464 }
 0xa55   : > { %v11255_v24 = vadd.f32 %v4465_v63, %v4346_v4  ;;  %v4471_v9 = vpop.permute.xlu2 %4470  ;;  %v4348_v63 = vmul.f32 %v11140_v2, %v10950_v30  ;;  %v4350_v30 = vmul.f32 %v11154_v15, %v10961_v60  ;;  %v8530_v60 = vld [vmem:[%s9710_s26 + $0x100] sm:$0xff]  ;;  %s12704_s26 = scalar_lea.vmem %s12780_s10, %s9719_s27 }
 0xa56   : > { %v11262_v26 = vadd.f32 %v4471_v9, %v4349_v7  ;;  %8263 = vmatmul.msk.bf16.gmra.mxu0 %vm883_vm1, %v8530_v60 }
 0xa57   : > { %4562 = vrot.lane.b32.xlu0 %v9075_v20, %s9624_s13  ;;  %9076 = vtanh.f32 %v11255_v24 }
 0xa58   : > { %v4399_v55 = vpop.permute.xlu0 %4398  ;;  %9078 = vtanh.f32 %v11262_v26 }
 0xa59   : > { %v4433_v39 = vmul.f32 %v4399_v55, %v11186_v14 }
 0xa5b   : > { %4478 = vrot.lane.b32.xlu1 %v4433_v39, %s9624_s13 }
 0xa5c   : > { %v4551_v47 = vpop.permute.xlu1 %4550 }
 0xa5d   : > { %v4597_v11 = vmul.f32 %v4551_v47, %v11056_v12  ;;  %v9077_v43 = vpop.eup %9076 }
 0xa5e   : > { %v9079_v12 = vpop.eup %9078 }
 0xa5f   : > { %v4629_v40 = vpack.c.bf16 %v4597_v11, %v4596_v54 }
 0xa60   : > { %v4553_v51 = vpop.permute.xlu0 %4552 }
 0xa61   : > { %4645 = vrot.lane.b32.xlu2 %v4629_v40, %s9625_s18  ;;  %v4598_v55 = vmul.f32 %v4553_v51, %v11085_v19 }
 0xa69   : > { %4560 = vrot.lane.b32.xlu2 %v9077_v43, %s9624_s13 }
 0xa6b   : > { %v4401_v52 = vpop.permute.xlu2 %4400 }
 0xa6c   : > { %v4434_v33 = vmul.f32 %v4401_v52, %v11214_v61 }
 0xa71   : > { %4480 = vrot.lane.b32.xlu2 %v4434_v33, %s9624_s13 }
 0xa79   : > { %4566 = vrot.lane.b32.xlu2 %v9079_v12, %s9624_s13 }
 0xa7d   : > { %v4469_v17 = vpop.permute.xlu1 %4468  ;;  %v4475_v31 = vpop.permute.xlu2 %4474 }
 0xa7e   : > { %v11270_v8 = vadd.f32 %v4475_v31, %v4351_v46  ;;  %v11277_v47 = vadd.f32 %v4469_v17, %v4348_v63  ;;  %v4352_v17 = vmul.f32 %v11198_v22, %v10993_v25 }
 0xa80   : > { %9080 = vtanh.f32 %v11270_v8 }
 0xa81   : > { %9082 = vtanh.f32 %v11277_v47 }
 0xa85   : > { %v4555_v20 = vpop.permute.xlu1 %4554 }
 0xa86   : > { %v4599_v39 = vmul.f32 %v4555_v20, %v11078_v0  ;;  %v9081_v4 = vpop.eup %9080 }
 0xa87   : > { %4570 = vrot.lane.b32.xlu2 %v9081_v4, %s9624_s13  ;;  %v9083_v40 = vpop.eup %9082 }
 0xa88   : > { %v4630_v54 = vpack.c.bf16 %v4599_v39, %v4598_v55  ;;  %v4354_v39 = vmul.f32 %v11214_v61, %v11005_v38 }
 0xa8a   : > { %4647 = vrot.lane.b32.xlu1 %v4630_v54, %s9625_s18 }
 0xa8b   : > { %v4403_v59 = vpop.permute.xlu0 %4402 }
 0xa8c   : > { %v4435_v11 = vmul.f32 %v4403_v59, %v11229_v29  ;;  %v4353_v59 = vmul.f32 %v11186_v14, %v10986_v16  ;;  %v4355_v16 = vmul.f32 %v11229_v29, %v11010_v49 }
 0xa8d   : > { %v4473_v19 = vpop.permute.xlu1 %4472 }
 0xa8e   : > { %4482 = vrot.lane.b32.xlu0 %v4435_v11, %s9624_s13  ;;  %v11286_v0 = vadd.f32 %v4473_v19, %v4350_v30 }
 0xa90   : > { %9084 = vtanh.f32 %v11286_v0 }
 0xa92   : > { %4564 = vrot.lane.b32.xlu1 %v9083_v40, %s9624_s13 }
 0xa93   : > { %v4557_v9 = vpop.permute.xlu0 %4556 }
 0xa94   : > { %v4600_v7 = vmul.f32 %v4557_v9, %v11094_v27 }
 0xa95   : > { %v4559_v43 = vpop.permute.xlu1 %4558 }
 0xa96   : > { %v4601_v52 = vmul.f32 %v4559_v43, %v11100_v5  ;;  %v9085_v12 = vpop.eup %9084 }
 0xa98   : > { %v4631_v33 = vpack.c.bf16 %v4601_v52, %v4600_v7 }
 0xa9a   : > { %4568 = vrot.lane.b32.xlu1 %v9085_v12, %s9624_s13  ;;  %4649 = vrot.lane.b32.xlu0 %v4631_v33, %s9625_s18 }
 0xabb   : > { %v4646_v46 = vpop.permute.xlu2 %4645 }
 0xabc   : > { %8399 = vmatmul.msk.bf16.vlgmr.msra.gmra.mxu2 %vm1612_vm2, %v4646_v46 }
 0xac1   : > { %v4477_v31 = vpop.permute.xlu0 %4476 }
 0xac2   : > { %v11299_v51 = vadd.f32 %v4477_v31, %v4352_v17 }
 0xac3   : > { %v4561_v27 = vpop.permute.xlu2 %4560 }
 0xac4   : > { %9086 = vtanh.f32 %v11299_v51  ;;  %v4602_v20 = vmul.f32 %v4561_v27, %v11114_v28 }
 0xac9   : > { %v4563_v5 = vpop.permute.xlu0 %4562 }
 0xaca   : > { %v9087_v63 = vpop.eup %9086  ;;  %v4603_v55 = vmul.f32 %v4563_v5, %v11122_v1  ;;  %v11335_v5 = vld [vmem:[%s12776_s6] ss:$0 sm:$0xff] }
 0xacb   : > { %v4481_v4 = vpop.permute.xlu2 %4480  ;;  %4572 = vrot.lane.b32.xlu1 %v9087_v63, %s9624_s13 }
 0xacc   : > { %v4632_v54 = vpack.c.bf16 %v4603_v55, %v4602_v20  ;;  %v11307_v25 = vadd.f32 %v4481_v4, %v4354_v39 }
 0xacd   : > { %v4479_v11 = vpop.permute.xlu1 %4478 }
 0xace   : > { %9088 = vtanh.f32 %v11307_v25  ;;  %v11312_v30 = vadd.f32 %v4479_v11, %v4353_v59  ;;  %4651 = vrot.lane.b32.xlu0 %v4632_v54, %s9625_s18 }
 0xad0   : > { %9090 = vtanh.f32 %v11312_v30 }
 0xad3   : > { %v4567_v9 = vpop.permute.xlu2 %4566 }
 0xad4   : > { %v9089_v28 = vpop.eup %9088  ;;  %v4605_v7 = vmul.f32 %v4567_v9, %v11146_v62  ;;  %v1249_v62 = vpop.f32.mrf.mxu0 }
 0xad5   : > { %4576 = vrot.lane.b32.xlu1 %v9089_v28, %s9624_s13  ;;  %v1250_v63 = vadd.f32 %v11335_v5, %v1249_v62 }
 0xad6   : > { %v9091_v38 = vpop.eup %9090 }
 0xad7   : > { %4574 = vrot.lane.b32.xlu2 %v9091_v38, %s9624_s13 }
 0xadc   : > { %v1251_v59 = vpop.f32.mrf.mxu0 }
 0xadd   : > { %v1252_v28 = vadd.f32 %v11335_v5, %v1251_v59 }
 0xae1   : > { %v4571_v60 = vpop.permute.xlu2 %4570 }
 0xae2   : > { %v4607_v17 = vmul.f32 %v4571_v60, %v11162_v32 }
 0xafc   : > { %v4648_v1 = vpop.permute.xlu1 %4647 }
 0xafd   : > { %8400 = vmatmul.msk.bf16.gmra.mxu2 %vm1612_vm2, %v4648_v1 }
 0xb00   : > { %v4483_v19 = vpop.permute.xlu0 %4482 }
 0xb01   : > { %v11321_v40 = vadd.f32 %v4483_v19, %v4355_v16 }
 0xb03   : > { %9092 = vtanh.f32 %v11321_v40 }
 0xb04   : > { %v4565_v43 = vpop.permute.xlu1 %4564 }
 0xb05   : > { %v4604_v52 = vmul.f32 %v4565_v43, %v11140_v2 }
 0xb07   : > { %v4633_v33 = vpack.c.bf16 %v4605_v7, %v4604_v52 }
 0xb09   : > { %v9093_v12 = vpop.eup %9092  ;;  %4653 = vrot.lane.b32.xlu0 %v4633_v33, %s9625_s18 }
 0xb0a   : > { %4578 = vrot.lane.b32.xlu2 %v9093_v12, %s9624_s13 }
 0xb0c   : > { %v4569_v46 = vpop.permute.xlu1 %4568  ;;  %v4650_v49 = vpop.permute.xlu0 %4649 }
 0xb0d   : > { %v4606_v31 = vmul.f32 %v4569_v46, %v11154_v15  ;;  %8401 = vmatmul.msk.bf16.gmra.mxu2 %vm1612_vm2, %v4650_v49 }
 0xb0f   : > { %v4634_v27 = vpack.c.bf16 %v4607_v17, %v4606_v31 }
 0xb11   : > { %4655 = vrot.lane.b32.xlu0 %v4634_v27, %s9625_s18 }
 0xb31   : > { %v4575_v2 = vpop.permute.xlu2 %4574 }
 0xb32   : > { %v4609_v55 = vmul.f32 %v4575_v2, %v11186_v14 }
 0xb3d   : > { %v4573_v20 = vpop.permute.xlu1 %4572 }
 0xb3e   : > { %v4608_v32 = vmul.f32 %v4573_v20, %v11198_v22 }
 0xb3f   : > { %v4694_v15 = vpop.f32.mrf.mxu2 }
 0xb40   : > { %v4635_v39 = vpack.c.bf16 %v4609_v55, %v4608_v32  ;;  %v4734_v4 = vadd.f32 %v4694_v15, %v1250_v63  ;;  %v4652_v54 = vpop.permute.xlu0 %4651 }
 0xb41   : > { %8402 = vmatmul.msk.bf16.gmra.mxu2 %vm1612_vm2, %v4652_v54 }
 0xb42   : > { %v8407_v11 = vmul.f32 -1.442695, %v4734_v4  ;;  %4657 = vrot.lane.b32.xlu1 %v4635_v39, %s9625_s18 }
 0xb44   : > { %9094 = vpow2.f32 %v8407_v11 }
 0xb47   : > { %v4696_v38 = vpop.f32.mrf.mxu2  ;;  %v4577_v39 = vpop.permute.xlu1 %4576 }
 0xb48   : > { %v4735_v1 = vadd.f32 %v4696_v38, %v1252_v28  ;;  %v4610_v38 = vmul.f32 %v4577_v39, %v11214_v61 }
 0xb4a   : > { %v9095_v16 = vpop.eup %9094  ;;  %v8408_v19 = vmul.f32 -1.442695, %v4735_v1 }
 0xb4b   : > { %v4798_v14 = vadd.f32 1.0, %v9095_v16 }
 0xb4c   : > { %9096 = vpow2.f32 %v8408_v19 }
 0xb4d   : > { %9098 = vrcp.f32 %v4798_v14  ;;  %v4825_v33 = vand.u32 2147483648, %v4798_v14  ;;  %v4823_v60 = vand.u32 2147483647, %v4798_v14  ;;  %vm4819_vm13 = vweird.f32 %v4798_v14 }
 0xb4f   : > { %v4826_v17 = vor.u32 1.1754944e-38, %v4825_v33  ;;  %vm4824_vm15 = vcmp.eq.f32.partialorder %v4823_v60, 8.507059e+37 }
 0xb52   : > { %v9097_v22 = vpop.eup %9096 }
 0xb53   : > { %v9099_v9 = vpop.eup %9098  ;;  %v4799_v43 = vadd.f32 1.0, %v9097_v22 }
 0xb54   : > { %v4815_v7 = vmul.f32 %v9099_v9, %v4798_v14  ;;  %vm4820_vm1 = vweird.f32 %v9099_v9 }
 0xb55   : > { %9100 = vrcp.f32 %v4799_v43  ;;  %vm4821_vm14 = vmor %vm4819_vm13, %vm4820_vm1  ;;  %v4840_v55 = vand.u32 2147483648, %v4799_v43  ;;  %v4838_v15 = vand.u32 2147483647, %v4799_v43  ;;  %vm4834_vm3 = vweird.f32 %v4799_v43 }
 0xb56   : > { %v4816_v52 = vsub.f32 1.0, %v4815_v7  ;;  %9102 = vtanh.f32 %v4734_v4  ;;  %v1257_v7 = vadd.f32 %v11335_v5, %v9779_v37 }
 0xb57   : > { %9104 = vtanh.f32 %v4735_v1  ;;  %v4841_v54 = vor.u32 1.1754944e-38, %v4840_v55  ;;  %vm4839_vm5 = vcmp.eq.f32.partialorder %v4838_v15, 8.507059e+37  ;;  %v1262_v55 = vadd.f32 %v11335_v5, %v9793_v48 }
 0xb58   : > { %v4817_v12 = vmul.f32 %v9099_v9, %v4816_v52 }
 0xb5a   : > { %v4818_v46 = vadd.f32 %v9099_v9, %v4817_v12 }
 0xb5b   : > { %v9101_v49 = vpop.eup %9100 }
 0xb5c   : > { %v4822_v31 = vsel %vm4821_vm14, %v9099_v9, %v4818_v46  ;;  %v4830_v27 = vmul.f32 %v9101_v49, %v4799_v43  ;;  %v9103_v62 = vpop.eup %9102  ;;  %vm4835_vm0 = vweird.f32 %v9101_v49  ;;  %v1255_v9 = vadd.f32 %v11335_v5, %v9771_v34 }
 0xb5d   : > { %v4827_v2 = vsel %vm4824_vm15, %v4826_v17, %v4822_v31  ;;  %vm4836_vm4 = vmor %vm4834_vm3, %vm4835_vm0  ;;  %v9105_v28 = vpop.eup %9104  ;;  %v1260_v34 = vadd.f32 %v11335_v5, %v9789_v42 }
 0xb5e   : > { %v11345_v63 = vsel %vm1543_vm6, %v4827_v2, %v9103_v62  ;;  %v4831_v20 = vsub.f32 1.0, %v4830_v27 }
 0xb5f   : > { %5118 = vrot.lane.b32.xlu0 %v11345_v63, %s9624_s13 }
 0xb60   : > { %v4832_v32 = vmul.f32 %v9101_v49, %v4831_v20 }
 0xb62   : > { %v4833_v4 = vadd.f32 %v9101_v49, %v4832_v32 }
 0xb64   : > { %v4579_v59 = vpop.permute.xlu2 %4578  ;;  %v4837_v11 = vsel %vm4836_vm4, %v9101_v49, %v4833_v4 }
 0xb65   : > { %v4611_v1 = vmul.f32 %v4579_v59, %v11229_v29  ;;  %v4842_v16 = vsel %vm4839_vm5, %v4841_v54, %v4837_v11 }
 0xb66   : > { %v11353_v19 = vsel %vm1543_vm6, %v4842_v16, %v9105_v28 }
 0xb67   : > { %v4636_v14 = vpack.c.bf16 %v4611_v1, %v4610_v38  ;;  %5120 = vrot.lane.b32.xlu1 %v11353_v19, %s9624_s13 }
 0xb69   : > { %4659 = vrot.lane.b32.xlu2 %v4636_v14, %s9625_s18 }
 0xb7b   : > { %v4654_v22 = vpop.permute.xlu0 %4653 }
 0xb7c   : > { %8403 = vmatmul.msk.bf16.gmra.mxu2 %vm1612_vm2, %v4654_v22 }
 0xb80   : > { %v4699_v61 = vpop.f32.mrf.mxu2 }
 0xb81   : > { %v4736_v43 = vadd.f32 %v4699_v61, %v1255_v9 }
 0xb83   : > { %v8409_v29 = vmul.f32 -1.442695, %v4736_v43  ;;  %v4656_v60 = vpop.permute.xlu0 %4655 }
 0xb85   : > { %9106 = vpow2.f32 %v8409_v29 }
 0xb88   : > { %v4701_v52 = vpop.f32.mrf.mxu2 }
 0xb89   : > { %v4737_v33 = vadd.f32 %v4701_v52, %v1257_v7 }
 0xb8b   : > { %v9107_v12 = vpop.eup %9106  ;;  %v8410_v46 = vmul.f32 -1.442695, %v4737_v33 }
 0xb8c   : > { %v4800_v49 = vadd.f32 1.0, %v9107_v12  ;;  %8404 = vmatmul.msk.bf16.gmra.mxu2 %vm1612_vm2, %v4656_v60 }
 0xb8d   : > { %9108 = vpow2.f32 %v8410_v46 }
 0xb8e   : > { %9110 = vrcp.f32 %v4800_v49  ;;  %v4855_v39 = vand.u32 2147483648, %v4800_v49  ;;  %v4853_v42 = vand.u32 2147483647, %v4800_v49  ;;  %vm4849_vm8 = vweird.f32 %v4800_v49 }
 0xb90   : > { %v4704_v17 = vpop.f32.mrf.mxu2  ;;  %v4856_v16 = vor.u32 1.1754944e-38, %v4855_v39  ;;  %vm4854_vm10 = vcmp.eq.f32.partialorder %v4853_v42, 8.507059e+37 }
 0xb91   : > { %v4738_v31 = vadd.f32 %v4704_v17, %v1260_v34 }
 0xb93   : > { %v9109_v27 = vpop.eup %9108  ;;  %v8411_v62 = vmul.f32 -1.442695, %v4738_v31 }
 0xb94   : > { %v9111_v2 = vpop.eup %9110  ;;  %v4801_v20 = vadd.f32 1.0, %v9109_v27 }
 0xb95   : > { %9112 = vpow2.f32 %v8411_v62  ;;  %v4845_v37 = vmul.f32 %v9111_v2, %v4800_v49  ;;  %vm4850_vm7 = vweird.f32 %v9111_v2 }
 0xb96   : > { %9114 = vrcp.f32 %v4801_v20  ;;  %vm4851_vm9 = vmor %vm4849_vm8, %vm4850_vm7  ;;  %v4870_v29 = vand.u32 2147483648, %v4801_v20  ;;  %v4868_v52 = vand.u32 2147483647, %v4801_v20  ;;  %vm4864_vm12 = vweird.f32 %v4801_v20 }
 0xb97   : > { %v4846_v32 = vsub.f32 1.0, %v4845_v37  ;;  %9116 = vtanh.f32 %v4736_v43 }
 0xb98   : > { %v4706_v15 = vpop.f32.mrf.mxu2  ;;  %v4871_v34 = vor.u32 1.1754944e-38, %v4870_v29  ;;  %vm4869_vm13 = vcmp.eq.f32.partialorder %v4868_v52, 8.507059e+37  ;;  %v1265_v52 = vadd.f32 %v11335_v5, %v9797_v57 }
 0xb99   : > { %v4739_v4 = vadd.f32 %v4706_v15, %v1262_v55  ;;  %v4847_v54 = vmul.f32 %v9111_v2, %v4846_v32 }
 0xb9b   : > { %v9113_v59 = vpop.eup %9112  ;;  %v8412_v11 = vmul.f32 -1.442695, %v4739_v4  ;;  %v4848_v28 = vadd.f32 %v9111_v2, %v4847_v54 }
 0xb9c   : > { %v9115_v38 = vpop.eup %9114  ;;  %v4802_v1 = vadd.f32 1.0, %v9113_v59 }
 0xb9d   : > { %9118 = vpow2.f32 %v8412_v11  ;;  %v4852_v14 = vsel %vm4851_vm9, %v9111_v2, %v4848_v28  ;;  %v4860_v48 = vmul.f32 %v9115_v38, %v4801_v20  ;;  %v9117_v22 = vpop.eup %9116  ;;  %vm4865_vm11 = vweird.f32 %v9115_v38 }
 0xb9e   : > { %9120 = vrcp.f32 %v4802_v1  ;;  %v4857_v9 = vsel %vm4854_vm10, %v4856_v16, %v4852_v14  ;;  %vm4866_vm1 = vmor %vm4864_vm12, %vm4865_vm11  ;;  %v4885_v20 = vand.u32 2147483648, %v4802_v1  ;;  %v4883_v32 = vand.u32 2147483647, %v4802_v1 }
 0xb9f   : > { %v11370_v61 = vsel %vm1543_vm6, %v4857_v9, %v9117_v22  ;;  %v4861_v43 = vsub.f32 1.0, %v4860_v48  ;;  %9122 = vtanh.f32 %v4737_v33  ;;  %vm4879_vm15 = vweird.f32 %v4802_v1 }
 0xba0   : > { %5122 = vrot.lane.b32.xlu2 %v11370_v61, %s9624_s13  ;;  %v4886_v54 = vor.u32 1.1754944e-38, %v4885_v20  ;;  %vm4884_vm3 = vcmp.eq.f32.partialorder %v4883_v32, 8.507059e+37 }
 0xba1   : > { %v4862_v7 = vmul.f32 %v9115_v38, %v4861_v43 }
 0xba3   : > { %v9119_v12 = vpop.eup %9118  ;;  %v4863_v60 = vadd.f32 %v9115_v38, %v4862_v7 }
 0xba4   : > { %v9121_v46 = vpop.eup %9120  ;;  %v4803_v49 = vadd.f32 1.0, %v9119_v12 }
 0xba5   : > { %v4867_v17 = vsel %vm4866_vm1, %v9115_v38, %v4863_v60  ;;  %v4875_v27 = vmul.f32 %v9121_v46, %v4802_v1  ;;  %v9123_v62 = vpop.eup %9122  ;;  %vm4880_vm14 = vweird.f32 %v9121_v46 }
 0xba6   : > { %9124 = vrcp.f32 %v4803_v49  ;;  %v4872_v33 = vsel %vm4869_vm13, %v4871_v34, %v4867_v17  ;;  %vm4881_vm0 = vmor %vm4879_vm15, %vm4880_vm14  ;;  %v4900_v16 = vand.u32 2147483648, %v4803_v49  ;;  %v4898_v1 = vand.u32 2147483647, %v4803_v49 }
 0xba7   : > { %v11376_v2 = vsel %vm1543_vm6, %v4872_v33, %v9123_v62  ;;  %v4876_v37 = vsub.f32 1.0, %v4875_v27  ;;  %9126 = vtanh.f32 %v4738_v31  ;;  %vm4894_vm5 = vweird.f32 %v4803_v49 }
 0xba8   : > { %5124 = vrot.lane.b32.xlu0 %v11376_v2, %s9624_s13  ;;  %9128 = vtanh.f32 %v4739_v4  ;;  %v4901_v9 = vor.u32 1.1754944e-38, %v4900_v16  ;;  %vm4899_vm8 = vcmp.eq.f32.partialorder %v4898_v1, 8.507059e+37  ;;  %v1267_v34 = vadd.f32 %v11335_v5, %v9805_v3 }
 0xba9   : > { %v4877_v55 = vmul.f32 %v9121_v46, %v4876_v37 }
 0xbab   : > { %v4878_v15 = vadd.f32 %v9121_v46, %v4877_v55 }
 0xbac   : > { %v9125_v39 = vpop.eup %9124 }
 0xbad   : > { %v4882_v42 = vsel %vm4881_vm0, %v9121_v46, %v4878_v15  ;;  %v4890_v59 = vmul.f32 %v9125_v39, %v4803_v49  ;;  %v9127_v11 = vpop.eup %9126  ;;  %vm4895_vm4 = vweird.f32 %v9125_v39 }
 0xbae   : > { %v4887_v28 = vsel %vm4884_vm3, %v4886_v54, %v4882_v42  ;;  %vm4896_vm7 = vmor %vm4894_vm5, %vm4895_vm4  ;;  %v9129_v29 = vpop.eup %9128 }
 0xbaf   : > { %v11382_v31 = vsel %vm1543_vm6, %v4887_v28, %v9127_v11  ;;  %v4891_v38 = vsub.f32 1.0, %v4890_v59 }
 0xbb0   : > { %5126 = vrot.lane.b32.xlu1 %v11382_v31, %s9624_s13 }
 0xbb1   : > { %v4892_v14 = vmul.f32 %v9125_v39, %v4891_v38 }
 0xbb3   : > { %v4893_v48 = vadd.f32 %v9125_v39, %v4892_v14 }
 0xbb4   : > { %v4658_v22 = vpop.permute.xlu1 %4657 }
 0xbb5   : > { %8405 = vmatmul.msk.bf16.gmra.mxu2 %vm1612_vm2, %v4658_v22  ;;  %v4897_v43 = vsel %vm4896_vm7, %v9125_v39, %v4893_v48 }
 0xbb6   : > { %v4902_v7 = vsel %vm4899_vm8, %v4901_v9, %v4897_v43 }
 0xbb7   : > { %v11389_v4 = vsel %vm1543_vm6, %v4902_v7, %v9129_v29 }
 0xbb8   : > { %5128 = vrot.lane.b32.xlu2 %v11389_v4, %s9624_s13 }
 0xbc3   : > { %v4660_v12 = vpop.permute.xlu2 %4659 }
 0xbc4   : > { %v4709_v60 = vpop.f32.mrf.mxu2 }
 0xbc5   : > { %v4740_v46 = vadd.f32 %v4709_v60, %v1265_v52  ;;  %8406 = vmatmul.msk.bf16.gmra.mxu2 %vm1612_vm2, %v4660_v12 }
 0xbc7   : > { %v8413_v49 = vmul.f32 -1.442695, %v4740_v46 }
 0xbc9   : > { %9130 = vpow2.f32 %v8413_v49 }
 0xbcc   : > { %v4711_v17 = vpop.f32.mrf.mxu2 }
 0xbcd   : > { %v4741_v27 = vadd.f32 %v4711_v17, %v1267_v34 }
 0xbcf   : > { %v9131_v62 = vpop.eup %9130  ;;  %v8414_v33 = vmul.f32 -1.442695, %v4741_v27 }
 0xbd0   : > { %v4804_v37 = vadd.f32 1.0, %v9131_v62 }
 0xbd1   : > { %9132 = vpow2.f32 %v8414_v33  ;;  %v5119_v20 = vpop.permute.xlu0 %5118 }
 0xbd2   : > { %9134 = vrcp.f32 %v4804_v37  ;;  %v5166_v57 = vmul.f32 %v5119_v20, %v11345_v63  ;;  %v4915_v59 = vand.u32 2147483648, %v4804_v37  ;;  %v4913_v28 = vand.u32 2147483647, %v4804_v37 }
 0xbd3   : > { %vm4909_vm10 = vweird.f32 %v4804_v37 }
 0xbd4   : > { %5198 = vrot.lane.b32.xlu0 %v5166_v57, %s9624_s13  ;;  %v4916_v14 = vor.u32 1.1754944e-38, %v4915_v59  ;;  %vm4914_vm12 = vcmp.eq.f32.partialorder %v4913_v28, 8.507059e+37  ;;  %v1275_v59 = vadd.f32 %v11335_v5, %v9845_v50 }
 0xbd7   : > { %v9133_v55 = vpop.eup %9132 }
 0xbd8   : > { %v9135_v32 = vpop.eup %9134  ;;  %v4805_v15 = vadd.f32 1.0, %v9133_v55 }
 0xbd9   : > { %v5121_v39 = vpop.permute.xlu1 %5120  ;;  %v4905_v54 = vmul.f32 %v9135_v32, %v4804_v37  ;;  %vm4910_vm9 = vweird.f32 %v9135_v32  ;;  %v1270_v37 = vadd.f32 %v11335_v5, %v9819_v21 }
 0xbda   : > { %9136 = vrcp.f32 %v4805_v15  ;;  %v5167_v3 = vmul.f32 %v5121_v39, %v11353_v19  ;;  %vm4911_vm11 = vmor %vm4909_vm10, %vm4910_vm9  ;;  %v4930_v7 = vand.u32 2147483648, %v4805_v15  ;;  %v4928_v12 = vand.u32 2147483647, %v4805_v15 }
 0xbdb   : > { %v4906_v42 = vsub.f32 1.0, %v4905_v54  ;;  %9138 = vtanh.f32 %v4740_v46  ;;  %vm4924_vm13 = vweird.f32 %v4805_v15 }
 0xbdc   : > { %5200 = vrot.lane.b32.xlu1 %v5167_v3, %s9624_s13  ;;  %9140 = vtanh.f32 %v4741_v27  ;;  %v4931_v46 = vor.u32 1.1754944e-38, %v4930_v7  ;;  %vm4929_vm15 = vcmp.eq.f32.partialorder %v4928_v12, 8.507059e+37 }
 0xbdd   : > { %v4907_v11 = vmul.f32 %v9135_v32, %v4906_v42 }
 0xbdf   : > { %v4908_v38 = vadd.f32 %v9135_v32, %v4907_v11 }
 0xbe0   : > { %v9137_v16 = vpop.eup %9136 }
 0xbe1   : > { %v4912_v1 = vsel %vm4911_vm11, %v9135_v32, %v4908_v38  ;;  %v4920_v48 = vmul.f32 %v9137_v16, %v4805_v15  ;;  %v9139_v22 = vpop.eup %9138  ;;  %vm4925_vm1 = vweird.f32 %v9137_v16  ;;  %v1272_v32 = vadd.f32 %v11335_v5, %v9829_v41 }
 0xbe2   : > { %v4917_v9 = vsel %vm4914_vm12, %v4916_v14, %v4912_v1  ;;  %vm4926_vm14 = vmor %vm4924_vm13, %vm4925_vm1  ;;  %v9141_v34 = vpop.eup %9140  ;;  %v1277_v1 = vadd.f32 %v11335_v5, %v9849_v53 }
 0xbe3   : > { %v11404_v43 = vsel %vm1543_vm6, %v4917_v9, %v9139_v22  ;;  %v4921_v29 = vsub.f32 1.0, %v4920_v48 }
 0xbe4   : > { %5130 = vrot.lane.b32.xlu2 %v11404_v43, %s9624_s13 }
 0xbe5   : > { %v4922_v52 = vmul.f32 %v9137_v16, %v4921_v29 }
 0xbe7   : > { %v4923_v60 = vadd.f32 %v9137_v16, %v4922_v52 }
 0xbe9   : > { %v4927_v49 = vsel %vm4926_vm14, %v9137_v16, %v4923_v60 }
 0xbea   : > { %v4932_v17 = vsel %vm4929_vm15, %v4931_v46, %v4927_v49 }
 0xbeb   : > { %v11410_v62 = vsel %vm1543_vm6, %v4932_v17, %v9141_v34 }
 0xbec   : > { %5132 = vrot.lane.b32.xlu0 %v11410_v62, %s9624_s13 }
 0xbfa   : > { %v5123_v27 = vpop.permute.xlu2 %5122 }
 0xbfb   : > { %v5168_v33 = vmul.f32 %v5123_v27, %v11370_v61 }
 0xbfd   : > { %5202 = vrot.lane.b32.xlu1 %v5168_v33, %s9624_s13 }
 0xbff   : > { %v4714_v20 = vpop.f32.mrf.mxu2 }
 0xc00   : > { %v4742_v57 = vadd.f32 %v4714_v20, %v1270_v37 }
 0xc02   : > { %v8415_v55 = vmul.f32 -1.442695, %v4742_v57 }
 0xc04   : > { %9142 = vpow2.f32 %v8415_v55 }
 0xc07   : > { %v4716_v15 = vpop.f32.mrf.mxu2 }
 0xc08   : > { %v4743_v39 = vadd.f32 %v4716_v15, %v1272_v32 }
 0xc0a   : > { %v9143_v54 = vpop.eup %9142  ;;  %v8416_v3 = vmul.f32 -1.442695, %v4743_v39 }
 0xc0b   : > { %v4806_v42 = vadd.f32 1.0, %v9143_v54 }
 0xc0c   : > { %9144 = vpow2.f32 %v8416_v3 }
 0xc0d   : > { %9146 = vrcp.f32 %v4806_v42  ;;  %v4945_v9 = vand.u32 2147483648, %v4806_v42  ;;  %v4943_v7 = vand.u32 2147483647, %v4806_v42  ;;  %vm4939_vm3 = vweird.f32 %v4806_v42 }
 0xc0f   : > { %v4719_v11 = vpop.f32.mrf.mxu2  ;;  %v4946_v53 = vor.u32 1.1754944e-38, %v4945_v9  ;;  %vm4944_vm5 = vcmp.eq.f32.partialorder %v4943_v7, 8.507059e+37 }
 0xc10   : > { %v11422_v28 = vadd.f32 %v4719_v11, %v1275_v59 }
 0xc12   : > { %v9145_v21 = vpop.eup %9144  ;;  %v8417_v38 = vmul.f32 -1.442695, %v11422_v28 }
 0xc13   : > { %v9147_v16 = vpop.eup %9146  ;;  %v4807_v14 = vadd.f32 1.0, %v9145_v21 }
 0xc14   : > { %9148 = vpow2.f32 %v8417_v38  ;;  %v4935_v41 = vmul.f32 %v9147_v16, %v4806_v42  ;;  %vm4940_vm0 = vweird.f32 %v9147_v16  ;;  %v5129_v42 = vpop.permute.xlu2 %5128 }
 0xc15   : > { %9150 = vrcp.f32 %v4807_v14  ;;  %vm4941_vm4 = vmor %vm4939_vm3, %vm4940_vm0  ;;  %v4960_v32 = vand.u32 2147483648, %v4807_v14  ;;  %v4958_v54 = vand.u32 2147483647, %v4807_v14  ;;  %vm4954_vm8 = vweird.f32 %v4807_v14 }
 0xc16   : > { %v4936_v48 = vsub.f32 1.0, %v4935_v41  ;;  %9152 = vtanh.f32 %v4742_v57 }
 0xc17   : > { %v4721_v22 = vpop.f32.mrf.mxu2  ;;  %v4961_v41 = vor.u32 1.1754944e-38, %v4960_v32  ;;  %vm4959_vm10 = vcmp.eq.f32.partialorder %v4958_v54, 8.507059e+37 }
 0xc18   : > { %v11427_v29 = vadd.f32 %v4721_v22, %v1277_v1  ;;  %v4937_v50 = vmul.f32 %v9147_v16, %v4936_v48  ;;  %v5171_v22 = vmul.f32 %v5129_v42, %v11389_v4 }
 0xc1a   : > { %v9149_v52 = vpop.eup %9148  ;;  %v8418_v12 = vmul.f32 -1.442695, %v11427_v29  ;;  %v5125_v60 = vpop.permute.xlu0 %5124  ;;  %v4938_v46 = vadd.f32 %v9147_v16, %v4937_v50 }
 0xc1b   : > { %v9151_v49 = vpop.eup %9150  ;;  %v4808_v34 = vadd.f32 1.0, %v9149_v52  ;;  %v5169_v17 = vmul.f32 %v5125_v60, %v11376_v2 }
 0xc1c   : > { %9154 = vpow2.f32 %v8418_v12  ;;  %v4942_v27 = vsel %vm4941_vm4, %v9147_v16, %v4938_v46  ;;  %v4950_v33 = vmul.f32 %v9151_v49, %v4807_v14  ;;  %v9153_v37 = vpop.eup %9152  ;;  %vm4955_vm7 = vweird.f32 %v9151_v49 }
 0xc1d   : > { %9156 = vrcp.f32 %v4808_v34  ;;  %5204 = vrot.lane.b32.xlu2 %v5169_v17, %s9624_s13  ;;  %v4947_v20 = vsel %vm4944_vm5, %v4946_v53, %v4942_v27  ;;  %vm4956_vm9 = vmor %vm4954_vm8, %vm4955_vm7  ;;  %v4975_v7 = vand.u32 2147483648, %v4808_v34  ;;  %v4973_v12 = vand.u32 2147483647, %v4808_v34 }
 0xc1e   : > { %v11434_v57 = vsel %vm1543_vm6, %v4947_v20, %v9153_v37  ;;  %v4951_v55 = vsub.f32 1.0, %v4950_v33  ;;  %9158 = vtanh.f32 %v4743_v39  ;;  %vm4969_vm12 = vweird.f32 %v4808_v34 }
 0xc1f   : > { %5134 = vrot.lane.b32.xlu0 %v11434_v57, %s9624_s13  ;;  %vm4974_vm13 = vcmp.eq.f32.partialorder %v4973_v12, 8.507059e+37 }
 0xc20   : > { %v4952_v15 = vmul.f32 %v9151_v49, %v4951_v55 }
 0xc22   : > { %v9155_v3 = vpop.eup %9154  ;;  %v5127_v59 = vpop.permute.xlu1 %5126  ;;  %v4953_v11 = vadd.f32 %v9151_v49, %v4952_v15 }
 0xc23   : > { %v9157_v21 = vpop.eup %9156  ;;  %v4809_v38 = vadd.f32 1.0, %v9155_v3  ;;  %v5170_v16 = vmul.f32 %v5127_v59, %v11382_v31 }
 0xc24   : > { %v4957_v1 = vsel %vm4956_vm9, %v9151_v49, %v4953_v11  ;;  %v4965_v39 = vmul.f32 %v9157_v21, %v4808_v34  ;;  %v9159_v48 = vpop.eup %9158  ;;  %vm4970_vm11 = vweird.f32 %v9157_v21  ;;  %v4976_v49 = vor.u32 1.1754944e-38, %v4975_v7 }
 0xc25   : > { %9160 = vrcp.f32 %v4809_v38  ;;  %5206 = vrot.lane.b32.xlu2 %v5170_v16, %s9624_s13  ;;  %v4962_v9 = vsel %vm4959_vm10, %v4961_v41, %v4957_v1  ;;  %vm4971_vm1 = vmor %vm4969_vm12, %vm4970_vm11  ;;  %v4990_v20 = vand.u32 2147483648, %v4809_v38  ;;  %v4988_v55 = vand.u32 2147483647, %v4809_v38  ;;  %v12834_v41 = vld [vmem:[#allocation4_spill] sm:$0xff] }
 0xc26   : > { %v11443_v50 = vsel %vm1543_vm6, %v4962_v9, %v9159_v48  ;;  %v4966_v14 = vsub.f32 1.0, %v4965_v39  ;;  %9162 = vtanh.f32 %v11422_v28  ;;  %vm4984_vm15 = vweird.f32 %v4809_v38 }
 0xc27   : > { %5136 = vrot.lane.b32.xlu1 %v11443_v50, %s9624_s13  ;;  %5208 = vrot.lane.b32.xlu0 %v5171_v22, %s9624_s13  ;;  %9164 = vtanh.f32 %v11427_v29  ;;  %v4991_v15 = vor.u32 1.1754944e-38, %v4990_v20  ;;  %vm4989_vm3 = vcmp.eq.f32.partialorder %v4988_v55, 8.507059e+37  ;;  %v1280_v29 = vadd.f32 %v11335_v5, %v9852_v6 }
 0xc28   : > { %v4967_v52 = vmul.f32 %v9157_v21, %v4966_v14  ;;  %v1282_v1 = vadd.f32 %v11335_v5, %v12834_v41  ;;  %v5086_v7 = vmul.f32 %v11345_v63, %v11169_v35 }
 0xc2a   : > { %v4968_v60 = vadd.f32 %v9157_v21, %v4967_v52 }
 0xc2b   : > { %v9161_v46 = vpop.eup %9160 }
 0xc2c   : > { %v4972_v17 = vsel %vm4971_vm1, %v9157_v21, %v4968_v60  ;;  %v4980_v53 = vmul.f32 %v9161_v46, %v4809_v38  ;;  %v9163_v27 = vpop.eup %9162  ;;  %vm4985_vm14 = vweird.f32 %v9161_v46 }
 0xc2d   : > { %v4977_v33 = vsel %vm4974_vm13, %v4976_v49, %v4972_v17  ;;  %vm4986_vm0 = vmor %vm4984_vm15, %vm4985_vm14  ;;  %v9165_v3 = vpop.eup %9164  ;;  %v5087_v17 = vmul.f32 %v11353_v19, %v11175_v44 }
 0xc2e   : > { %v11451_v28 = vsel %vm1543_vm6, %v4977_v33, %v9163_v27  ;;  %v4981_v37 = vsub.f32 1.0, %v4980_v53 }
 0xc2f   : > { %5138 = vrot.lane.b32.xlu1 %v11451_v28, %s9624_s13 }
 0xc30   : > { %v4982_v34 = vmul.f32 %v9161_v46, %v4981_v37  ;;  %v12835_v37 = vld [vmem:[#allocation6_spill] sm:$0xff] }
 0xc31   : > { %v1287_v35 = vadd.f32 %v11335_v5, %v12835_v37 }
 0xc32   : > { %v4983_v32 = vadd.f32 %v9161_v46, %v4982_v34 }
 0xc34   : > { %v4987_v54 = vsel %vm4986_vm0, %v9161_v46, %v4983_v32 }
 0xc35   : > { %v4992_v42 = vsel %vm4989_vm3, %v4991_v15, %v4987_v54 }
 0xc36   : > { %v11458_v59 = vsel %vm1543_vm6, %v4992_v42, %v9165_v3 }
 0xc37   : > { %5140 = vrot.lane.b32.xlu2 %v11458_v59, %s9624_s13 }
 0xc38   : > { %v4724_v11 = vpop.f32.mrf.mxu2 }
 0xc39   : > { %v11464_v21 = vadd.f32 %v4724_v11, %v1280_v29 }
 0xc3b   : > { %v8419_v38 = vmul.f32 -1.442695, %v11464_v21 }
 0xc3d   : > { %9166 = vpow2.f32 %v8419_v38 }
 0xc3e   : > { %v5131_v16 = vpop.permute.xlu2 %5130 }
 0xc3f   : > { %v5172_v39 = vmul.f32 %v5131_v16, %v11404_v43 }
 0xc40   : > { %v4726_v48 = vpop.f32.mrf.mxu2 }
 0xc41   : > { %v4747_v22 = vadd.f32 %v4726_v48, %v1282_v1  ;;  %5210 = vrot.lane.b32.xlu0 %v5172_v39, %s9624_s13 }
 0xc43   : > { %v9167_v6 = vpop.eup %9166  ;;  %v8420_v9 = vmul.f32 -1.442695, %v4747_v22 }
 0xc44   : > { %v4810_v14 = vadd.f32 1.0, %v9167_v6 }
 0xc45   : > { %9168 = vpow2.f32 %v8420_v9 }
 0xc46   : > { %v5199_v52 = vpop.permute.xlu0 %5198  ;;  %9170 = vrcp.f32 %v4810_v14  ;;  %vm4999_vm10 = vweird.f32 %v4810_v14 }
 0xc47   : > { %v11473_v12 = vadd.f32 %v5199_v52, %v5086_v7 }
 0xc48   : > { %v11475_v60 = vpop.f32.mrf.mxu2 }
 0xc49   : > { %9172 = vtanh.f32 %v11473_v12 }
 0xc4b   : > { %v9169_v46 = vpop.eup %9168 }
 0xc4c   : > { %v4811_v49 = vadd.f32 1.0, %v9169_v46  ;;  %v9171_v53 = vpop.eup %9170 }
 0xc4d   : > { %v4995_v32 = vmul.f32 %v9171_v53, %v4810_v14  ;;  %vm5000_vm9 = vweird.f32 %v9171_v53 }
 0xc4e   : > { %9174 = vrcp.f32 %v4811_v49  ;;  %v5201_v27 = vpop.permute.xlu1 %5200  ;;  %v5020_v11 = vand.u32 2147483648, %v4811_v49  ;;  %v5018_v16 = vand.u32 2147483647, %v4811_v49  ;;  %vm5014_vm5 = vweird.f32 %v4811_v49  ;;  %vm5001_vm11 = vmor %vm4999_vm10, %vm5000_vm9 }
 0xc4f   : > { %v9173_v33 = vpop.eup %9172  ;;  %v11482_v20 = vadd.f32 %v5201_v27, %v5087_v17  ;;  %v4996_v3 = vsub.f32 1.0, %v4995_v32 }
 0xc50   : > { %v4731_v34 = vpop.f32.mrf.mxu2  ;;  %5294 = vrot.lane.b32.xlu2 %v9173_v33, %s9624_s13  ;;  %v5021_v48 = vor.u32 1.1754944e-38, %v5020_v11  ;;  %vm5019_vm8 = vcmp.eq.f32.partialorder %v5018_v16, 8.507059e+37  ;;  %v5005_v33 = vand.u32 2147483648, %v4810_v14 }
 0xc51   : > { %9176 = vtanh.f32 %v11482_v20  ;;  %v11486_v55 = vadd.f32 %v4731_v34, %v1287_v35  ;;  %v4997_v41 = vmul.f32 %v9171_v53, %v4996_v3  ;;  %v5088_v3 = vmul.f32 %v11370_v61, %v11182_v36 }
 0xc52   : > { %v5006_v35 = vor.u32 1.1754944e-38, %v5005_v33 }
 0xc53   : > { %v8422_v15 = vmul.f32 -1.442695, %v11486_v55  ;;  %v4998_v17 = vadd.f32 %v9171_v53, %v4997_v41 }
 0xc54   : > { %v9175_v44 = vpop.eup %9174 }
 0xc55   : > { %9178 = vpow2.f32 %v8422_v15  ;;  %v5010_v54 = vmul.f32 %v9175_v44, %v4811_v49  ;;  %vm5015_vm4 = vweird.f32 %v9175_v44  ;;  %v5003_v49 = vand.u32 2147483647, %v4810_v14 }
 0xc56   : > { %9180 = vtanh.f32 %v4747_v22  ;;  %vm5016_vm7 = vmor %vm5014_vm5, %vm5015_vm4  ;;  %v5002_v37 = vsel %vm5001_vm11, %v9171_v53, %v4998_v17 }
 0xc57   : > { %v9177_v42 = vpop.eup %9176  ;;  %v5011_v29 = vsub.f32 1.0, %v5010_v54  ;;  %9182 = vtanh.f32 %v11464_v21  ;;  %vm5004_vm12 = vcmp.eq.f32.partialorder %v5003_v49, 8.507059e+37  ;;  %v12836_v54 = vld [vmem:[#allocation5_spill] sm:$0xff] }
 0xc58   : > { %5296 = vrot.lane.b32.xlu0 %v9177_v42, %s9624_s13  ;;  %v5007_v34 = vsel %vm5004_vm12, %v5006_v35, %v5002_v37  ;;  %v1285_v14 = vadd.f32 %v11335_v5, %v12836_v54  ;;  %v5089_v37 = vmul.f32 %v11376_v2, %v11207_v56 }
 0xc59   : > { %v5012_v38 = vmul.f32 %v9175_v44, %v5011_v29 }
 0xc5a   : > { %v4748_v42 = vadd.f32 %v11475_v60, %v1285_v14 }
 0xc5b   : > { %v9179_v1 = vpop.eup %9178  ;;  %v5013_v39 = vadd.f32 %v9175_v44, %v5012_v38 }
 0xc5c   : > { %v4813_v6 = vadd.f32 1.0, %v9179_v1  ;;  %v9181_v7 = vpop.eup %9180  ;;  %v8421_v16 = vmul.f32 -1.442695, %v4748_v42 }
 0xc5d   : > { %v5017_v9 = vsel %vm5016_vm7, %v9175_v44, %v5013_v39  ;;  %v9183_v32 = vpop.eup %9182 }
 0xc5e   : > { %v5133_v52 = vpop.permute.xlu0 %5132  ;;  %v5022_v46 = vsel %vm5019_vm8, %v5021_v48, %v5017_v9  ;;  %9184 = vrcp.f32 %v4813_v6  ;;  %v11501_v44 = vsel %vm1543_vm6, %v5007_v34, %v9183_v32  ;;  %v5050_v39 = vand.u32 2147483648, %v4813_v6 }
 0xc5f   : > { %v5173_v22 = vmul.f32 %v5133_v52, %v11410_v62  ;;  %v11493_v27 = vsel %vm1543_vm6, %v5022_v46, %v9181_v7  ;;  %vm5044_vm13 = vweird.f32 %v4813_v6  ;;  %v5048_v5 = vand.u32 2147483647, %v4813_v6 }
 0xc60   : > { %5144 = vrot.lane.b32.xlu2 %v11493_v27, %s9624_s13  ;;  %v5051_v60 = vor.u32 1.1754944e-38, %v5050_v39  ;;  %v5090_v52 = vmul.f32 %v11382_v31, %v11221_v13 }
 0xc61   : > { %5212 = vrot.lane.b32.xlu1 %v5173_v22, %s9624_s13  ;;  %vm5049_vm15 = vcmp.eq.f32.partialorder %v5048_v5, 8.507059e+37 }
 0xc64   : > { %v9185_v15 = vpop.eup %9184 }
 0xc65   : > { %v5040_v21 = vmul.f32 %v9185_v15, %v4813_v6  ;;  %vm5045_vm1 = vweird.f32 %v9185_v15 }
 0xc66   : > { %vm5046_vm14 = vmor %vm5044_vm13, %vm5045_vm1 }
 0xc67   : > { %v5041_v53 = vsub.f32 1.0, %v5040_v21 }
 0xc69   : > { %5142 = vrot.lane.b32.xlu1 %v11501_v44, %s9624_s13  ;;  %v5042_v38 = vmul.f32 %v9185_v15, %v5041_v53 }
 0xc6b   : > { %v5043_v41 = vadd.f32 %v9185_v15, %v5042_v38 }
 0xc6d   : > { %v5047_v36 = vsel %vm5046_vm14, %v9185_v15, %v5043_v41 }
 0xc6e   : > { %v5052_v7 = vsel %vm5049_vm15, %v5051_v60, %v5047_v36 }
 0xc6f   : > { %v5203_v29 = vpop.permute.xlu1 %5202 }
 0xc70   : > { %v11510_v11 = vadd.f32 %v5203_v29, %v5088_v3 }
 0xc72   : > { %9186 = vtanh.f32 %v11510_v11 }
 0xc73   : > { %9188 = vpow2.f32 %v8421_v16 }
 0xc74   : > { %9190 = vtanh.f32 %v11486_v55 }
 0xc77   : > { %v5205_v1 = vpop.permute.xlu2 %5204 }
 0xc78   : > { %v9187_v48 = vpop.eup %9186  ;;  %v11529_v35 = vadd.f32 %v5205_v1, %v5089_v37  ;;  %v5091_v1 = vmul.f32 %v11389_v4, %v11225_v58 }
 0xc79   : > { %5298 = vrot.lane.b32.xlu2 %v9187_v48, %s9624_s13  ;;  %v9189_v9 = vpop.eup %9188 }
 0xc7a   : > { %v9191_v46 = vpop.eup %9190  ;;  %v4812_v22 = vadd.f32 1.0, %v9189_v9 }
 0xc7b   : > { %v11521_v6 = vsel %vm1543_vm6, %v5052_v7, %v9191_v46 }
 0xc7c   : > { %v5035_v53 = vand.u32 2147483648, %v4812_v22  ;;  %vm5029_vm3 = vweird.f32 %v4812_v22  ;;  %v5033_v56 = vand.u32 2147483647, %v4812_v22 }
 0xc7e   : > { %v5036_v41 = vor.u32 1.1754944e-38, %v5035_v53  ;;  %vm5034_vm5 = vcmp.eq.f32.partialorder %v5033_v56, 8.507059e+37 }
 0xc7f   : > { %v5207_v17 = vpop.permute.xlu2 %5206 }
 0xc80   : > { %v11517_v33 = vadd.f32 %v5207_v17, %v5090_v52 }
 0xc81   : > { %5148 = vrot.lane.b32.xlu2 %v11521_v6, %s9624_s13 }
 0xc82   : > { %9192 = vtanh.f32 %v11517_v33 }
 0xc83   : > { %9194 = vrcp.f32 %v4812_v22 }
 0xc84   : > { %9196 = vtanh.f32 %v11529_v35 }
 0xc85   : > { %9198 = vtanh.f32 %v4748_v42 }
 0xc88   : > { %v9193_v55 = vpop.eup %9192 }
 0xc89   : > { %5302 = vrot.lane.b32.xlu2 %v9193_v55, %s9624_s13  ;;  %v9195_v49 = vpop.eup %9194  ;;  %v5092_v55 = vmul.f32 %v11404_v43, %v11255_v24 }
 0xc8a   : > { %v5025_v13 = vmul.f32 %v9195_v49, %v4812_v22  ;;  %vm5030_vm0 = vweird.f32 %v9195_v49  ;;  %v9197_v29 = vpop.eup %9196 }
 0xc8b   : > { %vm5031_vm4 = vmor %vm5029_vm3, %vm5030_vm0  ;;  %v9199_v36 = vpop.eup %9198 }
 0xc8c   : > { %v5026_v32 = vsub.f32 1.0, %v5025_v13 }
 0xc8e   : > { %v5027_v21 = vmul.f32 %v9195_v49, %v5026_v32 }
 0xc90   : > { %v5028_v14 = vadd.f32 %v9195_v49, %v5027_v21 }
 0xc91   : > { %v5135_v34 = vpop.permute.xlu0 %5134  ;;  %v5141_v58 = vpop.permute.xlu2 %5140 }
 0xc92   : > { %v5174_v15 = vmul.f32 %v5135_v34, %v11434_v57  ;;  %v5032_v38 = vsel %vm5031_vm4, %v9195_v49, %v5028_v14  ;;  %v5177_v9 = vmul.f32 %v5141_v58, %v11458_v59 }
 0xc93   : > { %v5037_v39 = vsel %vm5034_vm5, %v5036_v41, %v5032_v38 }
 0xc94   : > { %5214 = vrot.lane.b32.xlu0 %v5174_v15, %s9624_s13  ;;  %v11544_v42 = vsel %vm1543_vm6, %v5037_v39, %v9199_v36  ;;  %v5095_v36 = vmul.f32 %v11443_v50, %v11262_v26  ;;  %v5097_v26 = vmul.f32 %v11458_v59, %v11270_v8 }
 0xc99   : > { %v5137_v54 = vpop.permute.xlu1 %5136  ;;  %v5209_v16 = vpop.permute.xlu0 %5208 }
 0xc9a   : > { %v5175_v3 = vmul.f32 %v5137_v54, %v11443_v50  ;;  %v11539_v48 = vadd.f32 %v5209_v16, %v5091_v1  ;;  %v5093_v54 = vmul.f32 %v11410_v62, %v11243_v18  ;;  %v5094_v18 = vmul.f32 %v11434_v57, %v11277_v47 }
 0xc9b   : > { %v5096_v47 = vmul.f32 %v11451_v28, %v11286_v0 }
 0xc9c   : > { %5216 = vrot.lane.b32.xlu1 %v5175_v3, %s9624_s13  ;;  %5300 = vrot.lane.b32.xlu0 %v9197_v29, %s9624_s13  ;;  %9200 = vtanh.f32 %v11539_v48 }
 0xca1   : > { %v5139_v5 = vpop.permute.xlu1 %5138 }
 0xca2   : > { %v5176_v60 = vmul.f32 %v5139_v5, %v11451_v28  ;;  %v9201_v7 = vpop.eup %9200 }
 0xca4   : > { %5146 = vrot.lane.b32.xlu1 %v11544_v42, %s9624_s13  ;;  %5218 = vrot.lane.b32.xlu0 %v5176_v60, %s9624_s13 }
 0xcaa   : > { %v5295_v52 = vpop.permute.xlu2 %5294 }
 0xcab   : > { %v5342_v13 = vmul.f32 %v5295_v52, %v11345_v63 }
 0xcac   : > { %5220 = vrot.lane.b32.xlu1 %v5177_v9, %s9624_s13  ;;  %5304 = vrot.lane.b32.xlu0 %v9201_v7, %s9624_s13 }
 0xcb3   : > { %v5211_v22 = vpop.permute.xlu0 %5210 }
 0xcb4   : > { %v11559_v34 = vadd.f32 %v5211_v22, %v5092_v55 }
 0xcb6   : > { %9202 = vtanh.f32 %v11559_v34 }
 0xcba   : > { %v5145_v46 = vpop.permute.xlu2 %5144 }
 0xcbb   : > { %v5179_v17 = vmul.f32 %v5145_v46, %v11493_v27 }
 0xcbc   : > { %v9203_v21 = vpop.eup %9202 }
 0xcbd   : > { %5224 = vrot.lane.b32.xlu0 %v5179_v17, %s9624_s13 }
 0xcca   : > { %v5297_v49 = vpop.permute.xlu0 %5296 }
 0xccb   : > { %v5343_v37 = vmul.f32 %v5297_v49, %v11353_v19 }
 0xccd   : > { %v5375_v32 = vpack.c.bf16 %v5343_v37, %v5342_v13 }
 0xccf   : > { %5391 = vrot.lane.b32.xlu1 %v5375_v32, %s9625_s18 }
 0xcd3   : > { %v5213_v15 = vpop.permute.xlu1 %5212  ;;  %v5299_v19 = vpop.permute.xlu2 %5298 }
 0xcd4   : > { %v11566_v24 = vadd.f32 %v5213_v15, %v5093_v54  ;;  %v5344_v41 = vmul.f32 %v5299_v19, %v11370_v61 }
 0xcd6   : > { %9204 = vtanh.f32 %v11566_v24 }
 0xcd7   : > { %5306 = vrot.lane.b32.xlu1 %v9203_v21, %s9624_s13 }
 0xcdb   : > { %v5143_v14 = vpop.permute.xlu1 %5142  ;;  %v5149_v53 = vpop.permute.xlu2 %5148 }
 0xcdc   : > { %v5178_v63 = vmul.f32 %v5143_v14, %v11501_v44  ;;  %v9205_v3 = vpop.eup %9204  ;;  %v5181_v29 = vmul.f32 %v5149_v53, %v11521_v6 }
 0xcde   : > { %5222 = vrot.lane.b32.xlu2 %v5178_v63, %s9624_s13 }
 0xce3   : > { %v5303_v52 = vpop.permute.xlu2 %5302 }
 0xce4   : > { %v5346_v17 = vmul.f32 %v5303_v52, %v11382_v31  ;;  %v5099_v31 = vmul.f32 %v11493_v27, %v11312_v30  ;;  %v5101_v30 = vmul.f32 %v11521_v6, %v11321_v40  ;;  %v5100_v40 = vmul.f32 %v11544_v42, %v11307_v25 }
 0xce6   : > { %5308 = vrot.lane.b32.xlu2 %v9205_v3, %s9624_s13 }
 0xcee   : > { %5228 = vrot.lane.b32.xlu2 %v5181_v29, %s9624_s13 }
 0xd06   : > { %v5215_v56 = vpop.permute.xlu0 %5214 }
 0xd07   : > { %v11578_v39 = vadd.f32 %v5215_v56, %v5094_v18 }
 0xd09   : > { %9206 = vtanh.f32 %v11578_v39 }
 0xd0e   : > { %v5217_v38 = vpop.permute.xlu1 %5216  ;;  %v5301_v16 = vpop.permute.xlu0 %5300 }
 0xd0f   : > { %v5345_v1 = vmul.f32 %v5301_v16, %v11376_v2  ;;  %v11584_v60 = vadd.f32 %v5217_v38, %v5095_v36  ;;  %v9207_v7 = vpop.eup %9206 }
 0xd11   : > { %v5376_v5 = vpack.c.bf16 %v5345_v1, %v5344_v41  ;;  %9208 = vtanh.f32 %v11584_v60 }
 0xd13   : > { %5393 = vrot.lane.b32.xlu0 %v5376_v5, %s9625_s18 }
 0xd16   : > { %v5147_v58 = vpop.permute.xlu1 %5146  ;;  %v5219_v9 = vpop.permute.xlu0 %5218 }
 0xd17   : > { %v5180_v61 = vmul.f32 %v5147_v58, %v11544_v42  ;;  %v11589_v2 = vadd.f32 %v5219_v9, %v5096_v47  ;;  %v9209_v49 = vpop.eup %9208 }
 0xd19   : > { %5226 = vrot.lane.b32.xlu1 %v5180_v61, %s9624_s13  ;;  %9210 = vtanh.f32 %v11589_v2 }
 0xd1b   : > { %5310 = vrot.lane.b32.xlu0 %v9207_v7, %s9624_s13 }
 0xd1e   : > { %v5221_v46 = vpop.permute.xlu1 %5220  ;;  %v5305_v0 = vpop.permute.xlu0 %5304 }
 0xd1f   : > { %v11598_v22 = vadd.f32 %v5221_v46, %v5097_v26  ;;  %v5347_v55 = vmul.f32 %v5305_v0, %v11389_v4  ;;  %v9211_v37 = vpop.eup %9210  ;;  %v5098_v4 = vmul.f32 %v11501_v44, %v11299_v51 }
 0xd21   : > { %9212 = vtanh.f32 %v11598_v22  ;;  %v5377_v13 = vpack.c.bf16 %v5347_v55, %v5346_v17  ;;  %5312 = vrot.lane.b32.xlu1 %v9209_v49, %s9624_s13 }
 0xd23   : > { %5314 = vrot.lane.b32.xlu0 %v9211_v37, %s9624_s13  ;;  %5395 = vrot.lane.b32.xlu2 %v5377_v13, %s9625_s18 }
 0xd27   : > { %v9213_v8 = vpop.eup %9212 }
 0xd29   : > { %5316 = vrot.lane.b32.xlu1 %v9213_v8, %s9624_s13 }
 0xd2f   : > { %v5225_v32 = vpop.permute.xlu0 %5224 }
 0xd30   : > { %v11608_v15 = vadd.f32 %v5225_v32, %v5099_v31  ;;  %v12838_v32 = vld [vmem:[#allocation8_spill] sm:$0xff] }
 0xd32   : > { %9214 = vtanh.f32 %v11608_v15 }
 0xd38   : > { %v9215_v21 = vpop.eup %9214  ;;  %v5223_v54 = vpop.permute.xlu2 %5222 }
 0xd39   : > { %v11613_v14 = vadd.f32 %v5223_v54, %v5098_v4  ;;  %5320 = vrot.lane.b32.xlu1 %v9215_v21, %s9624_s13 }
 0xd3b   : > { %9216 = vtanh.f32 %v11613_v14 }
 0xd40   : > { %v5309_v63 = vpop.permute.xlu2 %5308 }
 0xd41   : > { %v9217_v19 = vpop.eup %9216  ;;  %v5392_v3 = vpop.permute.xlu1 %5391  ;;  %v5349_v56 = vmul.f32 %v5309_v63, %v11410_v62 }
 0xd42   : > { %8423 = vmatmul.msk.bf16.vlgmr.msra.gmra.mxu3 %vm1612_vm2, %v5392_v3  ;;  %5318 = vrot.lane.b32.xlu0 %v9217_v19, %s9624_s13 }
 0xd48   : > { %v5229_v53 = vpop.permute.xlu2 %5228 }
 0xd49   : > { %v11621_v51 = vadd.f32 %v5229_v53, %v5101_v30  ;;  %v5307_v29 = vpop.permute.xlu1 %5306 }
 0xd4a   : > { %v5348_v18 = vmul.f32 %v5307_v29, %v11404_v43 }
 0xd4b   : > { %9218 = vtanh.f32 %v11621_v51 }
 0xd4c   : > { %v5378_v38 = vpack.c.bf16 %v5349_v56, %v5348_v18 }
 0xd4e   : > { %5397 = vrot.lane.b32.xlu2 %v5378_v38, %s9625_s18 }
 0xd51   : > { %v9219_v16 = vpop.eup %9218 }
 0xd52   : > { %5324 = vrot.lane.b32.xlu1 %v9219_v16, %s9624_s13 }
 0xd7d   : > { %v5396_v9 = vpop.permute.xlu2 %5395 }
 0xd85   : > { %v5394_v41 = vpop.permute.xlu0 %5393 }
 0xd86   : > { %8424 = vmatmul.msk.bf16.gmra.mxu3 %vm1612_vm2, %v5394_v41 }
 0xd8b   : > { %v5227_v1 = vpop.permute.xlu1 %5226 }
 0xd8c   : > { %v11631_v5 = vadd.f32 %v5227_v1, %v5100_v40 }
 0xd8d   : > { %v5311_v43 = vpop.permute.xlu0 %5310 }
 0xd8e   : > { %9220 = vtanh.f32 %v11631_v5  ;;  %v5350_v58 = vmul.f32 %v5311_v43, %v11434_v57 }
 0xd93   : > { %v5313_v62 = vpop.permute.xlu1 %5312 }
 0xd94   : > { %v9221_v36 = vpop.eup %9220  ;;  %v5351_v47 = vmul.f32 %v5313_v62, %v11443_v50 }
 0xd95   : > { %5322 = vrot.lane.b32.xlu0 %v9221_v36, %s9624_s13  ;;  %v5315_v25 = vpop.permute.xlu0 %5314 }
 0xd96   : > { %v5379_v61 = vpack.c.bf16 %v5351_v47, %v5350_v58  ;;  %8425 = vmatmul.msk.bf16.gmra.mxu3 %vm1612_vm2, %v5396_v9  ;;  %v5352_v52 = vmul.f32 %v5315_v25, %v11451_v28  ;;  %v11649_v28 = vld [vmem:[%s12776_s6] ss:$0 sm:$0xff] }
 0xd98   : > { %5399 = vrot.lane.b32.xlu2 %v5379_v61, %s9625_s18 }
 0xd9b   : > { %v5317_v7 = vpop.permute.xlu1 %5316 }
 0xd9c   : > { %v5353_v26 = vmul.f32 %v5317_v7, %v11458_v59  ;;  %v12837_v59 = vld [vmem:[#allocation7_spill] sm:$0xff] }
 0xd9d   : > { %v1290_v13 = vadd.f32 %v11649_v28, %v12837_v59  ;;  %v12839_v59 = vld [vmem:[#allocation9_spill] sm:$0xff] }
 0xd9e   : > { %v5380_v46 = vpack.c.bf16 %v5353_v26, %v5352_v52 }
 0xda0   : > { %5401 = vrot.lane.b32.xlu2 %v5380_v46, %s9625_s18 }
 0xda8   : > { %v5398_v57 = vpop.permute.xlu2 %5397 }
 0xda9   : > { %8426 = vmatmul.msk.bf16.gmra.mxu3 %vm1612_vm2, %v5398_v57 }
 0xdab   : > { %v5321_v50 = vpop.permute.xlu1 %5320 }
 0xdac   : > { %v5355_v17 = vmul.f32 %v5321_v50, %v11493_v27  ;;  %v1292_v27 = vadd.f32 %v11649_v28, %v12838_v32 }
 0xdb4   : > { %v5319_v0 = vpop.permute.xlu0 %5318 }
 0xdb5   : > { %v5354_v55 = vmul.f32 %v5319_v0, %v11501_v44 }
 0xdb7   : > { %v5381_v49 = vpack.c.bf16 %v5355_v17, %v5354_v55 }
 0xdb9   : > { %5403 = vrot.lane.b32.xlu0 %v5381_v49, %s9625_s18 }
 0xdc4   : > { %v5325_v55 = vpop.permute.xlu1 %5324 }
 0xdc5   : > { %v5440_v37 = vpop.f32.mrf.mxu3 }
 0xdc6   : > { %v5480_v8 = vadd.f32 %v5440_v37, %v1290_v13  ;;  %v1295_v13 = vadd.f32 %v11649_v28, %v12839_v59  ;;  %v5357_v37 = vmul.f32 %v5325_v55, %v11521_v6  ;;  %v12841_v6 = vld [vmem:[#allocation11_spill] sm:$0xff] }
 0xdc8   : > { %v8431_v31 = vmul.f32 -1.442695, %v5480_v8 }
 0xdca   : > { %9222 = vpow2.f32 %v8431_v31 }
 0xdcd   : > { %v5442_v4 = vpop.f32.mrf.mxu3 }
 0xdce   : > { %v5481_v44 = vadd.f32 %v5442_v4, %v1292_v27 }
 0xdd0   : > { %v9223_v21 = vpop.eup %9222  ;;  %v8432_v54 = vmul.f32 -1.442695, %v5481_v44 }
 0xdd1   : > { %v5544_v63 = vadd.f32 1.0, %v9223_v21 }
 0xdd2   : > { %9224 = vpow2.f32 %v8432_v54 }
 0xdd3   : > { %9226 = vrcp.f32 %v5544_v63  ;;  %v5571_v56 = vand.u32 2147483648, %v5544_v63  ;;  %v5569_v38 = vand.u32 2147483647, %v5544_v63  ;;  %vm5565_vm8 = vweird.f32 %v5544_v63 }
 0xdd5   : > { %v5572_v40 = vor.u32 1.1754944e-38, %v5571_v56  ;;  %vm5570_vm10 = vcmp.eq.f32.partialorder %v5569_v38, 8.507059e+37 }
 0xdd8   : > { %v9225_v19 = vpop.eup %9224 }
 0xdd9   : > { %v9227_v3 = vpop.eup %9226  ;;  %v5545_v30 = vadd.f32 1.0, %v9225_v19 }
 0xdda   : > { %v5561_v53 = vmul.f32 %v9227_v3, %v5544_v63  ;;  %vm5566_vm7 = vweird.f32 %v9227_v3 }
 0xddb   : > { %9228 = vrcp.f32 %v5545_v30  ;;  %vm5567_vm9 = vmor %vm5565_vm8, %vm5566_vm7  ;;  %v5586_v9 = vand.u32 2147483648, %v5545_v30  ;;  %v5584_v25 = vand.u32 2147483647, %v5545_v30  ;;  %vm5580_vm12 = vweird.f32 %v5545_v30 }
 0xddc   : > { %v5562_v29 = vsub.f32 1.0, %v5561_v53  ;;  %9230 = vtanh.f32 %v5480_v8 }
 0xddd   : > { %9232 = vtanh.f32 %v5481_v44  ;;  %v5587_v52 = vor.u32 1.1754944e-38, %v5586_v9  ;;  %vm5585_vm13 = vcmp.eq.f32.partialorder %v5584_v25, 8.507059e+37  ;;  %v12840_v44 = vld [vmem:[#allocation10_spill] sm:$0xff] }
 0xdde   : > { %v5563_v18 = vmul.f32 %v9227_v3, %v5562_v29  ;;  %v1297_v21 = vadd.f32 %v11649_v28, %v12840_v44 }
 0xde0   : > { %v5564_v16 = vadd.f32 %v9227_v3, %v5563_v18 }
 0xde1   : > { %v9229_v41 = vpop.eup %9228 }
 0xde2   : > { %v5568_v1 = vsel %vm5567_vm9, %v9227_v3, %v5564_v16  ;;  %v5576_v43 = vmul.f32 %v9229_v41, %v5545_v30  ;;  %v9231_v62 = vpop.eup %9230  ;;  %vm5581_vm11 = vweird.f32 %v9229_v41 }
 0xde3   : > { %v5573_v36 = vsel %vm5570_vm10, %v5572_v40, %v5568_v1  ;;  %vm5582_vm1 = vmor %vm5580_vm12, %vm5581_vm11  ;;  %v9233_v46 = vpop.eup %9232  ;;  %v12842_v40 = vld [vmem:[#allocation12_spill] sm:$0xff] }
 0xde4   : > { %v11657_v58 = vsel %vm1543_vm6, %v5573_v36, %v9231_v62  ;;  %v5577_v47 = vsub.f32 1.0, %v5576_v43  ;;  %v1302_v1 = vadd.f32 %v11649_v28, %v12842_v40 }
 0xde5   : > { %5864 = vrot.lane.b32.xlu2 %v11657_v58, %s9624_s13 }
 0xde6   : > { %v5578_v61 = vmul.f32 %v9229_v41, %v5577_v47 }
 0xde8   : > { %v5579_v7 = vadd.f32 %v9229_v41, %v5578_v61 }
 0xdea   : > { %v5583_v26 = vsel %vm5582_vm1, %v9229_v41, %v5579_v7 }
 0xdeb   : > { %v5588_v57 = vsel %vm5585_vm13, %v5587_v52, %v5583_v26 }
 0xdec   : > { %v11663_v50 = vsel %vm1543_vm6, %v5588_v57, %v9233_v46 }
 0xded   : > { %5866 = vrot.lane.b32.xlu0 %v11663_v50, %s9624_s13 }
 0xdf2   : > { %v5400_v0 = vpop.permute.xlu2 %5399 }
 0xdf3   : > { %8427 = vmatmul.msk.bf16.gmra.mxu3 %vm1612_vm2, %v5400_v0 }
 0xdfa   : > { %v5402_v17 = vpop.permute.xlu2 %5401 }
 0xe03   : > { %8428 = vmatmul.msk.bf16.gmra.mxu3 %vm1612_vm2, %v5402_v17 }
 0xe07   : > { %v5323_v49 = vpop.permute.xlu0 %5322 }
 0xe08   : > { %v5356_v8 = vmul.f32 %v5323_v49, %v11544_v42  ;;  %v1300_v42 = vadd.f32 %v11649_v28, %v12841_v6 }
 0xe09   : > { %v5445_v31 = vpop.f32.mrf.mxu3 }
 0xe0a   : > { %v5382_v32 = vpack.c.bf16 %v5357_v37, %v5356_v8  ;;  %v5482_v27 = vadd.f32 %v5445_v31, %v1295_v13 }
 0xe0c   : > { %v8433_v4 = vmul.f32 -1.442695, %v5482_v27  ;;  %5405 = vrot.lane.b32.xlu1 %v5382_v32, %s9625_s18  ;;  %v12843_v32 = vld [vmem:[#allocation13_spill] sm:$0xff] }
 0xe0e   : > { %9234 = vpow2.f32 %v8433_v4 }
 0xe11   : > { %v5447_v54 = vpop.f32.mrf.mxu3 }
 0xe12   : > { %v5483_v63 = vadd.f32 %v5447_v54, %v1297_v21 }
 0xe14   : > { %v9235_v19 = vpop.eup %9234  ;;  %v8434_v3 = vmul.f32 -1.442695, %v5483_v63 }
 0xe15   : > { %v5546_v30 = vadd.f32 1.0, %v9235_v19 }
 0xe16   : > { %9236 = vpow2.f32 %v8434_v3 }
 0xe17   : > { %9238 = vrcp.f32 %v5546_v30  ;;  %v5601_v36 = vand.u32 2147483648, %v5546_v30  ;;  %v5599_v61 = vand.u32 2147483647, %v5546_v30  ;;  %vm5595_vm15 = vweird.f32 %v5546_v30 }
 0xe19   : > { %v5450_v53 = vpop.f32.mrf.mxu3  ;;  %v5602_v57 = vor.u32 1.1754944e-38, %v5601_v36  ;;  %vm5600_vm3 = vcmp.eq.f32.partialorder %v5599_v61, 8.507059e+37 }
 0xe1a   : > { %v5484_v29 = vadd.f32 %v5450_v53, %v1300_v42 }
 0xe1c   : > { %v9237_v56 = vpop.eup %9236  ;;  %v8435_v18 = vmul.f32 -1.442695, %v5484_v29 }
 0xe1d   : > { %v9239_v38 = vpop.eup %9238  ;;  %v5547_v16 = vadd.f32 1.0, %v9237_v56 }
 0xe1e   : > { %9240 = vpow2.f32 %v8435_v18  ;;  %v5591_v41 = vmul.f32 %v9239_v38, %v5546_v30  ;;  %vm5596_vm14 = vweird.f32 %v9239_v38 }
 0xe1f   : > { %9242 = vrcp.f32 %v5547_v16  ;;  %vm5597_vm0 = vmor %vm5595_vm15, %vm5596_vm14  ;;  %v5616_v37 = vand.u32 2147483648, %v5547_v16  ;;  %v5614_v31 = vand.u32 2147483647, %v5547_v16  ;;  %vm5610_vm5 = vweird.f32 %v5547_v16 }
 0xe20   : > { %v5592_v43 = vsub.f32 1.0, %v5591_v41  ;;  %9244 = vtanh.f32 %v5482_v27  ;;  %v1305_v27 = vadd.f32 %v11649_v28, %v12843_v32 }
 0xe21   : > { %v5452_v62 = vpop.f32.mrf.mxu3  ;;  %v5617_v30 = vor.u32 1.1754944e-38, %v5616_v37  ;;  %vm5615_vm8 = vcmp.eq.f32.partialorder %v5614_v31, 8.507059e+37 }
 0xe22   : > { %v11680_v47 = vadd.f32 %v5452_v62, %v1302_v1  ;;  %v5593_v9 = vmul.f32 %v9239_v38, %v5592_v43  ;;  %v12844_v43 = vld [vmem:[#allocation14_spill] sm:$0xff] }
 0xe23   : > { %v1307_v62 = vadd.f32 %v11649_v28, %v12844_v43 }
 0xe24   : > { %v9241_v25 = vpop.eup %9240  ;;  %v8436_v7 = vmul.f32 -1.442695, %v11680_v47  ;;  %v5594_v52 = vadd.f32 %v9239_v38, %v5593_v9 }
 0xe25   : > { %v9243_v26 = vpop.eup %9242  ;;  %v5548_v46 = vadd.f32 1.0, %v9241_v25 }
 0xe26   : > { %9246 = vpow2.f32 %v8436_v7  ;;  %v5598_v0 = vsel %vm5597_vm0, %v9239_v38, %v5594_v52  ;;  %v5606_v17 = vmul.f32 %v9243_v26, %v5547_v16  ;;  %v9245_v55 = vpop.eup %9244  ;;  %vm5611_vm4 = vweird.f32 %v9243_v26 }
 0xe27   : > { %9248 = vrcp.f32 %v5548_v46  ;;  %v5603_v49 = vsel %vm5600_vm3, %v5602_v57, %v5598_v0  ;;  %vm5612_vm7 = vmor %vm5610_vm5, %vm5611_vm4  ;;  %v5631_v41 = vand.u32 2147483648, %v5548_v46  ;;  %v5629_v1 = vand.u32 2147483647, %v5548_v46 }
 0xe28   : > { %v11685_v59 = vsel %vm1543_vm6, %v5603_v49, %v9245_v55  ;;  %v5607_v13 = vsub.f32 1.0, %v5606_v17  ;;  %9250 = vtanh.f32 %v5483_v63  ;;  %vm5625_vm10 = vweird.f32 %v5548_v46 }
 0xe29   : > { %5868 = vrot.lane.b32.xlu1 %v11685_v59, %s9624_s13  ;;  %v5632_v25 = vor.u32 1.1754944e-38, %v5631_v41  ;;  %vm5630_vm12 = vcmp.eq.f32.partialorder %v5629_v1, 8.507059e+37 }
 0xe2a   : > { %v5608_v8 = vmul.f32 %v9243_v26, %v5607_v13 }
 0xe2b   : > { %v5404_v4 = vpop.permute.xlu0 %5403 }
 0xe2c   : > { %v9247_v44 = vpop.eup %9246  ;;  %v5455_v21 = vpop.f32.mrf.mxu3  ;;  %8429 = vmatmul.msk.bf16.gmra.mxu3 %vm1612_vm2, %v5404_v4  ;;  %v5609_v54 = vadd.f32 %v9243_v26, %v5608_v8 }
 0xe2d   : > { %v9249_v19 = vpop.eup %9248  ;;  %v5549_v3 = vadd.f32 1.0, %v9247_v44  ;;  %v11692_v63 = vadd.f32 %v5455_v21, %v1305_v27 }
 0xe2e   : > { %v5613_v6 = vsel %vm5612_vm7, %v9243_v26, %v5609_v54  ;;  %v5621_v42 = vmul.f32 %v9249_v19, %v5548_v46  ;;  %v9251_v53 = vpop.eup %9250  ;;  %vm5626_vm9 = vweird.f32 %v9249_v19 }
 0xe2f   : > { %9252 = vrcp.f32 %v5549_v3  ;;  %v8437_v56 = vmul.f32 -1.442695, %v11692_v63  ;;  %v5618_v18 = vsel %vm5615_vm8, %v5617_v30, %v5613_v6  ;;  %vm5627_vm11 = vmor %vm5625_vm10, %vm5626_vm9  ;;  %v5646_v46 = vand.u32 2147483648, %v5549_v3 }
 0xe30   : > { %9254 = vtanh.f32 %v5484_v29  ;;  %v11697_v38 = vsel %vm1543_vm6, %v5618_v18, %v9251_v53  ;;  %v5622_v16 = vsub.f32 1.0, %v5621_v42  ;;  %v5644_v8 = vand.u32 2147483647, %v5549_v3 }
 0xe31   : > { %9256 = vpow2.f32 %v8437_v56  ;;  %5870 = vrot.lane.b32.xlu2 %v11697_v38, %s9624_s13  ;;  %vm5640_vm13 = vweird.f32 %v5549_v3  ;;  %v5647_v32 = vor.u32 1.1754944e-38, %v5646_v46  ;;  %v12845_v46 = vld [vmem:[#allocation15_spill] sm:$0xff] }
 0xe32   : > { %v5623_v40 = vmul.f32 %v9249_v19, %v5622_v16  ;;  %9258 = vtanh.f32 %v11680_v47  ;;  %vm5645_vm15 = vcmp.eq.f32.partialorder %v5644_v8, 8.507059e+37 }
 0xe34   : > { %v5457_v36 = vpop.f32.mrf.mxu3  ;;  %v5624_v9 = vadd.f32 %v9249_v19, %v5623_v40 }
 0xe35   : > { %v9253_v29 = vpop.eup %9252  ;;  %v5487_v61 = vadd.f32 %v5457_v36, %v1307_v62 }
 0xe36   : > { %v9255_v7 = vpop.eup %9254  ;;  %v5628_v52 = vsel %vm5627_vm11, %v9249_v19, %v5624_v9  ;;  %v5636_v26 = vmul.f32 %v9253_v29, %v5549_v3  ;;  %vm5641_vm1 = vweird.f32 %v9253_v29 }
 0xe37   : > { %v9257_v57 = vpop.eup %9256  ;;  %v8438_v0 = vmul.f32 -1.442695, %v5487_v61  ;;  %v5633_v17 = vsel %vm5630_vm12, %v5632_v25, %v5628_v52  ;;  %vm5642_vm14 = vmor %vm5640_vm13, %vm5641_vm1 }
 0xe38   : > { %v5550_v55 = vadd.f32 1.0, %v9257_v57  ;;  %v11706_v49 = vsel %vm1543_vm6, %v5633_v17, %v9255_v7  ;;  %v5637_v13 = vsub.f32 1.0, %v5636_v26  ;;  %v9259_v47 = vpop.eup %9258 }
 0xe39   : > { %9260 = vpow2.f32 %v8438_v0  ;;  %5872 = vrot.lane.b32.xlu0 %v11706_v49, %s9624_s13 }
 0xe3a   : > { %9262 = vrcp.f32 %v5550_v55  ;;  %v5638_v37 = vmul.f32 %v9253_v29, %v5637_v13  ;;  %v5661_v53 = vand.u32 2147483648, %v5550_v55  ;;  %v5659_v18 = vand.u32 2147483647, %v5550_v55 }
 0xe3b   : > { %vm5655_vm3 = vweird.f32 %v5550_v55 }
 0xe3c   : > { %v5639_v31 = vadd.f32 %v9253_v29, %v5638_v37  ;;  %v5662_v40 = vor.u32 1.1754944e-38, %v5661_v53  ;;  %vm5660_vm5 = vcmp.eq.f32.partialorder %v5659_v18, 8.507059e+37  ;;  %v1310_v37 = vadd.f32 %v11649_v28, %v12845_v46 }
 0xe3e   : > { %v5643_v27 = vsel %vm5642_vm14, %v9253_v29, %v5639_v31 }
 0xe3f   : > { %v9261_v4 = vpop.eup %9260  ;;  %v5865_v44 = vpop.permute.xlu2 %5864  ;;  %v5648_v21 = vsel %vm5645_vm15, %v5647_v32, %v5643_v27 }
 0xe40   : > { %v9263_v54 = vpop.eup %9262  ;;  %v5551_v19 = vadd.f32 1.0, %v9261_v4  ;;  %v5912_v30 = vmul.f32 %v5865_v44, %v11657_v58  ;;  %v11713_v6 = vsel %vm1543_vm6, %v5648_v21, %v9259_v47  ;;  %v12846_v47 = vld [vmem:[#allocation16_spill] sm:$0xff] }
 0xe41   : > { %5874 = vrot.lane.b32.xlu1 %v11713_v6, %s9624_s13  ;;  %v5651_v3 = vmul.f32 %v9263_v54, %v5550_v55  ;;  %vm5656_vm0 = vweird.f32 %v9263_v54  ;;  %v1312_v27 = vadd.f32 %v11649_v28, %v12846_v47 }
 0xe42   : > { %9264 = vrcp.f32 %v5551_v19  ;;  %5944 = vrot.lane.b32.xlu2 %v5912_v30, %s9624_s13  ;;  %vm5657_vm4 = vmor %vm5655_vm3, %vm5656_vm0  ;;  %v5674_v7 = vand.u32 2147483647, %v5551_v19  ;;  %vm5670_vm8 = vweird.f32 %v5551_v19 }
 0xe43   : > { %v5652_v42 = vsub.f32 1.0, %v5651_v3  ;;  %9266 = vtanh.f32 %v11692_v63  ;;  %v5676_v63 = vand.u32 2147483648, %v5551_v19  ;;  %v12847_v3 = vld [vmem:[#allocation17_spill] sm:$0xff] }
 0xe44   : > { %9268 = vtanh.f32 %v5487_v61  ;;  %vm5675_vm10 = vcmp.eq.f32.partialorder %v5674_v7, 8.507059e+37 }
 0xe45   : > { %v5653_v56 = vmul.f32 %v9263_v54, %v5652_v42  ;;  %v5677_v26 = vor.u32 1.1754944e-38, %v5676_v63  ;;  %v1315_v42 = vadd.f32 %v11649_v28, %v12847_v3 }
 0xe47   : > { %v5654_v16 = vadd.f32 %v9263_v54, %v5653_v56 }
 0xe48   : > { %v9265_v41 = vpop.eup %9264 }
 0xe49   : > { %v5658_v1 = vsel %vm5657_vm4, %v9263_v54, %v5654_v16  ;;  %v5666_v43 = vmul.f32 %v9265_v41, %v5551_v19  ;;  %v9267_v62 = vpop.eup %9266  ;;  %vm5671_vm7 = vweird.f32 %v9265_v41 }
 0xe4a   : > { %v5663_v36 = vsel %vm5660_vm5, %v5662_v40, %v5658_v1  ;;  %vm5672_vm9 = vmor %vm5670_vm8, %vm5671_vm7  ;;  %v9269_v0 = vpop.eup %9268 }
 0xe4b   : > { %v11721_v9 = vsel %vm1543_vm6, %v5663_v36, %v9267_v62  ;;  %v5667_v29 = vsub.f32 1.0, %v5666_v43  ;;  %v12848_v36 = vld [vmem:[#allocation18_spill] sm:$0xff] }
 0xe4c   : > { %5876 = vrot.lane.b32.xlu1 %v11721_v9, %s9624_s13 }
 0xe4d   : > { %v5668_v25 = vmul.f32 %v9265_v41, %v5667_v29  ;;  %v1317_v29 = vadd.f32 %v11649_v28, %v12848_v36 }
 0xe4f   : > { %v5669_v52 = vadd.f32 %v9265_v41, %v5668_v25 }
 0xe51   : > { %v5673_v57 = vsel %vm5672_vm9, %v9265_v41, %v5669_v52 }
 0xe52   : > { %v5678_v17 = vsel %vm5675_vm10, %v5677_v26, %v5673_v57 }
 0xe53   : > { %v11727_v55 = vsel %vm1543_vm6, %v5678_v17, %v9269_v0 }
 0xe54   : > { %5878 = vrot.lane.b32.xlu2 %v11727_v55, %s9624_s13 }
 0xe5f   : > { %v5867_v61 = vpop.permute.xlu0 %5866 }
 0xe60   : > { %v5913_v13 = vmul.f32 %v5867_v61, %v11663_v50 }
 0xe62   : > { %5946 = vrot.lane.b32.xlu0 %v5913_v13, %s9624_s13 }
 0xe76   : > { %v5460_v8 = vpop.f32.mrf.mxu3 }
 0xe77   : > { %v5488_v31 = vadd.f32 %v5460_v8, %v1310_v37 }
 0xe79   : > { %v8439_v32 = vmul.f32 -1.442695, %v5488_v31 }
 0xe7b   : > { %9270 = vpow2.f32 %v8439_v32 }
 0xe7e   : > { %v5462_v4 = vpop.f32.mrf.mxu3  ;;  %v5406_v44 = vpop.permute.xlu1 %5405 }
 0xe7f   : > { %v5489_v21 = vadd.f32 %v5462_v4, %v1312_v27  ;;  %8430 = vmatmul.msk.bf16.gmra.mxu3 %vm1612_vm2, %v5406_v44 }
 0xe81   : > { %v9271_v54 = vpop.eup %9270  ;;  %v8440_v19 = vmul.f32 -1.442695, %v5489_v21 }
 0xe82   : > { %v5552_v30 = vadd.f32 1.0, %v9271_v54 }
 0xe83   : > { %9272 = vpow2.f32 %v8440_v19 }
 0xe84   : > { %9274 = vrcp.f32 %v5552_v30  ;;  %v5691_v7 = vand.u32 2147483648, %v5552_v30  ;;  %v5689_v57 = vand.u32 2147483647, %v5552_v30  ;;  %vm5685_vm12 = vweird.f32 %v5552_v30 }
 0xe86   : > { %v5465_v53 = vpop.f32.mrf.mxu3  ;;  %v5692_v37 = vor.u32 1.1754944e-38, %v5691_v7  ;;  %vm5690_vm13 = vcmp.eq.f32.partialorder %v5689_v57, 8.507059e+37 }
 0xe87   : > { %v11740_v56 = vadd.f32 %v5465_v53, %v1315_v42 }
 0xe89   : > { %v9273_v18 = vpop.eup %9272  ;;  %v8441_v16 = vmul.f32 -1.442695, %v11740_v56 }
 0xe8a   : > { %v9275_v41 = vpop.eup %9274  ;;  %v5553_v40 = vadd.f32 1.0, %v9273_v18 }
 0xe8b   : > { %9276 = vpow2.f32 %v8441_v16  ;;  %v5871_v1 = vpop.permute.xlu2 %5870  ;;  %v5681_v43 = vmul.f32 %v9275_v41, %v5552_v30  ;;  %vm5686_vm11 = vweird.f32 %v9275_v41 }
 0xe8c   : > { %9278 = vrcp.f32 %v5553_v40  ;;  %v5915_v62 = vmul.f32 %v5871_v1, %v11697_v38  ;;  %vm5687_vm1 = vmor %vm5685_vm12, %vm5686_vm11  ;;  %v5706_v16 = vand.u32 2147483648, %v5553_v40  ;;  %vm5700_vm15 = vweird.f32 %v5553_v40 }
 0xe8d   : > { %v5682_v63 = vsub.f32 1.0, %v5681_v43  ;;  %9280 = vtanh.f32 %v5488_v31 }
 0xe8e   : > { %v5467_v25 = vpop.f32.mrf.mxu3  ;;  %5950 = vrot.lane.b32.xlu1 %v5915_v62, %s9624_s13  ;;  %v5707_v36 = vor.u32 1.1754944e-38, %v5706_v16 }
 0xe8f   : > { %v11747_v52 = vadd.f32 %v5467_v25, %v1317_v29  ;;  %v5683_v26 = vmul.f32 %v9275_v41, %v5682_v63 }
 0xe91   : > { %v9277_v0 = vpop.eup %9276  ;;  %v8442_v17 = vmul.f32 -1.442695, %v11747_v52  ;;  %v5684_v61 = vadd.f32 %v9275_v41, %v5683_v26 }
 0xe92   : > { %v9279_v13 = vpop.eup %9278  ;;  %v5554_v46 = vadd.f32 1.0, %v9277_v0 }
 0xe93   : > { %9282 = vpow2.f32 %v8442_v17  ;;  %v5688_v8 = vsel %vm5687_vm1, %v9275_v41, %v5684_v61  ;;  %v5696_v31 = vmul.f32 %v9279_v13, %v5553_v40  ;;  %v9281_v32 = vpop.eup %9280  ;;  %vm5701_vm14 = vweird.f32 %v9279_v13 }
 0xe94   : > { %9284 = vrcp.f32 %v5554_v46  ;;  %v5693_v47 = vsel %vm5690_vm13, %v5692_v37, %v5688_v8  ;;  %v5704_v41 = vand.u32 2147483647, %v5553_v40  ;;  %vm5702_vm0 = vmor %vm5700_vm15, %vm5701_vm14  ;;  %v5721_v57 = vand.u32 2147483648, %v5554_v46 }
 0xe95   : > { %v11752_v27 = vsel %vm1543_vm6, %v5693_v47, %v9281_v32  ;;  %v5697_v4 = vsub.f32 1.0, %v5696_v31  ;;  %vm5715_vm5 = vweird.f32 %v5554_v46 }
 0xe96   : > { %5880 = vrot.lane.b32.xlu2 %v11752_v27, %s9624_s13  ;;  %vm5705_vm3 = vcmp.eq.f32.partialorder %v5704_v41, 8.507059e+37  ;;  %v5722_v61 = vor.u32 1.1754944e-38, %v5721_v57  ;;  %v5832_v41 = vmul.f32 %v11657_v58, %v11473_v12 }
 0xe97   : > { %v5698_v44 = vmul.f32 %v9279_v13, %v5697_v4 }
 0xe99   : > { %v9283_v54 = vpop.eup %9282  ;;  %v5699_v42 = vadd.f32 %v9279_v13, %v5698_v44  ;;  %v12849_v44 = vld [vmem:[#allocation19_spill] sm:$0xff] }
 0xe9a   : > { %v9285_v19 = vpop.eup %9284  ;;  %v5555_v30 = vadd.f32 1.0, %v9283_v54  ;;  %v1320_v54 = vadd.f32 %v11649_v28, %v12849_v44 }
 0xe9b   : > { %v5869_v3 = vpop.permute.xlu1 %5868  ;;  %v5711_v53 = vmul.f32 %v9285_v19, %v5554_v46  ;;  %v5703_v43 = vsel %vm5702_vm0, %v9279_v13, %v5699_v42  ;;  %vm5716_vm4 = vweird.f32 %v9285_v19 }
 0xe9c   : > { %9286 = vrcp.f32 %v5555_v30  ;;  %v5914_v18 = vmul.f32 %v5869_v3, %v11685_v59  ;;  %v5708_v63 = vsel %vm5705_vm3, %v5707_v36, %v5703_v43  ;;  %vm5717_vm7 = vmor %vm5715_vm5, %vm5716_vm4  ;;  %v5945_v37 = vpop.permute.xlu2 %5944  ;;  %vm5730_vm10 = vweird.f32 %v5555_v30 }
 0xe9d   : > { %v5712_v1 = vsub.f32 1.0, %v5711_v53  ;;  %9288 = vtanh.f32 %v5489_v21  ;;  %v5719_v21 = vand.u32 2147483647, %v5554_v46  ;;  %v11778_v36 = vadd.f32 %v5945_v37, %v5832_v41 }
 0xe9e   : > { %5948 = vrot.lane.b32.xlu0 %v5914_v18, %s9624_s13  ;;  %9290 = vtanh.f32 %v11740_v56  ;;  %v5736_v56 = vand.u32 2147483648, %v5555_v30 }
 0xe9f   : > { %v5713_v62 = vmul.f32 %v9285_v19, %v5712_v1  ;;  %vm5720_vm8 = vcmp.eq.f32.partialorder %v5719_v21, 8.507059e+37  ;;  %9292 = vtanh.f32 %v11747_v52 }
 0xea0   : > { %v5737_v16 = vor.u32 1.1754944e-38, %v5736_v56 }
 0xea1   : > { %v5714_v25 = vadd.f32 %v9285_v19, %v5713_v62 }
 0xea2   : > { %v9287_v29 = vpop.eup %9286 }
 0xea3   : > { %v5726_v7 = vmul.f32 %v9287_v29, %v5555_v30  ;;  %v9289_v26 = vpop.eup %9288  ;;  %v5718_v17 = vsel %vm5717_vm7, %v9285_v19, %v5714_v25  ;;  %vm5731_vm9 = vweird.f32 %v9287_v29  ;;  %v5734_v19 = vand.u32 2147483647, %v5555_v30  ;;  %v12850_v25 = vld [vmem:[#allocation20_spill] sm:$0xff] }
 0xea4   : > { %v11760_v0 = vsel %vm1543_vm6, %v5708_v63, %v9289_v26  ;;  %v5723_v8 = vsel %vm5720_vm8, %v5722_v61, %v5718_v17  ;;  %v9291_v32 = vpop.eup %9290  ;;  %vm5732_vm11 = vmor %vm5730_vm10, %vm5731_vm9 }
 0xea5   : > { %v5727_v40 = vsub.f32 1.0, %v5726_v7  ;;  %v11768_v46 = vsel %vm1543_vm6, %v5723_v8, %v9291_v32  ;;  %vm5735_vm12 = vcmp.eq.f32.partialorder %v5734_v19, 8.507059e+37  ;;  %v9293_v30 = vpop.eup %9292 }
 0xea6   : > { %5882 = vrot.lane.b32.xlu0 %v11760_v0, %s9624_s13 }
 0xea7   : > { %v5728_v13 = vmul.f32 %v9287_v29, %v5727_v40 }
 0xea9   : > { %v5729_v4 = vadd.f32 %v9287_v29, %v5728_v13 }
 0xeab   : > { %v5873_v31 = vpop.permute.xlu0 %5872  ;;  %v5733_v53 = vsel %vm5732_vm11, %v9287_v29, %v5729_v4  ;;  %v1322_v29 = vadd.f32 %v11649_v28, %v12850_v25 }
 0xeac   : > { %v5916_v47 = vmul.f32 %v5873_v31, %v11706_v49  ;;  %v5738_v62 = vsel %vm5735_vm12, %v5737_v16, %v5733_v53 }
 0xead   : > { %v11788_v12 = vsel %vm1543_vm6, %v5738_v62, %v9293_v30  ;;  %v5833_v30 = vmul.f32 %v11663_v50, %v11482_v20 }
 0xeae   : > { %5884 = vrot.lane.b32.xlu0 %v11768_v46, %s9624_s13  ;;  %5952 = vrot.lane.b32.xlu1 %v5916_v47, %s9624_s13  ;;  %v5879_v18 = vpop.permute.xlu2 %5878 }
 0xeaf   : > { %v5470_v3 = vpop.f32.mrf.mxu3  ;;  %v5919_v63 = vmul.f32 %v5879_v18, %v11727_v55 }
 0xeb0   : > { %v5492_v42 = vadd.f32 %v5470_v3, %v1320_v54 }
 0xeb2   : > { %v8443_v1 = vmul.f32 -1.442695, %v5492_v42 }
 0xeb3   : > { %v5875_v43 = vpop.permute.xlu1 %5874 }
 0xeb4   : > { %9294 = vpow2.f32 %v8443_v1  ;;  %v5917_v52 = vmul.f32 %v5875_v43, %v11713_v6 }
 0xeb5   : > { %9296 = vtanh.f32 %v11778_v36 }
 0xeb6   : > { %5954 = vrot.lane.b32.xlu2 %v5917_v52, %s9624_s13  ;;  %5958 = vrot.lane.b32.xlu0 %v5919_v63, %s9624_s13 }
 0xeb7   : > { %5886 = vrot.lane.b32.xlu1 %v11788_v12, %s9624_s13  ;;  %v5472_v7 = vpop.f32.mrf.mxu3 }
 0xeb8   : > { %v5493_v26 = vadd.f32 %v5472_v7, %v1322_v29 }
 0xeba   : > { %v9295_v57 = vpop.eup %9294  ;;  %v8444_v21 = vmul.f32 -1.442695, %v5493_v26 }
 0xebb   : > { %v5556_v40 = vadd.f32 1.0, %v9295_v57  ;;  %v9297_v17 = vpop.eup %9296 }
 0xebc   : > { %9298 = vpow2.f32 %v8444_v21 }
 0xebd   : > { %9300 = vrcp.f32 %v5556_v40  ;;  %v5751_v4 = vand.u32 2147483648, %v5556_v40  ;;  %v5749_v44 = vand.u32 2147483647, %v5556_v40  ;;  %vm5745_vm13 = vweird.f32 %v5556_v40 }
 0xebe   : > { %v5877_v61 = vpop.permute.xlu1 %5876 }
 0xebf   : > { %v5918_v13 = vmul.f32 %v5877_v61, %v11721_v9  ;;  %6040 = vrot.lane.b32.xlu1 %v9297_v17, %s9624_s13  ;;  %v5752_v3 = vor.u32 1.1754944e-38, %v5751_v4  ;;  %vm5750_vm15 = vcmp.eq.f32.partialorder %v5749_v44, 8.507059e+37  ;;  %v1327_v44 = vadd.f32 %v11649_v28, %v10532_v23 }
 0xec1   : > { %5956 = vrot.lane.b32.xlu2 %v5918_v13, %s9624_s13  ;;  %v5835_v13 = vmul.f32 %v11697_v38, %v11529_v35 }
 0xec2   : > { %v9299_v37 = vpop.eup %9298 }
 0xec3   : > { %v9301_v8 = vpop.eup %9300  ;;  %v5557_v31 = vadd.f32 1.0, %v9299_v37 }
 0xec4   : > { %v5741_v32 = vmul.f32 %v9301_v8, %v5556_v40  ;;  %vm5746_vm1 = vweird.f32 %v9301_v8 }
 0xec5   : > { %9302 = vrcp.f32 %v5557_v31  ;;  %vm5747_vm14 = vmor %vm5745_vm13, %vm5746_vm1  ;;  %v5764_v63 = vand.u32 2147483647, %v5557_v31  ;;  %vm5760_vm3 = vweird.f32 %v5557_v31 }
 0xec6   : > { %v5742_v47 = vsub.f32 1.0, %v5741_v32  ;;  %9304 = vtanh.f32 %v5492_v42  ;;  %v5766_v42 = vand.u32 2147483648, %v5557_v31 }
 0xec7   : > { %9306 = vtanh.f32 %v5493_v26  ;;  %vm5765_vm5 = vcmp.eq.f32.partialorder %v5764_v63, 8.507059e+37 }
 0xec8   : > { %v5743_v56 = vmul.f32 %v9301_v8, %v5742_v47  ;;  %v5767_v25 = vor.u32 1.1754944e-38, %v5766_v42 }
 0xeca   : > { %v5744_v54 = vadd.f32 %v9301_v8, %v5743_v56 }
 0xecb   : > { %v9303_v19 = vpop.eup %9302 }
 0xecc   : > { %v5748_v53 = vsel %vm5747_vm14, %v9301_v8, %v5744_v54  ;;  %v5756_v18 = vmul.f32 %v9303_v19, %v5557_v31  ;;  %v9305_v16 = vpop.eup %9304  ;;  %vm5761_vm0 = vweird.f32 %v9303_v19  ;;  %v1325_v8 = vadd.f32 %v11649_v28, %v10530_v45 }
 0xecd   : > { %v5753_v41 = vsel %vm5750_vm15, %v5752_v3, %v5748_v53  ;;  %vm5762_vm4 = vmor %vm5760_vm3, %vm5761_vm0  ;;  %v9307_v57 = vpop.eup %9306  ;;  %v5834_v45 = vmul.f32 %v11685_v59, %v11510_v11 }
 0xece   : > { %v11798_v1 = vsel %vm1543_vm6, %v5753_v41, %v9305_v16  ;;  %v5757_v43 = vsub.f32 1.0, %v5756_v18 }
 0xecf   : > { %5888 = vrot.lane.b32.xlu0 %v11798_v1, %s9624_s13 }
 0xed0   : > { %v5758_v62 = vmul.f32 %v9303_v19, %v5757_v43 }
 0xed2   : > { %v5759_v52 = vadd.f32 %v9303_v19, %v5758_v62 }
 0xed4   : > { %v5947_v29 = vpop.permute.xlu0 %5946  ;;  %v5763_v7 = vsel %vm5762_vm4, %v9303_v19, %v5759_v52 }
 0xed5   : > { %v11804_v21 = vadd.f32 %v5947_v29, %v5833_v30  ;;  %v5768_v26 = vsel %vm5765_vm5, %v5767_v25, %v5763_v7 }
 0xed6   : > { %v11808_v40 = vsel %vm1543_vm6, %v5768_v26, %v9307_v57  ;;  %v5837_v26 = vmul.f32 %v11713_v6, %v11539_v48 }
 0xed7   : > { %9308 = vtanh.f32 %v11804_v21  ;;  %5890 = vrot.lane.b32.xlu1 %v11808_v40, %s9624_s13 }
 0xedd   : > { %v9309_v17 = vpop.eup %9308 }
 0xede   : > { %6042 = vrot.lane.b32.xlu2 %v9309_v17, %s9624_s13 }
 0xef0   : > { %v5881_v20 = vpop.permute.xlu2 %5880 }
 0xef1   : > { %v5920_v61 = vmul.f32 %v5881_v20, %v11752_v27 }
 0xef3   : > { %5960 = vrot.lane.b32.xlu2 %v5920_v61, %s9624_s13 }
 0xf00   : > { %v5951_v37 = vpop.permute.xlu1 %5950 }
 0xf01   : > { %v11820_v31 = vadd.f32 %v5951_v37, %v5835_v13 }
 0xf02   : > { %v5475_v32 = vpop.f32.mrf.mxu3 }
 0xf03   : > { %9310 = vtanh.f32 %v11820_v31  ;;  %v5494_v47 = vadd.f32 %v5475_v32, %v1325_v8 }
 0xf05   : > { %v8445_v4 = vmul.f32 -1.442695, %v5494_v47 }
 0xf07   : > { %9312 = vpow2.f32 %v8445_v4 }
 0xf09   : > { %v9311_v56 = vpop.eup %9310 }
 0xf0a   : > { %v5477_v54 = vpop.f32.mrf.mxu3  ;;  %6046 = vrot.lane.b32.xlu2 %v9311_v56, %s9624_s13 }
 0xf0b   : > { %v5495_v35 = vadd.f32 %v5477_v54, %v1327_v44 }
 0xf0d   : > { %v9313_v19 = vpop.eup %9312  ;;  %v8446_v3 = vmul.f32 -1.442695, %v5495_v35 }
 0xf0e   : > { %v5558_v53 = vadd.f32 1.0, %v9313_v19 }
 0xf0f   : > { %9314 = vpow2.f32 %v8446_v3  ;;  %v5836_v3 = vmul.f32 %v11706_v49, %v11517_v33 }
 0xf10   : > { %9316 = vrcp.f32 %v5558_v53  ;;  %v5949_v18 = vpop.permute.xlu0 %5948  ;;  %v5781_v30 = vand.u32 2147483648, %v5558_v53  ;;  %v5779_v25 = vand.u32 2147483647, %v5558_v53  ;;  %v5955_v29 = vpop.permute.xlu2 %5954  ;;  %vm5775_vm8 = vweird.f32 %v5558_v53 }
 0xf11   : > { %v11828_v16 = vadd.f32 %v5949_v18, %v5834_v45  ;;  %v11836_v37 = vadd.f32 %v5955_v29, %v5837_v26 }
 0xf12   : > { %v5782_v17 = vor.u32 1.1754944e-38, %v5781_v30  ;;  %vm5780_vm10 = vcmp.eq.f32.partialorder %v5779_v25, 8.507059e+37  ;;  %v5838_v30 = vmul.f32 %v11721_v9, %v11559_v34 }
 0xf13   : > { %9318 = vtanh.f32 %v11828_v16 }
 0xf15   : > { %v9315_v41 = vpop.eup %9314 }
 0xf16   : > { %v9317_v43 = vpop.eup %9316  ;;  %v5559_v23 = vadd.f32 1.0, %v9315_v41 }
 0xf17   : > { %v5771_v28 = vmul.f32 %v9317_v43, %v5558_v53  ;;  %vm5776_vm7 = vweird.f32 %v9317_v43 }
 0xf18   : > { %9320 = vrcp.f32 %v5559_v23  ;;  %v5883_v42 = vpop.permute.xlu0 %5882  ;;  %vm5777_vm9 = vmor %vm5775_vm8, %vm5776_vm7  ;;  %v5796_v48 = vand.u32 2147483648, %v5559_v23  ;;  %v5794_v19 = vand.u32 2147483647, %v5559_v23  ;;  %vm5790_vm12 = vweird.f32 %v5559_v23 }
 0xf19   : > { %v5921_v62 = vmul.f32 %v5883_v42, %v11760_v0  ;;  %v5772_v63 = vsub.f32 1.0, %v5771_v28  ;;  %v9319_v52 = vpop.eup %9318  ;;  %9322 = vtanh.f32 %v5494_v47 }
 0xf1a   : > { %6044 = vrot.lane.b32.xlu1 %v9319_v52, %s9624_s13  ;;  %9324 = vtanh.f32 %v5495_v35  ;;  %v5797_v45 = vor.u32 1.1754944e-38, %v5796_v48  ;;  %vm5795_vm13 = vcmp.eq.f32.partialorder %v5794_v19, 8.507059e+37 }
 0xf1b   : > { %5962 = vrot.lane.b32.xlu0 %v5921_v62, %s9624_s13  ;;  %v5773_v11 = vmul.f32 %v9317_v43, %v5772_v63  ;;  %9326 = vtanh.f32 %v11836_v37  ;;  %v5957_v33 = vpop.permute.xlu2 %5956 }
 0xf1d   : > { %v5774_v7 = vadd.f32 %v9317_v43, %v5773_v11 }
 0xf1e   : > { %v9321_v57 = vpop.eup %9320 }
 0xf1f   : > { %v5778_v20 = vsel %vm5777_vm9, %v9317_v43, %v5774_v7  ;;  %v5786_v61 = vmul.f32 %v9321_v57, %v5559_v23  ;;  %v9323_v13 = vpop.eup %9322  ;;  %vm5791_vm11 = vweird.f32 %v9321_v57 }
 0xf20   : > { %v5953_v8 = vpop.permute.xlu1 %5952  ;;  %v5885_v32 = vpop.permute.xlu0 %5884  ;;  %v5783_v47 = vsel %vm5780_vm10, %v5782_v17, %v5778_v20  ;;  %vm5792_vm1 = vmor %vm5790_vm12, %vm5791_vm11  ;;  %v5839_v17 = vmul.f32 %v11727_v55, %v11566_v24 }
 0xf21   : > { %v5922_v4 = vmul.f32 %v5885_v32, %v11768_v46  ;;  %v11841_v56 = vsel %vm1543_vm6, %v5783_v47, %v9323_v13  ;;  %v5787_v44 = vsub.f32 1.0, %v5786_v61  ;;  %v11849_v18 = vadd.f32 %v5953_v8, %v5836_v3  ;;  %v9325_v41 = vpop.eup %9324 }
 0xf22   : > { %v9327_v62 = vpop.eup %9326  ;;  %v5840_v47 = vmul.f32 %v11752_v27, %v11578_v39  ;;  %v5842_v39 = vmul.f32 %v11768_v46, %v11589_v2  ;;  %v5843_v2 = vmul.f32 %v11788_v12, %v11598_v22  ;;  %v5845_v22 = vmul.f32 %v11808_v40, %v11608_v15 }
 0xf23   : > { %5892 = vrot.lane.b32.xlu0 %v11841_v56, %s9624_s13  ;;  %5964 = vrot.lane.b32.xlu2 %v5922_v4, %s9624_s13  ;;  %v5788_v54 = vmul.f32 %v9321_v57, %v5787_v44  ;;  %9328 = vtanh.f32 %v11849_v18  ;;  %v5844_v15 = vmul.f32 %v11798_v1, %v11613_v14  ;;  %v5846_v14 = vmul.f32 %v11841_v56, %v11631_v5 }
 0xf25   : > { %v5789_v53 = vadd.f32 %v9321_v57, %v5788_v54 }
 0xf27   : > { %v5793_v35 = vsel %vm5792_vm1, %v9321_v57, %v5789_v53  ;;  %v11866_v57 = vadd.f32 %v5957_v33, %v5838_v30  ;;  %v5841_v53 = vmul.f32 %v11760_v0, %v11584_v60 }
 0xf28   : > { %v5798_v43 = vsel %vm5795_vm13, %v5797_v45, %v5793_v35  ;;  %v5959_v25 = vpop.permute.xlu0 %5958 }
 0xf29   : > { %v5887_v28 = vpop.permute.xlu1 %5886  ;;  %v11853_v42 = vsel %vm1543_vm6, %v5798_v43, %v9325_v41  ;;  %v9329_v23 = vpop.eup %9328  ;;  %9330 = vtanh.f32 %v11866_v57  ;;  %v11872_v20 = vadd.f32 %v5959_v25, %v5839_v17 }
 0xf2a   : > { %v5923_v63 = vmul.f32 %v5887_v28, %v11788_v12  ;;  %5894 = vrot.lane.b32.xlu1 %v11853_v42, %s9624_s13 }
 0xf2b   : > { %6050 = vrot.lane.b32.xlu2 %v9327_v62, %s9624_s13  ;;  %9332 = vtanh.f32 %v11872_v20 }
 0xf2c   : > { %5966 = vrot.lane.b32.xlu0 %v5923_v63, %s9624_s13 }
 0xf2f   : > { %v9331_v13 = vpop.eup %9330 }
 0xf31   : > { %v6041_v52 = vpop.permute.xlu1 %6040  ;;  %v9333_v8 = vpop.eup %9332 }
 0xf32   : > { %6048 = vrot.lane.b32.xlu1 %v9329_v23, %s9624_s13  ;;  %v6088_v29 = vmul.f32 %v6041_v52, %v11657_v58 }
 0xf38   : > { %v6043_v11 = vpop.permute.xlu2 %6042 }
 0xf39   : > { %v6089_v7 = vmul.f32 %v6043_v11, %v11663_v50 }
 0xf3b   : > { %v6121_v26 = vpack.c.bf16 %v6089_v7, %v6088_v29 }
 0xf3d   : > { %6137 = vrot.lane.b32.xlu0 %v6121_v26, %s9625_s18 }
 0xf41   : > { %v5889_v61 = vpop.permute.xlu0 %5888 }
 0xf42   : > { %v5924_v34 = vmul.f32 %v5889_v61, %v11798_v1 }
 0xf44   : > { %5968 = vrot.lane.b32.xlu1 %v5924_v34, %s9624_s13 }
 0xf45   : > { %6052 = vrot.lane.b32.xlu0 %v9331_v13, %s9624_s13 }
 0xf49   : > { %v5891_v58 = vpop.permute.xlu1 %5890 }
 0xf4a   : > { %v5925_v50 = vmul.f32 %v5891_v58, %v11808_v40 }
 0xf4c   : > { %5970 = vrot.lane.b32.xlu2 %v5925_v50, %s9624_s13  ;;  %6054 = vrot.lane.b32.xlu1 %v9333_v8, %s9624_s13 }
 0xf4d   : > { %v5961_v24 = vpop.permute.xlu2 %5960 }
 0xf4e   : > { %v11885_v19 = vadd.f32 %v5961_v24, %v5840_v47 }
 0xf50   : > { %9334 = vtanh.f32 %v11885_v19 }
 0xf56   : > { %v9335_v43 = vpop.eup %9334 }
 0xf64   : > { %v6047_v32 = vpop.permute.xlu2 %6046 }
 0xf65   : > { %v6091_v48 = vmul.f32 %v6047_v32, %v11697_v38 }
 0xf7d   : > { %v5965_v45 = vpop.permute.xlu2 %5964 }
 0xf85   : > { %v6051_v62 = vpop.permute.xlu2 %6050 }
 0xf86   : > { %v6093_v11 = vmul.f32 %v6051_v62, %v11713_v6 }
 0xf8c   : > { %v6045_v4 = vpop.permute.xlu1 %6044 }
 0xf8d   : > { %v5963_v44 = vpop.permute.xlu0 %5962  ;;  %v6090_v54 = vmul.f32 %v6045_v4, %v11685_v59  ;;  %v11896_v59 = vadd.f32 %v5965_v45, %v5842_v39 }
 0xf8e   : > { %v11893_v35 = vadd.f32 %v5963_v44, %v5841_v53 }
 0xf8f   : > { %v6122_v3 = vpack.c.bf16 %v6091_v48, %v6090_v54 }
 0xf90   : > { %9336 = vtanh.f32 %v11893_v35 }
 0xf91   : > { %6139 = vrot.lane.b32.xlu2 %v6122_v3, %s9625_s18  ;;  %9338 = vtanh.f32 %v11896_v59 }
 0xf95   : > { %v5893_v41 = vpop.permute.xlu0 %5892 }
 0xf96   : > { %v5926_v38 = vmul.f32 %v5893_v41, %v11841_v56  ;;  %v9337_v33 = vpop.eup %9336 }
 0xf97   : > { %v9339_v52 = vpop.eup %9338 }
 0xf98   : > { %5972 = vrot.lane.b32.xlu0 %v5926_v38, %s9624_s13 }
 0xf99   : > { %6056 = vrot.lane.b32.xlu2 %v9335_v43, %s9624_s13 }
 0xf9c   : > { %v5895_v60 = vpop.permute.xlu1 %5894 }
 0xf9d   : > { %v5927_v28 = vmul.f32 %v5895_v60, %v11853_v42 }
 0xf9e   : > { %v5967_v63 = vpop.permute.xlu0 %5966 }
 0xf9f   : > { %v11905_v23 = vadd.f32 %v5967_v63, %v5843_v2  ;;  %5974 = vrot.lane.b32.xlu1 %v5927_v28, %s9624_s13 }
 0xfa0   : > { %6058 = vrot.lane.b32.xlu0 %v9337_v33, %s9624_s13 }
 0xfa1   : > { %9340 = vtanh.f32 %v11905_v23  ;;  %6060 = vrot.lane.b32.xlu2 %v9339_v52, %s9624_s13 }
 0xfa4   : > { %v6049_v30 = vpop.permute.xlu1 %6048 }
 0xfa5   : > { %v6092_v25 = vmul.f32 %v6049_v30, %v11706_v49 }
 0xfa6   : > { %v5971_v29 = vpop.permute.xlu2 %5970 }
 0xfa7   : > { %v9341_v7 = vpop.eup %9340  ;;  %v6123_v26 = vpack.c.bf16 %v6093_v11, %v6092_v25  ;;  %v11915_v17 = vadd.f32 %v5971_v29, %v5845_v22  ;;  %v12852_v22 = vld [vmem:[#allocation22_spill] sm:$0xff] }
 0xfa8   : > { %6062 = vrot.lane.b32.xlu0 %v9341_v7, %s9624_s13 }
 0xfa9   : > { %9342 = vtanh.f32 %v11915_v17  ;;  %6141 = vrot.lane.b32.xlu1 %v6123_v26, %s9625_s18 }
 0xfaf   : > { %v9343_v61 = vpop.eup %9342  ;;  %v6138_v34 = vpop.permute.xlu0 %6137 }
 0xfb0   : > { %6066 = vrot.lane.b32.xlu0 %v9343_v61, %s9624_s13  ;;  %8447 = vmatmul.msk.bf16.vlgmr.msrb.gmra.mxu1 %vm1612_vm2, %v6138_v34 }
 0xfb6   : > { %v5969_v49 = vpop.permute.xlu1 %5968 }
 0xfb7   : > { %v11924_v6 = vadd.f32 %v5969_v49, %v5844_v15  ;;  %v6053_v13 = vpop.permute.xlu0 %6052 }
 0xfb8   : > { %v6094_v8 = vmul.f32 %v6053_v13, %v11721_v9  ;;  %v5847_v9 = vmul.f32 %v11853_v42, %v11621_v51 }
 0xfb9   : > { %9344 = vtanh.f32 %v11924_v6 }
 0xfbe   : > { %v6055_v58 = vpop.permute.xlu1 %6054 }
 0xfbf   : > { %v9345_v50 = vpop.eup %9344  ;;  %v6095_v24 = vmul.f32 %v6055_v58, %v11727_v55 }
 0xfc0   : > { %6064 = vrot.lane.b32.xlu2 %v9345_v50, %s9624_s13 }
 0xfc1   : > { %v6124_v32 = vpack.c.bf16 %v6095_v24, %v6094_v8 }
 0xfc3   : > { %6143 = vrot.lane.b32.xlu1 %v6124_v32, %s9625_s18 }
 0xfeb   : > { %v6140_v47 = vpop.permute.xlu2 %6139 }
 0xfec   : > { %8448 = vmatmul.msk.bf16.gmra.mxu1 %vm1612_vm2, %v6140_v47 }
 0xff3   : > { %v6057_v48 = vpop.permute.xlu2 %6056 }
 0xff4   : > { %v6096_v45 = vmul.f32 %v6057_v48, %v11752_v27 }
 0xffb   : > { %v6061_v41 = vpop.permute.xlu2 %6060 }
 0xffc   : > { %v6098_v51 = vmul.f32 %v6061_v41, %v11768_v46  ;;  %v11957_v46 = vld [vmem:[%s12776_s6] ss:$0 sm:$0xff] }
0x100a   : > { %v5973_v4 = vpop.permute.xlu0 %5972 }
0x100b   : > { %v11934_v44 = vadd.f32 %v5973_v4, %v5846_v14 }
0x100d   : > { %9346 = vtanh.f32 %v11934_v44 }
0x1011   : > { %v5975_v55 = vpop.permute.xlu1 %5974 }
0x1012   : > { %v11939_v54 = vadd.f32 %v5975_v55, %v5847_v9  ;;  %v6059_v3 = vpop.permute.xlu0 %6058 }
0x1013   : > { %v9347_v53 = vpop.eup %9346  ;;  %v6097_v39 = vmul.f32 %v6059_v3, %v11760_v0 }
0x1014   : > { %9348 = vtanh.f32 %v11939_v54  ;;  %6068 = vrot.lane.b32.xlu2 %v9347_v53, %s9624_s13 }
0x1015   : > { %v6125_v5 = vpack.c.bf16 %v6097_v39, %v6096_v45 }
0x1017   : > { %6145 = vrot.lane.b32.xlu1 %v6125_v5, %s9625_s18 }
0x101a   : > { %v9349_v38 = vpop.eup %9348  ;;  %v6063_v43 = vpop.permute.xlu0 %6062 }
0x101b   : > { %v6099_v60 = vmul.f32 %v6063_v43, %v11788_v12  ;;  %v6142_v28 = vpop.permute.xlu1 %6141  ;;  %6070 = vrot.lane.b32.xlu0 %v9349_v38, %s9624_s13  ;;  %v6065_v0 = vpop.permute.xlu2 %6064  ;;  %v12851_v12 = vld [vmem:[#allocation21_spill] sm:$0xff] }
0x101c   : > { %8449 = vmatmul.msk.bf16.gmra.mxu1 %vm1612_vm2, %v6142_v28  ;;  %v6100_v62 = vmul.f32 %v6065_v0, %v11798_v1  ;;  %v1330_v52 = vadd.f32 %v11957_v46, %v12851_v12  ;;  %v1332_v1 = vadd.f32 %v11957_v46, %v12852_v22  ;;  %v12853_v0 = vld [vmem:[#allocation23_spill] sm:$0xff]  ;;  %v12854_v12 = vld [vmem:[#allocation24_spill] sm:$0xff] }
0x101d   : > { %v6126_v27 = vpack.c.bf16 %v6099_v60, %v6098_v51 }
0x101f   : > { %6147 = vrot.lane.b32.xlu1 %v6126_v27, %s9625_s18 }
0x1022   : > { %v6067_v2 = vpop.permute.xlu0 %6066 }
0x1023   : > { %v6101_v63 = vmul.f32 %v6067_v2, %v11808_v40  ;;  %v1335_v2 = vadd.f32 %v11957_v46, %v12853_v0 }
0x1025   : > { %v6127_v33 = vpack.c.bf16 %v6101_v63, %v6100_v62 }
0x1027   : > { %6149 = vrot.lane.b32.xlu2 %v6127_v33, %s9625_s18 }
0x102d   : > { %v6186_v30 = vpop.f32.mrf.mxu1 }
0x102e   : > { %v6226_v11 = vadd.f32 %v6186_v30, %v1330_v52  ;;  %v1337_v52 = vadd.f32 %v11957_v46, %v12854_v12 }
0x1030   : > { %v8455_v25 = vmul.f32 -1.442695, %v6226_v11 }
0x1032   : > { %9350 = vpow2.f32 %v8455_v25 }
0x1035   : > { %v6188_v29 = vpop.f32.mrf.mxu1  ;;  %v6144_v40 = vpop.permute.xlu1 %6143 }
0x1036   : > { %v6227_v7 = vadd.f32 %v6188_v29, %v1332_v1  ;;  %8450 = vmatmul.msk.bf16.gmra.mxu1 %vm1612_vm2, %v6144_v40 }
0x1038   : > { %v9351_v26 = vpop.eup %9350  ;;  %v8456_v61 = vmul.f32 -1.442695, %v6227_v7 }
0x1039   : > { %v6290_v34 = vadd.f32 1.0, %v9351_v26 }
0x103a   : > { %9352 = vpow2.f32 %v8456_v61 }
0x103b   : > { %9354 = vrcp.f32 %v6290_v34  ;;  %v6317_v8 = vand.u32 2147483648, %v6290_v34  ;;  %v6315_v32 = vand.u32 2147483647, %v6290_v34  ;;  %vm6311_vm15 = vweird.f32 %v6290_v34 }
0x103d   : > { %v6318_v4 = vor.u32 1.1754944e-38, %v6317_v8  ;;  %vm6316_vm3 = vcmp.eq.f32.partialorder %v6315_v32, 8.507059e+37 }
0x1040   : > { %v9353_v15 = vpop.eup %9352 }
0x1041   : > { %v9355_v49 = vpop.eup %9354  ;;  %v6291_v13 = vadd.f32 1.0, %v9353_v15 }
0x1042   : > { %v6307_v58 = vmul.f32 %v9355_v49, %v6290_v34  ;;  %vm6312_vm14 = vweird.f32 %v9355_v49 }
0x1043   : > { %9356 = vrcp.f32 %v6291_v13  ;;  %vm6313_vm0 = vmor %vm6311_vm15, %vm6312_vm14  ;;  %v6332_v39 = vand.u32 2147483648, %v6291_v13  ;;  %v6330_v41 = vand.u32 2147483647, %v6291_v13  ;;  %vm6326_vm5 = vweird.f32 %v6291_v13 }
0x1044   : > { %v6308_v50 = vsub.f32 1.0, %v6307_v58  ;;  %9358 = vtanh.f32 %v6226_v11 }
0x1045   : > { %9360 = vtanh.f32 %v6227_v7  ;;  %v6333_v43 = vor.u32 1.1754944e-38, %v6332_v39  ;;  %vm6331_vm8 = vcmp.eq.f32.partialorder %v6330_v41, 8.507059e+37 }
0x1046   : > { %v6309_v24 = vmul.f32 %v9355_v49, %v6308_v50 }
0x1048   : > { %v6310_v47 = vadd.f32 %v9355_v49, %v6309_v24 }
0x1049   : > { %v9357_v14 = vpop.eup %9356 }
0x104a   : > { %v6314_v48 = vsel %vm6313_vm0, %v9355_v49, %v6310_v47  ;;  %v6322_v9 = vmul.f32 %v9357_v14, %v6291_v13  ;;  %v9359_v55 = vpop.eup %9358  ;;  %vm6327_vm4 = vweird.f32 %v9357_v14 }
0x104b   : > { %v6319_v3 = vsel %vm6316_vm3, %v6318_v4, %v6314_v48  ;;  %vm6328_vm7 = vmor %vm6326_vm5, %vm6327_vm4  ;;  %v9361_v60 = vpop.eup %9360 }
0x104c   : > { %v11966_v53 = vsel %vm1543_vm6, %v6319_v3, %v9359_v55  ;;  %v6323_v45 = vsub.f32 1.0, %v6322_v9 }
0x104d   : > { %6610 = vrot.lane.b32.xlu1 %v11966_v53, %s9624_s13 }
0x104e   : > { %v6324_v5 = vmul.f32 %v9357_v14, %v6323_v45 }
0x1050   : > { %v6325_v38 = vadd.f32 %v9357_v14, %v6324_v5 }
0x1052   : > { %v6329_v51 = vsel %vm6328_vm7, %v9357_v14, %v6325_v38 }
0x1053   : > { %v6334_v28 = vsel %vm6331_vm8, %v6333_v43, %v6329_v51 }
0x1054   : > { %v11972_v27 = vsel %vm1543_vm6, %v6334_v28, %v9361_v60  ;;  %v12855_v28 = vld [vmem:[#allocation25_spill] sm:$0xff] }
0x1055   : > { %6612 = vrot.lane.b32.xlu2 %v11972_v27, %s9624_s13  ;;  %v1340_v0 = vadd.f32 %v11957_v46, %v12855_v28 }
0x1069   : > { %v6191_v62 = vpop.f32.mrf.mxu1 }
0x106a   : > { %v6228_v63 = vadd.f32 %v6191_v62, %v1335_v2 }
0x106c   : > { %v8457_v33 = vmul.f32 -1.442695, %v6228_v63 }
0x106e   : > { %9362 = vpow2.f32 %v8457_v33  ;;  %v6069_v50 = vpop.permute.xlu2 %6068 }
0x106f   : > { %v6102_v4 = vmul.f32 %v6069_v50, %v11841_v56 }
0x1071   : > { %v6193_v30 = vpop.f32.mrf.mxu1 }
0x1072   : > { %v6229_v11 = vadd.f32 %v6193_v30, %v1337_v52  ;;  %v12856_v52 = vld [vmem:[#allocation26_spill] sm:$0xff] }
0x1073   : > { %v1342_v30 = vadd.f32 %v11957_v46, %v12856_v52 }
0x1074   : > { %v9363_v25 = vpop.eup %9362  ;;  %v8458_v22 = vmul.f32 -1.442695, %v6229_v11 }
0x1075   : > { %v6292_v1 = vadd.f32 1.0, %v9363_v25 }
0x1076   : > { %9364 = vpow2.f32 %v8458_v22 }
0x1077   : > { %9366 = vrcp.f32 %v6292_v1  ;;  %v6347_v41 = vand.u32 2147483648, %v6292_v1  ;;  %vm6341_vm13 = vweird.f32 %v6292_v1  ;;  %v6345_v43 = vand.u32 2147483647, %v6292_v1 }
0x1079   : > { %vm6346_vm15 = vcmp.eq.f32.partialorder %v6345_v43, 8.507059e+37  ;;  %v12858_v43 = vld [vmem:[#allocation28_spill] sm:$0xff] }
0x107c   : > { %v9365_v29 = vpop.eup %9364 }
0x107d   : > { %v6293_v40 = vadd.f32 1.0, %v9365_v29  ;;  %v9367_v7 = vpop.eup %9366 }
0x107e   : > { %v6337_v26 = vmul.f32 %v9367_v7, %v6292_v1  ;;  %vm6342_vm1 = vweird.f32 %v9367_v7 }
0x107f   : > { %9368 = vrcp.f32 %v6293_v40  ;;  %v6362_v58 = vand.u32 2147483648, %v6293_v40  ;;  %v6360_v24 = vand.u32 2147483647, %v6293_v40  ;;  %vm6356_vm10 = vweird.f32 %v6293_v40  ;;  %vm6343_vm14 = vmor %vm6341_vm13, %vm6342_vm1 }
0x1080   : > { %v6338_v15 = vsub.f32 1.0, %v6337_v26  ;;  %9370 = vtanh.f32 %v6229_v11 }
0x1081   : > { %v6363_v9 = vor.u32 1.1754944e-38, %v6362_v58  ;;  %vm6361_vm12 = vcmp.eq.f32.partialorder %v6360_v24, 8.507059e+37  ;;  %9372 = vtanh.f32 %v6228_v63 }
0x1082   : > { %v6339_v32 = vmul.f32 %v9367_v7, %v6338_v15 }
0x1084   : > { %v6340_v3 = vadd.f32 %v9367_v7, %v6339_v32 }
0x1085   : > { %v9369_v61 = vpop.eup %9368 }
0x1086   : > { %v6352_v34 = vmul.f32 %v9369_v61, %v6293_v40  ;;  %vm6357_vm9 = vweird.f32 %v9369_v61  ;;  %v9371_v45 = vpop.eup %9370  ;;  %v6344_v56 = vsel %vm6343_vm14, %v9367_v7, %v6340_v3  ;;  %v6150_v40 = vpop.permute.xlu2 %6149 }
0x1087   : > { %vm6358_vm11 = vmor %vm6356_vm10, %vm6357_vm9  ;;  %v9373_v60 = vpop.eup %9372 }
0x1088   : > { %v6353_v13 = vsub.f32 1.0, %v6352_v34 }
0x1089   : > { %v6146_v49 = vpop.permute.xlu1 %6145 }
0x108a   : > { %8451 = vmatmul.msk.bf16.gmra.mxu1 %vm1612_vm2, %v6146_v49  ;;  %v6354_v8 = vmul.f32 %v9369_v61, %v6353_v13  ;;  %v12857_v13 = vld [vmem:[#allocation27_spill] sm:$0xff] }
0x108b   : > { %v1345_v58 = vadd.f32 %v11957_v46, %v12857_v13 }
0x108c   : > { %v6355_v14 = vadd.f32 %v9369_v61, %v6354_v8 }
0x108d   : > { %v6071_v47 = vpop.permute.xlu0 %6070 }
0x108e   : > { %v6103_v48 = vmul.f32 %v6071_v47, %v11853_v42  ;;  %v6359_v55 = vsel %vm6358_vm11, %v9369_v61, %v6355_v14  ;;  %v6348_v42 = vor.u32 1.1754944e-38, %v6347_v41 }
0x108f   : > { %v6364_v5 = vsel %vm6361_vm12, %v6363_v9, %v6359_v55 }
0x1090   : > { %v6128_v39 = vpack.c.bf16 %v6103_v48, %v6102_v4  ;;  %v11985_v38 = vsel %vm1543_vm6, %v6364_v5, %v9371_v45  ;;  %v6349_v51 = vsel %vm6346_vm15, %v6348_v42, %v6344_v56  ;;  %v1347_v56 = vadd.f32 %v11957_v46, %v12858_v43 }
0x1091   : > { %6616 = vrot.lane.b32.xlu1 %v11985_v38, %s9624_s13  ;;  %v6148_v2 = vpop.permute.xlu1 %6147  ;;  %v11994_v33 = vsel %vm1543_vm6, %v6349_v51, %v9373_v60 }
0x1092   : > { %6151 = vrot.lane.b32.xlu0 %v6128_v39, %s9625_s18 }
0x1099   : > { %v6196_v62 = vpop.f32.mrf.mxu1 }
0x109a   : > { %v6230_v63 = vadd.f32 %v6196_v62, %v1340_v0  ;;  %8452 = vmatmul.msk.bf16.gmra.mxu1 %vm1612_vm2, %v6148_v2  ;;  %6614 = vrot.lane.b32.xlu0 %v11994_v33, %s9624_s13 }
0x109c   : > { %v8459_v12 = vmul.f32 -1.442695, %v6230_v63 }
0x109e   : > { %9374 = vpow2.f32 %v8459_v12 }
0x10a1   : > { %v6198_v11 = vpop.f32.mrf.mxu1 }
0x10a2   : > { %v6231_v25 = vadd.f32 %v6198_v11, %v1342_v30 }
0x10a4   : > { %v9375_v22 = vpop.eup %9374  ;;  %v8460_v1 = vmul.f32 -1.442695, %v6231_v25 }
0x10a5   : > { %v6294_v29 = vadd.f32 1.0, %v9375_v22 }
0x10a6   : > { %9376 = vpow2.f32 %v8460_v1 }
0x10a7   : > { %9378 = vrcp.f32 %v6294_v29  ;;  %v6377_v49 = vand.u32 2147483648, %v6294_v29  ;;  %v6375_v8 = vand.u32 2147483647, %v6294_v29  ;;  %vm6371_vm3 = vweird.f32 %v6294_v29 }
0x10a9   : > { %v6378_v4 = vor.u32 1.1754944e-38, %v6377_v49  ;;  %vm6376_vm5 = vcmp.eq.f32.partialorder %v6375_v8, 8.507059e+37 }
0x10aa   : > { %8453 = vmatmul.msk.bf16.gmra.mxu1 %vm1612_vm2, %v6150_v40 }
0x10ac   : > { %v9377_v7 = vpop.eup %9376 }
0x10ad   : > { %v9379_v26 = vpop.eup %9378  ;;  %v6295_v61 = vadd.f32 1.0, %v9377_v7 }
0x10ae   : > { %v6367_v34 = vmul.f32 %v9379_v26, %v6294_v29  ;;  %vm6372_vm0 = vweird.f32 %v9379_v26 }
0x10af   : > { %9380 = vrcp.f32 %v6295_v61  ;;  %vm6373_vm4 = vmor %vm6371_vm3, %vm6372_vm0  ;;  %v6392_v41 = vand.u32 2147483648, %v6295_v61  ;;  %v6390_v51 = vand.u32 2147483647, %v6295_v61  ;;  %v6613_v28 = vpop.permute.xlu2 %6612  ;;  %vm6386_vm8 = vweird.f32 %v6295_v61 }
0x10b0   : > { %v6368_v15 = vsub.f32 1.0, %v6367_v34  ;;  %9382 = vtanh.f32 %v6230_v63  ;;  %v6659_v11 = vmul.f32 %v6613_v28, %v11972_v27 }
0x10b1   : > { %v6393_v62 = vor.u32 1.1754944e-38, %v6392_v41  ;;  %vm6391_vm10 = vcmp.eq.f32.partialorder %v6390_v51, 8.507059e+37 }
0x10b2   : > { %v6369_v50 = vmul.f32 %v9379_v26, %v6368_v15 }
0x10b3   : > { %v6201_v24 = vpop.f32.mrf.mxu1 }
0x10b4   : > { %v6232_v32 = vadd.f32 %v6201_v24, %v1345_v58  ;;  %v6370_v47 = vadd.f32 %v9379_v26, %v6369_v50 }
0x10b5   : > { %v9381_v14 = vpop.eup %9380 }
0x10b6   : > { %v8461_v48 = vmul.f32 -1.442695, %v6232_v32  ;;  %v6374_v9 = vsel %vm6373_vm4, %v9379_v26, %v6370_v47  ;;  %v6382_v55 = vmul.f32 %v9381_v14, %v6295_v61  ;;  %v9383_v3 = vpop.eup %9382  ;;  %vm6387_vm7 = vweird.f32 %v9381_v14 }
0x10b7   : > { %v6379_v45 = vsel %vm6376_vm5, %v6378_v4, %v6374_v9  ;;  %vm6388_vm9 = vmor %vm6386_vm8, %vm6387_vm7 }
0x10b8   : > { %9384 = vpow2.f32 %v8461_v48  ;;  %v12006_v39 = vsel %vm1543_vm6, %v6379_v45, %v9383_v3  ;;  %v6383_v5 = vsub.f32 1.0, %v6382_v55 }
0x10b9   : > { %9386 = vtanh.f32 %v6231_v25  ;;  %6618 = vrot.lane.b32.xlu2 %v12006_v39, %s9624_s13 }
0x10ba   : > { %v6384_v42 = vmul.f32 %v9381_v14, %v6383_v5 }
0x10bb   : > { %v6203_v60 = vpop.f32.mrf.mxu1 }
0x10bc   : > { %v6233_v0 = vadd.f32 %v6203_v60, %v1347_v56  ;;  %v6385_v2 = vadd.f32 %v9381_v14, %v6384_v42 }
0x10be   : > { %v9385_v63 = vpop.eup %9384  ;;  %v8462_v12 = vmul.f32 -1.442695, %v6233_v0  ;;  %v6389_v52 = vsel %vm6388_vm9, %v9381_v14, %v6385_v2  ;;  %v12859_v2 = vld [vmem:[#allocation29_spill] sm:$0xff] }
0x10bf   : > { %v9387_v30 = vpop.eup %9386  ;;  %v6296_v25 = vadd.f32 1.0, %v9385_v63  ;;  %v6611_v22 = vpop.permute.xlu1 %6610  ;;  %v6394_v1 = vsel %vm6391_vm10, %v6393_v62, %v6389_v52  ;;  %v1350_v62 = vadd.f32 %v11957_v46, %v12859_v2 }
0x10c0   : > { %9388 = vpow2.f32 %v8462_v12  ;;  %v6658_v29 = vmul.f32 %v6611_v22, %v11966_v53  ;;  %v12016_v40 = vsel %vm1543_vm6, %v6394_v1, %v9387_v30 }
0x10c1   : > { %9390 = vrcp.f32 %v6296_v25  ;;  %6692 = vrot.lane.b32.xlu2 %v6659_v11, %s9624_s13  ;;  %6620 = vrot.lane.b32.xlu0 %v12016_v40, %s9624_s13  ;;  %v6407_v49 = vand.u32 2147483648, %v6296_v25  ;;  %v6405_v58 = vand.u32 2147483647, %v6296_v25  ;;  %vm6401_vm12 = vweird.f32 %v6296_v25 }
0x10c2   : > { %6690 = vrot.lane.b32.xlu1 %v6658_v29, %s9624_s13 }
0x10c3   : > { %v6408_v24 = vor.u32 1.1754944e-38, %v6407_v49  ;;  %vm6406_vm13 = vcmp.eq.f32.partialorder %v6405_v58, 8.507059e+37  ;;  %v12861_v49 = vld [vmem:[#allocation31_spill] sm:$0xff] }
0x10c6   : > { %v9389_v7 = vpop.eup %9388 }
0x10c7   : > { %v9391_v26 = vpop.eup %9390  ;;  %v6297_v61 = vadd.f32 1.0, %v9389_v7 }
0x10c8   : > { %v6397_v34 = vmul.f32 %v9391_v26, %v6296_v25  ;;  %vm6402_vm11 = vweird.f32 %v9391_v26  ;;  %v12860_v25 = vld [vmem:[#allocation30_spill] sm:$0xff] }
0x10c9   : > { %9392 = vrcp.f32 %v6297_v61  ;;  %vm6403_vm1 = vmor %vm6401_vm12, %vm6402_vm11  ;;  %v6420_v45 = vand.u32 2147483647, %v6297_v61  ;;  %vm6416_vm15 = vweird.f32 %v6297_v61  ;;  %v1352_v22 = vadd.f32 %v11957_v46, %v12860_v25 }
0x10ca   : > { %v6398_v15 = vsub.f32 1.0, %v6397_v34  ;;  %9394 = vtanh.f32 %v6232_v32  ;;  %v6422_v32 = vand.u32 2147483648, %v6297_v61 }
0x10cb   : > { %9396 = vtanh.f32 %v6233_v0  ;;  %vm6421_vm3 = vcmp.eq.f32.partialorder %v6420_v45, 8.507059e+37 }
0x10cc   : > { %v6399_v13 = vmul.f32 %v9391_v26, %v6398_v15  ;;  %v6423_v41 = vor.u32 1.1754944e-38, %v6422_v32 }
0x10ce   : > { %v6400_v50 = vadd.f32 %v9391_v26, %v6399_v13  ;;  %v1355_v13 = vadd.f32 %v11957_v46, %v12861_v49 }
0x10cf   : > { %v9393_v8 = vpop.eup %9392 }
0x10d0   : > { %v6404_v47 = vsel %vm6403_vm1, %v9391_v26, %v6400_v50  ;;  %v6412_v14 = vmul.f32 %v9393_v8, %v6297_v61  ;;  %v9395_v4 = vpop.eup %9394  ;;  %vm6417_vm14 = vweird.f32 %v9393_v8 }
0x10d1   : > { %v6409_v48 = vsel %vm6406_vm13, %v6408_v24, %v6404_v47  ;;  %vm6418_vm0 = vmor %vm6416_vm15, %vm6417_vm14  ;;  %v9397_v56 = vpop.eup %9396 }
0x10d2   : > { %v12024_v9 = vsel %vm1543_vm6, %v6409_v48, %v9395_v4  ;;  %v6413_v55 = vsub.f32 1.0, %v6412_v14  ;;  %v12862_v48 = vld [vmem:[#allocation32_spill] sm:$0xff] }
0x10d3   : > { %6622 = vrot.lane.b32.xlu0 %v12024_v9, %s9624_s13 }
0x10d4   : > { %v6414_v3 = vmul.f32 %v9393_v8, %v6413_v55  ;;  %v1357_v55 = vadd.f32 %v11957_v46, %v12862_v48 }
0x10d6   : > { %v6415_v5 = vadd.f32 %v9393_v8, %v6414_v3 }
0x10d8   : > { %v6419_v43 = vsel %vm6418_vm0, %v9393_v8, %v6415_v5 }
0x10d9   : > { %v6424_v42 = vsel %vm6421_vm3, %v6423_v41, %v6419_v43 }
0x10da   : > { %v12030_v51 = vsel %vm1543_vm6, %v6424_v42, %v9397_v56 }
0x10db   : > { %6624 = vrot.lane.b32.xlu1 %v12030_v51, %s9624_s13 }
0x1103   : > { %v6617_v60 = vpop.permute.xlu1 %6616 }
0x1104   : > { %v6152_v28 = vpop.permute.xlu0 %6151  ;;  %v6661_v0 = vmul.f32 %v6617_v60, %v11985_v38 }
0x1105   : > { %8454 = vmatmul.msk.bf16.gmra.mxu1 %vm1612_vm2, %v6152_v28 }
0x1106   : > { %6696 = vrot.lane.b32.xlu0 %v6661_v0, %s9624_s13 }
0x1107   : > { %v6206_v63 = vpop.f32.mrf.mxu1 }
0x1108   : > { %v6234_v12 = vadd.f32 %v6206_v63, %v1350_v62 }
0x110a   : > { %v8463_v52 = vmul.f32 -1.442695, %v6234_v12 }
0x110c   : > { %9398 = vpow2.f32 %v8463_v52  ;;  %v6615_v30 = vpop.permute.xlu0 %6614 }
0x110d   : > { %v6660_v11 = vmul.f32 %v6615_v30, %v11994_v33  ;;  %v12863_v30 = vld [vmem:[#allocation33_spill] sm:$0xff] }
0x110f   : > { %v6208_v1 = vpop.f32.mrf.mxu1  ;;  %6694 = vrot.lane.b32.xlu2 %v6660_v11, %s9624_s13  ;;  %v1360_v11 = vadd.f32 %v11957_v46, %v12863_v30 }
0x1110   : > { %v6235_v29 = vadd.f32 %v6208_v1, %v1352_v22 }
0x1112   : > { %v9399_v7 = vpop.eup %9398  ;;  %v8464_v26 = vmul.f32 -1.442695, %v6235_v29 }
0x1113   : > { %v6298_v61 = vadd.f32 1.0, %v9399_v7  ;;  %v6619_v34 = vpop.permute.xlu2 %6618 }
0x1114   : > { %9400 = vpow2.f32 %v8464_v26  ;;  %v6662_v15 = vmul.f32 %v6619_v34, %v12006_v39 }
0x1115   : > { %9402 = vrcp.f32 %v6298_v61  ;;  %v6437_v45 = vand.u32 2147483648, %v6298_v61  ;;  %v6435_v43 = vand.u32 2147483647, %v6298_v61  ;;  %vm6431_vm5 = vweird.f32 %v6298_v61 }
0x1116   : > { %6698 = vrot.lane.b32.xlu0 %v6662_v15, %s9624_s13 }
0x1117   : > { %v6211_v58 = vpop.f32.mrf.mxu1  ;;  %v6438_v2 = vor.u32 1.1754944e-38, %v6437_v45  ;;  %vm6436_vm8 = vcmp.eq.f32.partialorder %v6435_v43, 8.507059e+37 }
0x1118   : > { %v6236_v50 = vadd.f32 %v6211_v58, %v1355_v13 }
0x111a   : > { %v9401_v8 = vpop.eup %9400  ;;  %v8465_v24 = vmul.f32 -1.442695, %v6236_v50 }
0x111b   : > { %v9403_v47 = vpop.eup %9402  ;;  %v6299_v14 = vadd.f32 1.0, %v9401_v8 }
0x111c   : > { %9404 = vpow2.f32 %v8465_v24  ;;  %v6427_v4 = vmul.f32 %v9403_v47, %v6298_v61  ;;  %vm6432_vm4 = vweird.f32 %v9403_v47 }
0x111d   : > { %9406 = vrcp.f32 %v6299_v14  ;;  %vm6433_vm7 = vmor %vm6431_vm5, %vm6432_vm4  ;;  %v6452_v7 = vand.u32 2147483648, %v6299_v14  ;;  %v6450_v34 = vand.u32 2147483647, %v6299_v14  ;;  %vm6446_vm10 = vweird.f32 %v6299_v14 }
0x111e   : > { %v6428_v32 = vsub.f32 1.0, %v6427_v4  ;;  %9408 = vtanh.f32 %v6234_v12 }
0x111f   : > { %v6213_v3 = vpop.f32.mrf.mxu1  ;;  %v6453_v24 = vor.u32 1.1754944e-38, %v6452_v7  ;;  %vm6451_vm12 = vcmp.eq.f32.partialorder %v6450_v34, 8.507059e+37 }
0x1120   : > { %v12049_v5 = vadd.f32 %v6213_v3, %v1357_v55  ;;  %v6429_v41 = vmul.f32 %v9403_v47, %v6428_v32  ;;  %v12864_v55 = vld [vmem:[#allocation34_spill] sm:$0xff] }
0x1121   : > { %v1362_v32 = vadd.f32 %v11957_v46, %v12864_v55 }
0x1122   : > { %v9405_v56 = vpop.eup %9404  ;;  %v8466_v42 = vmul.f32 -1.442695, %v12049_v5  ;;  %v6430_v60 = vadd.f32 %v9403_v47, %v6429_v41 }
0x1123   : > { %v9407_v28 = vpop.eup %9406  ;;  %v6300_v0 = vadd.f32 1.0, %v9405_v56 }
0x1124   : > { %9410 = vpow2.f32 %v8466_v42  ;;  %v6434_v62 = vsel %vm6433_vm7, %v9403_v47, %v6430_v60  ;;  %v6442_v63 = vmul.f32 %v9407_v28, %v6299_v14  ;;  %v9409_v12 = vpop.eup %9408  ;;  %vm6447_vm9 = vweird.f32 %v9407_v28 }
0x1125   : > { %9412 = vrcp.f32 %v6300_v0  ;;  %v6439_v52 = vsel %vm6436_vm8, %v6438_v2, %v6434_v62  ;;  %vm6448_vm11 = vmor %vm6446_vm10, %vm6447_vm9  ;;  %v6465_v41 = vand.u32 2147483647, %v6300_v0  ;;  %v6467_v43 = vand.u32 2147483648, %v6300_v0 }
0x1126   : > { %v12056_v25 = vsel %vm1543_vm6, %v6439_v52, %v9409_v12  ;;  %v6443_v22 = vsub.f32 1.0, %v6442_v63  ;;  %9414 = vtanh.f32 %v6235_v29  ;;  %vm6461_vm13 = vweird.f32 %v6300_v0 }
0x1127   : > { %6626 = vrot.lane.b32.xlu1 %v12056_v25, %s9624_s13  ;;  %v6216_v1 = vpop.f32.mrf.mxu1  ;;  %vm6466_vm15 = vcmp.eq.f32.partialorder %v6465_v41, 8.507059e+37  ;;  %v6579_v41 = vmul.f32 %v11972_v27, %v11804_v21 }
0x1128   : > { %v12060_v26 = vadd.f32 %v6216_v1, %v1360_v11  ;;  %v6444_v61 = vmul.f32 %v9407_v28, %v6443_v22 }
0x112a   : > { %v9411_v15 = vpop.eup %9410  ;;  %v8467_v49 = vmul.f32 -1.442695, %v12060_v26  ;;  %v6445_v13 = vadd.f32 %v9407_v28, %v6444_v61 }
0x112b   : > { %v9413_v58 = vpop.eup %9412  ;;  %v6301_v8 = vadd.f32 1.0, %v9411_v15 }
0x112c   : > { %9416 = vpow2.f32 %v8467_v49  ;;  %v6449_v29 = vsel %vm6448_vm11, %v9407_v28, %v6445_v13  ;;  %v6457_v47 = vmul.f32 %v9413_v58, %v6300_v0  ;;  %v9415_v4 = vpop.eup %9414  ;;  %vm6462_vm1 = vweird.f32 %v9413_v58 }
0x112d   : > { %9418 = vrcp.f32 %v6301_v8  ;;  %v6454_v48 = vsel %vm6451_vm12, %v6453_v24, %v6449_v29  ;;  %vm6463_vm14 = vmor %vm6461_vm13, %vm6462_vm1  ;;  %v6482_v61 = vand.u32 2147483648, %v6301_v8  ;;  %v6480_v15 = vand.u32 2147483647, %v6301_v8 }
0x112e   : > { %v12067_v3 = vsel %vm1543_vm6, %v6454_v48, %v9415_v4  ;;  %v6458_v45 = vsub.f32 1.0, %v6457_v47  ;;  %9420 = vtanh.f32 %v6236_v50  ;;  %v6468_v50 = vor.u32 1.1754944e-38, %v6467_v43 }
0x112f   : > { %v6218_v14 = vpop.f32.mrf.mxu1  ;;  %6628 = vrot.lane.b32.xlu2 %v12067_v3, %s9624_s13  ;;  %vm6476_vm3 = vweird.f32 %v6301_v8  ;;  %v6483_v47 = vor.u32 1.1754944e-38, %v6482_v61  ;;  %vm6481_vm5 = vcmp.eq.f32.partialorder %v6480_v15, 8.507059e+37 }
0x1130   : > { %v6239_v56 = vadd.f32 %v6218_v14, %v1362_v32  ;;  %v6459_v42 = vmul.f32 %v9413_v58, %v6458_v45 }
0x1132   : > { %v9417_v60 = vpop.eup %9416  ;;  %v8468_v28 = vmul.f32 -1.442695, %v6239_v56  ;;  %v6460_v2 = vadd.f32 %v9413_v58, %v6459_v42 }
0x1133   : > { %v9419_v62 = vpop.eup %9418  ;;  %v12071_v63 = vadd.f32 1.0, %v9417_v60  ;;  %v6621_v12 = vpop.permute.xlu0 %6620 }
0x1134   : > { %9422 = vpow2.f32 %v8468_v28  ;;  %v6663_v52 = vmul.f32 %v6621_v12, %v12016_v40  ;;  %v6464_v30 = vsel %vm6463_vm14, %v9413_v58, %v6460_v2  ;;  %v6472_v11 = vmul.f32 %v9419_v62, %v6301_v8  ;;  %v9421_v22 = vpop.eup %9420  ;;  %v6691_v49 = vpop.permute.xlu1 %6690 }
0x1135   : > { %v6469_v1 = vsel %vm6466_vm15, %v6468_v50, %v6464_v30  ;;  %9424 = vtanh.f32 %v12049_v5  ;;  %vm6477_vm0 = vweird.f32 %v9419_v62  ;;  %v6578_v58 = vmul.f32 %v11966_v53, %v11778_v36  ;;  %v6693_v8 = vpop.permute.xlu2 %6692 }
0x1136   : > { %6700 = vrot.lane.b32.xlu1 %v6663_v52, %s9624_s13  ;;  %v12077_v7 = vsel %vm1543_vm6, %v6469_v1, %v9421_v22  ;;  %v6473_v0 = vsub.f32 1.0, %v6472_v11  ;;  %9426 = vrcp.f32 %v12071_v63  ;;  %vm6478_vm4 = vmor %vm6476_vm3, %vm6477_vm0  ;;  %v12097_v42 = vadd.f32 %v6693_v8, %v6579_v41  ;;  %v12865_v8 = vld [vmem:[#allocation35_spill] sm:$0xff] }
0x1137   : > { %6630 = vrot.lane.b32.xlu2 %v12077_v7, %s9624_s13  ;;  %v12085_v5 = vadd.f32 %v6691_v49, %v6578_v58  ;;  %vm6491_vm12 = vweird.f32 %v12071_v63 }
0x1138   : > { %v6474_v34 = vmul.f32 %v9419_v62, %v6473_v0 }
0x113a   : > { %v9423_v13 = vpop.eup %9422  ;;  %v6475_v24 = vadd.f32 %v9419_v62, %v6474_v34 }
0x113b   : > { %v6303_v29 = vadd.f32 1.0, %v9423_v13  ;;  %v9425_v48 = vpop.eup %9424  ;;  %v6497_v13 = vand.u32 2147483648, %v12071_v63 }
0x113c   : > { %v6479_v4 = vsel %vm6478_vm4, %v9419_v62, %v6475_v24  ;;  %v9427_v32 = vpop.eup %9426  ;;  %v6495_v24 = vand.u32 2147483647, %v12071_v63 }
0x113d   : > { %9428 = vrcp.f32 %v6303_v29  ;;  %v6484_v55 = vsel %vm6481_vm5, %v6483_v47, %v6479_v4  ;;  %v6487_v36 = vmul.f32 %v9427_v32, %v12071_v63  ;;  %v6512_v50 = vand.u32 2147483648, %v6303_v29 }
0x113e   : > { %v12089_v45 = vsel %vm1543_vm6, %v6484_v55, %v9425_v48  ;;  %9430 = vtanh.f32 %v12085_v5  ;;  %v6510_v30 = vand.u32 2147483647, %v6303_v29  ;;  %vm6506_vm8 = vweird.f32 %v6303_v29 }
0x113f   : > { %6632 = vrot.lane.b32.xlu0 %v12089_v45, %s9624_s13  ;;  %v6488_v28 = vsub.f32 1.0, %v6487_v36  ;;  %9432 = vtanh.f32 %v6239_v56  ;;  %v6513_v22 = vor.u32 1.1754944e-38, %v6512_v50  ;;  %vm6492_vm11 = vweird.f32 %v9427_v32 }
0x1140   : > { %9434 = vtanh.f32 %v12097_v42  ;;  %vm6511_vm10 = vcmp.eq.f32.partialorder %v6510_v30, 8.507059e+37  ;;  %vm6493_vm1 = vmor %vm6491_vm12, %vm6492_vm11  ;;  %v6498_v47 = vor.u32 1.1754944e-38, %v6497_v13  ;;  %vm6496_vm13 = vcmp.eq.f32.partialorder %v6495_v24, 8.507059e+37 }
0x1141   : > { %v6489_v21 = vmul.f32 %v9427_v32, %v6488_v28  ;;  %9436 = vtanh.f32 %v12060_v26  ;;  %v6580_v26 = vmul.f32 %v11994_v33, %v11828_v16  ;;  %v12866_v28 = vld [vmem:[#allocation36_spill] sm:$0xff] }
0x1143   : > { %v9429_v14 = vpop.eup %9428  ;;  %v6490_v34 = vadd.f32 %v9427_v32, %v6489_v21 }
0x1144   : > { %v6502_v43 = vmul.f32 %v9429_v14, %v6303_v29  ;;  %v9431_v2 = vpop.eup %9430  ;;  %vm6507_vm7 = vweird.f32 %v9429_v14 }
0x1145   : > { %v6623_v60 = vpop.permute.xlu0 %6622  ;;  %vm6508_vm9 = vmor %vm6506_vm8, %vm6507_vm7  ;;  %v9433_v0 = vpop.eup %9432  ;;  %v6494_v29 = vsel %vm6493_vm1, %v9427_v32, %v6490_v34 }
0x1146   : > { %v6664_v62 = vmul.f32 %v6623_v60, %v12024_v9  ;;  %v6503_v12 = vsub.f32 1.0, %v6502_v43  ;;  %v9435_v58 = vpop.eup %9434  ;;  %v6499_v4 = vsel %vm6496_vm13, %v6498_v47, %v6494_v29 }
0x1147   : > { %6786 = vrot.lane.b32.xlu0 %v9431_v2, %s9624_s13  ;;  %v9437_v48 = vpop.eup %9436  ;;  %v1367_v2 = vadd.f32 %v11957_v46, %v12866_v28 }
0x1148   : > { %6702 = vrot.lane.b32.xlu1 %v6664_v62, %s9624_s13  ;;  %v6504_v52 = vmul.f32 %v9429_v14, %v6503_v12  ;;  %v12118_v55 = vsel %vm1543_vm6, %v6499_v4, %v9437_v48 }
0x114a   : > { %v6505_v11 = vadd.f32 %v9429_v14, %v6504_v52 }
0x114c   : > { %v6509_v1 = vsel %vm6508_vm9, %v9429_v14, %v6505_v11  ;;  %v1365_v14 = vadd.f32 %v11957_v46, %v12865_v8  ;;  %vm7766_vm9 = vcmask 23552  }
0x114d   : > { %v6625_v61 = vpop.permute.xlu1 %6624  ;;  %v6514_v56 = vsel %vm6511_vm10, %v6513_v22, %v6509_v1 }
0x114e   : > { %v6665_v15 = vmul.f32 %v6625_v61, %v12030_v51  ;;  %v12106_v49 = vsel %vm1543_vm6, %v6514_v56, %v9433_v0  ;;  %v6581_v61 = vmul.f32 %v11985_v38, %v11820_v31 }
0x114f   : > { %6636 = vrot.lane.b32.xlu0 %v12106_v49, %s9624_s13 }
0x1150   : > { %6704 = vrot.lane.b32.xlu2 %v6665_v15, %s9624_s13  ;;  %6788 = vrot.lane.b32.xlu1 %v9435_v58, %s9624_s13 }
0x1158   : > { %6634 = vrot.lane.b32.xlu2 %v12118_v55, %s9624_s13 }
0x1169   : > { %v6695_v63 = vpop.permute.xlu2 %6694 }
0x116a   : > { %v12124_v36 = vadd.f32 %v6695_v63, %v6580_v26 }
0x116c   : > { %9438 = vtanh.f32 %v12124_v36 }
0x1172   : > { %v9439_v32 = vpop.eup %9438 }
0x1173   : > { %6790 = vrot.lane.b32.xlu0 %v9439_v32, %s9624_s13 }
0x1178   : > { %v6697_v1 = vpop.permute.xlu0 %6696 }
0x1179   : > { %v12136_v56 = vadd.f32 %v6697_v1, %v6581_v61 }
0x1182   : > { %v6221_v41 = vpop.f32.mrf.mxu1 }
0x1183   : > { %v6240_v43 = vadd.f32 %v6221_v41, %v1365_v14 }
0x1185   : > { %v8469_v60 = vmul.f32 -1.442695, %v6240_v43 }
0x1187   : > { %9440 = vpow2.f32 %v8469_v60 }
0x1189   : > { %v6629_v62 = vpop.permute.xlu2 %6628 }
0x118a   : > { %v6667_v16 = vmul.f32 %v6629_v62, %v12067_v3  ;;  %v6223_v12 = vpop.f32.mrf.mxu1  ;;  %v6699_v62 = vpop.permute.xlu0 %6698 }
0x118b   : > { %v6241_v50 = vadd.f32 %v6223_v12, %v1367_v2 }
0x118c   : > { %6708 = vrot.lane.b32.xlu2 %v6667_v16, %s9624_s13  ;;  %v6582_v16 = vmul.f32 %v12006_v39, %v11849_v18 }
0x118d   : > { %v9441_v52 = vpop.eup %9440  ;;  %v8470_v30 = vmul.f32 -1.442695, %v6241_v50 }
0x118e   : > { %v6304_v21 = vadd.f32 1.0, %v9441_v52 }
0x118f   : > { %9442 = vpow2.f32 %v8470_v30  ;;  %v6583_v30 = vmul.f32 %v12016_v40, %v11836_v37 }
0x1190   : > { %9444 = vrcp.f32 %v6304_v21  ;;  %v6527_v58 = vand.u32 2147483648, %v6304_v21  ;;  %v6525_v29 = vand.u32 2147483647, %v6304_v21  ;;  %vm6521_vm15 = vweird.f32 %v6304_v21 }
0x1191   : > { %v6631_v60 = vpop.permute.xlu2 %6630 }
0x1192   : > { %v6528_v4 = vor.u32 1.1754944e-38, %v6527_v58  ;;  %vm6526_vm3 = vcmp.eq.f32.partialorder %v6525_v29, 8.507059e+37  ;;  %v6668_v18 = vmul.f32 %v6631_v60, %v12077_v7  ;;  %v6585_v58 = vmul.f32 %v12030_v51, %v11872_v20 }
0x1195   : > { %v9443_v11 = vpop.eup %9442 }
0x1196   : > { %v9445_v22 = vpop.eup %9444  ;;  %v6305_v0 = vadd.f32 1.0, %v9443_v11 }
0x1197   : > { %v6517_v46 = vmul.f32 %v9445_v22, %v6304_v21  ;;  %vm6522_vm14 = vweird.f32 %v9445_v22 }
0x1198   : > { %9446 = vrcp.f32 %v6305_v0  ;;  %vm6523_vm0 = vmor %vm6521_vm15, %vm6522_vm14  ;;  %v6542_v41 = vand.u32 2147483648, %v6305_v0  ;;  %v6540_v2 = vand.u32 2147483647, %v6305_v0  ;;  %vm6536_vm5 = vweird.f32 %v6305_v0 }
0x1199   : > { %v6627_v34 = vpop.permute.xlu1 %6626  ;;  %v6518_v15 = vsub.f32 1.0, %v6517_v46  ;;  %9448 = vtanh.f32 %v6240_v43 }
0x119a   : > { %v6666_v13 = vmul.f32 %v6627_v34, %v12056_v25  ;;  %9450 = vtanh.f32 %v12136_v56  ;;  %v6543_v52 = vor.u32 1.1754944e-38, %v6542_v41  ;;  %vm6541_vm8 = vcmp.eq.f32.partialorder %v6540_v2, 8.507059e+37 }
0x119b   : > { %v6519_v24 = vmul.f32 %v9445_v22, %v6518_v15  ;;  %9452 = vtanh.f32 %v6241_v50  ;;  %v12150_v50 = vadd.f32 %v6699_v62, %v6582_v16  ;;  %v6587_v2 = vmul.f32 %v12067_v3, %v11893_v35 }
0x119c   : > { %6706 = vrot.lane.b32.xlu1 %v6666_v13, %s9624_s13 }
0x119d   : > { %v6520_v47 = vadd.f32 %v9445_v22, %v6519_v24  ;;  %9454 = vtanh.f32 %v12150_v50 }
0x119e   : > { %v9447_v31 = vpop.eup %9446 }
0x119f   : > { %v6524_v48 = vsel %vm6523_vm0, %v9445_v22, %v6520_v47  ;;  %v6532_v26 = vmul.f32 %v9447_v31, %v6305_v0  ;;  %v9449_v63 = vpop.eup %9448  ;;  %vm6537_vm4 = vweird.f32 %v9447_v31 }
0x11a0   : > { %v6529_v32 = vsel %vm6526_vm3, %v6528_v4, %v6524_v48  ;;  %v9451_v43 = vpop.eup %9450  ;;  %vm6538_vm7 = vmor %vm6536_vm5, %vm6537_vm4 }
0x11a1   : > { %v12143_v8 = vsel %vm1543_vm6, %v6529_v32, %v9449_v63  ;;  %v6533_v14 = vsub.f32 1.0, %v6532_v26  ;;  %v9453_v11 = vpop.eup %9452  ;;  %v6584_v63 = vmul.f32 %v12024_v9, %v11866_v57 }
0x11a2   : > { %6638 = vrot.lane.b32.xlu2 %v12143_v8, %s9624_s13 }
0x11a3   : > { %v6534_v28 = vmul.f32 %v9447_v31, %v6533_v14  ;;  %v9455_v37 = vpop.eup %9454 }
0x11a4   : > { %6792 = vrot.lane.b32.xlu1 %v9451_v43, %s9624_s13 }
0x11a5   : > { %v6535_v12 = vadd.f32 %v9447_v31, %v6534_v28 }
0x11a7   : > { %v6539_v21 = vsel %vm6538_vm7, %v9447_v31, %v6535_v12  ;;  %v6589_v12 = vmul.f32 %v12089_v45, %v11905_v23 }
0x11a8   : > { %v6701_v22 = vpop.permute.xlu1 %6700  ;;  %v6544_v1 = vsel %vm6541_vm8, %v6543_v52, %v6539_v21 }
0x11a9   : > { %v12154_v61 = vadd.f32 %v6701_v22, %v6583_v30  ;;  %v12158_v46 = vsel %vm1543_vm6, %v6544_v1, %v9453_v11  ;;  %v6586_v11 = vmul.f32 %v12056_v25, %v11885_v19  ;;  %v6588_v19 = vmul.f32 %v12077_v7, %v11896_v59 }
0x11aa   : > { %6640 = vrot.lane.b32.xlu0 %v12158_v46, %s9624_s13  ;;  %v6705_v0 = vpop.permute.xlu2 %6704 }
0x11ab   : > { %9456 = vtanh.f32 %v12154_v61  ;;  %v12172_v29 = vadd.f32 %v6705_v0, %v6585_v58 }
0x11ac   : > { %6710 = vrot.lane.b32.xlu1 %v6668_v18, %s9624_s13 }
0x11ad   : > { %9458 = vtanh.f32 %v12172_v29 }
0x11b1   : > { %v6633_v34 = vpop.permute.xlu0 %6632  ;;  %v9457_v13 = vpop.eup %9456 }
0x11b2   : > { %v6669_v15 = vmul.f32 %v6633_v34, %v12089_v45  ;;  %6794 = vrot.lane.b32.xlu0 %v9455_v37, %s9624_s13  ;;  %v6635_v24 = vpop.permute.xlu2 %6634 }
0x11b3   : > { %v6670_v47 = vmul.f32 %v6635_v24, %v12118_v55  ;;  %v9459_v48 = vpop.eup %9458 }
0x11b4   : > { %6796 = vrot.lane.b32.xlu1 %v9457_v13, %s9624_s13  ;;  %6712 = vrot.lane.b32.xlu2 %v6669_v15, %s9624_s13 }
0x11b9   : > { %v6787_v31 = vpop.permute.xlu0 %6786 }
0x11ba   : > { %v6703_v4 = vpop.permute.xlu1 %6702  ;;  %6714 = vrot.lane.b32.xlu0 %v6670_v47, %s9624_s13  ;;  %v6834_v20 = vmul.f32 %v6787_v31, %v11966_v53 }
0x11bb   : > { %v12183_v43 = vadd.f32 %v6703_v4, %v6584_v63 }
0x11bd   : > { %9460 = vtanh.f32 %v12183_v43 }
0x11c1   : > { %v6637_v26 = vpop.permute.xlu0 %6636 }
0x11c2   : > { %v6671_v32 = vmul.f32 %v6637_v26, %v12106_v49  ;;  %v6789_v14 = vpop.permute.xlu1 %6788  ;;  %6800 = vrot.lane.b32.xlu0 %v9459_v48, %s9624_s13  ;;  %v6590_v26 = vmul.f32 %v12118_v55, %v11924_v6 }
0x11c3   : > { %v6835_v41 = vmul.f32 %v6789_v14, %v11972_v27  ;;  %v9461_v28 = vpop.eup %9460 }
0x11c4   : > { %6716 = vrot.lane.b32.xlu1 %v6671_v32, %s9624_s13 }
0x11c5   : > { %v6867_v60 = vpack.c.bf16 %v6835_v41, %v6834_v20 }
0x11c7   : > { %6883 = vrot.lane.b32.xlu2 %v6867_v60, %s9625_s18  ;;  %v6591_v60 = vmul.f32 %v12106_v49, %v11915_v17 }
0x11cf   : > { %6798 = vrot.lane.b32.xlu2 %v9461_v28, %s9624_s13 }
0x11e5   : > { %v6791_v35 = vpop.permute.xlu0 %6790 }
0x11e6   : > { %v6709_v57 = vpop.permute.xlu2 %6708  ;;  %v6836_v1 = vmul.f32 %v6791_v35, %v11994_v33 }
0x11e7   : > { %v12191_v62 = vadd.f32 %v6709_v57, %v6587_v2 }
0x11e9   : > { %9462 = vtanh.f32 %v12191_v62 }
0x11ef   : > { %v9463_v16 = vpop.eup %9462 }
0x11fc   : > { %v6639_v53 = vpop.permute.xlu2 %6638 }
0x11fd   : > { %v6672_v27 = vmul.f32 %v6639_v53, %v12143_v8 }
0x11ff   : > { %6718 = vrot.lane.b32.xlu2 %v6672_v27, %s9624_s13 }
0x1207   : > { %6804 = vrot.lane.b32.xlu2 %v9463_v16, %s9624_s13  ;;  %v6593_v16 = vmul.f32 %v12158_v46, %v11939_v54 }
0x120e   : > { %v6707_v52 = vpop.permute.xlu1 %6706  ;;  %v6713_v30 = vpop.permute.xlu2 %6712 }
0x120f   : > { %v12199_v21 = vadd.f32 %v6713_v30, %v6589_v12  ;;  %v12206_v37 = vadd.f32 %v6707_v52, %v6586_v11 }
0x1211   : > { %9464 = vtanh.f32 %v12199_v21 }
0x1212   : > { %9466 = vtanh.f32 %v12206_v37 }
0x1216   : > { %v6793_v22 = vpop.permute.xlu1 %6792 }
0x1217   : > { %v6837_v18 = vmul.f32 %v6793_v22, %v11985_v38  ;;  %v9465_v0 = vpop.eup %9464 }
0x1218   : > { %6808 = vrot.lane.b32.xlu2 %v9465_v0, %s9624_s13  ;;  %v9467_v58 = vpop.eup %9466 }
0x1219   : > { %v6868_v34 = vpack.c.bf16 %v6837_v18, %v6836_v1 }
0x121b   : > { %6885 = vrot.lane.b32.xlu1 %v6868_v34, %s9625_s18 }
0x121c   : > { %v6641_v23 = vpop.permute.xlu0 %6640 }
0x121d   : > { %v6673_v15 = vmul.f32 %v6641_v23, %v12158_v46 }
0x121e   : > { %v6711_v13 = vpop.permute.xlu1 %6710 }
0x121f   : > { %6720 = vrot.lane.b32.xlu0 %v6673_v15, %s9624_s13  ;;  %v12215_v38 = vadd.f32 %v6711_v13, %v6588_v19 }
0x1221   : > { %v6884_v33 = vpop.permute.xlu2 %6883  ;;  %9468 = vtanh.f32 %v12215_v38 }
0x1222   : > { %8471 = vmatmul.msk.bf16.vlgmr.msrb.gmra.mxu2 %vm1612_vm2, %v6884_v33 }
0x1223   : > { %6802 = vrot.lane.b32.xlu1 %v9467_v58, %s9624_s13 }
0x1224   : > { %v6795_v24 = vpop.permute.xlu0 %6794 }
0x1225   : > { %v6838_v31 = vmul.f32 %v6795_v24, %v12006_v39 }
0x1226   : > { %v6797_v47 = vpop.permute.xlu1 %6796 }
0x1227   : > { %v6839_v4 = vmul.f32 %v6797_v47, %v12016_v40  ;;  %v9469_v48 = vpop.eup %9468  ;;  %v12283_v47 = vld [vmem:[%s12778_s8] ss:$0 sm:$0xff] }
0x1229   : > { %v6869_v59 = vpack.c.bf16 %v6839_v4, %v6838_v31  ;;  %v6799_v14 = vpop.permute.xlu2 %6798  ;;  %v7731_v31 = vld [vmem:[%s12271_s21 + $0x8] sm:$0xff] }
0x122a   : > { %v6840_v39 = vmul.f32 %v6799_v14, %v12024_v9  ;;  %v6592_v9 = vmul.f32 %v12143_v8, %v11934_v44 }
0x122b   : > { %6806 = vrot.lane.b32.xlu1 %v9469_v48, %s9624_s13  ;;  %6887 = vrot.lane.b32.xlu0 %v6869_v59, %s9625_s18  ;;  %v7751_v59 = vmul.f32 %v12283_v47, %v7731_v31  ;;  %v7732_v48 = vld [vmem:[%s12271_s21 + $0x10] sm:$0xff] }
0x122c   : > { %v6715_v63 = vpop.permute.xlu0 %6714  ;;  %v7752_v14 = vmul.f32 %v12283_v47, %v7732_v48 }
0x122d   : > { %v12226_v32 = vadd.f32 %v6715_v63, %v6590_v26 }
0x122f   : > { %9470 = vtanh.f32 %v12226_v32 }
0x1234   : > { %v6801_v20 = vpop.permute.xlu0 %6800 }
0x1235   : > { %v9471_v41 = vpop.eup %9470  ;;  %v6841_v40 = vmul.f32 %v6801_v20, %v12030_v51  ;;  %v12868_v20 = vld [vmem:[#allocation38_spill] sm:$0xff] }
0x1236   : > { %v6717_v28 = vpop.permute.xlu1 %6716  ;;  %6810 = vrot.lane.b32.xlu1 %v9471_v41, %s9624_s13 }
0x1237   : > { %v6870_v57 = vpack.c.bf16 %v6841_v40, %v6840_v39  ;;  %v12234_v6 = vadd.f32 %v6717_v28, %v6591_v60  ;;  %v7770_v39 = vsel %vm7766_vm9, %v7751_v59, 0.0  ;;  %v7734_v40 = vld [vmem:[%s12271_s21 + $0x20] sm:$0xff]  ;;  %v7773_v28 = vsel %vm7766_vm9, %v7752_v14, 0.0 }
0x1239   : > { %9472 = vtanh.f32 %v12234_v6  ;;  %6889 = vrot.lane.b32.xlu0 %v6870_v57, %s9625_s18  ;;  %v7754_v57 = vmul.f32 %v12283_v47, %v7734_v40 }
0x123f   : > { %v9473_v2 = vpop.eup %9472 }
0x1240   : > { %6812 = vrot.lane.b32.xlu2 %v9473_v2, %s9624_s13  ;;  %v7735_v2 = vld [vmem:[%s12271_s21 + $0x28] sm:$0xff] }
0x1259   : > { %v6719_v51 = vpop.permute.xlu2 %6718 }
0x125a   : > { %v12241_v53 = vadd.f32 %v6719_v51, %v6592_v9  ;;  %v7755_v51 = vmul.f32 %v12283_v47, %v7735_v2 }
0x125c   : > { %9474 = vtanh.f32 %v12241_v53 }
0x1261   : > { %v6805_v30 = vpop.permute.xlu2 %6804 }
0x1262   : > { %v9475_v17 = vpop.eup %9474  ;;  %v6843_v35 = vmul.f32 %v6805_v30, %v12067_v3  ;;  %v8579_v3 = vld [vmem:[%s12777_s7] ss:$0 sm:$0xff]  ;;  %v7782_v30 = vsel %vm7766_vm9, %v7755_v51, 0.0 }
0x1263   : > { %6814 = vrot.lane.b32.xlu1 %v9475_v17, %s9624_s13 }
0x1272   : > { %v6809_v18 = vpop.permute.xlu2 %6808 }
0x1273   : > { %v6845_v34 = vmul.f32 %v6809_v18, %v12089_v45  ;;  %v7740_v18 = vld [vmem:[%s12271_s21 + $0x50] sm:$0xff] }
0x128d   : > { %v6886_v27 = vpop.permute.xlu1 %6885 }
0x128e   : > { %8472 = vmatmul.msk.bf16.gmra.mxu2 %vm1612_vm2, %v6886_v27  ;;  %v7779_v27 = vsel %vm7766_vm9, %v7754_v57, 0.0 }
0x1291   : > { %v6721_v12 = vpop.permute.xlu0 %6720 }
0x1292   : > { %v12248_v52 = vadd.f32 %v6721_v12, %v6593_v16  ;;  %v7737_v16 = vld [vmem:[%s12271_s21 + $0x38] sm:$0xff] }
0x1294   : > { %9476 = vtanh.f32 %v12248_v52 }
0x1295   : > { %v6803_v44 = vpop.permute.xlu1 %6802 }
0x1296   : > { %v6842_v11 = vmul.f32 %v6803_v44, %v12056_v25  ;;  %v7757_v44 = vmul.f32 %v12283_v47, %v7737_v16 }
0x1298   : > { %v6871_v22 = vpack.c.bf16 %v6843_v35, %v6842_v11  ;;  %v7738_v35 = vld [vmem:[%s12271_s21 + $0x40] sm:$0xff] }
0x1299   : > { %v7758_v11 = vmul.f32 %v12283_v47, %v7738_v35 }
0x129a   : > { %v9477_v1 = vpop.eup %9476  ;;  %6891 = vrot.lane.b32.xlu0 %v6871_v22, %s9625_s18  ;;  %v6813_v25 = vpop.permute.xlu2 %6812 }
0x129b   : > { %6816 = vrot.lane.b32.xlu2 %v9477_v1, %s9624_s13  ;;  %v6847_v13 = vmul.f32 %v6813_v25, %v12106_v49  ;;  %v12276_v49 = vld [vmem:[%s12776_s6] ss:$0 sm:$0xff]  ;;  %v7788_v1 = vsel %vm7766_vm9, %v7757_v44, 0.0 }
0x129c   : > { %v1372_v41 = vadd.f32 %v12276_v49, %v12868_v20 }
0x129d   : > { %v6807_v0 = vpop.permute.xlu1 %6806  ;;  %v6888_v54 = vpop.permute.xlu0 %6887 }
0x129e   : > { %v6844_v23 = vmul.f32 %v6807_v0, %v12077_v7  ;;  %8473 = vmatmul.msk.bf16.gmra.mxu2 %vm1612_vm2, %v6888_v54  ;;  %v7791_v54 = vsel %vm7766_vm9, %v7758_v11, 0.0  ;;  %v7730_v11 = vld [vmem:[%s12271_s21] sm:$0xff] }
0x12a0   : > { %v6872_v15 = vpack.c.bf16 %v6845_v34, %v6844_v23  ;;  %v7760_v34 = vmul.f32 %v12283_v47, %v7740_v18  ;;  %v7741_v23 = vld [vmem:[%s12271_s21 + $0x58] sm:$0xff] }
0x12a1   : > { %v7761_v25 = vmul.f32 %v12283_v47, %v7741_v23 }
0x12a2   : > { %6893 = vrot.lane.b32.xlu0 %v6872_v15, %s9625_s18 }
0x12a5   : > { %v6932_v7 = vpop.f32.mrf.mxu2 }
0x12a8   : > { %v6811_v19 = vpop.permute.xlu1 %6810 }
0x12a9   : > { %v6846_v33 = vmul.f32 %v6811_v19, %v12118_v55  ;;  %v12867_v55 = vld [vmem:[#allocation37_spill] sm:$0xff] }
0x12aa   : > { %7599 = vrot.lane.b32.xlu0 %v8579_v3, %s9625_s18  ;;  %v1370_v24 = vadd.f32 %v12276_v49, %v12867_v55  ;;  %v7797_v3 = vsel %vm7766_vm9, %v7760_v34, 0.0 }
0x12ab   : > { %v6873_v45 = vpack.c.bf16 %v6847_v13, %v6846_v33  ;;  %v6890_v58 = vpop.permute.xlu0 %6889  ;;  %v7800_v13 = vsel %vm7766_vm9, %v7761_v25, 0.0  ;;  %v7733_v25 = vld [vmem:[%s12271_s21 + $0x18] sm:$0xff] }
0x12ac   : > { %v6972_v4 = vadd.f32 %v6932_v7, %v1370_v24 }
0x12ad   : > { %6895 = vrot.lane.b32.xlu1 %v6873_v45, %s9625_s18  ;;  %v6934_v63 = vpop.f32.mrf.mxu2 }
0x12ae   : > { %8474 = vmatmul.msk.bf16.gmra.mxu2 %vm1612_vm2, %v6890_v58  ;;  %v8479_v26 = vmul.f32 -1.442695, %v6972_v4  ;;  %v12293_v60 = vadd.f32 %v6934_v63, %v1372_v41 }
0x12b0   : > { %9478 = vpow2.f32 %v8479_v26  ;;  %v8480_v9 = vmul.f32 -1.442695, %v12293_v60 }
0x12b2   : > { %9480 = vpow2.f32 %v8480_v9 }
0x12b6   : > { %v9479_v17 = vpop.eup %9478 }
0x12b7   : > { %v7036_v12 = vadd.f32 1.0, %v9479_v17 }
0x12b8   : > { %v9481_v22 = vpop.eup %9480 }
0x12b9   : > { %9482 = vrcp.f32 %v7036_v12  ;;  %v7037_v0 = vadd.f32 1.0, %v9481_v22  ;;  %v7063_v63 = vand.u32 2147483648, %v7036_v12  ;;  %vm7057_vm11 = vweird.f32 %v7036_v12 }
0x12ba   : > { %v7061_v14 = vand.u32 2147483647, %v7036_v12 }
0x12bb   : > { %9484 = vrcp.f32 %v7037_v0  ;;  %v7064_v40 = vor.u32 1.1754944e-38, %v7063_v63  ;;  %v7078_v9 = vand.u32 2147483648, %v7037_v0  ;;  %vm7072_vm14 = vweird.f32 %v7037_v0 }
0x12bc   : > { %9486 = vtanh.f32 %v6972_v4  ;;  %vm7062_vm1 = vcmp.eq.f32.partialorder %v7061_v14, 8.507059e+37 }
0x12bd   : > { %9488 = vtanh.f32 %v12293_v60  ;;  %v7079_v51 = vor.u32 1.1754944e-38, %v7078_v9 }
0x12bf   : > { %v9483_v15 = vpop.eup %9482 }
0x12c0   : > { %v7053_v19 = vmul.f32 %v9483_v15, %v7036_v12  ;;  %vm7058_vm10 = vweird.f32 %v9483_v15 }
0x12c1   : > { %v9485_v45 = vpop.eup %9484  ;;  %vm7059_vm12 = vmor %vm7057_vm11, %vm7058_vm10 }
0x12c2   : > { %v7054_v33 = vsub.f32 1.0, %v7053_v19  ;;  %v7068_v7 = vmul.f32 %v9485_v45, %v7037_v0  ;;  %vm7073_vm13 = vweird.f32 %v9485_v45  ;;  %v9487_v2 = vpop.eup %9486 }
0x12c3   : > { %vm7074_vm15 = vmor %vm7072_vm14, %vm7073_vm13 }
0x12c4   : > { %v7055_v58 = vmul.f32 %v9483_v15, %v7054_v33  ;;  %v7069_v59 = vsub.f32 1.0, %v7068_v7 }
0x12c6   : > { %v7056_v31 = vadd.f32 %v9483_v15, %v7055_v58  ;;  %v7753_v58 = vmul.f32 %v12283_v47, %v7733_v25 }
0x12c8   : > { %v7060_v41 = vsel %vm7059_vm12, %v9483_v15, %v7056_v31 }
0x12d4   : > { %7771 = vadd.xlane.f32.xlu0 %v7770_v39  ;;  %v7070_v39 = vmul.f32 %v9485_v45, %v7069_v59  ;;  %v7736_v59 = vld [vmem:[%s12271_s21 + $0x30] sm:$0xff] }
0x12d5   : > { %v6815_v55 = vpop.permute.xlu1 %6814 }
0x12d6   : > { %v6848_v48 = vmul.f32 %v6815_v55, %v12143_v8  ;;  %v7071_v57 = vadd.f32 %v9485_v45, %v7070_v39 }
0x12d7   : > { %7774 = vadd.xlane.f32.xlu1 %v7773_v28  ;;  %v7065_v28 = vsel %vm7062_vm1, %v7064_v40, %v7060_v41  ;;  %v7756_v41 = vmul.f32 %v12283_v47, %v7736_v59 }
0x12d8   : > { %v12319_v8 = vsel %vm1543_vm6, %v7065_v28, %v9487_v2  ;;  %v7075_v4 = vsel %vm7074_vm15, %v9485_v45, %v7071_v57  ;;  %v12873_v2 = vld [vmem:[#allocation43_spill] sm:$0xff] }
0x12d9   : > { %v1385_v9 = vadd.f32 %v12276_v49, %v12873_v2 }
0x12dc   : > { %7780 = vadd.xlane.f32.xlu0 %v7779_v27  ;;  %v9489_v27 = vpop.eup %9488 }
0x12df   : > { %7783 = vadd.xlane.f32.xlu1 %v7782_v30  ;;  %v12869_v30 = vld [vmem:[#allocation40_spill] sm:$0xff] }
0x12e0   : > { %v1377_v44 = vadd.f32 %v12276_v49, %v12869_v30 }
0x12e4   : > { %7789 = vadd.xlane.f32.xlu0 %v7788_v1 }
0x12e7   : > { %7792 = vadd.xlane.f32.xlu1 %v7791_v54  ;;  %v12870_v54 = vld [vmem:[#allocation41_spill] sm:$0xff] }
0x12e8   : > { %v1380_v34 = vadd.f32 %v12276_v49, %v12870_v54 }
0x12ec   : > { %7798 = vadd.xlane.f32.xlu0 %v7797_v3 }
0x12ef   : > { %7801 = vadd.xlane.f32.xlu1 %v7800_v13  ;;  %v12871_v13 = vld [vmem:[#allocation39_spill] sm:$0xff] }
0x12f0   : > { %v1375_v33 = vadd.f32 %v12276_v49, %v12871_v13 }
0x12f5   : > { %v6817_v24 = vpop.permute.xlu2 %6816 }
0x12f6   : > { %v6849_v26 = vmul.f32 %v6817_v24, %v12158_v46  ;;  %v7076_v46 = vand.u32 2147483647, %v7037_v0  ;;  %v7750_v0 = vmul.f32 %v12283_v47, %v7730_v11  ;;  %v7776_v24 = vsel %vm7766_vm9, %v7753_v58, 0.0 }
0x12f8   : > { %v6874_v20 = vpack.c.bf16 %v6849_v26, %v6848_v48  ;;  %vm7077_vm0 = vcmp.eq.f32.partialorder %v7076_v46, 8.507059e+37  ;;  %v7767_v23 = vsel %vm7766_vm9, %v7750_v0, 0.0  ;;  %v12872_v26 = vld [vmem:[#allocation42_spill] sm:$0xff]  ;;  %v7785_v46 = vsel %vm7766_vm9, %v7756_v41, 0.0 }
0x12f9   : > { %v7080_v17 = vsel %vm7077_vm0, %v7079_v51, %v7075_v4  ;;  %v1382_v63 = vadd.f32 %v12276_v49, %v12872_v26 }
0x12fa   : > { %6897 = vrot.lane.b32.xlu2 %v6874_v20, %s9625_s18  ;;  %v12326_v16 = vsel %vm1543_vm6, %v7080_v17, %v9489_v27 }
0x1300   : > { %7356 = vrot.lane.b32.xlu0 %v12319_v8, %s9624_s13 }
0x1308   : > { %7358 = vrot.lane.b32.xlu1 %v12326_v16, %s9624_s13 }
0x130c   : > { %v6892_v12 = vpop.permute.xlu0 %6891 }
0x130d   : > { %8475 = vmatmul.msk.bf16.gmra.mxu2 %vm1612_vm2, %v6892_v12  ;;  %v7739_v12 = vld [vmem:[%s12271_s21 + $0x48] sm:$0xff] }
0x1311   : > { %v6937_v60 = vpop.f32.mrf.mxu2 }
0x1312   : > { %v12343_v55 = vadd.f32 %v6937_v60, %v1375_v33 }
0x1314   : > { %v6894_v1 = vpop.permute.xlu0 %6893  ;;  %v8481_v48 = vmul.f32 -1.442695, %v12343_v55 }
0x1319   : > { %v6939_v35 = vpop.f32.mrf.mxu2 }
0x131a   : > { %v6975_v22 = vadd.f32 %v6939_v35, %v1377_v44 }
0x131c   : > { %v8482_v18 = vmul.f32 -1.442695, %v6975_v22 }
0x131d   : > { %8476 = vmatmul.msk.bf16.gmra.mxu2 %vm1612_vm2, %v6894_v1 }
0x131e   : > { %9490 = vpow2.f32 %v8482_v18  ;;  %v7759_v18 = vmul.f32 %v12283_v47, %v7739_v12 }
0x131f   : > { %v6896_v20 = vpop.permute.xlu1 %6895 }
0x1321   : > { %v6942_v15 = vpop.f32.mrf.mxu2 }
0x1322   : > { %v6976_v3 = vadd.f32 %v6942_v15, %v1380_v34 }
0x1323   : > { %7768 = vadd.xlane.f32.xlu2 %v7767_v23 }
0x1324   : > { %v9491_v19 = vpop.eup %9490  ;;  %v8483_v45 = vmul.f32 -1.442695, %v6976_v3 }
0x1325   : > { %v7039_v7 = vadd.f32 1.0, %v9491_v19  ;;  %v12874_v19 = vld [vmem:[#allocation44_spill] sm:$0xff] }
0x1326   : > { %9492 = vpow2.f32 %v8483_v45  ;;  %v1387_v13 = vadd.f32 %v12276_v49, %v12874_v19  ;;  %v7794_v45 = vsel %vm7766_vm9, %v7759_v18, 0.0 }
0x1327   : > { %9494 = vrcp.f32 %v7039_v7  ;;  %v7108_v27 = vand.u32 2147483648, %v7039_v7  ;;  %v7106_v44 = vand.u32 2147483647, %v7039_v7  ;;  %vm7102_vm4 = vweird.f32 %v7039_v7 }
0x1328   : > { %9496 = vpow2.f32 %v8481_v48 }
0x1329   : > { %v6944_v31 = vpop.f32.mrf.mxu2  ;;  %vm7107_vm7 = vcmp.eq.f32.partialorder %v7106_v44, 8.507059e+37 }
0x132a   : > { %v12351_v28 = vadd.f32 %v6944_v31, %v1382_v63  ;;  %v7742_v31 = vld [vmem:[%s12271_s21 + $0x60] sm:$0xff] }
0x132b   : > { %7777 = vadd.xlane.f32.xlu2 %v7776_v24 }
0x132c   : > { %v9493_v14 = vpop.eup %9492  ;;  %v8484_v51 = vmul.f32 -1.442695, %v12351_v28 }
0x132d   : > { %v9495_v39 = vpop.eup %9494  ;;  %v7040_v40 = vadd.f32 1.0, %v9493_v14  ;;  %8477 = vmatmul.msk.bf16.gmra.mxu2 %vm1612_vm2, %v6896_v20 }
0x132e   : > { %v7098_v57 = vmul.f32 %v9495_v39, %v7039_v7  ;;  %vm7103_vm3 = vweird.f32 %v9495_v39  ;;  %v9497_v35 = vpop.eup %9496 }
0x132f   : > { %9498 = vrcp.f32 %v7040_v40  ;;  %vm7104_vm5 = vmor %vm7102_vm4, %vm7103_vm3  ;;  %v12363_v15 = vadd.f32 1.0, %v9497_v35  ;;  %v7123_v24 = vand.u32 2147483648, %v7040_v40  ;;  %v7121_v26 = vand.u32 2147483647, %v7040_v40 }
0x1330   : > { %v7099_v4 = vsub.f32 1.0, %v7098_v57  ;;  %9500 = vtanh.f32 %v6975_v22  ;;  %v7109_v22 = vor.u32 1.1754944e-38, %v7108_v27  ;;  %vm7117_vm10 = vweird.f32 %v7040_v40 }
0x1331   : > { %v6947_v17 = vpop.f32.mrf.mxu2  ;;  %9502 = vpow2.f32 %v8484_v51  ;;  %v7124_v57 = vor.u32 1.1754944e-38, %v7123_v24  ;;  %vm7122_vm12 = vcmp.eq.f32.partialorder %v7121_v26, 8.507059e+37  ;;  %vm7087_vm3 = vweird.f32 %v12363_v15 }
0x1332   : > { %v12359_v60 = vadd.f32 %v6947_v17, %v1385_v9  ;;  %v7100_v30 = vmul.f32 %v9495_v39, %v7099_v4 }
0x1333   : > { %7786 = vadd.xlane.f32.xlu2 %v7785_v46 }
0x1334   : > { %v8485_v11 = vmul.f32 -1.442695, %v12359_v60  ;;  %v7101_v1 = vadd.f32 %v9495_v39, %v7100_v30 }
0x1335   : > { %v9499_v0 = vpop.eup %9498 }
0x1336   : > { %9504 = vpow2.f32 %v8485_v11  ;;  %v7105_v54 = vsel %vm7104_vm5, %v9495_v39, %v7101_v1  ;;  %v7113_v34 = vmul.f32 %v9499_v0, %v7040_v40  ;;  %v9501_v23 = vpop.eup %9500  ;;  %vm7118_vm8 = vweird.f32 %v9499_v0 }
0x1337   : > { %v7110_v25 = vsel %vm7107_vm7, %v7109_v22, %v7105_v54  ;;  %9506 = vtanh.f32 %v6976_v3  ;;  %v9503_v63 = vpop.eup %9502  ;;  %v7762_v3 = vmul.f32 %v12283_v47, %v7742_v31  ;;  %vm7119_vm11 = vmor %vm7117_vm10, %vm7118_vm8 }
0x1338   : > { %v12369_v33 = vsel %vm1543_vm6, %v7110_v25, %v9501_v23  ;;  %v7114_v58 = vsub.f32 1.0, %v7113_v34  ;;  %9508 = vrcp.f32 %v12363_v15  ;;  %v12377_v46 = vadd.f32 1.0, %v9503_v63 }
0x1339   : > { %7362 = vrot.lane.b32.xlu0 %v12369_v33, %s9624_s13  ;;  %v6949_v7 = vpop.f32.mrf.mxu2  ;;  %v7803_v17 = vsel %vm7766_vm9, %v7762_v3, 0.0  ;;  %v7093_v63 = vand.u32 2147483648, %v12363_v15 }
0x133a   : > { %v6979_v59 = vadd.f32 %v6949_v7, %v1387_v13  ;;  %v7115_v48 = vmul.f32 %v9499_v0, %v7114_v58 }
0x133b   : > { %7795 = vadd.xlane.f32.xlu2 %v7794_v45 }
0x133c   : > { %v9505_v14 = vpop.eup %9504  ;;  %v8486_v20 = vmul.f32 -1.442695, %v6979_v59  ;;  %v7116_v41 = vadd.f32 %v9499_v0, %v7115_v48 }
0x133d   : > { %v7042_v39 = vadd.f32 1.0, %v9505_v14  ;;  %v9507_v9 = vpop.eup %9506 }
0x133e   : > { %9510 = vpow2.f32 %v8486_v20  ;;  %v7120_v2 = vsel %vm7119_vm11, %v9499_v0, %v7116_v41  ;;  %v9509_v40 = vpop.eup %9508  ;;  %v7091_v41 = vand.u32 2147483647, %v12363_v15 }
0x133f   : > { %9512 = vrcp.f32 %v7042_v39  ;;  %v7125_v4 = vsel %vm7122_vm12, %v7124_v57, %v7120_v2  ;;  %v7083_v27 = vmul.f32 %v9509_v40, %v12363_v15  ;;  %v7153_v18 = vand.u32 2147483648, %v7042_v39 }
0x1340   : > { %v12381_v51 = vsel %vm1543_vm6, %v7125_v4, %v9507_v9  ;;  %9514 = vrcp.f32 %v12377_v46  ;;  %v7151_v22 = vand.u32 2147483647, %v7042_v39  ;;  %vm7147_vm13 = vweird.f32 %v7042_v39 }
0x1341   : > { %7364 = vrot.lane.b32.xlu1 %v12381_v51, %s9624_s13  ;;  %v7084_v11 = vsub.f32 1.0, %v7083_v27  ;;  %v7154_v19 = vor.u32 1.1754944e-38, %v7153_v18  ;;  %vm7088_vm0 = vweird.f32 %v9509_v40  ;;  %v7094_v15 = vor.u32 1.1754944e-38, %v7093_v63 }
0x1342   : > { %vm7152_vm15 = vcmp.eq.f32.partialorder %v7151_v22, 8.507059e+37  ;;  %vm12404_vm5 = vmor %vm7087_vm3, %vm7088_vm0  ;;  %vm7092_vm11 = vcmp.eq.f32.partialorder %v7091_v41, 8.507059e+37 }
0x1343   : > { %7804 = vadd.xlane.f32.xlu2 %v7803_v17  ;;  %v7085_v34 = vmul.f32 %v9509_v40, %v7084_v11 }
0x1344   : > { %v9511_v47 = vpop.eup %9510 }
0x1345   : > { %v9513_v12 = vpop.eup %9512  ;;  %v7043_v30 = vadd.f32 1.0, %v9511_v47  ;;  %v7086_v31 = vadd.f32 %v9509_v40, %v7085_v34 }
0x1346   : > { %v7143_v44 = vmul.f32 %v9513_v12, %v7042_v39  ;;  %v12388_v1 = vpop.eup %9514  ;;  %vm7148_vm1 = vweird.f32 %v9513_v12 }
0x1347   : > { %9516 = vrcp.f32 %v7043_v30  ;;  %v7128_v23 = vmul.f32 %v12388_v1, %v12377_v46  ;;  %vm7149_vm14 = vmor %vm7147_vm13, %vm7148_vm1  ;;  %v7168_v26 = vand.u32 2147483648, %v7043_v30  ;;  %v7166_v20 = vand.u32 2147483647, %v7043_v30 }
0x1348   : > { %v7144_v35 = vsub.f32 1.0, %v7143_v44  ;;  %9518 = vtanh.f32 %v12359_v60  ;;  %vm7162_vm7 = vweird.f32 %v7043_v30  ;;  %v7090_v57 = vsel %vm12404_vm5, %v9509_v40, %v7086_v31  ;;  %v12879_v31 = vld [vmem:[#allocation47_spill] sm:$0xff] }
0x1349   : > { %v7129_v48 = vsub.f32 1.0, %v7128_v23  ;;  %9520 = vtanh.f32 %v6979_v59  ;;  %v7169_v9 = vor.u32 1.1754944e-38, %v7168_v26  ;;  %vm7167_vm10 = vcmp.eq.f32.partialorder %v7166_v20, 8.507059e+37 }
0x134a   : > { %v7145_v0 = vmul.f32 %v9513_v12, %v7144_v35  ;;  %9522 = vtanh.f32 %v12343_v55  ;;  %v7095_v47 = vsel %vm7092_vm11, %v7094_v15, %v7090_v57  ;;  %vm7133_vm12 = vweird.f32 %v12388_v1 }
0x134b   : > { %v7130_v2 = vmul.f32 %v12388_v1, %v7129_v48  ;;  %vm7132_vm1 = vweird.f32 %v12377_v46  ;;  %v7136_v35 = vand.u32 2147483647, %v12377_v46  ;;  %9524 = vtanh.f32 %v12351_v28 }
0x134c   : > { %v7146_v54 = vadd.f32 %v9513_v12, %v7145_v0  ;;  %vm7134_vm13 = vmor %vm7132_vm1, %vm7133_vm12  ;;  %v1395_v48 = vadd.f32 %v12276_v49, %v12879_v31 }
0x134d   : > { %v9517_v25 = vpop.eup %9516 }
0x134e   : > { %v7150_v13 = vsel %vm7149_vm14, %v9513_v12, %v7146_v54  ;;  %v7158_v45 = vmul.f32 %v9517_v25, %v7043_v30  ;;  %v9519_v58 = vpop.eup %9518  ;;  %vm7163_vm4 = vweird.f32 %v9517_v25  ;;  %v7131_v12 = vadd.f32 %v12388_v1, %v7130_v2 }
0x134f   : > { %v7155_v7 = vsel %vm7152_vm15, %v7154_v19, %v7150_v13  ;;  %vm7164_vm8 = vmor %vm7162_vm7, %vm7163_vm4  ;;  %v9521_v55 = vpop.eup %9520  ;;  %v7138_v30 = vand.u32 2147483648, %v12377_v46  ;;  %vm7137_vm14 = vcmp.eq.f32.partialorder %v7136_v35, 8.507059e+37  ;;  %v12877_v46 = vld [vmem:[#allocation45_spill] sm:$0xff]  ;;  %v12878_v19 = vld [vmem:[#allocation46_spill] sm:$0xff] }
0x1350   : > { %v12395_v60 = vsel %vm1543_vm6, %v7155_v7, %v9519_v58  ;;  %v7159_v24 = vsub.f32 1.0, %v7158_v45  ;;  %v9523_v40 = vpop.eup %9522  ;;  %v7135_v11 = vsel %vm7134_vm13, %v12388_v1, %v7131_v12  ;;  %v1390_v28 = vadd.f32 %v12276_v49, %v12877_v46 }
0x1351   : > { %7368 = vrot.lane.b32.xlu0 %v12395_v60, %s9624_s13  ;;  %v12423_v44 = vsel %vm1543_vm6, %v7095_v47, %v9523_v40  ;;  %v7139_v18 = vor.u32 1.1754944e-38, %v7138_v30  ;;  %v9525_v22 = vpop.eup %9524  ;;  %v1392_v1 = vadd.f32 %v12276_v49, %v12878_v19 }
0x1352   : > { %v7160_v14 = vmul.f32 %v9517_v25, %v7159_v24 }
0x1353   : > { %v7140_v0 = vsel %vm7137_vm14, %v7139_v18, %v7135_v11 }
0x1354   : > { %v6898_v59 = vpop.permute.xlu2 %6897  ;;  %v7161_v39 = vadd.f32 %v9517_v25, %v7160_v14  ;;  %v12433_v54 = vsel %vm1543_vm6, %v7140_v0, %v9525_v22 }
0x1355   : > { %8478 = vmatmul.msk.bf16.gmra.mxu2 %vm1612_vm2, %v6898_v59 }
0x1356   : > { %v7165_v4 = vsel %vm7164_vm8, %v9517_v25, %v7161_v39  ;;  %v12880_v39 = vld [vmem:[#allocation48_spill] sm:$0xff] }
0x1357   : > { %v7170_v17 = vsel %vm7167_vm10, %v7169_v9, %v7165_v4  ;;  %v1397_v57 = vadd.f32 %v12276_v49, %v12880_v39  ;;  %v12448_v4 = vpop.permute.xlu0 %7599 }
0x1358   : > { %v12414_v27 = vsel %vm1543_vm6, %v7170_v17, %v9521_v55 }
0x1359   : > { %7370 = vrot.lane.b32.xlu1 %v12414_v27, %s9624_s13 }
0x135b   : > { %7360 = vrot.lane.b32.xlu2 %v12423_v44, %s9624_s13 }
0x1363   : > { %7366 = vrot.lane.b32.xlu2 %v12433_v54, %s9624_s13 }
0x1390   : > { %v6952_v34 = vpop.f32.mrf.mxu2 }
0x1391   : > { %v6980_v23 = vadd.f32 %v6952_v34, %v1390_v28  ;;  %v12881_v34 = vld [vmem:[#allocation49_spill] sm:$0xff] }
0x1393   : > { %v8487_v25 = vmul.f32 -1.442695, %v6980_v23 }
0x1395   : > { %9526 = vpow2.f32 %v8487_v25 }
0x1398   : > { %v6954_v13 = vpop.f32.mrf.mxu2 }
0x1399   : > { %v6981_v45 = vadd.f32 %v6954_v13, %v1392_v1 }
0x139b   : > { %v9527_v58 = vpop.eup %9526  ;;  %v8488_v7 = vmul.f32 -1.442695, %v6981_v45 }
0x139c   : > { %v7044_v24 = vadd.f32 1.0, %v9527_v58 }
0x139d   : > { %9528 = vpow2.f32 %v8488_v7 }
0x139e   : > { %9530 = vrcp.f32 %v7044_v24  ;;  %v7183_v15 = vand.u32 2147483648, %v7044_v24  ;;  %v7181_v47 = vand.u32 2147483647, %v7044_v24  ;;  %vm7177_vm0 = vweird.f32 %v7044_v24 }
0x13a0   : > { %v6957_v26 = vpop.f32.mrf.mxu2  ;;  %v7184_v18 = vor.u32 1.1754944e-38, %v7183_v15  ;;  %vm7182_vm4 = vcmp.eq.f32.partialorder %v7181_v47, 8.507059e+37 }
0x13a1   : > { %v12443_v63 = vadd.f32 %v6957_v26, %v1395_v48  ;;  %v12463_v48 = vpop.xlane.xlu0 %7771 }
0x13a3   : > { %v9529_v14 = vpop.eup %9528  ;;  %v8489_v20 = vmul.f32 -1.442695, %v12443_v63 }
0x13a4   : > { %v9531_v41 = vpop.eup %9530  ;;  %v7045_v3 = vadd.f32 1.0, %v9529_v14 }
0x13a5   : > { %9532 = vpow2.f32 %v8489_v20  ;;  %v7173_v59 = vmul.f32 %v9531_v41, %v7044_v24  ;;  %vm7178_vm15 = vweird.f32 %v9531_v41 }
0x13a6   : > { %9534 = vrcp.f32 %v7045_v3  ;;  %vm7179_vm3 = vmor %vm7177_vm0, %vm7178_vm15  ;;  %v7198_v13 = vand.u32 2147483648, %v7045_v3  ;;  %v7196_v24 = vand.u32 2147483647, %v7045_v3  ;;  %vm7192_vm7 = vweird.f32 %v7045_v3 }
0x13a7   : > { %v7174_v2 = vsub.f32 1.0, %v7173_v59  ;;  %9536 = vtanh.f32 %v6980_v23  ;;  %v1400_v23 = vadd.f32 %v12276_v49, %v12881_v34 }
0x13a8   : > { %v6959_v9 = vpop.f32.mrf.mxu2  ;;  %vm7197_vm10 = vcmp.eq.f32.partialorder %v7196_v24, 8.507059e+37 }
0x13a9   : > { %v12450_v55 = vadd.f32 %v6959_v9, %v1397_v57  ;;  %v7175_v17 = vmul.f32 %v9531_v41, %v7174_v2  ;;  %v12882_v9 = vld [vmem:[#allocation50_spill] sm:$0xff] }
0x13aa   : > { %v1402_v15 = vadd.f32 %v12276_v49, %v12882_v9 }
0x13ab   : > { %v9533_v12 = vpop.eup %9532  ;;  %v8490_v40 = vmul.f32 -1.442695, %v12450_v55  ;;  %v7176_v30 = vadd.f32 %v9531_v41, %v7175_v17 }
0x13ac   : > { %v9535_v35 = vpop.eup %9534  ;;  %v7046_v11 = vadd.f32 1.0, %v9533_v12 }
0x13ad   : > { %9538 = vpow2.f32 %v8490_v40  ;;  %v7180_v0 = vsel %vm7179_vm3, %v9531_v41, %v7176_v30  ;;  %v7188_v22 = vmul.f32 %v9535_v35, %v7045_v3  ;;  %v9537_v46 = vpop.eup %9536  ;;  %vm7193_vm5 = vweird.f32 %v9535_v35 }
0x13ae   : > { %9540 = vrcp.f32 %v7046_v11  ;;  %v7185_v28 = vsel %vm7182_vm4, %v7184_v18, %v7180_v0  ;;  %vm7194_vm8 = vmor %vm7192_vm7, %vm7193_vm5  ;;  %v7213_v12 = vand.u32 2147483648, %v7046_v11  ;;  %vm7207_vm12 = vweird.f32 %v7046_v11 }
0x13af   : > { %v12457_v25 = vsel %vm1543_vm6, %v7185_v28, %v9537_v46  ;;  %v7189_v19 = vsub.f32 1.0, %v7188_v22  ;;  %9542 = vtanh.f32 %v6981_v45  ;;  %v7199_v45 = vor.u32 1.1754944e-38, %v7198_v13 }
0x13b0   : > { %7372 = vrot.lane.b32.xlu2 %v12457_v25, %s9624_s13  ;;  %v6962_v1 = vpop.f32.mrf.mxu2  ;;  %v7214_v34 = vor.u32 1.1754944e-38, %v7213_v12 }
0x13b1   : > { %v12461_v58 = vadd.f32 %v6962_v1, %v1400_v23  ;;  %v7190_v7 = vmul.f32 %v9535_v35, %v7189_v19 }
0x13b3   : > { %v9539_v31 = vpop.eup %9538  ;;  %v8491_v26 = vmul.f32 -1.442695, %v12461_v58  ;;  %v7191_v14 = vadd.f32 %v9535_v35, %v7190_v7 }
0x13b4   : > { %v9541_v20 = vpop.eup %9540  ;;  %v7047_v41 = vadd.f32 1.0, %v9539_v31 }
0x13b5   : > { %9544 = vpow2.f32 %v8491_v26  ;;  %v7195_v59 = vsel %vm7194_vm8, %v9535_v35, %v7191_v14  ;;  %v7203_v39 = vmul.f32 %v9541_v20, %v7046_v11  ;;  %v9543_v57 = vpop.eup %9542  ;;  %vm7208_vm11 = vweird.f32 %v9541_v20 }
0x13b6   : > { %9546 = vrcp.f32 %v7047_v41  ;;  %v7200_v2 = vsel %vm7197_vm10, %v7199_v45, %v7195_v59  ;;  %v7211_v35 = vand.u32 2147483647, %v7046_v11  ;;  %vm7209_vm1 = vmor %vm7207_vm12, %vm7208_vm11  ;;  %v7228_v11 = vand.u32 2147483648, %v7047_v41 }
0x13b7   : > { %v12470_v17 = vsel %vm1543_vm6, %v7200_v2, %v9543_v57  ;;  %v7204_v47 = vsub.f32 1.0, %v7203_v39  ;;  %9548 = vtanh.f32 %v12443_v63  ;;  %v12478_v63 = vpop.xlane.xlu0 %7780  ;;  %v7226_v26 = vand.u32 2147483647, %v7047_v41 }
0x13b8   : > { %7374 = vrot.lane.b32.xlu0 %v12470_v17, %s9624_s13  ;;  %v6964_v3 = vpop.f32.mrf.mxu2  ;;  %vm7212_vm13 = vcmp.eq.f32.partialorder %v7211_v35, 8.507059e+37  ;;  %vm7222_vm15 = vweird.f32 %v7047_v41  ;;  %v7229_v39 = vor.u32 1.1754944e-38, %v7228_v11 }
0x13b9   : > { %v12475_v40 = vadd.f32 %v6964_v3, %v1402_v15  ;;  %v7205_v30 = vmul.f32 %v9541_v20, %v7204_v47  ;;  %vm7227_vm3 = vcmp.eq.f32.partialorder %v7226_v26, 8.507059e+37 }
0x13bb   : > { %v9545_v18 = vpop.eup %9544  ;;  %v8492_v0 = vmul.f32 -1.442695, %v12475_v40  ;;  %v7206_v22 = vadd.f32 %v9541_v20, %v7205_v30 }
0x13bc   : > { %v9547_v46 = vpop.eup %9546  ;;  %v7048_v28 = vadd.f32 1.0, %v9545_v18 }
0x13bd   : > { %9550 = vpow2.f32 %v8492_v0  ;;  %v7210_v23 = vsel %vm7209_vm1, %v9541_v20, %v7206_v22  ;;  %v7218_v19 = vmul.f32 %v9547_v46, %v7047_v41  ;;  %v9549_v1 = vpop.eup %9548  ;;  %vm7223_vm14 = vweird.f32 %v9547_v46 }
0x13be   : > { %9552 = vrcp.f32 %v7048_v28  ;;  %v7215_v13 = vsel %vm7212_vm13, %v7214_v34, %v7210_v23  ;;  %vm7224_vm0 = vmor %vm7222_vm15, %vm7223_vm14  ;;  %v7243_v41 = vand.u32 2147483648, %v7048_v28  ;;  %v7241_v30 = vand.u32 2147483647, %v7048_v28 }
0x13bf   : > { %v12482_v7 = vsel %vm1543_vm6, %v7215_v13, %v9549_v1  ;;  %v7219_v24 = vsub.f32 1.0, %v7218_v19  ;;  %9554 = vtanh.f32 %v12450_v55  ;;  %v12487_v15 = vpop.xlane.xlu0 %7789  ;;  %vm7237_vm5 = vweird.f32 %v7048_v28  ;;  %v12496_v19 = vpop.xlane.xlu2 %7768 }
0x13c0   : > { %7376 = vrot.lane.b32.xlu1 %v12482_v7, %s9624_s13  ;;  %v7244_v0 = vor.u32 1.1754944e-38, %v7243_v41  ;;  %vm7242_vm8 = vcmp.eq.f32.partialorder %v7241_v30, 8.507059e+37 }
0x13c1   : > { %v7220_v31 = vmul.f32 %v9547_v46, %v7219_v24 }
0x13c3   : > { %v9551_v14 = vpop.eup %9550  ;;  %v7221_v20 = vadd.f32 %v9547_v46, %v7220_v31  ;;  %v12507_v31 = vpop.xlane.xlu1 %7774 }
0x13c4   : > { %v9553_v45 = vpop.eup %9552  ;;  %v7049_v59 = vadd.f32 1.0, %v9551_v14 }
0x13c5   : > { %v7225_v57 = vsel %vm7224_vm0, %v9547_v46, %v7221_v20  ;;  %v7233_v2 = vmul.f32 %v9553_v45, %v7048_v28  ;;  %v9555_v9 = vpop.eup %9554  ;;  %vm7238_vm4 = vweird.f32 %v9553_v45 }
0x13c6   : > { %9556 = vrcp.f32 %v7049_v59  ;;  %v7230_v55 = vsel %vm7227_vm3, %v7229_v39, %v7225_v57  ;;  %vm7239_vm7 = vmor %vm7237_vm5, %vm7238_vm4  ;;  %v7258_v28 = vand.u32 2147483648, %v7049_v59  ;;  %v7256_v11 = vand.u32 2147483647, %v7049_v59 }
0x13c7   : > { %v12491_v47 = vsel %vm1543_vm6, %v7230_v55, %v9555_v9  ;;  %v7234_v3 = vsub.f32 1.0, %v7233_v2  ;;  %9558 = vtanh.f32 %v12461_v58  ;;  %v12505_v13 = vpop.xlane.xlu0 %7798  ;;  %vm7252_vm11 = vweird.f32 %v7049_v59  ;;  %v12517_v55 = vpop.xlane.xlu2 %7777 }
0x13c8   : > { %7378 = vrot.lane.b32.xlu2 %v12491_v47, %s9624_s13  ;;  %9560 = vtanh.f32 %v12475_v40  ;;  %v7259_v14 = vor.u32 1.1754944e-38, %v7258_v28  ;;  %vm7257_vm1 = vcmp.eq.f32.partialorder %v7256_v11, 8.507059e+37  ;;  %v12883_v40 = vld [vmem:[#allocation51_spill] sm:$0xff] }
0x13c9   : > { %v7235_v12 = vmul.f32 %v9553_v45, %v7234_v3  ;;  %v1405_v57 = vadd.f32 %v12276_v49, %v12883_v40 }
0x13cb   : > { %v7236_v35 = vadd.f32 %v9553_v45, %v7235_v12  ;;  %v12519_v12 = vpop.xlane.xlu1 %7783 }
0x13cc   : > { %v9557_v18 = vpop.eup %9556 }
0x13cd   : > { %v7240_v22 = vsel %vm7239_vm7, %v9553_v45, %v7236_v35  ;;  %v7248_v46 = vmul.f32 %v9557_v18, %v7049_v59  ;;  %v9559_v34 = vpop.eup %9558  ;;  %vm7253_vm10 = vweird.f32 %v9557_v18  ;;  %v12884_v35 = vld [vmem:[#allocation52_spill] sm:$0xff] }
0x13ce   : > { %v7245_v23 = vsel %vm7242_vm8, %v7244_v0, %v7240_v22  ;;  %vm7254_vm12 = vmor %vm7252_vm11, %vm7253_vm10  ;;  %v9561_v45 = vpop.eup %9560 }
0x13cf   : > { %v12500_v58 = vsel %vm1543_vm6, %v7245_v23, %v9559_v34  ;;  %v7249_v1 = vsub.f32 1.0, %v7248_v46  ;;  %v7357_v3 = vpop.permute.xlu0 %7356  ;;  %v12525_v34 = vpop.xlane.xlu2 %7786 }
0x13d0   : > { %7380 = vrot.lane.b32.xlu0 %v12500_v58, %s9624_s13  ;;  %v7404_v30 = vmul.f32 %v7357_v3, %v12319_v8 }
0x13d1   : > { %v7250_v24 = vmul.f32 %v9557_v18, %v7249_v1 }
0x13d3   : > { %v7251_v26 = vadd.f32 %v9557_v18, %v7250_v24  ;;  %v12528_v11 = vpop.xlane.xlu1 %7792 }
0x13d5   : > { %v7255_v20 = vsel %vm7254_vm12, %v9557_v18, %v7251_v26  ;;  %v1407_v18 = vadd.f32 %v12276_v49, %v12884_v35 }
0x13d6   : > { %v7260_v39 = vsel %vm7257_vm1, %v7259_v14, %v7255_v20 }
0x13d7   : > { %v12513_v2 = vsel %vm1543_vm6, %v7260_v39, %v9561_v45  ;;  %v7363_v23 = vpop.permute.xlu0 %7362  ;;  %v12531_v45 = vpop.xlane.xlu2 %7795 }
0x13d8   : > { %7382 = vrot.lane.b32.xlu1 %v12513_v2, %s9624_s13  ;;  %v6967_v9 = vpop.f32.mrf.mxu2  ;;  %v7407_v24 = vmul.f32 %v7363_v23, %v12369_v33 }
0x13d9   : > { %v6986_v59 = vadd.f32 %v6967_v9, %v1405_v57 }
0x13db   : > { %v8493_v41 = vmul.f32 -1.442695, %v6986_v59  ;;  %v12535_v3 = vpop.xlane.xlu1 %7801 }
0x13dd   : > { %9562 = vpow2.f32 %v8493_v41 }
0x13df   : > { %v7369_v49 = vpop.permute.xlu0 %7368 }
0x13e0   : > { %v6969_v0 = vpop.f32.mrf.mxu2  ;;  %7436 = vrot.lane.b32.xlu1 %v7404_v30, %s9624_s13  ;;  %v7410_v40 = vmul.f32 %v7369_v49, %v12395_v60 }
0x13e1   : > { %v6987_v22 = vadd.f32 %v6969_v0, %v1407_v18 }
0x13e3   : > { %v9563_v46 = vpop.eup %9562  ;;  %v8494_v1 = vmul.f32 -1.442695, %v6987_v22 }
0x13e4   : > { %v7050_v28 = vadd.f32 1.0, %v9563_v46 }
0x13e5   : > { %9564 = vpow2.f32 %v8494_v1 }
0x13e6   : > { %9566 = vrcp.f32 %v7050_v28  ;;  %v7273_v9 = vand.u32 2147483648, %v7050_v28  ;;  %v7271_v30 = vand.u32 2147483647, %v7050_v28  ;;  %vm7267_vm14 = vweird.f32 %v7050_v28 }
0x13e8   : > { %7442 = vrot.lane.b32.xlu1 %v7407_v24, %s9624_s13  ;;  %v7274_v0 = vor.u32 1.1754944e-38, %v7273_v9  ;;  %vm7272_vm0 = vcmp.eq.f32.partialorder %v7271_v30, 8.507059e+37 }
0x13eb   : > { %v9565_v26 = vpop.eup %9564 }
0x13ec   : > { %v9567_v14 = vpop.eup %9566  ;;  %v7051_v20 = vadd.f32 1.0, %v9565_v26  ;;  %v12537_v26 = vpop.xlane.xlu2 %7804 }
0x13ed   : > { %v7263_v39 = vmul.f32 %v9567_v14, %v7050_v28  ;;  %vm7268_vm13 = vweird.f32 %v9567_v14 }
0x13ee   : > { %9568 = vrcp.f32 %v7051_v20  ;;  %vm7269_vm15 = vmor %vm7267_vm14, %vm7268_vm13  ;;  %v7288_v28 = vand.u32 2147483648, %v7051_v20  ;;  %vm7282_vm4 = vweird.f32 %v7051_v20 }
0x13ef   : > { %v7264_v57 = vsub.f32 1.0, %v7263_v39  ;;  %9570 = vtanh.f32 %v6986_v59 }
0x13f0   : > { %7448 = vrot.lane.b32.xlu1 %v7410_v40, %s9624_s13  ;;  %9572 = vtanh.f32 %v6987_v22  ;;  %v7286_v40 = vand.u32 2147483647, %v7051_v20  ;;  %v7289_v9 = vor.u32 1.1754944e-38, %v7288_v28 }
0x13f1   : > { %v7265_v41 = vmul.f32 %v9567_v14, %v7264_v57 }
0x13f2   : > { %vm7287_vm7 = vcmp.eq.f32.partialorder %v7286_v40, 8.507059e+37 }
0x13f3   : > { %v7266_v35 = vadd.f32 %v9567_v14, %v7265_v41 }
0x13f4   : > { %v9569_v18 = vpop.eup %9568 }
0x13f5   : > { %v7270_v46 = vsel %vm7269_vm15, %v9567_v14, %v7266_v35  ;;  %v7278_v23 = vmul.f32 %v9569_v18, %v7051_v20  ;;  %v9571_v1 = vpop.eup %9570  ;;  %vm7283_vm3 = vweird.f32 %v9569_v18  ;;  %v7359_v14 = vpop.permute.xlu1 %7358 }
0x13f6   : > { %v7275_v24 = vsel %vm7272_vm0, %v7274_v0, %v7270_v46  ;;  %vm7284_vm5 = vmor %vm7282_vm4, %vm7283_vm3  ;;  %v9573_v30 = vpop.eup %9572  ;;  %v7405_v35 = vmul.f32 %v7359_v14, %v12326_v16  ;;  %v7361_v46 = vpop.permute.xlu2 %7360 }
0x13f7   : > { %v12541_v59 = vsel %vm1543_vm6, %v7275_v24, %v9571_v1  ;;  %v7279_v49 = vsub.f32 1.0, %v7278_v23 }
0x13f8   : > { %7384 = vrot.lane.b32.xlu2 %v12541_v59, %s9624_s13 }
0x13f9   : > { %v7280_v39 = vmul.f32 %v9569_v18, %v7279_v49 }
0x13fb   : > { %v7281_v57 = vadd.f32 %v9569_v18, %v7280_v39 }
0x13fd   : > { %v7285_v41 = vsel %vm7284_vm5, %v9569_v18, %v7281_v57  ;;  %v7365_v23 = vpop.permute.xlu1 %7364  ;;  %v7406_v18 = vmul.f32 %v7361_v46, %v12423_v44 }
0x13fe   : > { %v7290_v0 = vsel %vm7287_vm7, %v7289_v9, %v7285_v41  ;;  %v7408_v20 = vmul.f32 %v7365_v23, %v12381_v51  ;;  %v7367_v1 = vpop.permute.xlu2 %7366 }
0x13ff   : > { %v12548_v22 = vsel %vm1543_vm6, %v7290_v0, %v9573_v30  ;;  %v7409_v10 = vmul.f32 %v7367_v1, %v12433_v54  ;;  %vm7851_vm6 = vcmask 7168  }
0x1400   : > { %7438 = vrot.lane.b32.xlu2 %v7405_v35, %s9624_s13  ;;  %7386 = vrot.lane.b32.xlu0 %v12548_v22, %s9624_s13 }
0x1405   : > { %v7371_v24 = vpop.permute.xlu1 %7370 }
0x1406   : > { %v7411_v49 = vmul.f32 %v7371_v24, %v12414_v27 }
0x1408   : > { %7444 = vrot.lane.b32.xlu2 %v7408_v20, %s9624_s13  ;;  %7440 = vrot.lane.b32.xlu0 %v7406_v18, %s9624_s13  ;;  %v7324_v20 = vmul.f32 %v12319_v8, %v12085_v5  ;;  %v7328_v5 = vmul.f32 %v12381_v51, %v12150_v50 }
0x140a   : > { %v7373_v28 = vpop.permute.xlu2 %7372 }
0x140b   : > { %v7412_v39 = vmul.f32 %v7373_v28, %v12457_v25  ;;  %v7327_v28 = vmul.f32 %v12369_v33, %v12136_v56 }
0x1410   : > { %7450 = vrot.lane.b32.xlu2 %v7411_v49, %s9624_s13  ;;  %7446 = vrot.lane.b32.xlu0 %v7409_v10, %s9624_s13  ;;  %v7325_v49 = vmul.f32 %v12326_v16, %v12097_v42 }
0x1418   : > { %7452 = vrot.lane.b32.xlu0 %v7412_v39, %s9624_s13 }
0x1422   : > { %v7379_v40 = vpop.permute.xlu2 %7378 }
0x1423   : > { %v7415_v14 = vmul.f32 %v7379_v40, %v12491_v47 }
0x1425   : > { %7458 = vrot.lane.b32.xlu0 %v7415_v14, %s9624_s13 }
0x142a   : > { %v7375_v57 = vpop.permute.xlu0 %7374 }
0x142b   : > { %v7413_v9 = vmul.f32 %v7375_v57, %v12470_v17 }
0x142d   : > { %7454 = vrot.lane.b32.xlu1 %v7413_v9, %s9624_s13 }
0x1432   : > { %v7377_v41 = vpop.permute.xlu1 %7376 }
0x1433   : > { %v7414_v30 = vmul.f32 %v7377_v41, %v12482_v7  ;;  %v7330_v41 = vmul.f32 %v12395_v60, %v12183_v43 }
0x1435   : > { %7456 = vrot.lane.b32.xlu2 %v7414_v30, %s9624_s13 }
0x1442   : > { %v7381_v35 = vpop.permute.xlu0 %7380 }
0x1443   : > { %v7416_v0 = vmul.f32 %v7381_v35, %v12500_v58 }
0x1445   : > { %7460 = vrot.lane.b32.xlu1 %v7416_v0, %s9624_s13 }
0x144a   : > { %v7383_v46 = vpop.permute.xlu1 %7382 }
0x144b   : > { %v7417_v23 = vmul.f32 %v7383_v46, %v12513_v2 }
0x144d   : > { %7462 = vrot.lane.b32.xlu2 %v7417_v23, %s9624_s13  ;;  %v7331_v23 = vmul.f32 %v12414_v27, %v12172_v29  ;;  %v7326_v29 = vmul.f32 %v12423_v44, %v12124_v36  ;;  %v7334_v36 = vmul.f32 %v12482_v7, %v12215_v38 }
0x1452   : > { %v7385_v18 = vpop.permute.xlu2 %7384  ;;  %v7437_v1 = vpop.permute.xlu1 %7436 }
0x1453   : > { %v7418_v24 = vmul.f32 %v7385_v18, %v12541_v59  ;;  %v7484_v10 = vadd.f32 %v7437_v1, %v7324_v20 }
0x1455   : > { %9574 = vtanh.f32 %v7484_v10  ;;  %7464 = vrot.lane.b32.xlu0 %v7418_v24, %s9624_s13 }
0x145a   : > { %v7439_v39 = vpop.permute.xlu2 %7438  ;;  %v7443_v40 = vpop.permute.xlu1 %7442 }
0x145b   : > { %v9575_v14 = vpop.eup %9574  ;;  %v7485_v57 = vadd.f32 %v7439_v39, %v7325_v49  ;;  %v7487_v9 = vadd.f32 %v7443_v40, %v7327_v28  ;;  %v7329_v39 = vmul.f32 %v12433_v54, %v12154_v61 }
0x145c   : > { %7532 = vrot.lane.b32.xlu2 %v9575_v14, %s9624_s13 }
0x145d   : > { %9576 = vtanh.f32 %v7485_v57 }
0x145e   : > { %9578 = vtanh.f32 %v7487_v9  ;;  %v7332_v9 = vmul.f32 %v12457_v25, %v12206_v37 }
0x1462   : > { %v7445_v30 = vpop.permute.xlu2 %7444  ;;  %v7449_v42 = vpop.permute.xlu1 %7448 }
0x1463   : > { %v9577_v35 = vpop.eup %9576  ;;  %v7488_v0 = vadd.f32 %v7445_v30, %v7328_v5  ;;  %v7490_v56 = vadd.f32 %v7449_v42, %v7330_v41 }
0x1464   : > { %v9579_v46 = vpop.eup %9578  ;;  %7534 = vrot.lane.b32.xlu0 %v9577_v35, %s9624_s13 }
0x1465   : > { %9580 = vtanh.f32 %v7488_v0  ;;  %7538 = vrot.lane.b32.xlu2 %v9579_v46, %s9624_s13  ;;  %v7335_v0 = vmul.f32 %v12491_v47, %v12199_v21 }
0x1466   : > { %9582 = vtanh.f32 %v7490_v56 }
0x146a   : > { %v7451_v20 = vpop.permute.xlu2 %7450 }
0x146b   : > { %v9581_v50 = vpop.eup %9580  ;;  %v7491_v18 = vadd.f32 %v7451_v20, %v7331_v23  ;;  %v7333_v23 = vmul.f32 %v12470_v17, %v12191_v62  ;;  %v7336_v62 = vmul.f32 %v12500_v58, %v12226_v32 }
0x146c   : > { %v9583_v1 = vpop.eup %9582  ;;  %7540 = vrot.lane.b32.xlu0 %v9581_v50, %s9624_s13 }
0x146d   : > { %9584 = vtanh.f32 %v7491_v18  ;;  %7544 = vrot.lane.b32.xlu2 %v9583_v1, %s9624_s13  ;;  %v7337_v18 = vmul.f32 %v12513_v2, %v12234_v6  ;;  %v7338_v6 = vmul.f32 %v12541_v59, %v12241_v53 }
0x1472   : > { %v7387_v43 = vpop.permute.xlu0 %7386 }
0x1473   : > { %v9585_v24 = vpop.eup %9584  ;;  %v7419_v10 = vmul.f32 %v7387_v43, %v12548_v22 }
0x1474   : > { %7546 = vrot.lane.b32.xlu0 %v9585_v24, %s9624_s13 }
0x1475   : > { %7466 = vrot.lane.b32.xlu1 %v7419_v10, %s9624_s13 }
0x147a   : > { %v7441_v49 = vpop.permute.xlu0 %7440 }
0x147b   : > { %v7486_v28 = vadd.f32 %v7441_v49, %v7326_v29 }
0x147d   : > { %9586 = vtanh.f32 %v7486_v28 }
0x1482   : > { %v7447_v40 = vpop.permute.xlu0 %7446 }
0x1483   : > { %v9587_v14 = vpop.eup %9586  ;;  %v7489_v57 = vadd.f32 %v7447_v40, %v7329_v39 }
0x1484   : > { %7536 = vrot.lane.b32.xlu1 %v9587_v14, %s9624_s13 }
0x1485   : > { %9588 = vtanh.f32 %v7489_v57 }
0x148a   : > { %v7453_v5 = vpop.permute.xlu0 %7452 }
0x148b   : > { %v9589_v41 = vpop.eup %9588  ;;  %v7492_v30 = vadd.f32 %v7453_v5, %v7332_v9 }
0x148c   : > { %7542 = vrot.lane.b32.xlu1 %v9589_v41, %s9624_s13 }
0x148d   : > { %9590 = vtanh.f32 %v7492_v30 }
0x148f   : > { %v7457_v42 = vpop.permute.xlu2 %7456 }
0x1490   : > { %v7494_v61 = vadd.f32 %v7457_v42, %v7334_v36  ;;  %v7339_v36 = vmul.f32 %v12548_v22, %v12248_v52 }
0x1492   : > { %9592 = vtanh.f32 %v7494_v61 }
0x1493   : > { %v9591_v35 = vpop.eup %9590 }
0x1494   : > { %7548 = vrot.lane.b32.xlu1 %v9591_v35, %s9624_s13 }
0x1497   : > { %v7459_v56 = vpop.permute.xlu0 %7458 }
0x1498   : > { %v9593_v37 = vpop.eup %9592  ;;  %v7495_v46 = vadd.f32 %v7459_v56, %v7335_v0 }
0x1499   : > { %7552 = vrot.lane.b32.xlu0 %v9593_v37, %s9624_s13 }
0x149a   : > { %9594 = vtanh.f32 %v7495_v46 }
0x149f   : > { %v7455_v20 = vpop.permute.xlu1 %7454 }
0x14a0   : > { %v9595_v38 = vpop.eup %9594  ;;  %v7493_v50 = vadd.f32 %v7455_v20, %v7333_v23 }
0x14a1   : > { %7554 = vrot.lane.b32.xlu1 %v9595_v38, %s9624_s13 }
0x14a2   : > { %9596 = vtanh.f32 %v7493_v50 }
0x14a7   : > { %v7463_v1 = vpop.permute.xlu2 %7462 }
0x14a8   : > { %v9597_v21 = vpop.eup %9596  ;;  %v7497_v43 = vadd.f32 %v7463_v1, %v7337_v18 }
0x14a9   : > { %7550 = vrot.lane.b32.xlu2 %v9597_v21, %s9624_s13 }
0x14aa   : > { %9598 = vtanh.f32 %v7497_v43 }
0x14b0   : > { %v9599_v24 = vpop.eup %9598 }
0x14b1   : > { %7558 = vrot.lane.b32.xlu0 %v9599_v24, %s9624_s13 }
0x14b6   : > { %v7533_v40 = vpop.permute.xlu2 %7532 }
0x14b7   : > { %v7461_v10 = vpop.permute.xlu1 %7460  ;;  %v7580_v57 = vmul.f32 %v7533_v40, %v12319_v8 }
0x14b8   : > { %v7496_v29 = vadd.f32 %v7461_v10, %v7336_v62 }
0x14b9   : > { %v7602_v32 = vmul.f32 %v12448_v4, %v7580_v57 }
0x14ba   : > { %9600 = vtanh.f32 %v7496_v29 }
0x14bf   : > { %v7539_v9 = vpop.permute.xlu2 %7538 }
0x14c0   : > { %v9601_v49 = vpop.eup %9600  ;;  %v7583_v5 = vmul.f32 %v7539_v9, %v12369_v33 }
0x14c1   : > { %7556 = vrot.lane.b32.xlu2 %v9601_v49, %s9624_s13 }
0x14c2   : > { %v7605_v41 = vmul.f32 %v12448_v4, %v7583_v5 }
0x14c7   : > { %v7465_v28 = vpop.permute.xlu0 %7464  ;;  %v7545_v30 = vpop.permute.xlu2 %7544 }
0x14c8   : > { %v7498_v39 = vadd.f32 %v7465_v28, %v7338_v6  ;;  %v7586_v53 = vmul.f32 %v7545_v30, %v12395_v60 }
0x14ca   : > { %9602 = vtanh.f32 %v7498_v39  ;;  %v7608_v42 = vmul.f32 %v12448_v4, %v7586_v53 }
0x14d0   : > { %v9603_v14 = vpop.eup %9602 }
0x14d1   : > { %7560 = vrot.lane.b32.xlu1 %v9603_v14, %s9624_s13 }
0x14d6   : > { %v7535_v35 = vpop.permute.xlu0 %7534 }
0x14d7   : > { %v7581_v33 = vmul.f32 %v7535_v35, %v12326_v16 }
0x14d9   : > { %7634 = vrot.lane.b32.xlu1 %v7602_v32, %s9625_s18  ;;  %v7603_v60 = vmul.f32 %v12448_v4, %v7581_v33 }
0x14de   : > { %v7541_v56 = vpop.permute.xlu0 %7540 }
0x14df   : > { %v7584_v23 = vmul.f32 %v7541_v56, %v12381_v51 }
0x14e1   : > { %7640 = vrot.lane.b32.xlu1 %v7605_v41, %s9625_s18  ;;  %v7606_v38 = vmul.f32 %v12448_v4, %v7584_v23 }
0x14e6   : > { %v7547_v16 = vpop.permute.xlu0 %7546 }
0x14e7   : > { %v7467_v8 = vpop.permute.xlu1 %7466 }
0x14e8   : > { %v7499_v61 = vadd.f32 %v7467_v8, %v7339_v36 }
0x14e9   : > { %7646 = vrot.lane.b32.xlu1 %v7608_v42, %s9625_s18 }
0x14ea   : > { %9604 = vtanh.f32 %v7499_v61 }
0x14f0   : > { %v9605_v0 = vpop.eup %9604 }
0x14f1   : > { %7562 = vrot.lane.b32.xlu2 %v9605_v0, %s9624_s13 }
0x14f6   : > { %v7537_v37 = vpop.permute.xlu1 %7536 }
0x14f7   : > { %v7582_v46 = vmul.f32 %v7537_v37, %v12423_v44  ;;  %v7587_v44 = vmul.f32 %v7547_v16, %v12414_v27 }
0x14f9   : > { %v7604_v52 = vmul.f32 %v12448_v4, %v7582_v46  ;;  %7636 = vrot.lane.b32.xlu2 %v7603_v60, %s9625_s18  ;;  %v7609_v24 = vmul.f32 %v12448_v4, %v7587_v44 }
0x14fb   : > { %7638 = vrot.lane.b32.xlu0 %v7604_v52, %s9625_s18 }
0x14fe   : > { %v7543_v20 = vpop.permute.xlu1 %7542 }
0x14ff   : > { %v7585_v50 = vmul.f32 %v7543_v20, %v12433_v54 }
0x1501   : > { %v7607_v18 = vmul.f32 %v12448_v4, %v7585_v50  ;;  %7642 = vrot.lane.b32.xlu2 %v7606_v38, %s9625_s18 }
0x1503   : > { %v7551_v1 = vpop.permute.xlu2 %7550  ;;  %7644 = vrot.lane.b32.xlu0 %v7607_v18, %s9625_s18 }
0x1504   : > { %v7589_v21 = vmul.f32 %v7551_v1, %v12470_v17 }
0x1506   : > { %v7611_v51 = vmul.f32 %v12448_v4, %v7589_v21  ;;  %v7549_v43 = vpop.permute.xlu1 %7548 }
0x1507   : > { %v7588_v62 = vmul.f32 %v7549_v43, %v12457_v25  ;;  %v9615_v43 = vld [vmem:[%s12778_s8] ss:$0 sm:$0xff] }
0x1508   : > { %7652 = vrot.lane.b32.xlu1 %v7611_v51, %s9625_s18  ;;  %v7745_v51 = vld [vmem:[%s12271_s21 + $0x78] sm:$0xff] }
0x1509   : > { %v7610_v54 = vmul.f32 %v12448_v4, %v7588_v62  ;;  %7648 = vrot.lane.b32.xlu2 %v7609_v24, %s9625_s18  ;;  %v7765_v24 = vmul.f32 %v9615_v43, %v7745_v51 }
0x150b   : > { %7650 = vrot.lane.b32.xlu0 %v7610_v54, %s9625_s18  ;;  %v7553_v27 = vpop.permute.xlu0 %7552  ;;  %v7812_v62 = vsel %vm7766_vm9, %v7765_v24, 0.0 }
0x150c   : > { %v7590_v10 = vmul.f32 %v7553_v27, %v12482_v7  ;;  %v7743_v27 = vld [vmem:[%s12271_s21 + $0x68] sm:$0xff] }
0x150e   : > { %v7612_v17 = vmul.f32 %v12448_v4, %v7590_v10 }
0x1511   : > { %7654 = vrot.lane.b32.xlu2 %v7612_v17, %s9625_s18  ;;  %v7763_v17 = vmul.f32 %v9615_v43, %v7743_v27 }
0x1513   : > { %v7555_v29 = vpop.permute.xlu1 %7554 }
0x1514   : > { %v7591_v49 = vmul.f32 %v7555_v29, %v12491_v47  ;;  %v7806_v29 = vsel %vm7766_vm9, %v7763_v17, 0.0 }
0x1516   : > { %v7613_v25 = vmul.f32 %v12448_v4, %v7591_v49 }
0x1518   : > { %7656 = vrot.lane.b32.xlu0 %v7613_v25, %s9625_s18  ;;  %v7744_v25 = vld [vmem:[%s12271_s21 + $0x70] sm:$0xff] }
0x151b   : > { %v7557_v6 = vpop.permute.xlu2 %7556 }
0x151c   : > { %v7592_v28 = vmul.f32 %v7557_v6, %v12500_v58 }
0x151e   : > { %v7614_v39 = vmul.f32 %v12448_v4, %v7592_v28  ;;  %v12697_v28 = vld [vmem:[#allocation3] ss:$0 sm:$0xff] }
0x1520   : > { %7658 = vrot.lane.b32.xlu1 %v7614_v39, %s9625_s18 }
0x1523   : > { %v7559_v40 = vpop.permute.xlu0 %7558 }
0x1524   : > { %v7593_v7 = vmul.f32 %v7559_v40, %v12513_v2 }
0x1526   : > { %v7615_v14 = vmul.f32 %v12448_v4, %v7593_v7  ;;  %v7764_v7 = vmul.f32 %v9615_v43, %v7744_v25 }
0x1528   : > { %7660 = vrot.lane.b32.xlu2 %v7615_v14, %s9625_s18 }
0x1543   : > { %v7561_v57 = vpop.permute.xlu1 %7560 }
0x1544   : > { %v7594_v47 = vmul.f32 %v7561_v57, %v12541_v59  ;;  %v7809_v57 = vsel %vm7766_vm9, %v7764_v7, 0.0 }
0x1546   : > { %v7616_v9 = vmul.f32 %v12448_v4, %v7594_v47 }
0x1548   : > { %7662 = vrot.lane.b32.xlu0 %v7616_v9, %s9625_s18 }
0x154b   : > { %v7563_v32 = vpop.permute.xlu2 %7562  ;;  %v7635_v58 = vpop.permute.xlu1 %7634 }
0x154c   : > { %v7595_v5 = vmul.f32 %v7563_v32, %v12548_v22  ;;  %v7682_v30 = vsel %vm1612_vm2, %v7635_v58, 0.0 }
0x154e   : > { %v7617_v41 = vmul.f32 %v12448_v4, %v7595_v5 }
0x1550   : > { %7664 = vrot.lane.b32.xlu1 %v7617_v41, %s9625_s18 }
0x1551   : > { %7683 = vadd.xlane.f32.xlu2 %v7682_v30 }
0x1553   : > { %v7637_v2 = vpop.permute.xlu2 %7636  ;;  %v7641_v53 = vpop.permute.xlu1 %7640 }
0x1554   : > { %v7691_v36 = vsel %vm1612_vm2, %v7641_v53, 0.0  ;;  %v7685_v0 = vsel %vm1612_vm2, %v7637_v2, 0.0 }
0x1559   : > { %7692 = vadd.xlane.f32.xlu2 %v7691_v36 }
0x155b   : > { %v7643_v59 = vpop.permute.xlu2 %7642  ;;  %v7647_v60 = vpop.permute.xlu1 %7646 }
0x155c   : > { %v7694_v42 = vsel %vm1612_vm2, %v7643_v59, 0.0  ;;  %v7700_v52 = vsel %vm1612_vm2, %v7647_v60, 0.0 }
0x1561   : > { %7695 = vadd.xlane.f32.xlu2 %v7694_v42 }
0x1563   : > { %v7649_v8 = vpop.permute.xlu2 %7648 }
0x1564   : > { %v7703_v61 = vsel %vm1612_vm2, %v7649_v8, 0.0 }
0x1569   : > { %7704 = vadd.xlane.f32.xlu2 %v7703_v61 }
0x156b   : > { %v7655_v22 = vpop.permute.xlu2 %7654 }
0x156c   : > { %v7712_v35 = vsel %vm1612_vm2, %v7655_v22, 0.0 }
0x156d   : > { %v7639_v4 = vpop.permute.xlu0 %7638 }
0x156e   : > { %v7688_v56 = vsel %vm1612_vm2, %v7639_v4, 0.0 }
0x1571   : > { %7713 = vadd.xlane.f32.xlu2 %v7712_v35 }
0x1572   : > { %7686 = vadd.xlane.f32.xlu0 %v7685_v0 }
0x1575   : > { %v7645_v33 = vpop.permute.xlu0 %7644 }
0x1576   : > { %v7697_v37 = vsel %vm1612_vm2, %v7645_v33, 0.0 }
0x157a   : > { %7689 = vadd.xlane.f32.xlu1 %v7688_v56  ;;  %7698 = vadd.xlane.f32.xlu0 %v7697_v37  ;;  %v7653_v50 = vpop.permute.xlu1 %7652 }
0x157b   : > { %v7709_v16 = vsel %vm1612_vm2, %v7653_v50, 0.0 }
0x157d   : > { %v7651_v46 = vpop.permute.xlu0 %7650 }
0x157e   : > { %v7706_v23 = vsel %vm1612_vm2, %v7651_v46, 0.0 }
0x1582   : > { %v7661_v20 = vpop.permute.xlu2 %7660  ;;  %7701 = vadd.xlane.f32.xlu1 %v7700_v52  ;;  %7707 = vadd.xlane.f32.xlu0 %v7706_v23 }
0x1583   : > { %v7721_v38 = vsel %vm1612_vm2, %v7661_v20, 0.0 }
0x1584   : > { %7722 = vadd.xlane.f32.xlu2 %v7721_v38 }
0x158a   : > { %7710 = vadd.xlane.f32.xlu1 %v7709_v16  ;;  %v7657_v18 = vpop.permute.xlu0 %7656 }
0x158b   : > { %v7715_v44 = vsel %vm1612_vm2, %v7657_v18, 0.0 }
0x158c   : > { %7716 = vadd.xlane.f32.xlu0 %v7715_v44  ;;  %7813 = vadd.xlane.f32.xlu2 %v7812_v62 }
0x1592   : > { %v7659_v1 = vpop.permute.xlu1 %7658 }
0x1593   : > { %v7718_v21 = vsel %vm1612_vm2, %v7659_v1, 0.0 }
0x1594   : > { %7719 = vadd.xlane.f32.xlu1 %v7718_v21 }
0x15ba   : > { %v7663_v54 = vpop.permute.xlu0 %7662 }
0x15bb   : > { %v7724_v10 = vsel %vm1612_vm2, %v7663_v54, 0.0 }
0x15bc   : > { %7725 = vadd.xlane.f32.xlu0 %v7724_v10 }
0x15c2   : > { %v7665_v49 = vpop.permute.xlu1 %7664 }
0x15c3   : > { %v7727_v6 = vsel %vm1612_vm2, %v7665_v49, 0.0 }
0x15c4   : > { %v7684_v39 = vpop.xlane.xlu2 %7683  ;;  %7728 = vadd.xlane.f32.xlu1 %v7727_v6  ;;  %7807 = vadd.xlane.f32.xlu0 %v7806_v29 }
0x15c5   : > { %v7815_v40 = vadd.f32 %v12496_v19, %v7684_v39 }
0x15c7   : > { %v7835_v14 = vadd.f32 %v12697_v28, %v7815_v40 }
0x15c9   : > { %7852 = vst.msk [vmem:[%s12704_s26] sm:$0xff] %vm7851_vm6, %v7835_v14 }
0x15cc   : > { %v7693_v47 = vpop.xlane.xlu2 %7692  ;;  %7810 = vadd.xlane.f32.xlu1 %v7809_v57 }
0x15cd   : > { %v7818_v19 = vadd.f32 %v12517_v55, %v7693_v47 }
0x15cf   : > { %v7838_v9 = vadd.f32 %v12697_v28, %v7818_v19 }
0x15d1   : > { %7855 = vst.msk [vmem:[%s12704_s26 + $0x18] sm:$0xff] %vm7851_vm6, %v7838_v9 }
0x15d4   : > { %v7696_v32 = vpop.xlane.xlu2 %7695 }
0x15d5   : > { %v7819_v58 = vadd.f32 %v12478_v63, %v7696_v32 }
0x15d7   : > { %v7839_v5 = vadd.f32 %v12697_v28, %v7819_v58 }
0x15d9   : > { %7856 = vst.msk [vmem:[%s12704_s26 + $0x20] sm:$0xff] %vm7851_vm6, %v7839_v5 }
0x15dc   : > { %v7705_v41 = vpop.xlane.xlu2 %7704 }
0x15dd   : > { %v7822_v30 = vadd.f32 %v12487_v15, %v7705_v41 }
0x15df   : > { %v7842_v2 = vadd.f32 %v12697_v28, %v7822_v30 }
0x15e1   : > { %7859 = vst.msk [vmem:[%s12704_s26 + $0x38] sm:$0xff] %vm7851_vm6, %v7842_v2 }
0x15e4   : > { %v7714_v55 = vpop.xlane.xlu2 %7713 }
0x15e5   : > { %v7825_v53 = vadd.f32 %v12505_v13, %v7714_v55  ;;  %v7687_v36 = vpop.xlane.xlu0 %7686 }
0x15e6   : > { %v7816_v59 = vadd.f32 %v12463_v48, %v7687_v36 }
0x15e7   : > { %v7845_v63 = vadd.f32 %v12697_v28, %v7825_v53 }
0x15e8   : > { %v7836_v42 = vadd.f32 %v12697_v28, %v7816_v59 }
0x15e9   : > { %7862 = vst.msk [vmem:[%s12704_s26 + $0x50] sm:$0xff] %vm7851_vm6, %v7845_v63 }
0x15ea   : > { %7853 = vst.msk [vmem:[%s12704_s26 + $0x8] sm:$0xff] %vm7851_vm6, %v7836_v42 }
0x15ed   : > { %v7690_v15 = vpop.xlane.xlu1 %7689  ;;  %v7699_v8 = vpop.xlane.xlu0 %7698 }
0x15ee   : > { %v7817_v61 = vadd.f32 %v12507_v31, %v7690_v15  ;;  %v7820_v22 = vadd.f32 %v12519_v12, %v7699_v8 }
0x15f0   : > { %v7837_v13 = vadd.f32 %v12697_v28, %v7817_v61  ;;  %v7840_v48 = vadd.f32 %v12697_v28, %v7820_v22 }
0x15f2   : > { %7854 = vst.msk [vmem:[%s12704_s26 + $0x10] sm:$0xff] %vm7851_vm6, %v7837_v13 }
0x15f3   : > { %7857 = vst.msk [vmem:[%s12704_s26 + $0x28] sm:$0xff] %vm7851_vm6, %v7840_v48 }
0x15f5   : > { %v7702_v4 = vpop.xlane.xlu1 %7701  ;;  %v7708_v35 = vpop.xlane.xlu0 %7707 }
0x15f6   : > { %v7821_v0 = vadd.f32 %v12525_v34, %v7702_v4  ;;  %v7823_v33 = vadd.f32 %v12528_v11, %v7708_v35 }
0x15f8   : > { %v7841_v31 = vadd.f32 %v12697_v28, %v7821_v0  ;;  %v7843_v12 = vadd.f32 %v12697_v28, %v7823_v33 }
0x15fa   : > { %7858 = vst.msk [vmem:[%s12704_s26 + $0x30] sm:$0xff] %vm7851_vm6, %v7841_v31 }
0x15fb   : > { %7860 = vst.msk [vmem:[%s12704_s26 + $0x40] sm:$0xff] %vm7851_vm6, %v7843_v12 }
0x15fd   : > { %v7711_v56 = vpop.xlane.xlu1 %7710 }
0x15fe   : > { %v7824_v37 = vadd.f32 %v12531_v45, %v7711_v56  ;;  %v7723_v45 = vpop.xlane.xlu2 %7722 }
0x15ff   : > { %v7717_v60 = vpop.xlane.xlu0 %7716 }
0x1600   : > { %v7844_v46 = vadd.f32 %v12697_v28, %v7824_v37  ;;  %v7826_v52 = vadd.f32 %v12535_v3, %v7717_v60 }
0x1602   : > { %7861 = vst.msk [vmem:[%s12704_s26 + $0x48] sm:$0xff] %vm7851_vm6, %v7844_v46  ;;  %v7846_v34 = vadd.f32 %v12697_v28, %v7826_v52 }
0x1604   : > { %7863 = vst.msk [vmem:[%s12704_s26 + $0x58] sm:$0xff] %vm7851_vm6, %v7846_v34 }
0x1606   : > { %v7814_v50 = vpop.xlane.xlu2 %7813 }
0x1607   : > { %v7720_v11 = vpop.xlane.xlu1 %7719 }
0x1608   : > { %v7827_v23 = vadd.f32 %v12537_v26, %v7720_v11 }
0x160a   : > { %v7847_v20 = vadd.f32 %v12697_v28, %v7827_v23 }
0x160c   : > { %7864 = vst.msk [vmem:[%s12704_s26 + $0x60] sm:$0xff] %vm7851_vm6, %v7847_v20 }
0x162f   : > { %v7726_v38 = vpop.xlane.xlu0 %7725 }
0x1637   : > { %v7729_v3 = vpop.xlane.xlu1 %7728  ;;  %v7808_v16 = vpop.xlane.xlu0 %7807 }
0x1638   : > { %v7830_v18 = vadd.f32 %v7814_v50, %v7729_v3  ;;  %v7828_v44 = vadd.f32 %v7808_v16, %v7723_v45 }
0x163a   : > { %v7850_v1 = vadd.f32 %v12697_v28, %v7830_v18  ;;  %v7848_v21 = vadd.f32 %v12697_v28, %v7828_v44 }
0x163c   : > { %7867 = vst.msk [vmem:[%s12704_s26 + $0x78] sm:$0xff] %vm7851_vm6, %v7850_v1 }
0x163d   : > { %7865 = vst.msk [vmem:[%s12704_s26 + $0x68] sm:$0xff] %vm7851_vm6, %v7848_v21 }
0x163f   : > { %v7811_v26 = vpop.xlane.xlu1 %7810 }
0x1640   : > { %v7829_v51 = vadd.f32 %v7811_v26, %v7726_v38 }
0x1642   : > { %v7849_v43 = vadd.f32 %v12697_v28, %v7829_v51 }
0x1644   : > { %7866 = vst.msk [vmem:[%s12704_s26 + $0x70] sm:$0xff] %vm7851_vm6, %v7849_v43 }
0x1645 PF: > { %s22_s15 = sadd.s32 1, %s9622_s15  }
0x1646   : > { %p19_p5 = scmp.ge.s32.totalorder %s22_s15, 4  }
0x1648   :  { %21 = sbr.rel (!%p19_p5) target bundleno = 3 (0x3), region = 106 }

</bundles_post_ra>
